<compile_context>
chip_gen: v5e
topology: v5e:2x2
jax: 0.10.0
libtpu: 0.0.40
codegen_flags: <defaults>
</compile_context>

<pallas_src>
import jax
import jax.numpy as jnp
import numpy as np
from jax.experimental import pallas as pl
from jax.experimental.pallas import tpu as pltpu

EPS = 1e-5  # nn.InstanceNorm2d default


def make_resnet_layer_kernel(use_xlu_roll=True):
    """Build the kernel body.  use_xlu_roll selects pltpu.roll (XLU sublane
    rotate) vs. a concatenate-based shift (conservative fallback)."""

    def kernel(x_ref, w1_ref, w2_ref, o_ref):
        # x_ref block: (Nb, H, W, C) NHWC -- channels on the lane dim.
        Nb, H, W, C = x_ref.shape
        HW = H * W
        R = Nb * HW
        mm_dtype = w1_ref.dtype  # bf16 in the fast path, f32 in the exact path

        # W-column masks for the reflect-pad boundary fix-up (built once,
        # shared by both convolutions).
        wcol = jax.lax.broadcasted_iota(jnp.int32, (1, 1, W, 1), 2)
        first_col = wcol == 0
        last_col = wcol == W - 1

        def shift_rows(flat, shift):
            # shifted[r] = flat[r - shift] with wrap-around; the wrapped rows
            # are exactly the boundary columns overwritten by the reflect
            # fix-up below, so the wrap never leaks into the result.
            s = shift % R
            if use_xlu_roll:
                return pltpu.roll(flat, shift=s, axis=0)
            return jnp.concatenate([flat[R - s:], flat[:R - s]], axis=0)

        def conv3x3(img, w_ref):
            # img: (Nb, H, W, C).  Returns the conv output as (R, C) float32.
            # Reflect pad along H (cheap leading-dim concat) and stack the three
            # row taps along channels (lane concat) -> (Nb, H, W, 3C).
            xh = jnp.concatenate([img[:, 1:2], img, img[:, H - 2:H - 1]], axis=1)
            rows = jnp.concatenate([xh[:, dy:dy + H] for dy in range(3)], axis=-1)
            flat = rows.reshape(R, 3 * C)

            def mm(a, w):  # MXU matmul, f32 accumulation
                return jnp.dot(a.astype(mm_dtype), w,
                               preferred_element_type=jnp.float32)

            # Center tap (kw = 1): unshifted rows.
            y = mm(flat, w_ref[1])

            # Left tap (kw = 0): input column j-1; reflect j==0 -> column 1.
            up = shift_rows(flat, 1).reshape(Nb, H, W, 3 * C)
            left = jnp.where(first_col, rows[:, :, 1:2, :], up)
            y += mm(left.reshape(R, 3 * C), w_ref[0])

            # Right tap (kw = 2): input column j+1; reflect j==W-1 -> col W-2.
            dn = shift_rows(flat, -1).reshape(Nb, H, W, 3 * C)
            right = jnp.where(last_col, rows[:, :, W - 2:W - 1, :], dn)
            y += mm(right.reshape(R, 3 * C), w_ref[2])

            # Conv bias intentionally omitted: the non-affine InstanceNorm that
            # follows subtracts the per-channel spatial mean, so a per-channel
            # bias cancels exactly (IN(conv + b) == IN(conv)).
            return y

        def instance_norm(y):
            # y: (R, C) f32 -> per-image, per-channel stats over HW.  Two-pass
            # (mean, then centered second moment) in f32: numerically safer
            # than E[y^2]-E[y]^2 and the centered tensor is reused below.
            y = y.reshape(Nb, HW, C)
            mean = jnp.mean(y, axis=1, keepdims=True)
            cen = y - mean
            var = jnp.mean(cen * cen, axis=1, keepdims=True)
            return (cen * jax.lax.rsqrt(var + EPS)).reshape(R, C)

        h = conv3x3(x_ref[...], w1_ref)                      # (R, C) f32
        h = jnp.maximum(instance_norm(h), 0.0)               # IN + ReLU
        h = conv3x3(h.reshape(Nb, H, W, C), w2_ref)
        h = instance_norm(h)
        # Residual read straight from the input block only here (no long-lived
        # up-cast copy of x held across the convolutions).
        res = x_ref[...].reshape(R, C).astype(jnp.float32)
        out = jnp.maximum(h + res, 0.0)
        o_ref[...] = out.reshape(Nb, H, W, C).astype(o_ref.dtype)

    return kernel


def _vmem_limit_bytes():
    """Generation-aware scoped-VMEM limit: ~96 MiB on 128-MiB parts (v5e/v6e),
    ~48 MiB on 64-MiB v7x, leaving headroom for the double-buffered I/O."""
    try:
        cap = int(pltpu.get_tpu_info().vmem_capacity_bytes)
    except Exception:  # no TPU / older API -> conservative (v7x per-TC) value
        cap = 64 * 1024 * 1024
    return int(max(cap * 3 // 4, cap - (32 << 20)))


def _pick_block_images(N, H, W, C, vmem_limit):
    """Largest divisor of N whose rough working set fits the scoped-VMEM limit,
    keeping >=2 grid steps when N>=2 so the batch axis can shard across both
    TensorCores on v7x (dimension_semantics=("parallel",))."""
    # ~3C f32 row-stack + one shifted operand + f32 accumulators + double-
    # buffered f32 I/O blocks  ~=  56 B per H*W*C element (conservative).
    per_image = H * W * C * 56
    budget = max(vmem_limit - (8 << 20), vmem_limit // 2)  # weights/scratch headroom
    nb = 1
    for d in range(1, N + 1):
        if N % d:
            continue
        if d * per_image > budget:
            break
        if N >= 2 and (N // d) < 2:
            continue
        nb = d
    return nb


def resnet_layer(x_nchw, w1, b1, w2, b2, *, block_images=None,
                 matmul_dtype=jnp.bfloat16):
    """x_nchw: (N, C, H, W); w*: (C, C, 3, 3) PyTorch (O, I, kh, kw); b*: (C,).

    matmul_dtype: dtype of the MXU operands (bf16 by default; accumulation and
    all InstanceNorm / residual math stay in f32).  b1/b2 are accepted for API
    parity with the PyTorch module, but a per-channel conv bias is cancelled
    exactly by the non-affine InstanceNorm, so they are never sent to the
    kernel.
    """
    N, C, H, W = x_nchw.shape
    x = jnp.transpose(x_nchw, (0, 2, 3, 1))            # -> NHWC (channels on lanes)
    del b1, b2                                          # dead under non-affine IN

    # Weights -> (3, 3C, C) kw-panels matching the row-stack layout:
    # (O, I, kh, kw) -> (kw, kh, I, O) -> reshape; row index inside a panel is
    # kh*C + c_in, column index is c_out.
    def prep_w(w):
        return jnp.transpose(w, (3, 2, 1, 0)).reshape(3, 3 * C, C).astype(matmul_dtype)
    w1k, w2k = prep_w(w1), prep_w(w2)

    vmem_limit = _vmem_limit_bytes()
    Nb = block_images if block_images is not None else _pick_block_images(
        N, H, W, C, vmem_limit)
    assert N % Nb == 0
    grid = (N // Nb,)
    # TODO(synk): H-tiled variant (1-row halo + cross-tile InstanceNorm stats)
    # for feature maps too large for whole-image blocks on v7x's 64 MiB VMEM,
    # and an H-split second grid axis so both v7x TensorCores get work when
    # N == 1.

    def build(use_xlu_roll, single_buffer_weights):
        # Constant index_map -> weight blocks never change across grid steps;
        # Buffered(1) removes their second (dead) pipeline buffer.
        wkw = dict(pipeline_mode=pl.Buffered(1)) if single_buffer_weights else {}
        w_specs = [pl.BlockSpec((3, 3 * C, C), lambda n: (0, 0, 0), **wkw)
                   for _ in range(2)]
        return pl.pallas_call(
            make_resnet_layer_kernel(use_xlu_roll),
            out_shape=jax.ShapeDtypeStruct((N, H, W, C), x.dtype),
            grid_spec=pltpu.PrefetchScalarGridSpec(
                num_scalar_prefetch=0,
                grid=grid,
                in_specs=[pl.BlockSpec((Nb, H, W, C), lambda n: (n, 0, 0, 0))]
                         + w_specs,
                out_specs=pl.BlockSpec((Nb, H, W, C), lambda n: (n, 0, 0, 0)),
            ),
            compiler_params=pltpu.CompilerParams(
                dimension_semantics=("parallel",),
                vmem_limit_bytes=vmem_limit,
            ),
        )

    try:
        out = build(use_xlu_roll=True, single_buffer_weights=True)(x, w1k, w2k)
    except Exception:
        # Conservative fallback for JAX/Mosaic versions that reject
        # pipeline_mode=pl.Buffered(1) or the sublane pltpu.roll lowering.
        out = build(use_xlu_roll=False, single_buffer_weights=False)(x, w1k, w2k)
    return jnp.transpose(out, (0, 3, 1, 2))             # back to NCHW


def resnet_layer_ref(x, w1, b1, w2, b2):
    """Pure-JAX reference (NCHW), mirrors the PyTorch forward exactly
    (including the conv biases)."""
    def conv(z, w, b):
        zp = jnp.pad(z, ((0, 0), (0, 0), (1, 1), (1, 1)), mode="reflect")
        y = jax.lax.conv_general_dilated(
            zp, w, window_strides=(1, 1), padding="VALID",
            dimension_numbers=("NCHW", "OIHW", "NCHW"))
        return y + b.reshape(1, -1, 1, 1)

    def inorm(y):
        mean = jnp.mean(y, axis=(2, 3), keepdims=True)
        var = jnp.mean((y - mean) ** 2, axis=(2, 3), keepdims=True)
        return (y - mean) / jnp.sqrt(var + EPS)

    h = jax.nn.relu(inorm(conv(x, w1, b1)))
    h = inorm(conv(h, w2, b2))
    return jax.nn.relu(h + x)


if __name__ == "__main__":
    filters, ksize = 4, 3
    N, H, W = 2, 16, 16

    key = jax.random.PRNGKey(0)
    kx, kw1, kb1, kw2, kb2 = jax.random.split(key, 5)

    x = jax.random.normal(kx, (N, filters, H, W), jnp.float32)

    # Deterministic parameter init (PyTorch-style uniform bound = 1/sqrt(fan_in)).
    fan_in = filters * ksize * ksize
    bound = 1.0 / np.sqrt(fan_in)
    w1 = jax.random.uniform(kw1, (filters, filters, ksize, ksize),
                            jnp.float32, -bound, bound)
    b1 = jax.random.uniform(kb1, (filters,), jnp.float32, -bound, bound)
    w2 = jax.random.uniform(kw2, (filters, filters, ksize, ksize),
                            jnp.float32, -bound, bound)
    b2 = jax.random.uniform(kb2, (filters,), jnp.float32, -bound, bound)

    ref = jax.block_until_ready(resnet_layer_ref(x, w1, b1, w2, b2))

    # Exact-semantics check: f32 MXU operands must match the reference tightly
    # (also validates that dropping the conv biases is exact under IN).
    out_f32 = jax.block_until_ready(
        resnet_layer(x, w1, b1, w2, b2, matmul_dtype=jnp.float32))
    np.testing.assert_allclose(np.asarray(out_f32), np.asarray(ref),
                               rtol=1e-4, atol=1e-4)

    # Production path: bf16 MXU operands, f32 accumulation / IN statistics.
    out_bf16 = jax.block_until_ready(resnet_layer(x, w1, b1, w2, b2))
    np.testing.assert_allclose(np.asarray(out_bf16), np.asarray(ref),
                               rtol=3e-2, atol=5e-2)

    print("KERNEL_OK")
</pallas_src>

<mosaic_0001>
module attributes {stable_mosaic.version = 11 : i64} {
  func.func @kernel(%arg0: i32, %arg1: memref<1x16x16x4xf32, #tpu.memory_space<vmem>>, %arg2: memref<3x12x4xf32, #tpu.memory_space<vmem>>, %arg3: memref<3x12x4xf32, #tpu.memory_space<vmem>>, %arg4: memref<1x16x16x4xf32, #tpu.memory_space<vmem>>) attributes {dimension_semantics = [#tpu.dimension_semantics<parallel>], iteration_bounds = array<i64: 2>, scalar_prefetch = 0 : i64, scratch_operands = 0 : i64, tpu.core_type = #tpu.core_type<tc>, window_params = [{transform_indices = @transform_0, window_bounds = array<i64: 1, 16, 16, 4>}, {pipeline_mode = #tpu.pipeline_mode<synchronous>, transform_indices = @transform_1, window_bounds = array<i64: 3, 12, 4>}, {pipeline_mode = #tpu.pipeline_mode<synchronous>, transform_indices = @transform_2, window_bounds = array<i64: 3, 12, 4>}, {transform_indices = @transform_3, window_bounds = array<i64: 1, 16, 16, 4>}]} {
    %0 = tpu.iota {dimensions = array<i32: 2>} : vector<1x1x16x1xi32>
    %c0_i32 = arith.constant 0 : i32
    %1 = vector.broadcast %c0_i32 : i32 to vector<1x1x16x1xi32>
    %2 = arith.cmpi eq, %0, %1 : vector<1x1x16x1xi32>
    %c15_i32 = arith.constant 15 : i32
    %3 = vector.broadcast %c15_i32 : i32 to vector<1x1x16x1xi32>
    %4 = arith.cmpi eq, %0, %3 : vector<1x1x16x1xi32>
    %c0 = arith.constant 0 : index
    %c0_0 = arith.constant 0 : index
    %c0_1 = arith.constant 0 : index
    %c0_2 = arith.constant 0 : index
    %5 = vector.load %arg1[%c0, %c0_0, %c0_1, %c0_2] : memref<1x16x16x4xf32, #tpu.memory_space<vmem>>, vector<1x16x16x4xf32>
    %6 = vector.extract_strided_slice %5 {offsets = [0, 1, 0, 0], sizes = [1, 1, 16, 4], strides = [1, 1, 1, 1]} : vector<1x16x16x4xf32> to vector<1x1x16x4xf32>
    %7 = vector.extract_strided_slice %5 {offsets = [0, 14, 0, 0], sizes = [1, 1, 16, 4], strides = [1, 1, 1, 1]} : vector<1x16x16x4xf32> to vector<1x1x16x4xf32>
    %8 = tpu.concatenate %6, %5, %7 in 1 : vector<1x1x16x4xf32>, vector<1x16x16x4xf32>, vector<1x1x16x4xf32> -> vector<1x18x16x4xf32>
    %9 = vector.extract_strided_slice %8 {offsets = [0, 0, 0, 0], sizes = [1, 16, 16, 4], strides = [1, 1, 1, 1]} : vector<1x18x16x4xf32> to vector<1x16x16x4xf32>
    %10 = vector.extract_strided_slice %8 {offsets = [0, 1, 0, 0], sizes = [1, 16, 16, 4], strides = [1, 1, 1, 1]} : vector<1x18x16x4xf32> to vector<1x16x16x4xf32>
    %11 = vector.extract_strided_slice %8 {offsets = [0, 2, 0, 0], sizes = [1, 16, 16, 4], strides = [1, 1, 1, 1]} : vector<1x18x16x4xf32> to vector<1x16x16x4xf32>
    %12 = tpu.concatenate %9, %10, %11 in 3 : vector<1x16x16x4xf32>, vector<1x16x16x4xf32>, vector<1x16x16x4xf32> -> vector<1x16x16x12xf32>
    %13 = vector.shape_cast %12 : vector<1x16x16x12xf32> to vector<256x12xf32>
    %c1 = arith.constant 1 : index
    %c0_3 = arith.constant 0 : index
    %c0_4 = arith.constant 0 : index
    %14 = vector.load %arg2[%c1, %c0_3, %c0_4] : memref<3x12x4xf32, #tpu.memory_space<vmem>>, vector<1x12x4xf32>
    %15 = vector.shape_cast %14 : vector<1x12x4xf32> to vector<12x4xf32>
    %cst = arith.constant dense<0.000000e+00> : vector<256x4xf32>
    %16 = tpu.matmul %13, %15, %cst {dimension_numbers = #tpu.dot_dimension_numbers<[1], [0], [0], [1], [0, 0, 1, 1], [], []>} : vector<256x12xf32>, vector<12x4xf32>, vector<256x4xf32> -> vector<256x4xf32>
    %c1_i32 = arith.constant 1 : i32
    %17 = tpu.dynamic_rotate %13 by %c1_i32 dim 0 : vector<256x12xf32>, i32 -> vector<256x12xf32>
    %18 = vector.shape_cast %17 : vector<256x12xf32> to vector<1x16x16x12xf32>
    %19 = vector.extract_strided_slice %12 {offsets = [0, 0, 1, 0], sizes = [1, 16, 1, 12], strides = [1, 1, 1, 1]} : vector<1x16x16x12xf32> to vector<1x16x1x12xf32>
    %20 = vector.shape_cast %2 : vector<1x1x16x1xi1> to vector<1x1x16x1xi1>
    %21 = vector.broadcast %20 : vector<1x1x16x1xi1> to vector<1x16x16x12xi1>
    %22 = vector.shape_cast %19 : vector<1x16x1x12xf32> to vector<1x16x1x12xf32>
    %23 = vector.broadcast %22 : vector<1x16x1x12xf32> to vector<1x16x16x12xf32>
    %24 = arith.select %21, %23, %18 : vector<1x16x16x12xi1>, vector<1x16x16x12xf32>
    %25 = vector.shape_cast %24 : vector<1x16x16x12xf32> to vector<256x12xf32>
    %c0_5 = arith.constant 0 : index
    %c0_6 = arith.constant 0 : index
    %c0_7 = arith.constant 0 : index
    %26 = vector.load %arg2[%c0_5, %c0_6, %c0_7] : memref<3x12x4xf32, #tpu.memory_space<vmem>>, vector<1x12x4xf32>
    %27 = vector.shape_cast %26 : vector<1x12x4xf32> to vector<12x4xf32>
    %cst_8 = arith.constant dense<0.000000e+00> : vector<256x4xf32>
    %28 = tpu.matmul %25, %27, %cst_8 {dimension_numbers = #tpu.dot_dimension_numbers<[1], [0], [0], [1], [0, 0, 1, 1], [], []>} : vector<256x12xf32>, vector<12x4xf32>, vector<256x4xf32> -> vector<256x4xf32>
    %29 = arith.addf %16, %28 : vector<256x4xf32>
    %c255_i32 = arith.constant 255 : i32
    %30 = tpu.dynamic_rotate %13 by %c255_i32 dim 0 : vector<256x12xf32>, i32 -> vector<256x12xf32>
    %31 = vector.shape_cast %30 : vector<256x12xf32> to vector<1x16x16x12xf32>
    %32 = vector.extract_strided_slice %12 {offsets = [0, 0, 14, 0], sizes = [1, 16, 1, 12], strides = [1, 1, 1, 1]} : vector<1x16x16x12xf32> to vector<1x16x1x12xf32>
    %33 = vector.shape_cast %4 : vector<1x1x16x1xi1> to vector<1x1x16x1xi1>
    %34 = vector.broadcast %33 : vector<1x1x16x1xi1> to vector<1x16x16x12xi1>
    %35 = vector.shape_cast %32 : vector<1x16x1x12xf32> to vector<1x16x1x12xf32>
    %36 = vector.broadcast %35 : vector<1x16x1x12xf32> to vector<1x16x16x12xf32>
    %37 = arith.select %34, %36, %31 : vector<1x16x16x12xi1>, vector<1x16x16x12xf32>
    %38 = vector.shape_cast %37 : vector<1x16x16x12xf32> to vector<256x12xf32>
    %c2 = arith.constant 2 : index
    %c0_9 = arith.constant 0 : index
    %c0_10 = arith.constant 0 : index
    %39 = vector.load %arg2[%c2, %c0_9, %c0_10] : memref<3x12x4xf32, #tpu.memory_space<vmem>>, vector<1x12x4xf32>
    %40 = vector.shape_cast %39 : vector<1x12x4xf32> to vector<12x4xf32>
    %cst_11 = arith.constant dense<0.000000e+00> : vector<256x4xf32>
    %41 = tpu.matmul %38, %40, %cst_11 {dimension_numbers = #tpu.dot_dimension_numbers<[1], [0], [0], [1], [0, 0, 1, 1], [], []>} : vector<256x12xf32>, vector<12x4xf32>, vector<256x4xf32> -> vector<256x4xf32>
    %42 = arith.addf %29, %41 : vector<256x4xf32>
    %43 = vector.shape_cast %42 : vector<256x4xf32> to vector<1x256x4xf32>
    %cst_12 = arith.constant dense<0.000000e+00> : vector<1x4xf32>
    %44 = vector.multi_reduction <add>, %43, %cst_12 [1] : vector<1x256x4xf32> to vector<1x4xf32>
    %45 = vector.shape_cast %44 : vector<1x4xf32> to vector<1x1x4xf32>
    %cst_13 = arith.constant 2.560000e+02 : f32
    %46 = vector.broadcast %cst_13 : f32 to vector<1x1x4xf32>
    %47 = arith.divf %45, %46 : vector<1x1x4xf32>
    %48 = vector.broadcast %47 : vector<1x1x4xf32> to vector<1x256x4xf32>
    %49 = arith.subf %43, %48 : vector<1x256x4xf32>
    %50 = arith.mulf %49, %49 : vector<1x256x4xf32>
    %cst_14 = arith.constant dense<0.000000e+00> : vector<1x4xf32>
    %51 = vector.multi_reduction <add>, %50, %cst_14 [1] : vector<1x256x4xf32> to vector<1x4xf32>
    %52 = vector.shape_cast %51 : vector<1x4xf32> to vector<1x1x4xf32>
    %cst_15 = arith.constant 2.560000e+02 : f32
    %53 = vector.broadcast %cst_15 : f32 to vector<1x1x4xf32>
    %54 = arith.divf %52, %53 : vector<1x1x4xf32>
    %cst_16 = arith.constant 9.99999974E-6 : f32
    %55 = vector.broadcast %cst_16 : f32 to vector<1x1x4xf32>
    %56 = arith.addf %54, %55 : vector<1x1x4xf32>
    %57 = math.rsqrt %56 : vector<1x1x4xf32>
    %58 = vector.broadcast %57 : vector<1x1x4xf32> to vector<1x256x4xf32>
    %59 = arith.mulf %49, %58 : vector<1x256x4xf32>
    %60 = vector.shape_cast %59 : vector<1x256x4xf32> to vector<256x4xf32>
    %cst_17 = arith.constant 0.000000e+00 : f32
    %61 = vector.broadcast %cst_17 : f32 to vector<256x4xf32>
    %62 = arith.maximumf %60, %61 : vector<256x4xf32>
    %63 = vector.shape_cast %62 : vector<256x4xf32> to vector<1x16x16x4xf32>
    %64 = vector.extract_strided_slice %63 {offsets = [0, 1, 0, 0], sizes = [1, 1, 16, 4], strides = [1, 1, 1, 1]} : vector<1x16x16x4xf32> to vector<1x1x16x4xf32>
    %65 = vector.extract_strided_slice %63 {offsets = [0, 14, 0, 0], sizes = [1, 1, 16, 4], strides = [1, 1, 1, 1]} : vector<1x16x16x4xf32> to vector<1x1x16x4xf32>
    %66 = tpu.concatenate %64, %63, %65 in 1 : vector<1x1x16x4xf32>, vector<1x16x16x4xf32>, vector<1x1x16x4xf32> -> vector<1x18x16x4xf32>
    %67 = vector.extract_strided_slice %66 {offsets = [0, 0, 0, 0], sizes = [1, 16, 16, 4], strides = [1, 1, 1, 1]} : vector<1x18x16x4xf32> to vector<1x16x16x4xf32>
    %68 = vector.extract_strided_slice %66 {offsets = [0, 1, 0, 0], sizes = [1, 16, 16, 4], strides = [1, 1, 1, 1]} : vector<1x18x16x4xf32> to vector<1x16x16x4xf32>
    %69 = vector.extract_strided_slice %66 {offsets = [0, 2, 0, 0], sizes = [1, 16, 16, 4], strides = [1, 1, 1, 1]} : vector<1x18x16x4xf32> to vector<1x16x16x4xf32>
    %70 = tpu.concatenate %67, %68, %69 in 3 : vector<1x16x16x4xf32>, vector<1x16x16x4xf32>, vector<1x16x16x4xf32> -> vector<1x16x16x12xf32>
    %71 = vector.shape_cast %70 : vector<1x16x16x12xf32> to vector<256x12xf32>
    %c1_18 = arith.constant 1 : index
    %c0_19 = arith.constant 0 : index
    %c0_20 = arith.constant 0 : index
    %72 = vector.load %arg3[%c1_18, %c0_19, %c0_20] : memref<3x12x4xf32, #tpu.memory_space<vmem>>, vector<1x12x4xf32>
    %73 = vector.shape_cast %72 : vector<1x12x4xf32> to vector<12x4xf32>
    %cst_21 = arith.constant dense<0.000000e+00> : vector<256x4xf32>
    %74 = tpu.matmul %71, %73, %cst_21 {dimension_numbers = #tpu.dot_dimension_numbers<[1], [0], [0], [1], [0, 0, 1, 1], [], []>} : vector<256x12xf32>, vector<12x4xf32>, vector<256x4xf32> -> vector<256x4xf32>
    %c1_i32_22 = arith.constant 1 : i32
    %75 = tpu.dynamic_rotate %71 by %c1_i32_22 dim 0 : vector<256x12xf32>, i32 -> vector<256x12xf32>
    %76 = vector.shape_cast %75 : vector<256x12xf32> to vector<1x16x16x12xf32>
    %77 = vector.extract_strided_slice %70 {offsets = [0, 0, 1, 0], sizes = [1, 16, 1, 12], strides = [1, 1, 1, 1]} : vector<1x16x16x12xf32> to vector<1x16x1x12xf32>
    %78 = vector.shape_cast %2 : vector<1x1x16x1xi1> to vector<1x1x16x1xi1>
    %79 = vector.broadcast %78 : vector<1x1x16x1xi1> to vector<1x16x16x12xi1>
    %80 = vector.shape_cast %77 : vector<1x16x1x12xf32> to vector<1x16x1x12xf32>
    %81 = vector.broadcast %80 : vector<1x16x1x12xf32> to vector<1x16x16x12xf32>
    %82 = arith.select %79, %81, %76 : vector<1x16x16x12xi1>, vector<1x16x16x12xf32>
    %83 = vector.shape_cast %82 : vector<1x16x16x12xf32> to vector<256x12xf32>
    %c0_23 = arith.constant 0 : index
    %c0_24 = arith.constant 0 : index
    %c0_25 = arith.constant 0 : index
    %84 = vector.load %arg3[%c0_23, %c0_24, %c0_25] : memref<3x12x4xf32, #tpu.memory_space<vmem>>, vector<1x12x4xf32>
    %85 = vector.shape_cast %84 : vector<1x12x4xf32> to vector<12x4xf32>
    %cst_26 = arith.constant dense<0.000000e+00> : vector<256x4xf32>
    %86 = tpu.matmul %83, %85, %cst_26 {dimension_numbers = #tpu.dot_dimension_numbers<[1], [0], [0], [1], [0, 0, 1, 1], [], []>} : vector<256x12xf32>, vector<12x4xf32>, vector<256x4xf32> -> vector<256x4xf32>
    %87 = arith.addf %74, %86 : vector<256x4xf32>
    %c255_i32_27 = arith.constant 255 : i32
    %88 = tpu.dynamic_rotate %71 by %c255_i32_27 dim 0 : vector<256x12xf32>, i32 -> vector<256x12xf32>
    %89 = vector.shape_cast %88 : vector<256x12xf32> to vector<1x16x16x12xf32>
    %90 = vector.extract_strided_slice %70 {offsets = [0, 0, 14, 0], sizes = [1, 16, 1, 12], strides = [1, 1, 1, 1]} : vector<1x16x16x12xf32> to vector<1x16x1x12xf32>
    %91 = vector.shape_cast %4 : vector<1x1x16x1xi1> to vector<1x1x16x1xi1>
    %92 = vector.broadcast %91 : vector<1x1x16x1xi1> to vector<1x16x16x12xi1>
    %93 = vector.shape_cast %90 : vector<1x16x1x12xf32> to vector<1x16x1x12xf32>
    %94 = vector.broadcast %93 : vector<1x16x1x12xf32> to vector<1x16x16x12xf32>
    %95 = arith.select %92, %94, %89 : vector<1x16x16x12xi1>, vector<1x16x16x12xf32>
    %96 = vector.shape_cast %95 : vector<1x16x16x12xf32> to vector<256x12xf32>
    %c2_28 = arith.constant 2 : index
    %c0_29 = arith.constant 0 : index
    %c0_30 = arith.constant 0 : index
    %97 = vector.load %arg3[%c2_28, %c0_29, %c0_30] : memref<3x12x4xf32, #tpu.memory_space<vmem>>, vector<1x12x4xf32>
    %98 = vector.shape_cast %97 : vector<1x12x4xf32> to vector<12x4xf32>
    %cst_31 = arith.constant dense<0.000000e+00> : vector<256x4xf32>
    %99 = tpu.matmul %96, %98, %cst_31 {dimension_numbers = #tpu.dot_dimension_numbers<[1], [0], [0], [1], [0, 0, 1, 1], [], []>} : vector<256x12xf32>, vector<12x4xf32>, vector<256x4xf32> -> vector<256x4xf32>
    %100 = arith.addf %87, %99 : vector<256x4xf32>
    %101 = vector.shape_cast %100 : vector<256x4xf32> to vector<1x256x4xf32>
    %cst_32 = arith.constant dense<0.000000e+00> : vector<1x4xf32>
    %102 = vector.multi_reduction <add>, %101, %cst_32 [1] : vector<1x256x4xf32> to vector<1x4xf32>
    %103 = vector.shape_cast %102 : vector<1x4xf32> to vector<1x1x4xf32>
    %cst_33 = arith.constant 2.560000e+02 : f32
    %104 = vector.broadcast %cst_33 : f32 to vector<1x1x4xf32>
    %105 = arith.divf %103, %104 : vector<1x1x4xf32>
    %106 = vector.broadcast %105 : vector<1x1x4xf32> to vector<1x256x4xf32>
    %107 = arith.subf %101, %106 : vector<1x256x4xf32>
    %108 = arith.mulf %107, %107 : vector<1x256x4xf32>
    %cst_34 = arith.constant dense<0.000000e+00> : vector<1x4xf32>
    %109 = vector.multi_reduction <add>, %108, %cst_34 [1] : vector<1x256x4xf32> to vector<1x4xf32>
    %110 = vector.shape_cast %109 : vector<1x4xf32> to vector<1x1x4xf32>
    %cst_35 = arith.constant 2.560000e+02 : f32
    %111 = vector.broadcast %cst_35 : f32 to vector<1x1x4xf32>
    %112 = arith.divf %110, %111 : vector<1x1x4xf32>
    %cst_36 = arith.constant 9.99999974E-6 : f32
    %113 = vector.broadcast %cst_36 : f32 to vector<1x1x4xf32>
    %114 = arith.addf %112, %113 : vector<1x1x4xf32>
    %115 = math.rsqrt %114 : vector<1x1x4xf32>
    %116 = vector.broadcast %115 : vector<1x1x4xf32> to vector<1x256x4xf32>
    %117 = arith.mulf %107, %116 : vector<1x256x4xf32>
    %118 = vector.shape_cast %117 : vector<1x256x4xf32> to vector<256x4xf32>
    %c0_37 = arith.constant 0 : index
    %c0_38 = arith.constant 0 : index
    %c0_39 = arith.constant 0 : index
    %c0_40 = arith.constant 0 : index
    %119 = vector.load %arg1[%c0_37, %c0_38, %c0_39, %c0_40] : memref<1x16x16x4xf32, #tpu.memory_space<vmem>>, vector<1x16x16x4xf32>
    %120 = vector.shape_cast %119 : vector<1x16x16x4xf32> to vector<256x4xf32>
    %121 = arith.addf %118, %120 : vector<256x4xf32>
    %cst_41 = arith.constant 0.000000e+00 : f32
    %122 = vector.broadcast %cst_41 : f32 to vector<256x4xf32>
    %123 = arith.maximumf %121, %122 : vector<256x4xf32>
    %124 = vector.shape_cast %123 : vector<256x4xf32> to vector<1x16x16x4xf32>
    %c0_42 = arith.constant 0 : index
    %c0_43 = arith.constant 0 : index
    %c0_44 = arith.constant 0 : index
    %c0_45 = arith.constant 0 : index
    %125 = vector.load %arg4[%c0_42, %c0_43, %c0_44, %c0_45] : memref<1x16x16x4xf32, #tpu.memory_space<vmem>>, vector<1x16x16x4xf32>
    tpu.vector_store %arg4[%c0_42, %c0_43, %c0_44, %c0_45], %124 {strides = array<i32>} : memref<1x16x16x4xf32, #tpu.memory_space<vmem>>, vector<1x16x16x4xf32>,
    return
  }
  func.func @transform_0(%arg0: i32) -> (i32, i32, i32, i32) {
    %c0_i32 = arith.constant 0 : i32
    %c0_i32_0 = arith.constant 0 : i32
    %c0_i32_1 = arith.constant 0 : i32
    %c0_i32_2 = arith.constant 0 : i32
    return %arg0, %c0_i32, %c0_i32_0, %c0_i32_1 : i32, i32, i32, i32
  }
  func.func @transform_1(%arg0: i32) -> (i32, i32, i32) {
    %c0_i32 = arith.constant 0 : i32
    %c0_i32_0 = arith.constant 0 : i32
    %c0_i32_1 = arith.constant 0 : i32
    %c0_i32_2 = arith.constant 0 : i32
    return %c0_i32, %c0_i32_0, %c0_i32_1 : i32, i32, i32
  }
  func.func @transform_2(%arg0: i32) -> (i32, i32, i32) {
    %c0_i32 = arith.constant 0 : i32
    %c0_i32_0 = arith.constant 0 : i32
    %c0_i32_1 = arith.constant 0 : i32
    %c0_i32_2 = arith.constant 0 : i32
    return %c0_i32, %c0_i32_0, %c0_i32_1 : i32, i32, i32
  }
  func.func @transform_3(%arg0: i32) -> (i32, i32, i32, i32) {
    %c0_i32 = arith.constant 0 : i32
    %c0_i32_0 = arith.constant 0 : i32
    %c0_i32_1 = arith.constant 0 : i32
    %c0_i32_2 = arith.constant 0 : i32
    return %arg0, %c0_i32, %c0_i32_0, %c0_i32_1 : i32, i32, i32, i32
  }
}

module attributes {stable_mosaic.version = 11 : i64} {
  func.func @kernel(%arg0: i32, %arg1: memref<1x16x16x4xf32, #tpu.memory_space<vmem>>, %arg2: memref<3x12x4xf32, #tpu.memory_space<vmem>>, %arg3: memref<3x12x4xf32, #tpu.memory_space<vmem>>, %arg4: memref<1x16x16x4xf32, #tpu.memory_space<vmem>>) attributes {dimension_semantics = [#tpu.dimension_semantics<parallel>], iteration_bounds = array<i64: 2>, scalar_prefetch = 0 : i64, scratch_operands = 0 : i64, tpu.core_type = #tpu.core_type<tc>, window_params = [{transform_indices = @transform_0, window_bounds = array<i64: 1, 16, 16, 4>}, {pipeline_mode = #tpu.pipeline_mode<synchronous>, transform_indices = @transform_1, window_bounds = array<i64: 3, 12, 4>}, {pipeline_mode = #tpu.pipeline_mode<synchronous>, transform_indices = @transform_2, window_bounds = array<i64: 3, 12, 4>}, {transform_indices = @transform_3, window_bounds = array<i64: 1, 16, 16, 4>}]} {
    %0 = tpu.iota {dimensions = array<i32: 2>} : vector<1x1x16x1xi32>
    %c0_i32 = arith.constant 0 : i32
    %1 = vector.broadcast %c0_i32 : i32 to vector<1x1x16x1xi32>
    %2 = arith.cmpi eq, %0, %1 : vector<1x1x16x1xi32>
    %c15_i32 = arith.constant 15 : i32
    %3 = vector.broadcast %c15_i32 : i32 to vector<1x1x16x1xi32>
    %4 = arith.cmpi eq, %0, %3 : vector<1x1x16x1xi32>
    %c0 = arith.constant 0 : index
    %c0_0 = arith.constant 0 : index
    %c0_1 = arith.constant 0 : index
    %c0_2 = arith.constant 0 : index
    %5 = vector.load %arg1[%c0, %c0_0, %c0_1, %c0_2] : memref<1x16x16x4xf32, #tpu.memory_space<vmem>>, vector<1x16x16x4xf32>
    %6 = vector.extract_strided_slice %5 {offsets = [0, 1, 0, 0], sizes = [1, 1, 16, 4], strides = [1, 1, 1, 1]} : vector<1x16x16x4xf32> to vector<1x1x16x4xf32>
    %7 = vector.extract_strided_slice %5 {offsets = [0, 14, 0, 0], sizes = [1, 1, 16, 4], strides = [1, 1, 1, 1]} : vector<1x16x16x4xf32> to vector<1x1x16x4xf32>
    %8 = tpu.concatenate %6, %5, %7 in 1 : vector<1x1x16x4xf32>, vector<1x16x16x4xf32>, vector<1x1x16x4xf32> -> vector<1x18x16x4xf32>
    %9 = vector.extract_strided_slice %8 {offsets = [0, 0, 0, 0], sizes = [1, 16, 16, 4], strides = [1, 1, 1, 1]} : vector<1x18x16x4xf32> to vector<1x16x16x4xf32>
    %10 = vector.extract_strided_slice %8 {offsets = [0, 1, 0, 0], sizes = [1, 16, 16, 4], strides = [1, 1, 1, 1]} : vector<1x18x16x4xf32> to vector<1x16x16x4xf32>
    %11 = vector.extract_strided_slice %8 {offsets = [0, 2, 0, 0], sizes = [1, 16, 16, 4], strides = [1, 1, 1, 1]} : vector<1x18x16x4xf32> to vector<1x16x16x4xf32>
    %12 = tpu.concatenate %9, %10, %11 in 3 : vector<1x16x16x4xf32>, vector<1x16x16x4xf32>, vector<1x16x16x4xf32> -> vector<1x16x16x12xf32>
    %13 = vector.shape_cast %12 : vector<1x16x16x12xf32> to vector<256x12xf32>
    %c1 = arith.constant 1 : index
    %c0_3 = arith.constant 0 : index
    %c0_4 = arith.constant 0 : index
    %14 = vector.load %arg2[%c1, %c0_3, %c0_4] : memref<3x12x4xf32, #tpu.memory_space<vmem>>, vector<1x12x4xf32>
    %15 = vector.shape_cast %14 : vector<1x12x4xf32> to vector<12x4xf32>
    %cst = arith.constant dense<0.000000e+00> : vector<256x4xf32>
    %16 = tpu.matmul %13, %15, %cst {dimension_numbers = #tpu.dot_dimension_numbers<[1], [0], [0], [1], [0, 0, 1, 1], [], []>} : vector<256x12xf32>, vector<12x4xf32>, vector<256x4xf32> -> vector<256x4xf32>
    %17 = vector.extract_strided_slice %13 {offsets = [255, 0], sizes = [1, 12], strides = [1, 1]} : vector<256x12xf32> to vector<1x12xf32>
    %18 = vector.extract_strided_slice %13 {offsets = [0, 0], sizes = [255, 12], strides = [1, 1]} : vector<256x12xf32> to vector<255x12xf32>
    %19 = tpu.concatenate %17, %18 in 0 : vector<1x12xf32>, vector<255x12xf32> -> vector<256x12xf32>
    %20 = vector.shape_cast %19 : vector<256x12xf32> to vector<1x16x16x12xf32>
    %21 = vector.extract_strided_slice %12 {offsets = [0, 0, 1, 0], sizes = [1, 16, 1, 12], strides = [1, 1, 1, 1]} : vector<1x16x16x12xf32> to vector<1x16x1x12xf32>
    %22 = vector.shape_cast %2 : vector<1x1x16x1xi1> to vector<1x1x16x1xi1>
    %23 = vector.broadcast %22 : vector<1x1x16x1xi1> to vector<1x16x16x12xi1>
    %24 = vector.shape_cast %21 : vector<1x16x1x12xf32> to vector<1x16x1x12xf32>
    %25 = vector.broadcast %24 : vector<1x16x1x12xf32> to vector<1x16x16x12xf32>
    %26 = arith.select %23, %25, %20 : vector<1x16x16x12xi1>, vector<1x16x16x12xf32>
    %27 = vector.shape_cast %26 : vector<1x16x16x12xf32> to vector<256x12xf32>
    %c0_5 = arith.constant 0 : index
    %c0_6 = arith.constant 0 : index
    %c0_7 = arith.constant 0 : index
    %28 = vector.load %arg2[%c0_5, %c0_6, %c0_7] : memref<3x12x4xf32, #tpu.memory_space<vmem>>, vector<1x12x4xf32>
    %29 = vector.shape_cast %28 : vector<1x12x4xf32> to vector<12x4xf32>
    %cst_8 = arith.constant dense<0.000000e+00> : vector<256x4xf32>
    %30 = tpu.matmul %27, %29, %cst_8 {dimension_numbers = #tpu.dot_dimension_numbers<[1], [0], [0], [1], [0, 0, 1, 1], [], []>} : vector<256x12xf32>, vector<12x4xf32>, vector<256x4xf32> -> vector<256x4xf32>
    %31 = arith.addf %16, %30 : vector<256x4xf32>
    %32 = vector.extract_strided_slice %13 {offsets = [1, 0], sizes = [255, 12], strides = [1, 1]} : vector<256x12xf32> to vector<255x12xf32>
    %33 = vector.extract_strided_slice %13 {offsets = [0, 0], sizes = [1, 12], strides = [1, 1]} : vector<256x12xf32> to vector<1x12xf32>
    %34 = tpu.concatenate %32, %33 in 0 : vector<255x12xf32>, vector<1x12xf32> -> vector<256x12xf32>
    %35 = vector.shape_cast %34 : vector<256x12xf32> to vector<1x16x16x12xf32>
    %36 = vector.extract_strided_slice %12 {offsets = [0, 0, 14, 0], sizes = [1, 16, 1, 12], strides = [1, 1, 1, 1]} : vector<1x16x16x12xf32> to vector<1x16x1x12xf32>
    %37 = vector.shape_cast %4 : vector<1x1x16x1xi1> to vector<1x1x16x1xi1>
    %38 = vector.broadcast %37 : vector<1x1x16x1xi1> to vector<1x16x16x12xi1>
    %39 = vector.shape_cast %36 : vector<1x16x1x12xf32> to vector<1x16x1x12xf32>
    %40 = vector.broadcast %39 : vector<1x16x1x12xf32> to vector<1x16x16x12xf32>
    %41 = arith.select %38, %40, %35 : vector<1x16x16x12xi1>, vector<1x16x16x12xf32>
    %42 = vector.shape_cast %41 : vector<1x16x16x12xf32> to vector<256x12xf32>
    %c2 = arith.constant 2 : index
    %c0_9 = arith.constant 0 : index
    %c0_10 = arith.constant 0 : index
    %43 = vector.load %arg2[%c2, %c0_9, %c0_10] : memref<3x12x4xf32, #tpu.memory_space<vmem>>, vector<1x12x4xf32>
    %44 = vector.shape_cast %43 : vector<1x12x4xf32> to vector<12x4xf32>
    %cst_11 = arith.constant dense<0.000000e+00> : vector<256x4xf32>
    %45 = tpu.matmul %42, %44, %cst_11 {dimension_numbers = #tpu.dot_dimension_numbers<[1], [0], [0], [1], [0, 0, 1, 1], [], []>} : vector<256x12xf32>, vector<12x4xf32>, vector<256x4xf32> -> vector<256x4xf32>
    %46 = arith.addf %31, %45 : vector<256x4xf32>
    %47 = vector.shape_cast %46 : vector<256x4xf32> to vector<1x256x4xf32>
    %cst_12 = arith.constant dense<0.000000e+00> : vector<1x4xf32>
    %48 = vector.multi_reduction <add>, %47, %cst_12 [1] : vector<1x256x4xf32> to vector<1x4xf32>
    %49 = vector.shape_cast %48 : vector<1x4xf32> to vector<1x1x4xf32>
    %cst_13 = arith.constant 2.560000e+02 : f32
    %50 = vector.broadcast %cst_13 : f32 to vector<1x1x4xf32>
    %51 = arith.divf %49, %50 : vector<1x1x4xf32>
    %52 = vector.broadcast %51 : vector<1x1x4xf32> to vector<1x256x4xf32>
    %53 = arith.subf %47, %52 : vector<1x256x4xf32>
    %54 = arith.mulf %53, %53 : vector<1x256x4xf32>
    %cst_14 = arith.constant dense<0.000000e+00> : vector<1x4xf32>
    %55 = vector.multi_reduction <add>, %54, %cst_14 [1] : vector<1x256x4xf32> to vector<1x4xf32>
    %56 = vector.shape_cast %55 : vector<1x4xf32> to vector<1x1x4xf32>
    %cst_15 = arith.constant 2.560000e+02 : f32
    %57 = vector.broadcast %cst_15 : f32 to vector<1x1x4xf32>
    %58 = arith.divf %56, %57 : vector<1x1x4xf32>
    %cst_16 = arith.constant 9.99999974E-6 : f32
    %59 = vector.broadcast %cst_16 : f32 to vector<1x1x4xf32>
    %60 = arith.addf %58, %59 : vector<1x1x4xf32>
    %61 = math.rsqrt %60 : vector<1x1x4xf32>
    %62 = vector.broadcast %61 : vector<1x1x4xf32> to vector<1x256x4xf32>
    %63 = arith.mulf %53, %62 : vector<1x256x4xf32>
    %64 = vector.shape_cast %63 : vector<1x256x4xf32> to vector<256x4xf32>
    %cst_17 = arith.constant 0.000000e+00 : f32
    %65 = vector.broadcast %cst_17 : f32 to vector<256x4xf32>
    %66 = arith.maximumf %64, %65 : vector<256x4xf32>
    %67 = vector.shape_cast %66 : vector<256x4xf32> to vector<1x16x16x4xf32>
    %68 = vector.extract_strided_slice %67 {offsets = [0, 1, 0, 0], sizes = [1, 1, 16, 4], strides = [1, 1, 1, 1]} : vector<1x16x16x4xf32> to vector<1x1x16x4xf32>
    %69 = vector.extract_strided_slice %67 {offsets = [0, 14, 0, 0], sizes = [1, 1, 16, 4], strides = [1, 1, 1, 1]} : vector<1x16x16x4xf32> to vector<1x1x16x4xf32>
    %70 = tpu.concatenate %68, %67, %69 in 1 : vector<1x1x16x4xf32>, vector<1x16x16x4xf32>, vector<1x1x16x4xf32> -> vector<1x18x16x4xf32>
    %71 = vector.extract_strided_slice %70 {offsets = [0, 0, 0, 0], sizes = [1, 16, 16, 4], strides = [1, 1, 1, 1]} : vector<1x18x16x4xf32> to vector<1x16x16x4xf32>
    %72 = vector.extract_strided_slice %70 {offsets = [0, 1, 0, 0], sizes = [1, 16, 16, 4], strides = [1, 1, 1, 1]} : vector<1x18x16x4xf32> to vector<1x16x16x4xf32>
    %73 = vector.extract_strided_slice %70 {offsets = [0, 2, 0, 0], sizes = [1, 16, 16, 4], strides = [1, 1, 1, 1]} : vector<1x18x16x4xf32> to vector<1x16x16x4xf32>
    %74 = tpu.concatenate %71, %72, %73 in 3 : vector<1x16x16x4xf32>, vector<1x16x16x4xf32>, vector<1x16x16x4xf32> -> vector<1x16x16x12xf32>
    %75 = vector.shape_cast %74 : vector<1x16x16x12xf32> to vector<256x12xf32>
    %c1_18 = arith.constant 1 : index
    %c0_19 = arith.constant 0 : index
    %c0_20 = arith.constant 0 : index
    %76 = vector.load %arg3[%c1_18, %c0_19, %c0_20] : memref<3x12x4xf32, #tpu.memory_space<vmem>>, vector<1x12x4xf32>
    %77 = vector.shape_cast %76 : vector<1x12x4xf32> to vector<12x4xf32>
    %cst_21 = arith.constant dense<0.000000e+00> : vector<256x4xf32>
    %78 = tpu.matmul %75, %77, %cst_21 {dimension_numbers = #tpu.dot_dimension_numbers<[1], [0], [0], [1], [0, 0, 1, 1], [], []>} : vector<256x12xf32>, vector<12x4xf32>, vector<256x4xf32> -> vector<256x4xf32>
    %79 = vector.extract_strided_slice %75 {offsets = [255, 0], sizes = [1, 12], strides = [1, 1]} : vector<256x12xf32> to vector<1x12xf32>
    %80 = vector.extract_strided_slice %75 {offsets = [0, 0], sizes = [255, 12], strides = [1, 1]} : vector<256x12xf32> to vector<255x12xf32>
    %81 = tpu.concatenate %79, %80 in 0 : vector<1x12xf32>, vector<255x12xf32> -> vector<256x12xf32>
    %82 = vector.shape_cast %81 : vector<256x12xf32> to vector<1x16x16x12xf32>
    %83 = vector.extract_strided_slice %74 {offsets = [0, 0, 1, 0], sizes = [1, 16, 1, 12], strides = [1, 1, 1, 1]} : vector<1x16x16x12xf32> to vector<1x16x1x12xf32>
    %84 = vector.shape_cast %2 : vector<1x1x16x1xi1> to vector<1x1x16x1xi1>
    %85 = vector.broadcast %84 : vector<1x1x16x1xi1> to vector<1x16x16x12xi1>
    %86 = vector.shape_cast %83 : vector<1x16x1x12xf32> to vector<1x16x1x12xf32>
    %87 = vector.broadcast %86 : vector<1x16x1x12xf32> to vector<1x16x16x12xf32>
    %88 = arith.select %85, %87, %82 : vector<1x16x16x12xi1>, vector<1x16x16x12xf32>
    %89 = vector.shape_cast %88 : vector<1x16x16x12xf32> to vector<256x12xf32>
    %c0_22 = arith.constant 0 : index
    %c0_23 = arith.constant 0 : index
    %c0_24 = arith.constant 0 : index
    %90 = vector.load %arg3[%c0_22, %c0_23, %c0_24] : memref<3x12x4xf32, #tpu.memory_space<vmem>>, vector<1x12x4xf32>
    %91 = vector.shape_cast %90 : vector<1x12x4xf32> to vector<12x4xf32>
    %cst_25 = arith.constant dense<0.000000e+00> : vector<256x4xf32>
    %92 = tpu.matmul %89, %91, %cst_25 {dimension_numbers = #tpu.dot_dimension_numbers<[1], [0], [0], [1], [0, 0, 1, 1], [], []>} : vector<256x12xf32>, vector<12x4xf32>, vector<256x4xf32> -> vector<256x4xf32>
    %93 = arith.addf %78, %92 : vector<256x4xf32>
    %94 = vector.extract_strided_slice %75 {offsets = [1, 0], sizes = [255, 12], strides = [1, 1]} : vector<256x12xf32> to vector<255x12xf32>
    %95 = vector.extract_strided_slice %75 {offsets = [0, 0], sizes = [1, 12], strides = [1, 1]} : vector<256x12xf32> to vector<1x12xf32>
    %96 = tpu.concatenate %94, %95 in 0 : vector<255x12xf32>, vector<1x12xf32> -> vector<256x12xf32>
    %97 = vector.shape_cast %96 : vector<256x12xf32> to vector<1x16x16x12xf32>
    %98 = vector.extract_strided_slice %74 {offsets = [0, 0, 14, 0], sizes = [1, 16, 1, 12], strides = [1, 1, 1, 1]} : vector<1x16x16x12xf32> to vector<1x16x1x12xf32>
    %99 = vector.shape_cast %4 : vector<1x1x16x1xi1> to vector<1x1x16x1xi1>
    %100 = vector.broadcast %99 : vector<1x1x16x1xi1> to vector<1x16x16x12xi1>
    %101 = vector.shape_cast %98 : vector<1x16x1x12xf32> to vector<1x16x1x12xf32>
    %102 = vector.broadcast %101 : vector<1x16x1x12xf32> to vector<1x16x16x12xf32>
    %103 = arith.select %100, %102, %97 : vector<1x16x16x12xi1>, vector<1x16x16x12xf32>
    %104 = vector.shape_cast %103 : vector<1x16x16x12xf32> to vector<256x12xf32>
    %c2_26 = arith.constant 2 : index
    %c0_27 = arith.constant 0 : index
    %c0_28 = arith.constant 0 : index
    %105 = vector.load %arg3[%c2_26, %c0_27, %c0_28] : memref<3x12x4xf32, #tpu.memory_space<vmem>>, vector<1x12x4xf32>
    %106 = vector.shape_cast %105 : vector<1x12x4xf32> to vector<12x4xf32>
    %cst_29 = arith.constant dense<0.000000e+00> : vector<256x4xf32>
    %107 = tpu.matmul %104, %106, %cst_29 {dimension_numbers = #tpu.dot_dimension_numbers<[1], [0], [0], [1], [0, 0, 1, 1], [], []>} : vector<256x12xf32>, vector<12x4xf32>, vector<256x4xf32> -> vector<256x4xf32>
    %108 = arith.addf %93, %107 : vector<256x4xf32>
    %109 = vector.shape_cast %108 : vector<256x4xf32> to vector<1x256x4xf32>
    %cst_30 = arith.constant dense<0.000000e+00> : vector<1x4xf32>
    %110 = vector.multi_reduction <add>, %109, %cst_30 [1] : vector<1x256x4xf32> to vector<1x4xf32>
    %111 = vector.shape_cast %110 : vector<1x4xf32> to vector<1x1x4xf32>
    %cst_31 = arith.constant 2.560000e+02 : f32
    %112 = vector.broadcast %cst_31 : f32 to vector<1x1x4xf32>
    %113 = arith.divf %111, %112 : vector<1x1x4xf32>
    %114 = vector.broadcast %113 : vector<1x1x4xf32> to vector<1x256x4xf32>
    %115 = arith.subf %109, %114 : vector<1x256x4xf32>
    %116 = arith.mulf %115, %115 : vector<1x256x4xf32>
    %cst_32 = arith.constant dense<0.000000e+00> : vector<1x4xf32>
    %117 = vector.multi_reduction <add>, %116, %cst_32 [1] : vector<1x256x4xf32> to vector<1x4xf32>
    %118 = vector.shape_cast %117 : vector<1x4xf32> to vector<1x1x4xf32>
    %cst_33 = arith.constant 2.560000e+02 : f32
    %119 = vector.broadcast %cst_33 : f32 to vector<1x1x4xf32>
    %120 = arith.divf %118, %119 : vector<1x1x4xf32>
    %cst_34 = arith.constant 9.99999974E-6 : f32
    %121 = vector.broadcast %cst_34 : f32 to vector<1x1x4xf32>
    %122 = arith.addf %120, %121 : vector<1x1x4xf32>
    %123 = math.rsqrt %122 : vector<1x1x4xf32>
    %124 = vector.broadcast %123 : vector<1x1x4xf32> to vector<1x256x4xf32>
    %125 = arith.mulf %115, %124 : vector<1x256x4xf32>
    %126 = vector.shape_cast %125 : vector<1x256x4xf32> to vector<256x4xf32>
    %c0_35 = arith.constant 0 : index
    %c0_36 = arith.constant 0 : index
    %c0_37 = arith.constant 0 : index
    %c0_38 = arith.constant 0 : index
    %127 = vector.load %arg1[%c0_35, %c0_36, %c0_37, %c0_38] : memref<1x16x16x4xf32, #tpu.memory_space<vmem>>, vector<1x16x16x4xf32>
    %128 = vector.shape_cast %127 : vector<1x16x16x4xf32> to vector<256x4xf32>
    %129 = arith.addf %126, %128 : vector<256x4xf32>
    %cst_39 = arith.constant 0.000000e+00 : f32
    %130 = vector.broadcast %cst_39 : f32 to vector<256x4xf32>
    %131 = arith.maximumf %129, %130 : vector<256x4xf32>
    %132 = vector.shape_cast %131 : vector<256x4xf32> to vector<1x16x16x4xf32>
    %c0_40 = arith.constant 0 : index
    %c0_41 = arith.constant 0 : index
    %c0_42 = arith.constant 0 : index
    %c0_43 = arith.constant 0 : index
    %133 = vector.load %arg4[%c0_40, %c0_41, %c0_42, %c0_43] : memref<1x16x16x4xf32, #tpu.memory_space<vmem>>, vector<1x16x16x4xf32>
    tpu.vector_store %arg4[%c0_40, %c0_41, %c0_42, %c0_43], %132 {strides = array<i32>} : memref<1x16x16x4xf32, #tpu.memory_space<vmem>>, vector<1x16x16x4xf32>,
    return
  }
  func.func @transform_0(%arg0: i32) -> (i32, i32, i32, i32) {
    %c0_i32 = arith.constant 0 : i32
    %c0_i32_0 = arith.constant 0 : i32
    %c0_i32_1 = arith.constant 0 : i32
    %c0_i32_2 = arith.constant 0 : i32
    return %arg0, %c0_i32, %c0_i32_0, %c0_i32_1 : i32, i32, i32, i32
  }
  func.func @transform_1(%arg0: i32) -> (i32, i32, i32) {
    %c0_i32 = arith.constant 0 : i32
    %c0_i32_0 = arith.constant 0 : i32
    %c0_i32_1 = arith.constant 0 : i32
    %c0_i32_2 = arith.constant 0 : i32
    return %c0_i32, %c0_i32_0, %c0_i32_1 : i32, i32, i32
  }
  func.func @transform_2(%arg0: i32) -> (i32, i32, i32) {
    %c0_i32 = arith.constant 0 : i32
    %c0_i32_0 = arith.constant 0 : i32
    %c0_i32_1 = arith.constant 0 : i32
    %c0_i32_2 = arith.constant 0 : i32
    return %c0_i32, %c0_i32_0, %c0_i32_1 : i32, i32, i32
  }
  func.func @transform_3(%arg0: i32) -> (i32, i32, i32, i32) {
    %c0_i32 = arith.constant 0 : i32
    %c0_i32_0 = arith.constant 0 : i32
    %c0_i32_1 = arith.constant 0 : i32
    %c0_i32_2 = arith.constant 0 : i32
    return %arg0, %c0_i32, %c0_i32_0, %c0_i32_1 : i32, i32, i32, i32
  }
}

</mosaic_0001>

<bundles_post_ra>
// kernel: tpu_custom_call.1
= control target key start
LH: loop header
LB: loop body
LE: loop exit
PB: predicated region body
PF: predicated region fallthrough
CT: control target
= control target key end

     0   :  { %s3575_s12 = smov 0   ;;  %s6194_s0 = inlined_call_operand.vmem [shape: f32[2,16,16,4], index: 0, kind: input, shape index: {}]   ;;  %s6195_s1 = inlined_call_operand.vmem [shape: f32[3,12,4], index: 1, kind: input, shape index: {}]   ;;  %s6196_s2 = inlined_call_operand.vmem [shape: f32[3,12,4], index: 2, kind: input, shape index: {}]   ;;  %s6197_s3 = inlined_call_operand.vmem [shape: f32[2,16,16,4], index: 3, kind: output, shape index: {}]  }
   0x1 LB: > { %s3272_s13 = sadd.s32 4294967295, %s3550_s12   ;;  %p3276_p0 = scmp.ge.s32.totalorder %s3550_s12, 1  ;;  %s3550_s12 = sphi %s3575_s12, %s13_s12  }
   0x2   : > { %p137_p1 = scmp.lt.s32.totalorder %s3550_s12, 3 }
   0x4   : > { %p138_p2 = pnand %p3276_p0, %p137_p1 }
   0x6   : > { %141 = sbr.rel (%p138_p2) target bundleno = 1441 (0x5a1), region = 32 }
   0xb   : > { %p161_p3 = scmp.lt.s32.totalorder %s3272_s13, 1  ;;  %s3552_s18 = smov 8   ;;  %v3282_v21 = vld [vmem:[%s6195_s1 + $0x18] sm:$0xf]  ;;  %vm713_vm0 = vcmask 1043456   ;;  %v3281_v22 = vld [vmem:[%s6195_s1 + $0x10] sm:$0xff]  ;;  %v171_v36 = vlaneseq }
   0xc   : > { %s3553_s19 = smov 4   ;;  %3493 = vmatpush.msk.msra.mxu3 %vm713_vm0, %v3282_v21  ;;  %3316 = vmatpush.msk.msra.mxu1 %vm713_vm0, %v3282_v21  ;;  %v615_v24 = vld [vmem:[%s6195_s1 + $0x8] sm:$0xf]  ;;  %v614_v25 = vld [vmem:[%s6195_s1] sm:$0xff]  ;;  %vm428_vm1 = vcmask 31744   ;;  %vm461_vm2 = vcmask 64512  }
   0xd   : > { %s6221_s13 = smov (!%p161_p3, %s3272_s13), 1  ;;  %3491 = vmatpush.msk.msra.mxu2 %vm713_vm0, %v615_v24  ;;  %3283 = vmatpush.msk.msra.mxu0 %vm713_vm0, %v615_v24  ;;  %v3350_v27 = vld [vmem:[%s6195_s1 + $0x28] sm:$0xf]  ;;  %v3786_v42 = vshrl.u32 %v171_v36, 7  ;;  %vm616_vm3 = vcmask 97280  }
   0xe   : > { %s3489_s14 = sshll.u32 %s6221_s13, 8  ;;  %3494 = vmatpush.msra.mxu3 %v3281_v22  ;;  %944 = vmatpush.msra.mxu1 %v3281_v22 }
   0xf   : > { %s3591_s17 = scalar_lea.vmem %s6194_s0, %s3489_s14  ;;  %3492 = vmatpush.msra.mxu2 %v614_v25  ;;  %732 = vmatpush.msra.mxu0 %v614_v25  ;;  %6202 = vst [vmem:[#allocation2_spill] sm:$0xff] %v3786_v42  ;;  %vm174_vm4 = vcmp.eq.s32.totalorder %v3786_v42, 0  ;;  %vm529_vm5 = vcmp.lt.s32.totalorder %v3786_v42, 1  ;;  %vm1074_vm6 = vcmp.lt.s32.totalorder %v3786_v42, 7  ;;  %v3830_v61 = vadd.s32 8, %v3786_v42  ;;  %s6052_s23 = scalar_lea.vmem %s6197_s3, %s3489_s14 }
  0x10   : > { %v3594_v0 = vld [vmem:[%s3591_s17 + $0x88] sm:$0xff]  ;;  %v3597_v1 = vld [vmem:[%s3591_s17 + $0x78] sm:$0xff]  ;;  %v3606_v2 = vld [vmem:[%s3591_s17 + $0x90] sm:$0xff] }
  0x11   : > { %368 = vrot.lane.b32.xlu1 %v3594_v0, %s3552_s18  ;;  %272 = vrot.lane.b32.xlu0 %v3597_v1, %s3553_s19  ;;  %v3609_v3 = vld [vmem:[%s3591_s17 + $0x80] sm:$0xff]  ;;  %v3612_v4 = vld [vmem:[%s3591_s17 + $0x98] sm:$0xff]  ;;  %6203 = vst [vmem:[#allocation3_spill] sm:$0xff] %v3830_v61  ;;  %vm177_vm7 = vcmp.eq.s32.totalorder %v3830_v61, 15 }
  0x12   : > { %276 = vrot.lane.b32.xlu2 %v3594_v0, %s3553_s19  ;;  %v3621_v5 = vld [vmem:[%s3591_s17 + $0xa0] sm:$0xff]  ;;  %v3630_v6 = vld [vmem:[%s3591_s17 + $0xa8] sm:$0xff]  ;;  %v3633_v7 = vld [vmem:[%s3591_s17 + $0xb0] sm:$0xff]  ;;  %3351 = vmatpush.msk.msrb.mxu2 %vm713_vm0, %v3350_v27 }
  0x13   : > { %v3642_v8 = vld [vmem:[%s3591_s17 + $0xb8] sm:$0xff]  ;;  %v3651_v9 = vld [vmem:[%s3591_s17 + $0xc0] sm:$0xff]  ;;  %v3654_v10 = vld [vmem:[%s3591_s17 + $0xc8] sm:$0xff] }
  0x14   : > { %v3663_v11 = vld [vmem:[%s3591_s17 + $0xd0] sm:$0xff]  ;;  %v3672_v12 = vld [vmem:[%s3591_s17 + $0xd8] sm:$0xff]  ;;  %v3675_v13 = vld [vmem:[%s3591_s17 + $0xe0] sm:$0xff] }
  0x15   : > { %v3684_v14 = vld [vmem:[%s3591_s17 + $0xe8] sm:$0xff]  ;;  %v208_v15 = vld [vmem:[%s3591_s17 + $0xf0] sm:$0xff]  ;;  %v209_v16 = vld [vmem:[%s3591_s17 + $0xf8] sm:$0xff] }
  0x16   : > { %v3699_v17 = vld [vmem:[%s3591_s17] sm:$0xff]  ;;  %v3706_v18 = vld [vmem:[%s3591_s17 + $0x10] sm:$0xff]  ;;  %v3709_v19 = vld [vmem:[%s3591_s17 + $0x8] sm:$0xff] }
  0x17   : > { %v3712_v20 = vld [vmem:[%s3591_s17 + $0x18] sm:$0xff]  ;;  %v3729_v23 = vld [vmem:[%s3591_s17 + $0x20] sm:$0xff]  ;;  %v3750_v28 = vld [vmem:[%s3591_s17 + $0x28] sm:$0xff] }
  0x18   : > { %v3757_v30 = vld [vmem:[%s3591_s17 + $0x38] sm:$0xff]  ;;  %v3760_v31 = vld [vmem:[%s3591_s17 + $0x30] sm:$0xff]  ;;  %v3769_v35 = vld [vmem:[%s3591_s17 + $0x68] sm:$0xff] }
  0x19   : > { %370 = vrot.lane.b32.xlu1 %v3606_v2, %s3552_s18  ;;  %274 = vrot.lane.b32.xlu0 %v3609_v3, %s3553_s19  ;;  %v3774_v38 = vld [vmem:[%s3591_s17 + $0x40] sm:$0xff]  ;;  %v3783_v40 = vld [vmem:[%s3591_s17 + $0x70] sm:$0xff] }
  0x1a   : > { %372 = vrot.lane.b32.xlu2 %v3612_v4, %s3552_s18  ;;  %v3808_v54 = vld [vmem:[%s3591_s17 + $0x50] sm:$0xff]  ;;  %v3838_v22 = vld [vmem:[%s3591_s17 + $0x48] sm:$0xff] }
  0x21   : > { %374 = vrot.lane.b32.xlu1 %v3621_v5, %s3552_s18  ;;  %278 = vrot.lane.b32.xlu0 %v3606_v2, %s3553_s19 }
  0x22   : > { %280 = vrot.lane.b32.xlu2 %v3612_v4, %s3553_s19 }
  0x29   : > { %282 = vrot.lane.b32.xlu1 %v3621_v5, %s3553_s19  ;;  %376 = vrot.lane.b32.xlu0 %v3630_v6, %s3552_s18 }
  0x2a   : > { %378 = vrot.lane.b32.xlu2 %v3633_v7, %s3552_s18 }
  0x31   : > { %380 = vrot.lane.b32.xlu1 %v3642_v8, %s3552_s18  ;;  %284 = vrot.lane.b32.xlu0 %v3630_v6, %s3553_s19 }
  0x32   : > { %286 = vrot.lane.b32.xlu2 %v3633_v7, %s3553_s19 }
  0x39   : > { %288 = vrot.lane.b32.xlu1 %v3642_v8, %s3553_s19  ;;  %382 = vrot.lane.b32.xlu0 %v3651_v9, %s3552_s18 }
  0x3a   : > { %384 = vrot.lane.b32.xlu2 %v3654_v10, %s3552_s18 }
  0x41   : > { %386 = vrot.lane.b32.xlu1 %v3663_v11, %s3552_s18  ;;  %290 = vrot.lane.b32.xlu0 %v3651_v9, %s3553_s19 }
  0x42   : > { %292 = vrot.lane.b32.xlu2 %v3654_v10, %s3553_s19 }
  0x49   : > { %294 = vrot.lane.b32.xlu1 %v3663_v11, %s3553_s19  ;;  %388 = vrot.lane.b32.xlu0 %v3672_v12, %s3552_s18 }
  0x4a   : > { %390 = vrot.lane.b32.xlu2 %v3675_v13, %s3552_s18 }
  0x51   : > { %392 = vrot.lane.b32.xlu1 %v3684_v14, %s3552_s18  ;;  %296 = vrot.lane.b32.xlu0 %v3672_v12, %s3553_s19 }
  0x52   : > { %298 = vrot.lane.b32.xlu2 %v3675_v13, %s3553_s19 }
  0x59   : > { %300 = vrot.lane.b32.xlu1 %v3684_v14, %s3553_s19  ;;  %394 = vrot.lane.b32.xlu0 %v208_v15, %s3552_s18 }
  0x5a   : > { %396 = vrot.lane.b32.xlu2 %v209_v16, %s3552_s18 }
  0x61   : > { %304 = vrot.lane.b32.xlu1 %v209_v16, %s3553_s19  ;;  %302 = vrot.lane.b32.xlu0 %v208_v15, %s3553_s19  ;;  %v3835_v15 = vld [vmem:[%s3591_s17 + $0x58] sm:$0xff] }
  0x62   : > { %242 = vrot.lane.b32.xlu2 %v3699_v17, %s3553_s19 }
  0x69   : > { %338 = vrot.lane.b32.xlu1 %v3706_v18, %s3552_s18  ;;  %244 = vrot.lane.b32.xlu0 %v3709_v19, %s3553_s19 }
  0x6a   : > { %340 = vrot.lane.b32.xlu2 %v3712_v20, %s3552_s18 }
  0x6c   : > { %v277_v26 = vpop.permute.xlu2 %276 }
  0x6d   : > { %v446_v37 = vsel %vm428_vm1, %v3597_v1, %v277_v26 }
  0x71   : > { %246 = vrot.lane.b32.xlu0 %v3706_v18, %s3553_s19  ;;  %342 = vrot.lane.b32.xlu1 %v3729_v23, %s3552_s18 }
  0x72   : > { %248 = vrot.lane.b32.xlu2 %v3712_v20, %s3553_s19 }
  0x74   : > { %v373_v29 = vpop.permute.xlu2 %372 }
  0x75   : > { %v479_v41 = vsel %vm461_vm2, %v446_v37, %v373_v29 }
  0x76   : > { %v1059_v47 = vrot.slane %v479_v41, 1  ;;  %v514_v62 = vrot.slane %v479_v41, 7  ;;  %v1119_v24 = vperm.slane %v479_v41, 6 }
  0x79   : > { %344 = vrot.lane.b32.xlu0 %v3750_v28, %s3552_s18  ;;  %250 = vrot.lane.b32.xlu1 %v3729_v23, %s3553_s19 }
  0x7a   : > { %346 = vrot.lane.b32.xlu2 %v3760_v31, %s3552_s18 }
  0x7c   : > { %v281_v32 = vpop.permute.xlu2 %280 }
  0x7d   : > { %v448_v26 = vsel %vm428_vm1, %v3594_v0, %v281_v32 }
  0x81   : > { %252 = vrot.lane.b32.xlu0 %v3750_v28, %s3553_s19  ;;  %348 = vrot.lane.b32.xlu1 %v3757_v30, %s3552_s18 }
  0x82   : > { %254 = vrot.lane.b32.xlu2 %v3760_v31, %s3553_s19 }
  0x83   : > { %v369_v33 = vpop.permute.xlu1 %368  ;;  %v273_v34 = vpop.permute.xlu0 %272 }
  0x84   : > { %v444_v39 = vsel %vm428_vm1, %v3769_v35, %v273_v34  ;;  %v379_v48 = vpop.permute.xlu2 %378 }
  0x85   : > { %v3791_v43 = vsel %vm461_vm2, %v444_v39, %v369_v33 }
  0x86   : > { %v512_v50 = vrot.slane %v3791_v43, 7 }
  0x89   : > { %350 = vrot.lane.b32.xlu0 %v3774_v38, %s3552_s18  ;;  %256 = vrot.lane.b32.xlu1 %v3757_v30, %s3553_s19 }
  0x8a   : > { %352 = vrot.lane.b32.xlu2 %v3838_v22, %s3552_s18 }
  0x8b   : > { %v371_v44 = vpop.permute.xlu1 %370  ;;  %v275_v45 = vpop.permute.xlu0 %274 }
  0x8c   : > { %v445_v46 = vsel %vm428_vm1, %v3783_v40, %v275_v45  ;;  %v287_v21 = vpop.permute.xlu2 %286 }
  0x8d   : > { %v3796_v49 = vsel %vm461_vm2, %v445_v46, %v371_v44 }
  0x8e   : > { %v513_v51 = vrot.slane %v3796_v49, 7  ;;  %3333 = vmatmul.msk.f32.vlgmr.msra.gmra.mxu3 %vm616_vm3, %v3796_v49  ;;  %v1058_v52 = vrot.slane %v3796_v49, 1  ;;  %v574_v53 = vperm.slane %v3796_v49, 1 }
  0x90   : > { %v545_v55 = vsel %vm529_vm5, %v512_v50, %v513_v51  ;;  %v3818_v56 = vsel %vm1074_vm6, %v1058_v52, %v1059_v47  ;;  %v544_v27 = vsel %vm529_vm5, %v513_v51, %v514_v62 }
  0x91   : > { %258 = vrot.lane.b32.xlu0 %v3774_v38, %s3553_s19  ;;  %v598_v57 = vsel %vm174_vm4, %v574_v53, %v545_v55  ;;  %354 = vrot.lane.b32.xlu1 %v3808_v54, %s3552_s18 }
  0x92   : > { %3300 = vmatmul.msk.f32.vlgmr.msra.gmra.mxu2 %vm616_vm3, %v598_v57  ;;  %260 = vrot.lane.b32.xlu2 %v3838_v22, %s3553_s19 }
  0x93   : > { %v375_v58 = vpop.permute.xlu1 %374  ;;  %v279_v59 = vpop.permute.xlu0 %278 }
  0x94   : > { %v447_v60 = vsel %vm428_vm1, %v3609_v3, %v279_v59 }
  0x95   : > { %v480_v63 = vsel %vm461_vm2, %v447_v60, %v375_v58 }
  0x96   : > { %3334 = vmatmul.msk.f32.gmra.mxu3 %vm616_vm3, %v479_v41  ;;  %v1060_v16 = vrot.slane %v480_v63, 1  ;;  %v515_v33 = vrot.slane %v480_v63, 7  ;;  %v575_v44 = vperm.slane %v480_v63, 1 }
  0x98   : > { %v1088_v25 = vsel %vm1074_vm6, %v1059_v47, %v1060_v16  ;;  %v543_v46 = vsel %vm529_vm5, %v514_v62, %v515_v33  ;;  %v385_v47 = vpop.permute.xlu2 %384 }
  0x99   : > { %356 = vrot.lane.b32.xlu0 %v3835_v15, %s3552_s18  ;;  %262 = vrot.lane.b32.xlu1 %v3808_v54, %s3553_s19  ;;  %v3855_v29 = vsel %vm177_vm7, %v1119_v24, %v1088_v25  ;;  %v600_v51 = vsel %vm174_vm4, %v575_v44, %v543_v46 }
  0x9a   : > { %3301 = vmatmul.msk.f32.gmra.mxu2 %vm616_vm3, %v544_v27 }
  0x9b   : > { %v283_v34 = vpop.permute.xlu1 %282  ;;  %v377_v36 = vpop.permute.xlu0 %376 }
  0x9c   : > { %v449_v37 = vsel %vm428_vm1, %v3606_v2, %v283_v34  ;;  %v481_v0 = vsel %vm461_vm2, %v448_v26, %v377_v36 }
  0x9d   : > { %v1061_v32 = vrot.slane %v481_v0, 1  ;;  %v1120_v39 = vperm.slane %v481_v0, 6  ;;  %v3862_v41 = vsel %vm461_vm2, %v449_v37, %v379_v48  ;;  %v516_v59 = vrot.slane %v481_v0, 7 }
  0x9e   : > { %3335 = vmatmul.msk.f32.gmra.mxu3 %vm616_vm3, %v480_v63  ;;  %v1062_v45 = vrot.slane %v3862_v41, 1 }
  0x9f   : > { %v3872_v2 = vsel %vm1074_vm6, %v1060_v16, %v1061_v32  ;;  %v451_v16 = vsel %vm428_vm1, %v3621_v5, %v287_v21  ;;  %v542_v24 = vsel %vm529_vm5, %v515_v33, %v516_v59  ;;  %v576_v21 = vperm.slane %v3862_v41, 1 }
  0xa0   : > { %v1086_v48 = vsel %vm1074_vm6, %v1061_v32, %v1062_v45  ;;  %v293_v25 = vpop.permute.xlu2 %292  ;;  %v3349_v32 = vld [vmem:[%s6195_s1 + $0x20] sm:$0xff] }
  0xa1   : > { %264 = vrot.lane.b32.xlu0 %v3835_v15, %s3553_s19  ;;  %360 = vrot.lane.b32.xlu1 %v3769_v35, %s3552_s18  ;;  %v3884_v53 = vsel %vm177_vm7, %v1120_v39, %v1086_v48 }
  0xa2   : > { %3302 = vmatmul.msk.f32.gmra.mxu2 %vm616_vm3, %v600_v51 }
  0xa3   : > { %v381_v55 = vpop.permute.xlu1 %380  ;;  %v285_v57 = vpop.permute.xlu0 %284  ;;  %1276 = vmatpush.msrb.mxu2 %v3349_v32 }
  0xa4   : > { %v450_v58 = vsel %vm428_vm1, %v3612_v4, %v285_v57  ;;  %v517_v4 = vrot.slane %v3862_v41, 7 }
  0xa5   : > { %v483_v60 = vsel %vm461_vm2, %v450_v58, %v381_v55 }
  0xa6   : > { %3336 = vmatmul.msk.f32.gmra.mxu3 %vm616_vm3, %v481_v0  ;;  %v1063_v62 = vrot.slane %v483_v60, 1  ;;  %v1121_v5 = vperm.slane %v483_v60, 6  ;;  %v541_v0 = vsel %vm529_vm5, %v516_v59, %v517_v4  ;;  %v518_v57 = vrot.slane %v483_v60, 7 }
  0xa8   : > { %v3893_v63 = vsel %vm1074_vm6, %v1062_v45, %v1063_v62  ;;  %v602_v45 = vsel %vm174_vm4, %v576_v21, %v541_v0  ;;  %v3947_v51 = vpop.permute.xlu2 %390  ;;  %v540_v59 = vsel %vm529_vm5, %v517_v4, %v518_v57 }
  0xa9   : > { %362 = vrot.lane.b32.xlu0 %v3783_v40, %s3552_s18  ;;  %268 = vrot.lane.b32.xlu1 %v3769_v35, %s3553_s19 }
  0xaa   : > { %3303 = vmatmul.msk.f32.gmra.mxu2 %vm616_vm3, %v542_v24 }
  0xab   : > { %v289_v26 = vpop.permute.xlu1 %288  ;;  %v383_v27 = vpop.permute.xlu0 %382 }
  0xac   : > { %v452_v34 = vsel %vm428_vm1, %v3630_v6, %v289_v26  ;;  %v3908_v36 = vsel %vm461_vm2, %v451_v16, %v383_v27  ;;  %v3921_v6 = vld [vmem:[%s3591_s17 + $0x60] sm:$0xff] }
  0xad   : > { %v1064_v33 = vrot.slane %v3908_v36, 1  ;;  %v3913_v35 = vsel %vm461_vm2, %v452_v34, %v385_v47  ;;  %358 = vrot.lane.b32.xlu2 %v3921_v6, %s3552_s18 }
  0xae   : > { %3337 = vmatmul.msk.f32.gmra.mxu3 %vm616_vm3, %v3862_v41  ;;  %v1065_v37 = vrot.slane %v3913_v35, 1  ;;  %v1122_v55 = vperm.slane %v3913_v35, 6 }
  0xaf   : > { %v1084_v39 = vsel %vm1074_vm6, %v1063_v62, %v1064_v33 }
  0xb0   : > { %v3932_v41 = vsel %vm177_vm7, %v1121_v5, %v1084_v39  ;;  %v3936_v44 = vsel %vm1074_vm6, %v1064_v33, %v1065_v37  ;;  %v299_v21 = vpop.permute.xlu2 %298 }
  0xb1   : > { %270 = vrot.lane.b32.xlu0 %v3783_v40, %s3553_s19  ;;  %366 = vrot.lane.b32.xlu1 %v3609_v3, %s3552_s18 }
  0xb2   : > { %3304 = vmatmul.msk.f32.gmra.mxu2 %vm616_vm3, %v602_v45  ;;  %v520_v45 = vrot.slane %v3913_v35, 7 }
  0xb3   : > { %v387_v46 = vpop.permute.xlu1 %386  ;;  %v291_v47 = vpop.permute.xlu0 %290 }
  0xb4   : > { %v453_v48 = vsel %vm428_vm1, %v3633_v7, %v291_v47  ;;  %v454_v7 = vsel %vm428_vm1, %v3642_v8, %v293_v25  ;;  %v577_v8 = vperm.slane %v3908_v36, 1 }
  0xb5   : > { %v3951_v40 = vsel %vm461_vm2, %v453_v48, %v387_v46  ;;  %266 = vrot.lane.b32.xlu2 %v3921_v6, %s3553_s19 }
  0xb6   : > { %3338 = vmatmul.msk.f32.gmra.mxu3 %vm616_vm3, %v483_v60  ;;  %v1066_v58 = vrot.slane %v3951_v40, 1  ;;  %v519_v60 = vrot.slane %v3908_v36, 7 }
  0xb8   : > { %v1082_v3 = vsel %vm1074_vm6, %v1065_v37, %v1066_v58  ;;  %v397_v48 = vpop.permute.xlu2 %396 }
  0xb9   : > { %v3965_v62 = vsel %vm177_vm7, %v1122_v55, %v1082_v3 }
  0xba   : > { %3305 = vmatmul.msk.f32.gmra.mxu2 %vm616_vm3, %v540_v59 }
  0xbb   : > { %v295_v16 = vpop.permute.xlu1 %294  ;;  %v389_v24 = vpop.permute.xlu0 %388 }
  0xbc   : > { %v455_v26 = vsel %vm428_vm1, %v3651_v9, %v295_v16  ;;  %v3972_v27 = vsel %vm461_vm2, %v454_v7, %v389_v24  ;;  %v539_v9 = vsel %vm529_vm5, %v518_v57, %v519_v60  ;;  %v457_v57 = vsel %vm428_vm1, %v3663_v11, %v299_v21 }
  0xbd   : > { %v1067_v4 = vrot.slane %v3972_v27, 1  ;;  %v1123_v25 = vperm.slane %v3972_v27, 6  ;;  %v3979_v34 = vsel %vm461_vm2, %v455_v26, %v3947_v51  ;;  %364 = vrot.lane.b32.xlu2 %v3597_v1, %s3552_s18  ;;  %v604_v0 = vsel %vm174_vm4, %v577_v8, %v539_v9 }
  0xbe   : > { %3339 = vmatmul.msk.f32.gmra.mxu3 %vm616_vm3, %v3908_v36  ;;  %v1068_v5 = vrot.slane %v3979_v34, 1 }
  0xbf   : > { %v3990_v33 = vsel %vm1074_vm6, %v1066_v58, %v1067_v4  ;;  %v521_v58 = vrot.slane %v3951_v40, 7 }
  0xc0   : > { %v1080_v37 = vsel %vm1074_vm6, %v1067_v4, %v1068_v5 }
  0xc1   : > { %v3998_v36 = vsel %vm177_vm7, %v1123_v25, %v1080_v37 }
  0xc2   : > { %3306 = vmatmul.msk.f32.gmra.mxu2 %vm616_vm3, %v604_v0 }
  0xc3   : > { %v393_v32 = vpop.permute.xlu1 %392  ;;  %v297_v39 = vpop.permute.xlu0 %296 }
  0xc4   : > { %v456_v1 = vsel %vm428_vm1, %v3654_v10, %v297_v39  ;;  %v538_v10 = vsel %vm529_vm5, %v519_v60, %v520_v45  ;;  %v578_v60 = vperm.slane %v3951_v40, 1  ;;  %v522_v39 = vrot.slane %v3972_v27, 7 }
  0xc5   : > { %v4005_v46 = vsel %vm461_vm2, %v456_v1, %v393_v32 }
  0xc6   : > { %3340 = vmatmul.msk.f32.gmra.mxu3 %vm616_vm3, %v3913_v35  ;;  %v1069_v47 = vrot.slane %v4005_v46, 1  ;;  %v1124_v16 = vperm.slane %v4005_v46, 6 }
  0xc8   : > { %v4012_v55 = vsel %vm1074_vm6, %v1068_v5, %v1069_v47 }
  0xca   : > { %3307 = vmatmul.msk.f32.gmra.mxu2 %vm616_vm3, %v538_v10  ;;  %v523_v10 = vrot.slane %v3979_v34, 7 }
  0xcb   : > { %v301_v3 = vpop.permute.xlu1 %300  ;;  %v395_v7 = vpop.permute.xlu0 %394 }
  0xcc   : > { %v458_v35 = vsel %vm428_vm1, %v3672_v12, %v301_v3  ;;  %v4023_v59 = vsel %vm461_vm2, %v457_v57, %v395_v7  ;;  %v537_v12 = vsel %vm529_vm5, %v520_v45, %v521_v58  ;;  %v536_v57 = vsel %vm529_vm5, %v521_v58, %v522_v39 }
  0xcd   : > { %v1070_v24 = vrot.slane %v4023_v59, 1  ;;  %v4028_v11 = vsel %vm461_vm2, %v458_v35, %v397_v48  ;;  %v606_v5 = vsel %vm174_vm4, %v578_v60, %v537_v12 }
  0xce   : > { %3341 = vmatmul.msk.f32.gmra.mxu3 %vm616_vm3, %v3951_v40  ;;  %v1071_v26 = vrot.slane %v4028_v11, 1  ;;  %v243_v40 = vpop.permute.xlu2 %242  ;;  %v1125_v1 = vperm.slane %v4028_v11, 6 }
  0xcf   : > { %v1078_v8 = vsel %vm1074_vm6, %v1069_v47, %v1070_v24 }
  0xd0   : > { %v4040_v4 = vsel %vm177_vm7, %v1124_v16, %v1078_v8  ;;  %v4044_v25 = vsel %vm1074_vm6, %v1070_v24, %v1071_v26 }
  0xd2   : > { %3308 = vmatmul.msk.f32.gmra.mxu2 %vm616_vm3, %v606_v5 }
  0xd3   : > { %v305_v9 = vpop.permute.xlu1 %304  ;;  %v303_v21 = vpop.permute.xlu0 %302 }
  0xd4   : > { %v460_v37 = vsel %vm428_vm1, %v3684_v14, %v305_v9  ;;  %v459_v0 = vsel %vm428_vm1, %v3675_v13, %v303_v21 }
  0xd5   : > { %v4056_v45 = vsel %vm461_vm2, %v460_v37, %v393_v32  ;;  %v4060_v47 = vsel %vm461_vm2, %v459_v0, %v3947_v51  ;;  %v429_v32 = vsel %vm428_vm1, %v3706_v18, %v243_v40  ;;  %v535_v40 = vsel %vm529_vm5, %v522_v39, %v523_v10 }
  0xd6   : > { %3342 = vmatmul.msk.f32.gmra.mxu3 %vm616_vm3, %v3972_v27  ;;  %v1072_v48 = vrot.slane %v4060_v47, 1  ;;  %v1073_v14 = vrot.slane %v4056_v45, 1  ;;  %v528_v3 = vrot.slane %v4056_v45, 7  ;;  %v341_v24 = vpop.permute.xlu2 %340  ;;  %v1126_v60 = vperm.slane %v4056_v45, 6 }
  0xd8   : > { %v1076_v13 = vsel %vm1074_vm6, %v1071_v26, %v1072_v48  ;;  %v4078_v27 = vsel %vm1074_vm6, %v1072_v48, %v1073_v14  ;;  %v579_v26 = vperm.slane %v3979_v34, 1 }
  0xd9   : > { %v4074_v51 = vsel %vm177_vm7, %v1125_v1, %v1076_v13 }
  0xda   : > { %3309 = vmatmul.msk.f32.gmra.mxu2 %vm616_vm3, %v536_v57  ;;  %v608_v39 = vsel %vm174_vm4, %v579_v26, %v535_v40 }
  0xdb   : > { %v339_v7 = vpop.permute.xlu1 %338  ;;  %v245_v35 = vpop.permute.xlu0 %244 }
  0xdc   : > { %v4084_v58 = vsel %vm461_vm2, %v429_v32, %v339_v7  ;;  %v430_v16 = vsel %vm428_vm1, %v3712_v20, %v245_v35  ;;  %v524_v32 = vrot.slane %v4005_v46, 7 }
  0xdd   : > { %v497_v12 = vrot.slane %v4084_v58, 7  ;;  %v566_v8 = vperm.slane %v4084_v58, 1  ;;  %v1042_v5 = vrot.slane %v4084_v58, 1  ;;  %3317 = vmatmul.msk.f32.vlgmr.msra.gmra.mxu1 %vm616_vm3, %v4084_v58  ;;  %v4104_v21 = vsel %vm461_vm2, %v430_v16, %v341_v24 }
  0xde   : > { %3343 = vmatmul.msk.f32.gmra.mxu3 %vm616_vm3, %v3979_v34  ;;  %v498_v1 = vrot.slane %v4104_v21, 7  ;;  %v249_v16 = vpop.permute.xlu2 %248  ;;  %v525_v24 = vrot.slane %v4023_v59, 7 }
  0xdf   : > { %v561_v9 = vsel %vm529_vm5, %v528_v3, %v497_v12  ;;  %v1106_v37 = vsel %vm1074_vm6, %v1073_v14, %v1042_v5  ;;  %v432_v26 = vsel %vm428_vm1, %v3709_v19, %v249_v16  ;;  %v527_v16 = vrot.slane %v4060_v47, 7 }
  0xe0   : > { %v582_v0 = vsel %vm174_vm4, %v566_v8, %v561_v9  ;;  %v4114_v34 = vsel %vm177_vm7, %v1126_v60, %v1106_v37  ;;  %v560_v7 = vsel %vm529_vm5, %v497_v12, %v498_v1  ;;  %v580_v12 = vperm.slane %v4023_v59, 1 }
  0xe1   : > { %3284 = vmatmul.msk.f32.vlgmr.msra.gmra.mxu0 %vm616_vm3, %v582_v0  ;;  %v533_v40 = vsel %vm529_vm5, %v524_v32, %v525_v24 }
  0xe2   : > { %3310 = vmatmul.msk.f32.gmra.mxu2 %vm616_vm3, %v608_v39  ;;  %v610_v0 = vsel %vm174_vm4, %v580_v12, %v533_v40 }
  0xe3   : > { %v247_v48 = vpop.permute.xlu0 %246  ;;  %v343_v13 = vpop.permute.xlu1 %342 }
  0xe4   : > { %v431_v14 = vsel %vm428_vm1, %v3699_v17, %v247_v48  ;;  %v534_v17 = vsel %vm529_vm5, %v523_v10, %v524_v32  ;;  %v526_v48 = vrot.slane %v4028_v11, 7 }
  0xe5   : > { %v4124_v57 = vsel %vm461_vm2, %v431_v14, %v343_v13  ;;  %3318 = vmatmul.msk.f32.gmra.mxu1 %vm616_vm3, %v4104_v21 }
  0xe6   : > { %3344 = vmatmul.msk.f32.gmra.mxu3 %vm616_vm3, %v4005_v46  ;;  %v499_v35 = vrot.slane %v4124_v57, 7  ;;  %v567_v60 = vperm.slane %v4124_v57, 1  ;;  %v347_v39 = vpop.permute.xlu2 %346  ;;  %v532_v32 = vsel %vm529_vm5, %v525_v24, %v526_v48 }
  0xe8   : > { %v559_v46 = vsel %vm529_vm5, %v498_v1, %v499_v35 }
  0xe9   : > { %3285 = vmatmul.msk.f32.gmra.mxu0 %vm616_vm3, %v560_v7  ;;  %v584_v10 = vsel %vm174_vm4, %v567_v60, %v559_v46  ;;  %v531_v46 = vsel %vm529_vm5, %v526_v48, %v527_v16 }
  0xea   : > { %3311 = vmatmul.msk.f32.gmra.mxu2 %vm616_vm3, %v534_v17 }
  0xeb   : > { %v345_v8 = vpop.permute.xlu0 %344  ;;  %v251_v37 = vpop.permute.xlu1 %250 }
  0xec   : > { %v4154_v9 = vsel %vm461_vm2, %v432_v26, %v345_v8  ;;  %v433_v19 = vsel %vm428_vm1, %v3706_v18, %v251_v37 }
  0xed   : > { %3319 = vmatmul.msk.f32.gmra.mxu1 %vm616_vm3, %v4124_v57  ;;  %v4164_v1 = vsel %vm461_vm2, %v433_v19, %v347_v39 }
  0xee   : > { %3345 = vmatmul.msk.f32.gmra.mxu3 %vm616_vm3, %v4023_v59  ;;  %v500_v59 = vrot.slane %v4154_v9, 7  ;;  %v501_v14 = vrot.slane %v4164_v1, 7  ;;  %v568_v7 = vperm.slane %v4164_v1, 1  ;;  %v255_v26 = vpop.permute.xlu2 %254 }
  0xef   : > { %v435_v8 = vsel %vm428_vm1, %v3729_v23, %v255_v26 }
  0xf0   : > { %v558_v18 = vsel %vm529_vm5, %v499_v35, %v500_v59  ;;  %v557_v17 = vsel %vm529_vm5, %v500_v59, %v501_v14  ;;  %v581_v35 = vperm.slane %v4060_v47, 1 }
  0xf1   : > { %3286 = vmatmul.msk.f32.gmra.mxu0 %vm616_vm3, %v584_v10  ;;  %v586_v24 = vsel %vm174_vm4, %v568_v7, %v557_v17  ;;  %v1044_v7 = vrot.slane %v4124_v57, 1 }
  0xf2   : > { %3312 = vmatmul.msk.f32.gmra.mxu2 %vm616_vm3, %v610_v0  ;;  %v530_v0 = vsel %vm529_vm5, %v527_v16, %v528_v3 }
  0xf3   : > { %v253_v13 = vpop.permute.xlu0 %252  ;;  %v349_v60 = vpop.permute.xlu1 %348 }
  0xf5   : > { %3320 = vmatmul.msk.f32.gmra.mxu1 %vm616_vm3, %v4154_v9 }
  0xf6   : > { %3346 = vmatmul.msk.f32.gmra.mxu3 %vm616_vm3, %v4028_v11  ;;  %v434_v11 = vsel %vm428_vm1, %v3712_v20, %v253_v13  ;;  %v612_v20 = vsel %vm174_vm4, %v581_v35, %v531_v46  ;;  %v353_v48 = vpop.permute.xlu2 %352  ;;  %v1111_v35 = vperm.slane %v4104_v21, 6 }
  0xf7   : > { %v4194_v12 = vsel %vm461_vm2, %v434_v11, %v349_v60 }
  0xf9   : > { %3287 = vmatmul.msk.f32.gmra.mxu0 %vm616_vm3, %v558_v18 }
  0xfa   : > { %3313 = vmatmul.msk.f32.gmra.mxu2 %vm616_vm3, %v532_v32 }
  0xfb   : > { %v351_v10 = vpop.permute.xlu0 %350  ;;  %v257_v23 = vpop.permute.xlu1 %256 }
  0xfc   : > { %v4204_v40 = vsel %vm461_vm2, %v435_v8, %v351_v10  ;;  %v436_v18 = vsel %vm428_vm1, %v3750_v28, %v257_v23  ;;  %v1045_v8 = vrot.slane %v4154_v9, 1 }
  0xfd   : > { %3321 = vmatmul.msk.f32.gmra.mxu1 %vm616_vm3, %v4164_v1  ;;  %v503_v19 = vrot.slane %v4204_v40, 7  ;;  %v569_v39 = vperm.slane %v4204_v40, 1  ;;  %v4230_v3 = vsel %vm461_vm2, %v436_v18, %v353_v48 }
  0xfe   : > { %3347 = vmatmul.msk.f32.gmra.mxu3 %vm616_vm3, %v4060_v47  ;;  %v502_v47 = vrot.slane %v4194_v12, 7  ;;  %v504_v16 = vrot.slane %v4230_v3, 7  ;;  %v261_v60 = vpop.permute.xlu2 %260 }
  0xff   : > { %v438_v26 = vsel %vm428_vm1, %v3757_v30, %v261_v60  ;;  %v1103_v30 = vsel %vm1074_vm6, %v1044_v7, %v1045_v8 }
 0x100   : > { %v556_v37 = vsel %vm529_vm5, %v501_v14, %v502_v47  ;;  %v555_v59 = vsel %vm529_vm5, %v502_v47, %v503_v19  ;;  %v1043_v14 = vrot.slane %v4104_v21, 1  ;;  %v554_v58 = vsel %vm529_vm5, %v503_v19, %v504_v16 }
 0x101   : > { %3288 = vmatmul.msk.f32.gmra.mxu0 %vm616_vm3, %v586_v24 }
 0x102   : > { %3314 = vmatmul.msk.f32.gmra.mxu2 %vm616_vm3, %v612_v20  ;;  %v1105_v28 = vsel %vm1074_vm6, %v1042_v5, %v1043_v14  ;;  %v1104_v5 = vsel %vm1074_vm6, %v1043_v14, %v1044_v7 }
 0x103   : > { %v259_v13 = vpop.permute.xlu0 %258  ;;  %v355_v17 = vpop.permute.xlu1 %354  ;;  %v1128_v24 = vsel %vm177_vm7, %v1111_v35, %v1104_v5 }
 0x104   : > { %v437_v32 = vsel %vm428_vm1, %v3760_v31, %v259_v13 }
 0x105   : > { %3322 = vmatmul.msk.f32.gmra.mxu1 %vm616_vm3, %v4194_v12  ;;  %v4243_v11 = vsel %vm461_vm2, %v437_v32, %v355_v17 }
 0x106   : > { %3348 = vmatmul.msk.f32.gmra.mxu3 %vm616_vm3, %v4056_v45  ;;  %v588_v45 = vsel %vm174_vm4, %v569_v39, %v555_v59  ;;  %v505_v57 = vrot.slane %v4243_v11, 7  ;;  %v570_v21 = vperm.slane %v4243_v11, 1  ;;  %v1046_v39 = vrot.slane %v4164_v1, 1 }
 0x108   : > { %v553_v46 = vsel %vm529_vm5, %v504_v16, %v505_v57  ;;  %v1102_v1 = vsel %vm1074_vm6, %v1045_v8, %v1046_v39  ;;  %v1047_v16 = vrot.slane %v4194_v12, 1  ;;  %v1113_v8 = vperm.slane %v4194_v12, 6 }
 0x109   : > { %3289 = vmatmul.msk.f32.gmra.mxu0 %vm616_vm3, %v556_v37  ;;  %v590_v10 = vsel %vm174_vm4, %v570_v21, %v553_v46 }
 0x10a   : > { %3315 = vmatmul.msk.f32.gmra.mxu2 %vm616_vm3, %v530_v0  ;;  %v359_v0 = vpop.permute.xlu2 %358 }
 0x10b   : > { %v357_v47 = vpop.permute.xlu0 %356  ;;  %v263_v19 = vpop.permute.xlu1 %262 }
 0x10c   : > { %v4272_v37 = vsel %vm461_vm2, %v438_v26, %v357_v47  ;;  %v439_v23 = vsel %vm428_vm1, %v3774_v38, %v263_v19  ;;  %v1112_v38 = vperm.slane %v4154_v9, 6 }
 0x10d   : > { %3323 = vmatmul.msk.f32.gmra.mxu1 %vm616_vm3, %v4204_v40  ;;  %v506_v59 = vrot.slane %v4272_v37, 7  ;;  %v4283_v18 = vsel %vm461_vm2, %v439_v23, %v359_v0 }
 0x10e   : > { %v1130_v32 = vsel %vm177_vm7, %v1112_v38, %v1102_v1 }
 0x10f   : > { %v552_v14 = vsel %vm529_vm5, %v505_v57, %v506_v59 }
 0x111   : > { %3290 = vmatmul.msk.f32.gmra.mxu0 %vm616_vm3, %v588_v45  ;;  %v507_v45 = vrot.slane %v4283_v18, 7 }
 0x112   : > { %3352 = vmatmul.msk.f32.vlgmr.msrb.gmra.mxu2 %vm616_vm3, %v1105_v28  ;;  %v571_v28 = vperm.slane %v4283_v18, 1  ;;  %v267_v5 = vpop.permute.xlu2 %266 }
 0x113   : > { %v265_v13 = vpop.permute.xlu0 %264  ;;  %v551_v9 = vsel %vm529_vm5, %v506_v59, %v507_v45  ;;  %v361_v35 = vpop.permute.xlu1 %360  ;;  %v441_v60 = vsel %vm428_vm1, %v3808_v54, %v267_v5  ;;  %v1049_v59 = vrot.slane %v4230_v3, 1 }
 0x114   : > { %v440_v7 = vsel %vm428_vm1, %v3838_v22, %v265_v13  ;;  %v1101_v22 = vsel %vm1074_vm6, %v1046_v39, %v1047_v16 }
 0x115   : > { %v4246_v31 = vpop.f32.mrf.mxu2  ;;  %3324 = vmatmul.msk.f32.gmra.mxu1 %vm616_vm3, %v4230_v3  ;;  %v4312_v57 = vsel %vm461_vm2, %v440_v7, %v361_v35  ;;  %v1114_v7 = vperm.slane %v4230_v3, 6 }
 0x116   : > { %v508_v21 = vrot.slane %v4312_v57, 7 }
 0x118   : > { %v550_v54 = vsel %vm529_vm5, %v507_v45, %v508_v21 }
 0x119   : > { %3291 = vmatmul.msk.f32.gmra.mxu0 %vm616_vm3, %v554_v58  ;;  %v592_v58 = vsel %vm174_vm4, %v571_v28, %v551_v9 }
 0x11a   : > { %3353 = vmatmul.msk.f32.gmra.mxu2 %vm616_vm3, %v1128_v24  ;;  %v1048_v24 = vrot.slane %v4204_v40, 1  ;;  %v365_v39 = vpop.permute.xlu2 %364 }
 0x11b   : > { %v363_v46 = vpop.permute.xlu0 %362  ;;  %v269_v19 = vpop.permute.xlu1 %268 }
 0x11c   : > { %v4323_v26 = vsel %vm461_vm2, %v441_v60, %v363_v46  ;;  %v1100_v40 = vsel %vm1074_vm6, %v1047_v16, %v1048_v24  ;;  %v442_v0 = vsel %vm428_vm1, %v3835_v15, %v269_v19  ;;  %v1099_v13 = vsel %vm1074_vm6, %v1048_v24, %v1049_v59 }
 0x11d   : > { %v4264_v20 = vpop.f32.mrf.mxu2  ;;  %3325 = vmatmul.msk.f32.gmra.mxu1 %vm616_vm3, %v4243_v11  ;;  %v1132_v23 = vsel %vm177_vm7, %v1113_v8, %v1100_v40  ;;  %v572_v12 = vperm.slane %v4323_v26, 1  ;;  %v475_v1 = vsel %vm461_vm2, %v442_v0, %v365_v39  ;;  %v1050_v15 = vrot.slane %v4243_v11, 1 }
 0x11e   : > { %v1051_v60 = vrot.slane %v4272_v37, 1  ;;  %v1052_v8 = vrot.slane %v4283_v18, 1 }
 0x11f   : > { %v1098_v11 = vsel %vm1074_vm6, %v1049_v59, %v1050_v15 }
 0x120   : > { %v1097_v46 = vsel %vm1074_vm6, %v1050_v15, %v1051_v60 }
 0x121   : > { %3292 = vmatmul.msk.f32.gmra.mxu0 %vm616_vm3, %v590_v10  ;;  %v509_v10 = vrot.slane %v4323_v26, 7 }
 0x122   : > { %3354 = vmatmul.msk.f32.gmra.mxu2 %vm616_vm3, %v1103_v30 }
 0x123   : > { %v549_v30 = vsel %vm529_vm5, %v508_v21, %v509_v10  ;;  %v271_v45 = vpop.permute.xlu0 %270  ;;  %v367_v9 = vpop.permute.xlu1 %366 }
 0x124   : > { %v443_v28 = vsel %vm428_vm1, %v3921_v6, %v271_v45  ;;  %v1134_v6 = vsel %vm177_vm7, %v1114_v7, %v1098_v11  ;;  %v1057_v7 = vrot.slane %v3791_v43, 1  ;;  %v1118_v11 = vperm.slane %v3791_v43, 6 }
 0x125   : > { %v4285_v48 = vpop.f32.mrf.mxu2  ;;  %3326 = vmatmul.msk.f32.gmra.mxu1 %vm616_vm3, %v4272_v37  ;;  %v476_v35 = vsel %vm461_vm2, %v443_v28, %v367_v9 }
 0x126   : > { %v511_v5 = vrot.slane %v476_v35, 7 }
 0x128   : > { %v546_v19 = vsel %vm529_vm5, %v511_v5, %v512_v50  ;;  %v1116_v50 = vperm.slane %v4312_v57, 6 }
 0x129   : > { %3293 = vmatmul.msk.f32.gmra.mxu0 %vm616_vm3, %v552_v14  ;;  %v594_v14 = vsel %vm174_vm4, %v572_v12, %v549_v30  ;;  %v1054_v30 = vrot.slane %v4323_v26, 1 }
 0x12a   : > { %3355 = vmatmul.msk.f32.gmra.mxu2 %vm616_vm3, %v1130_v32  ;;  %v510_v32 = vrot.slane %v475_v1, 7 }
 0x12c   : > { %v547_v3 = vsel %vm529_vm5, %v510_v32, %v511_v5 }
 0x12d   : > { %v4305_v17 = vpop.f32.mrf.mxu2  ;;  %3327 = vmatmul.msk.f32.gmra.mxu1 %vm616_vm3, %v4283_v18 }
 0x131   : > { %3294 = vmatmul.msk.f32.gmra.mxu0 %vm616_vm3, %v592_v58  ;;  %v548_v58 = vsel %vm529_vm5, %v509_v10, %v510_v32  ;;  %v1096_v10 = vsel %vm1074_vm6, %v1051_v60, %v1052_v8 }
 0x132   : > { %3356 = vmatmul.msk.f32.gmra.mxu2 %vm616_vm3, %v1101_v22  ;;  %v573_v22 = vperm.slane %v476_v35, 1 }
 0x134   : > { %v596_v21 = vsel %vm174_vm4, %v573_v22, %v547_v3 }
 0x135   : > { %v4326_v47 = vpop.f32.mrf.mxu2  ;;  %3328 = vmatmul.msk.f32.gmra.mxu1 %vm616_vm3, %v4312_v57 }
 0x139   : > { %3295 = vmatmul.msk.f32.gmra.mxu0 %vm616_vm3, %v550_v54  ;;  %v1115_v54 = vperm.slane %v4272_v37, 6  ;;  %v1053_v37 = vrot.slane %v4312_v57, 1  ;;  %v1117_v57 = vperm.slane %v475_v1, 6 }
 0x13a   : > { %3357 = vmatmul.msk.f32.gmra.mxu2 %vm616_vm3, %v1132_v23 }
 0x13b   : > { %v1136_v18 = vsel %vm177_vm7, %v1115_v54, %v1096_v10  ;;  %v1095_v12 = vsel %vm1074_vm6, %v1052_v8, %v1053_v37  ;;  %v1094_v39 = vsel %vm1074_vm6, %v1053_v37, %v1054_v30 }
 0x13c   : > { %v1138_v59 = vsel %vm177_vm7, %v1116_v50, %v1094_v39 }
 0x13d   : > { %v4345_v38 = vpop.f32.mrf.mxu2  ;;  %3329 = vmatmul.msk.f32.gmra.mxu1 %vm616_vm3, %v4323_v26 }
 0x141   : > { %3296 = vmatmul.msk.f32.gmra.mxu0 %vm616_vm3, %v594_v14  ;;  %v1055_v14 = vrot.slane %v475_v1, 1 }
 0x142   : > { %3358 = vmatmul.msk.f32.gmra.mxu2 %vm616_vm3, %v1099_v13  ;;  %v1056_v13 = vrot.slane %v476_v35, 1 }
 0x143   : > { %v1093_v26 = vsel %vm1074_vm6, %v1054_v30, %v1055_v14  ;;  %v994_v30 = vpop.f32.mrf.mxu3 }
 0x144   : > { %v1092_v32 = vsel %vm1074_vm6, %v1055_v14, %v1056_v13 }
 0x145   : > { %v4360_v16 = vpop.f32.mrf.mxu2  ;;  %3330 = vmatmul.msk.f32.gmra.mxu1 %vm616_vm3, %v475_v1  ;;  %v1140_v28 = vsel %vm177_vm7, %v1117_v57, %v1092_v32 }
 0x149   : > { %3297 = vmatmul.msk.f32.gmra.mxu0 %vm616_vm3, %v548_v58  ;;  %v1091_v58 = vsel %vm1074_vm6, %v1056_v13, %v1057_v7 }
 0x14a   : > { %3359 = vmatmul.msk.f32.gmra.mxu2 %vm616_vm3, %v1134_v6 }
 0x14b   : > { %v997_v14 = vpop.f32.mrf.mxu3 }
 0x14d   : > { %v4375_v24 = vpop.f32.mrf.mxu2  ;;  %3331 = vmatmul.msk.f32.gmra.mxu1 %vm616_vm3, %v476_v35  ;;  %v1090_v35 = vsel %vm1074_vm6, %v1057_v7, %v1058_v52 }
 0x14e   : > { %v1142_v5 = vsel %vm177_vm7, %v1118_v11, %v1090_v35 }
 0x151   : > { %3298 = vmatmul.msk.f32.gmra.mxu0 %vm616_vm3, %v596_v21 }
 0x152   : > { %3360 = vmatmul.msk.f32.gmra.mxu2 %vm616_vm3, %v1097_v46 }
 0x155   : > { %v4386_v40 = vpop.f32.mrf.mxu2  ;;  %3332 = vmatmul.msk.f32.gmra.mxu1 %vm616_vm3, %v3791_v43 }
 0x159   : > { %3299 = vmatmul.msk.f32.gmra.mxu0 %vm616_vm3, %v546_v19 }
 0x15a   : > { %3361 = vmatmul.msk.f32.gmra.mxu2 %vm616_vm3, %v1136_v18 }
 0x15d   : > { %v4401_v23 = vpop.f32.mrf.mxu2 }
 0x15e   : > { %6204 = vst [vmem:[#allocation4_spill] sm:$0xff] %v4401_v23  ;;  %v4465_v3 = vpop.f32.mrf.mxu0 }
 0x162   : > { %3362 = vmatmul.msk.f32.gmra.mxu2 %vm616_vm3, %v1095_v12 }
 0x165   : > { %v4408_v0 = vpop.f32.mrf.mxu2 }
 0x166   : > { %6205 = vst [vmem:[#allocation5_spill] sm:$0xff] %v4408_v0  ;;  %v4473_v60 = vpop.f32.mrf.mxu0 }
 0x16a   : > { %3363 = vmatmul.msk.f32.gmra.mxu2 %vm616_vm3, %v1138_v59 }
 0x16d   : > { %v4415_v45 = vpop.f32.mrf.mxu2 }
 0x16e   : > { %6206 = vst [vmem:[#allocation6_spill] sm:$0xff] %v4415_v45 }
 0x172   : > { %3364 = vmatmul.msk.f32.gmra.mxu2 %vm616_vm3, %v1093_v26 }
 0x175   : > { %v4420_v15 = vpop.f32.mrf.mxu2 }
 0x176   : > { %6207 = vst [vmem:[#allocation7_spill] sm:$0xff] %v4420_v15 }
 0x17a   : > { %3365 = vmatmul.msk.f32.gmra.mxu2 %vm616_vm3, %v1140_v28 }
 0x17d   : > { %v4427_v9 = vpop.f32.mrf.mxu2 }
 0x17e   : > { %6208 = vst [vmem:[#allocation8_spill] sm:$0xff] %v4427_v9 }
 0x182   : > { %3366 = vmatmul.msk.f32.gmra.mxu2 %vm616_vm3, %v1091_v58  ;;  %v995_v58 = vadd.f32 %v994_v30, %v4246_v31 }
 0x185   : > { %v4433_v1 = vpop.f32.mrf.mxu2 }
 0x186   : > { %6209 = vst [vmem:[#allocation9_spill] sm:$0xff] %v4433_v1 }
 0x18a   : > { %3367 = vmatmul.msk.f32.gmra.mxu2 %vm616_vm3, %v1142_v5 }
 0x18d   : > { %v4443_v6 = vpop.f32.mrf.mxu2 }
 0x18e   : > { %6210 = vst [vmem:[#allocation10_spill] sm:$0xff] %v4443_v6 }
 0x192   : > { %3368 = vmatmul.msk.f32.gmra.mxu2 %vm616_vm3, %v3818_v56 }
 0x195   : > { %v4447_v22 = vpop.f32.mrf.mxu2 }
 0x19a   : > { %3369 = vmatmul.msk.f32.gmra.mxu2 %vm616_vm3, %v3855_v29  ;;  %v4467_v29 = vpop.f32.mrf.mxu1 }
 0x19d   : > { %v4451_v49 = vpop.f32.mrf.mxu2 }
 0x1a2   : > { %3370 = vmatmul.msk.f32.gmra.mxu2 %vm616_vm3, %v3872_v2 }
 0x1a5   : > { %v4455_v43 = vpop.f32.mrf.mxu2 }
 0x1aa   : > { %3371 = vmatmul.msk.f32.gmra.mxu2 %vm616_vm3, %v3884_v53  ;;  %v949_v53 = vpop.f32.mrf.mxu1 }
 0x1ad   : > { %v4459_v52 = vpop.f32.mrf.mxu2 }
 0x1b2   : > { %3372 = vmatmul.msk.f32.gmra.mxu2 %vm616_vm3, %v3893_v63  ;;  %v740_v63 = vpop.f32.mrf.mxu0  ;;  %v952_v46 = vpop.f32.mrf.mxu1 }
 0x1b5   : > { %v4463_v56 = vpop.f32.mrf.mxu2 }
 0x1ba   : > { %3373 = vmatmul.msk.f32.gmra.mxu2 %vm616_vm3, %v3932_v41  ;;  %v743_v41 = vpop.f32.mrf.mxu0  ;;  %v955_v10 = vpop.f32.mrf.mxu1 }
 0x1bd   : > { %v4471_v2 = vpop.f32.mrf.mxu2 }
 0x1c2   : > { %3374 = vmatmul.msk.f32.gmra.mxu2 %vm616_vm3, %v3936_v44  ;;  %v746_v19 = vpop.f32.mrf.mxu0  ;;  %v958_v18 = vpop.f32.mrf.mxu1 }
 0x1c5   : > { %v4477_v21 = vpop.f32.mrf.mxu2 }
 0x1ca   : > { %3375 = vmatmul.msk.f32.gmra.mxu2 %vm616_vm3, %v3965_v62  ;;  %v749_v37 = vpop.f32.mrf.mxu0 }
 0x1cd   : > { %v4481_v8 = vpop.f32.mrf.mxu2 }
 0x1d2   : > { %3376 = vmatmul.msk.f32.gmra.mxu2 %vm616_vm3, %v3990_v33  ;;  %v961_v33 = vpop.f32.mrf.mxu1 }
 0x1d5   : > { %v4485_v54 = vpop.f32.mrf.mxu2 }
 0x1da   : > { %3377 = vmatmul.msk.f32.gmra.mxu2 %vm616_vm3, %v3998_v36  ;;  %v752_v36 = vpop.f32.mrf.mxu0  ;;  %v964_v50 = vpop.f32.mrf.mxu1 }
 0x1dd   : > { %v4489_v44 = vpop.f32.mrf.mxu2 }
 0x1e2   : > { %3378 = vmatmul.msk.f32.gmra.mxu2 %vm616_vm3, %v4012_v55  ;;  %v755_v55 = vpop.f32.mrf.mxu0  ;;  %v967_v26 = vpop.f32.mrf.mxu1 }
 0x1e5   : > { %v4493_v62 = vpop.f32.mrf.mxu2 }
 0x1ea   : > { %3379 = vmatmul.msk.f32.gmra.mxu2 %vm616_vm3, %v4040_v4  ;;  %v758_v13 = vpop.f32.mrf.mxu0  ;;  %v970_v57 = vpop.f32.mrf.mxu1 }
 0x1ed   : > { %v4497_v12 = vpop.f32.mrf.mxu2 }
 0x1f2   : > { %3380 = vmatmul.msk.f32.gmra.mxu2 %vm616_vm3, %v4044_v25  ;;  %v1000_v25 = vpop.f32.mrf.mxu3  ;;  %v761_v28 = vpop.f32.mrf.mxu0 }
 0x1f3   : > { %v973_v7 = vpop.f32.mrf.mxu1 }
 0x1f5   : > { %v4501_v39 = vpop.f32.mrf.mxu2 }
 0x1fa   : > { %3381 = vmatmul.msk.f32.gmra.mxu2 %vm616_vm3, %v4074_v51  ;;  %v1003_v51 = vpop.f32.mrf.mxu3  ;;  %v764_v5 = vpop.f32.mrf.mxu0 }
 0x1fb   : > { %v976_v42 = vpop.f32.mrf.mxu1  ;;  %v1004_v30 = vadd.f32 %v1003_v51, %v4305_v17  ;;  %v956_v51 = vadd.f32 %v955_v10, %v743_v41  ;;  %v965_v10 = vadd.f32 %v964_v50, %v752_v36 }
 0x1fd   : > { %v4505_v59 = vpop.f32.mrf.mxu2 }
 0x202   : > { %3382 = vmatmul.msk.f32.gmra.mxu2 %vm616_vm3, %v4078_v27  ;;  %v998_v27 = vadd.f32 %v997_v14, %v4264_v20  ;;  %v1006_v61 = vpop.f32.mrf.mxu3  ;;  %v767_v9 = vpop.f32.mrf.mxu0 }
 0x203   : > { %v979_v31 = vpop.f32.mrf.mxu1 }
 0x205   : > { %v4509_v4 = vpop.f32.mrf.mxu2 }
 0x20a   : > { %3383 = vmatmul.msk.f32.gmra.mxu2 %vm616_vm3, %v4114_v34  ;;  %v1001_v34 = vadd.f32 %v1000_v25, %v4285_v48  ;;  %v4522_v45 = vpop.f32.mrf.mxu3  ;;  %v770_v20 = vpop.f32.mrf.mxu0  ;;  %v950_v48 = vadd.f32 %v949_v53, %v4473_v60  ;;  %v959_v60 = vadd.f32 %v958_v18, %v746_v19  ;;  %v962_v53 = vadd.f32 %v961_v33, %v749_v37 }
 0x20b   : > { %v982_v23 = vpop.f32.mrf.mxu1  ;;  %v968_v37 = vadd.f32 %v967_v26, %v755_v55 }
 0x20d   : > { %v4513_v32 = vpop.f32.mrf.mxu2  ;;  %v4575_v36 = vadd.f32 %v4481_v8, %v968_v37 }
 0x212   : > { %v4529_v14 = vpop.f32.mrf.mxu3 }
 0x215   : > { %v1326_v35 = vpop.f32.mrf.mxu2 }
 0x216   : > { %v4516_v11 = vadd.f32 %v1326_v35, %v995_v58 }
 0x21d   : > { %v1329_v6 = vpop.f32.mrf.mxu2 }
 0x21e   : > { %v4519_v1 = vadd.f32 %v1329_v6, %v998_v27  ;;  %v1007_v6 = vadd.f32 %v1006_v61, %v4326_v47  ;;  %v947_v27 = vadd.f32 %v4467_v29, %v4465_v3  ;;  %v773_v61 = vpop.f32.mrf.mxu0  ;;  %v4546_v47 = vpop.f32.mrf.mxu3  ;;  %v4551_v29 = vadd.f32 %v4459_v52, %v956_v51 }
 0x21f   : > { %v4565_v52 = vadd.f32 %v4471_v2, %v962_v53  ;;  %v980_v53 = vadd.f32 %v979_v31, %v767_v9 }
 0x220   : > { %v1411_v19 = vsel %vm428_vm1, %v4551_v29, 0.0 }
 0x225   : > { %v1332_v15 = vpop.f32.mrf.mxu2 }
 0x226   : > { %v4524_v0 = vadd.f32 %v1332_v15, %v1001_v34  ;;  %v953_v15 = vadd.f32 %v952_v46, %v740_v63  ;;  %v4536_v34 = vadd.f32 %v4451_v49, %v950_v48  ;;  %v985_v49 = vpop.f32.mrf.mxu1  ;;  %v971_v48 = vadd.f32 %v970_v57, %v758_v13  ;;  %v1018_v2 = vpop.f32.mrf.mxu3 }
 0x227   : > { %v977_v13 = vadd.f32 %v976_v42, %v764_v5  ;;  %v1419_v57 = vsel %vm428_vm1, %v4575_v36, 0.0  ;;  %v4595_v42 = vadd.f32 %v4497_v12, %v980_v53 }
 0x228   : > { %v1407_v3 = vsel %vm428_vm1, %v4536_v34, 0.0  ;;  %v4580_v26 = vadd.f32 %v4485_v54, %v971_v48 }
 0x22d   : > { %v1335_v58 = vpop.f32.mrf.mxu2 }
 0x22e   : > { %v4527_v35 = vadd.f32 %v1335_v58, %v1004_v30  ;;  %v4541_v30 = vadd.f32 %v4447_v22, %v947_v27  ;;  %v4544_v58 = vadd.f32 %v4455_v43, %v953_v15  ;;  %v4558_v43 = vadd.f32 %v4463_v56, %v959_v60  ;;  %v776_v27 = vpop.f32.mrf.mxu0  ;;  %v988_v51 = vpop.f32.mrf.mxu1 }
 0x22f   : > { %v974_v15 = vadd.f32 %v973_v7, %v761_v28  ;;  %v1421_v28 = vsel %vm428_vm1, %v4580_v26, 0.0  ;;  %v4590_v7 = vadd.f32 %v4493_v62, %v977_v13  ;;  %v1021_v12 = vpop.f32.mrf.mxu3  ;;  %v1439_v13 = vsel %vm428_vm1, %v4519_v1, 0.0 }
 0x230   : > { %v1406_v63 = vsel %vm428_vm1, %v4541_v30, 0.0  ;;  %v1409_v22 = vsel %vm428_vm1, %v4544_v58, 0.0  ;;  %v1413_v33 = vsel %vm428_vm1, %v4558_v43, 0.0 }
 0x231   : > { %v1408_v46 = vadd.f32 %v1407_v3, %v1406_v63  ;;  %v4585_v8 = vadd.f32 %v4489_v44, %v974_v15  ;;  %v983_v63 = vadd.f32 %v982_v23, %v770_v20  ;;  %v1425_v44 = vsel %vm428_vm1, %v4590_v7, 0.0 }
 0x232   : > { %v1427_v23 = vsel %vm428_vm1, %v4595_v42, 0.0 }
 0x233   : > { %v1410_v18 = vadd.f32 %v1409_v22, %v1408_v46  ;;  %v1423_v22 = vsel %vm428_vm1, %v4585_v8, 0.0  ;;  %v986_v46 = vadd.f32 %v985_v49, %v773_v61  ;;  %v4600_v9 = vadd.f32 %v4501_v39, %v983_v63 }
 0x234   : > { %v1443_v63 = vsel %vm428_vm1, %v4527_v35, 0.0 }
 0x235   : > { %v1338_v25 = vpop.f32.mrf.mxu2  ;;  %v1412_v56 = vadd.f32 %v1411_v19, %v1410_v18  ;;  %v989_v19 = vadd.f32 %v988_v51, %v776_v27  ;;  %v4605_v20 = vadd.f32 %v4505_v59, %v986_v46  ;;  %v1429_v49 = vsel %vm428_vm1, %v4600_v9, 0.0 }
 0x236   : > { %v4538_v17 = vadd.f32 %v1338_v25, %v1007_v6  ;;  %v4570_v6 = vadd.f32 %v4477_v21, %v965_v10  ;;  %v1415_v25 = vsel %vm428_vm1, %v4565_v52, 0.0  ;;  %v779_v31 = vpop.f32.mrf.mxu0  ;;  %v991_v18 = vpop.f32.mrf.mxu1  ;;  %v1016_v46 = vadd.f32 %v4546_v47, %v4375_v24 }
 0x237   : > { %v1414_v50 = vadd.f32 %v1413_v33, %v1412_v56  ;;  %v992_v61 = vadd.f32 %v991_v18, %v779_v31  ;;  %v4610_v39 = vadd.f32 %v4509_v4, %v989_v19  ;;  %v1431_v56 = vsel %vm428_vm1, %v4605_v20, 0.0  ;;  %v6211_v19 = vld [vmem:[#allocation4_spill] sm:$0xff] }
 0x238   : > { %v1417_v55 = vsel %vm428_vm1, %v4570_v6, 0.0  ;;  %v1437_v4 = vsel %vm428_vm1, %v4516_v11, 0.0  ;;  %v1019_v31 = vadd.f32 %v1018_v2, %v4386_v40 }
 0x239   : > { %v1416_v21 = vadd.f32 %v1415_v25, %v1414_v50  ;;  %v4615_v48 = vadd.f32 %v4513_v32, %v992_v61  ;;  %v1433_v59 = vsel %vm428_vm1, %v4610_v39, 0.0 }
 0x23b   : > { %v1418_v3 = vadd.f32 %v1417_v55, %v1416_v21  ;;  %v1435_v15 = vsel %vm428_vm1, %v4615_v48, 0.0  ;;  %v1024_v21 = vpop.f32.mrf.mxu3 }
 0x23d   : > { %v4560_v41 = vpop.f32.mrf.mxu2  ;;  %v1420_v54 = vadd.f32 %v1419_v57, %v1418_v3  ;;  %v1010_v57 = vadd.f32 %v4522_v45, %v4345_v38  ;;  %v1441_v3 = vsel %vm428_vm1, %v4524_v0, 0.0  ;;  %v1445_v38 = vsel %vm428_vm1, %v4538_v17, 0.0 }
 0x23f   : > { %v1422_v5 = vadd.f32 %v1421_v28, %v1420_v54  ;;  %v1013_v54 = vadd.f32 %v4529_v14, %v4360_v16 }
 0x241   : > { %v1424_v10 = vadd.f32 %v1423_v22, %v1422_v5  ;;  %v4634_v22 = vadd.f32 %v4560_v41, %v1010_v57  ;;  %v6214_v57 = vld [vmem:[#allocation7_spill] sm:$0xff] }
 0x243   : > { %v1426_v37 = vadd.f32 %v1425_v44, %v1424_v10  ;;  %v1447_v16 = vsel %vm428_vm1, %v4634_v22, 0.0  ;;  %v1027_v10 = vpop.f32.mrf.mxu3 }
 0x245   : > { %v1344_v60 = vpop.f32.mrf.mxu2  ;;  %v1428_v33 = vadd.f32 %v1427_v23, %v1426_v37  ;;  %v1022_v23 = vadd.f32 %v1021_v12, %v6211_v19  ;;  %v6212_v37 = vld [vmem:[#allocation5_spill] sm:$0xff] }
 0x246   : > { %v4640_v45 = vadd.f32 %v1344_v60, %v1013_v54  ;;  %v1025_v61 = vadd.f32 %v1024_v21, %v6212_v37  ;;  %v6216_v19 = vld [vmem:[#allocation9_spill] sm:$0xff] }
 0x247   : > { %v1430_v25 = vadd.f32 %v1429_v49, %v1428_v33 }
 0x248   : > { %v1449_v24 = vsel %vm428_vm1, %v4640_v45, 0.0 }
 0x249   : > { %v1432_v50 = vadd.f32 %v1431_v56, %v1430_v25 }
 0x24b   : > { %v1434_v55 = vadd.f32 %v1433_v59, %v1432_v50  ;;  %v6213_v59 = vld [vmem:[#allocation6_spill] sm:$0xff] }
 0x24c   : > { %v1028_v50 = vadd.f32 %v1027_v10, %v6213_v59 }
 0x24d   : > { %v1347_v62 = vpop.f32.mrf.mxu2  ;;  %v1436_v51 = vadd.f32 %v1435_v15, %v1434_v55  ;;  %v1030_v15 = vpop.f32.mrf.mxu3 }
 0x24e   : > { %v4645_v14 = vadd.f32 %v1347_v62, %v1016_v46  ;;  %v6215_v46 = vld [vmem:[#allocation8_spill] sm:$0xff] }
 0x24f   : > { %v1438_v32 = vadd.f32 %v1437_v4, %v1436_v51 }
 0x250   : > { %v1451_v40 = vsel %vm428_vm1, %v4645_v14, 0.0 }
 0x251   : > { %v1440_v53 = vadd.f32 %v1439_v13, %v1438_v32 }
 0x253   : > { %v1442_v5 = vadd.f32 %v1441_v3, %v1440_v53  ;;  %v1031_v3 = vadd.f32 %v1030_v15, %v6214_v57 }
 0x255   : > { %v1350_v27 = vpop.f32.mrf.mxu2  ;;  %v1444_v44 = vadd.f32 %v1443_v63, %v1442_v5  ;;  %v1033_v54 = vpop.f32.mrf.mxu3 }
 0x256   : > { %v4650_v47 = vadd.f32 %v1350_v27, %v1019_v31 }
 0x257   : > { %v1446_v41 = vadd.f32 %v1445_v38, %v1444_v44  ;;  %v1034_v38 = vadd.f32 %v1033_v54, %v6215_v46 }
 0x258   : > { %v1453_v49 = vsel %vm428_vm1, %v4650_v47, 0.0 }
 0x259   : > { %v1448_v18 = vadd.f32 %v1447_v16, %v1446_v41 }
 0x25b   : > { %v1450_v62 = vadd.f32 %v1449_v24, %v1448_v18 }
 0x25d   : > { %v1353_v28 = vpop.f32.mrf.mxu2  ;;  %v1452_v12 = vadd.f32 %v1451_v40, %v1450_v62  ;;  %v1036_v10 = vpop.f32.mrf.mxu3  ;;  %v6217_v62 = vld [vmem:[#allocation10_spill] sm:$0xff] }
 0x25e   : > { %v4655_v2 = vadd.f32 %v1353_v28, %v1022_v23  ;;  %v1037_v23 = vadd.f32 %v1036_v10, %v6216_v19 }
 0x25f   : > { %v1454_v25 = vadd.f32 %v1453_v49, %v1452_v12 }
 0x260   : > { %v1455_v56 = vsel %vm428_vm1, %v4655_v2, 0.0 }
 0x261   : > { %v1456_v55 = vadd.f32 %v1455_v56, %v1454_v25 }
 0x265   : > { %v1356_v60 = vpop.f32.mrf.mxu2  ;;  %v1039_v40 = vpop.f32.mrf.mxu3 }
 0x266   : > { %v1400_v33 = vadd.f32 %v1356_v60, %v1025_v61  ;;  %v3554_v60 = vmov 256.0   ;;  %v1040_v49 = vadd.f32 %v1039_v40, %v6217_v62 }
 0x267   : > { %3506 = vrcp.f32 %v3554_v60 }
 0x268   : > { %v1457_v27 = vsel %vm428_vm1, %v1400_v33, 0.0 }
 0x269   : > { %v1458_v51 = vadd.f32 %v1457_v27, %v1456_v55 }
 0x26d   : > { %v1359_v4 = vpop.f32.mrf.mxu2  ;;  %v3507_v12 = vpop.eup %3506 }
 0x26e   : > { %v1401_v21 = vadd.f32 %v1359_v4, %v1028_v50  ;;  %v1476_v50 = vmul.f32 256.0, %v3507_v12  ;;  %vm1480_vm8 = vweird.f32 %v3507_v12 }
 0x270   : > { %v1459_v13 = vsel %vm428_vm1, %v1401_v21, 0.0  ;;  %v1477_v55 = vsub.f32 1.0, %v1476_v50 }
 0x271   : > { %v1460_v32 = vadd.f32 %v1459_v13, %v1458_v51 }
 0x272   : > { %v1478_v13 = vmul.f32 %v3507_v12, %v1477_v55 }
 0x275   : > { %v1362_v53 = vpop.f32.mrf.mxu2 }
 0x276   : > { %v1402_v28 = vadd.f32 %v1362_v53, %v1031_v3  ;;  %v1479_v3 = vadd.f32 %v3507_v12, %v1478_v13 }
 0x278   : > { %v1461_v63 = vsel %vm428_vm1, %v1402_v28, 0.0  ;;  %v4672_v54 = vsel %vm1480_vm8, %v3507_v12, %v1479_v3 }
 0x279   : > { %v1462_v5 = vadd.f32 %v1461_v63, %v1460_v32 }
 0x27d   : > { %v1365_v44 = vpop.f32.mrf.mxu2 }
 0x27e   : > { %v1403_v31 = vadd.f32 %v1365_v44, %v1034_v38 }
 0x280   : > { %v1463_v16 = vsel %vm428_vm1, %v1403_v31, 0.0 }
 0x281   : > { %v1464_v41 = vadd.f32 %v1463_v16, %v1462_v5 }
 0x285   : > { %v1368_v24 = vpop.f32.mrf.mxu2 }
 0x286   : > { %v1404_v18 = vadd.f32 %v1368_v24, %v1037_v23 }
 0x288   : > { %v1465_v37 = vsel %vm428_vm1, %v1404_v18, 0.0 }
 0x289   : > { %v1466_v61 = vadd.f32 %v1465_v37, %v1464_v41 }
 0x28d   : > { %v1371_v56 = vpop.f32.mrf.mxu2 }
 0x28e   : > { %v1405_v25 = vadd.f32 %v1371_v56, %v1040_v49 }
 0x290   : > { %v1467_v59 = vsel %vm428_vm1, %v1405_v25, 0.0 }
 0x291   : > { %v1468_v27 = vadd.f32 %v1467_v59, %v1466_v61 }
 0x293   : > { %v1469_v15 = vrot.slane %v1468_v27, 4 }
 0x295   : > { %v1470_v4 = vadd.f32 %v1469_v15, %v1468_v27 }
 0x297   : > { %v1471_v51 = vrot.slane %v1470_v4, 2 }
 0x299   : > { %v1472_v32 = vadd.f32 %v1471_v51, %v1470_v4 }
 0x29b   : > { %v1473_v57 = vrot.slane %v1472_v32, 1 }
 0x29d   : > { %v1474_v53 = vadd.f32 %v1473_v57, %v1472_v32 }
 0x29f   : > { %v4675_v63 = vmul.f32 %v4672_v54, %v1474_v53 }
 0x2a1   : > { %v4678_v5 = vsub.f32 %v1400_v33, %v4675_v63  ;;  %v4681_v46 = vsub.f32 %v1401_v21, %v4675_v63  ;;  %v4684_v38 = vsub.f32 %v1402_v28, %v4675_v63  ;;  %v4687_v44 = vsub.f32 %v1403_v31, %v4675_v63 }
 0x2a2   : > { %v4690_v16 = vsub.f32 %v1404_v18, %v4675_v63  ;;  %v4693_v10 = vsub.f32 %v1405_v25, %v4675_v63  ;;  %v4697_v41 = vsub.f32 %v4541_v30, %v4675_v63  ;;  %v4701_v33 = vsub.f32 %v4536_v34, %v4675_v63 }
 0x2a3   : > { %v4705_v21 = vsub.f32 %v4544_v58, %v4675_v63  ;;  %v4709_v28 = vsub.f32 %v4551_v29, %v4675_v63  ;;  %v4717_v30 = vsub.f32 %v4558_v43, %v4675_v63  ;;  %v4723_v58 = vsub.f32 %v4565_v52, %v4675_v63 }
 0x2a4   : > { %v1515_v31 = vmul.f32 %v4697_v41, %v4697_v41  ;;  %v1516_v19 = vmul.f32 %v4701_v33, %v4701_v33  ;;  %v4731_v60 = vsub.f32 %v4570_v6, %v4675_v63  ;;  %v4738_v52 = vsub.f32 %v4575_v36, %v4675_v63 }
 0x2a5   : > { %v1517_v34 = vmul.f32 %v4705_v21, %v4705_v21  ;;  %v1518_v29 = vmul.f32 %v4709_v28, %v4709_v28  ;;  %v1519_v43 = vmul.f32 %v4717_v30, %v4717_v30  ;;  %v1520_v40 = vmul.f32 %v4723_v58, %v4723_v58 }
 0x2a6   : > { %v1547_v23 = vsel %vm428_vm1, %v1515_v31, 0.0  ;;  %v1548_v24 = vsel %vm428_vm1, %v1516_v19, 0.0  ;;  %v4745_v6 = vsub.f32 %v4580_v26, %v4675_v63  ;;  %v1521_v12 = vmul.f32 %v4731_v60, %v4731_v60 }
 0x2a7   : > { %v1549_v18 = vadd.f32 %v1548_v24, %v1547_v23  ;;  %v1550_v37 = vsel %vm428_vm1, %v1517_v34, 0.0  ;;  %v1552_v62 = vsel %vm428_vm1, %v1518_v29, 0.0  ;;  %v1554_v56 = vsel %vm428_vm1, %v1519_v43, 0.0 }
 0x2a8   : > { %v4752_v36 = vsub.f32 %v4585_v8, %v4675_v63  ;;  %v1522_v59 = vmul.f32 %v4738_v52, %v4738_v52  ;;  %v1556_v50 = vsel %vm428_vm1, %v1520_v40, 0.0  ;;  %v4759_v26 = vsub.f32 %v4590_v7, %v4675_v63 }
 0x2a9   : > { %v1551_v61 = vadd.f32 %v1550_v37, %v1549_v18  ;;  %v1523_v15 = vmul.f32 %v4745_v6, %v4745_v6  ;;  %v1558_v55 = vsel %vm428_vm1, %v1521_v12, 0.0  ;;  %v4766_v8 = vsub.f32 %v4595_v42, %v4675_v63 }
 0x2aa   : > { %v1524_v51 = vmul.f32 %v4752_v36, %v4752_v36  ;;  %v1560_v13 = vsel %vm428_vm1, %v1522_v59, 0.0  ;;  %v4773_v7 = vsub.f32 %v4600_v9, %v4675_v63  ;;  %v1525_v57 = vmul.f32 %v4759_v26, %v4759_v26 }
 0x2ab   : > { %v1553_v49 = vadd.f32 %v1552_v62, %v1551_v61  ;;  %v1562_v3 = vsel %vm428_vm1, %v1523_v15, 0.0  ;;  %v4780_v42 = vsub.f32 %v4605_v20, %v4675_v63  ;;  %v1526_v31 = vmul.f32 %v4766_v8, %v4766_v8 }
 0x2ac   : > { %v1564_v19 = vsel %vm428_vm1, %v1524_v51, 0.0  ;;  %v4787_v9 = vsub.f32 %v4610_v39, %v4675_v63  ;;  %v1527_v29 = vmul.f32 %v4773_v7, %v4773_v7  ;;  %v1566_v23 = vsel %vm428_vm1, %v1525_v57, 0.0 }
 0x2ad   : > { %v1555_v25 = vadd.f32 %v1554_v56, %v1553_v49  ;;  %v4794_v20 = vsub.f32 %v4615_v48, %v4675_v63  ;;  %v1528_v18 = vmul.f32 %v4780_v42, %v4780_v42  ;;  %v1568_v43 = vsel %vm428_vm1, %v1526_v31, 0.0 }
 0x2ae   : > { %v4801_v39 = vsub.f32 %v4516_v11, %v4675_v63  ;;  %v1529_v61 = vmul.f32 %v4787_v9, %v4787_v9  ;;  %v1570_v40 = vsel %vm428_vm1, %v1527_v29, 0.0  ;;  %v4808_v48 = vsub.f32 %v4519_v1, %v4675_v63 }
 0x2af   : > { %v1557_v27 = vadd.f32 %v1556_v50, %v1555_v25  ;;  %v1530_v49 = vmul.f32 %v4794_v20, %v4794_v20  ;;  %v1572_v12 = vsel %vm428_vm1, %v1528_v18, 0.0  ;;  %v4815_v11 = vsub.f32 %v4524_v0, %v4675_v63 }
 0x2b0   : > { %v1531_v25 = vmul.f32 %v4801_v39, %v4801_v39  ;;  %v1574_v59 = vsel %vm428_vm1, %v1529_v61, 0.0  ;;  %v4822_v1 = vsub.f32 %v4527_v35, %v4675_v63  ;;  %v4829_v0 = vsub.f32 %v4538_v17, %v4675_v63 }
 0x2b1   : > { %v1559_v4 = vadd.f32 %v1558_v55, %v1557_v27  ;;  %v1532_v27 = vmul.f32 %v4808_v48, %v4808_v48  ;;  %v1576_v15 = vsel %vm428_vm1, %v1530_v49, 0.0  ;;  %v4836_v35 = vsub.f32 %v4634_v22, %v4675_v63 }
 0x2b2   : > { %v1578_v51 = vsel %vm428_vm1, %v1531_v25, 0.0  ;;  %v4843_v17 = vsub.f32 %v4640_v45, %v4675_v63  ;;  %v4850_v22 = vsub.f32 %v4645_v14, %v4675_v63  ;;  %v4857_v45 = vsub.f32 %v4650_v47, %v4675_v63 }
 0x2b3   : > { %v1561_v32 = vadd.f32 %v1560_v13, %v1559_v4  ;;  %v1533_v4 = vmul.f32 %v4815_v11, %v4815_v11  ;;  %v1580_v57 = vsel %vm428_vm1, %v1532_v27, 0.0  ;;  %v4864_v14 = vsub.f32 %v4655_v2, %v4675_v63 }
 0x2b4   : > { %v1539_v47 = vmul.f32 %v4857_v45, %v4857_v45  ;;  %v1541_v2 = vmul.f32 %v4678_v5, %v4678_v5 }
 0x2b5   : > { %v1563_v53 = vadd.f32 %v1562_v3, %v1561_v32  ;;  %v1534_v32 = vmul.f32 %v4822_v1, %v4822_v1  ;;  %v1582_v31 = vsel %vm428_vm1, %v1533_v4, 0.0 }
 0x2b6   : > { %v1594_v63 = vsel %vm428_vm1, %v1539_v47, 0.0  ;;  %v1598_v4 = vsel %vm428_vm1, %v1541_v2, 0.0  ;;  %v2090_v47 = vld [vmem:[%s6196_s2 + $0x8] sm:$0xf] }
 0x2b7   : > { %v1565_v34 = vadd.f32 %v1564_v19, %v1563_v53  ;;  %v1535_v53 = vmul.f32 %v4829_v0, %v4829_v0  ;;  %v1584_v29 = vsel %vm428_vm1, %v1534_v32, 0.0  ;;  %3386 = vmatpush.msk.msrb.mxu3 %vm713_vm0, %v2090_v47 }
 0x2b9   : > { %v1567_v24 = vadd.f32 %v1566_v23, %v1565_v34  ;;  %v1536_v34 = vmul.f32 %v4836_v35, %v4836_v35  ;;  %v1586_v18 = vsel %vm428_vm1, %v1535_v53, 0.0 }
 0x2bb   : > { %v1569_v37 = vadd.f32 %v1568_v43, %v1567_v24  ;;  %v1537_v24 = vmul.f32 %v4843_v17, %v4843_v17  ;;  %v1588_v61 = vsel %vm428_vm1, %v1536_v34, 0.0 }
 0x2bd   : > { %v1571_v62 = vadd.f32 %v1570_v40, %v1569_v37  ;;  %v1538_v37 = vmul.f32 %v4850_v22, %v4850_v22 }
 0x2bf   : > { %v1573_v56 = vadd.f32 %v1572_v12, %v1571_v62  ;;  %v1590_v62 = vsel %vm428_vm1, %v1537_v24, 0.0  ;;  %v1540_v12 = vmul.f32 %v4864_v14, %v4864_v14 }
 0x2c1   : > { %v1575_v50 = vadd.f32 %v1574_v59, %v1573_v56  ;;  %v1592_v56 = vsel %vm428_vm1, %v1538_v37, 0.0  ;;  %v1596_v27 = vsel %vm428_vm1, %v1540_v12, 0.0  ;;  %v3453_v12 = vld [vmem:[%s6196_s2 + $0x28] sm:$0xf] }
 0x2c2   : > { %3454 = vmatpush.msk.msrb.mxu1 %vm713_vm0, %v3453_v12 }
 0x2c3   : > { %v1577_v55 = vadd.f32 %v1576_v15, %v1575_v50  ;;  %v1542_v50 = vmul.f32 %v4681_v46, %v4681_v46 }
 0x2c5   : > { %v1579_v13 = vadd.f32 %v1578_v51, %v1577_v55  ;;  %v1543_v55 = vmul.f32 %v4684_v38, %v4684_v38  ;;  %v1600_v32 = vsel %vm428_vm1, %v1542_v50, 0.0 }
 0x2c7   : > { %v1581_v3 = vadd.f32 %v1580_v57, %v1579_v13  ;;  %v1544_v13 = vmul.f32 %v4687_v44, %v4687_v44  ;;  %v1602_v53 = vsel %vm428_vm1, %v1543_v55, 0.0 }
 0x2c9   : > { %v1583_v19 = vadd.f32 %v1582_v31, %v1581_v3  ;;  %v1545_v3 = vmul.f32 %v4690_v16, %v4690_v16  ;;  %v1604_v34 = vsel %vm428_vm1, %v1544_v13, 0.0 }
 0x2cb   : > { %v1585_v23 = vadd.f32 %v1584_v29, %v1583_v19  ;;  %v1546_v19 = vmul.f32 %v4693_v10, %v4693_v10 }
 0x2cd   : > { %v1587_v43 = vadd.f32 %v1586_v18, %v1585_v23  ;;  %v1606_v23 = vsel %vm428_vm1, %v1545_v3, 0.0  ;;  %v1608_v18 = vsel %vm428_vm1, %v1546_v19, 0.0 }
 0x2cf   : > { %v1589_v40 = vadd.f32 %v1588_v61, %v1587_v43 }
 0x2d1   : > { %v1591_v49 = vadd.f32 %v1590_v62, %v1589_v40  ;;  %v3385_v62 = vld [vmem:[%s6196_s2 + $0x18] sm:$0xf] }
 0x2d2   : > { %3419 = vmatpush.msk.msrb.mxu0 %vm713_vm0, %v3385_v62 }
 0x2d3   : > { %v1593_v25 = vadd.f32 %v1592_v56, %v1591_v49 }
 0x2d5   : > { %v1595_v59 = vadd.f32 %v1594_v63, %v1593_v25 }
 0x2d7   : > { %v1597_v15 = vadd.f32 %v1596_v27, %v1595_v59 }
 0x2d9   : > { %v1599_v51 = vadd.f32 %v1598_v4, %v1597_v15 }
 0x2db   : > { %v1601_v57 = vadd.f32 %v1600_v32, %v1599_v51 }
 0x2dd   : > { %v1603_v31 = vadd.f32 %v1602_v53, %v1601_v57 }
 0x2df   : > { %v1605_v29 = vadd.f32 %v1604_v34, %v1603_v31 }
 0x2e1   : > { %v1607_v24 = vadd.f32 %v1606_v23, %v1605_v29 }
 0x2e3   : > { %v1609_v43 = vadd.f32 %v1608_v18, %v1607_v24 }
 0x2e5   : > { %v1610_v37 = vrot.slane %v1609_v43, 4 }
 0x2e7   : > { %v1611_v61 = vadd.f32 %v1610_v37, %v1609_v43  ;;  %v3452_v37 = vld [vmem:[%s6196_s2 + $0x20] sm:$0xff] }
 0x2e8   : > { %2744 = vmatpush.msrb.mxu1 %v3452_v37 }
 0x2e9   : > { %v1612_v40 = vrot.slane %v1611_v61, 2 }
 0x2eb   : > { %v1613_v49 = vadd.f32 %v1612_v40, %v1611_v61 }
 0x2ed   : > { %v1614_v56 = vrot.slane %v1613_v49, 1 }
 0x2ef   : > { %v1615_v25 = vadd.f32 %v1614_v56, %v1613_v49 }
 0x2f1   : > { %v1616_v2 = vmul.f32 %v1615_v25, %v4672_v54 }
 0x2f3   : > { %v1617_v63 = vadd.f32 1e-05, %v1616_v2 }
 0x2f5   : > { %3508 = vrsqrt.f32 %v1617_v63  ;;  %vm1624_vm10 = vweird.f32 %v1617_v63 }
 0x2fb   : > { %v3509_v59 = vpop.eup %3508 }
 0x2fc   : > { %v1619_v50 = vmul.f32 %v3509_v59, %v1617_v63  ;;  %vm1625_vm9 = vweird.f32 %v3509_v59 }
 0x2fd   : > { %vm1626_vm11 = vmor %vm1624_vm10, %vm1625_vm9 }
 0x2fe   : > { %v1620_v27 = vmul.f32 %v3509_v59, %v1619_v50 }
 0x300   : > { %v1621_v15 = vmul.f32 0.5, %v1620_v27 }
 0x302   : > { %v1622_v55 = vsub.f32 1.5, %v1621_v15 }
 0x304   : > { %v1623_v4 = vmul.f32 %v3509_v59, %v1622_v55 }
 0x306   : > { %v4908_v51 = vsel %vm1626_vm11, %v3509_v59, %v1623_v4 }
 0x307   : > { %v1630_v13 = vmul.f32 %v4908_v51, %v4705_v21  ;;  %v4914_v32 = vmul.f32 %v4908_v51, %v4693_v10  ;;  %v4918_v57 = vmul.f32 %v4908_v51, %v4697_v41  ;;  %v1657_v3 = vmul.f32 %v4908_v51, %v4687_v44 }
 0x308   : > { %v1631_v44 = vmul.f32 %v4908_v51, %v4709_v28  ;;  %v4938_v10 = vmul.f32 %v4908_v51, %v4701_v33  ;;  %v1632_v33 = vmul.f32 %v4908_v51, %v4717_v30  ;;  %v1634_v29 = vmul.f32 %v4908_v51, %v4731_v60  ;;  %v2089_v60 = vld [vmem:[%s6196_s2] sm:$0xff] }
 0x309   : > { %v4922_v53 = vmax.f32 %v1630_v13, 0.0  ;;  %v1691_v31 = vmax.f32 %v4914_v32, 0.0  ;;  %v1660_v19 = vmax.f32 %v4918_v57, 0.0  ;;  %v4943_v34 = vmax.f32 %v1657_v3, 0.0  ;;  %2205 = vmatpush.msrb.mxu3 %v2089_v60 }
 0x30a   : > { %v4940_v41 = vmax.f32 %v1631_v44, 0.0  ;;  %v1661_v21 = vmax.f32 %v4938_v10, 0.0  ;;  %v4954_v28 = vmax.f32 %v1632_v33, 0.0  ;;  %v1633_v23 = vmul.f32 %v4908_v51, %v4723_v58  ;;  %v3384_v58 = vld [vmem:[%s6196_s2 + $0x10] sm:$0xff] }
 0x30b   : > { %1786 = vrot.lane.b32.xlu0 %v1691_v31, %s3553_s19  ;;  %1820 = vrot.lane.b32.xlu1 %v4922_v53, %s3552_s18  ;;  %v4966_v24 = vmax.f32 %v1634_v29, 0.0  ;;  %v1635_v18 = vmul.f32 %v4908_v51, %v4738_v52  ;;  %v1637_v52 = vmul.f32 %v4908_v51, %v4752_v36  ;;  %v1636_v61 = vmul.f32 %v4908_v51, %v4745_v6 }
 0x30c   : > { %1724 = vrot.lane.b32.xlu2 %v1660_v19, %s3553_s19  ;;  %v4968_v30 = vmax.f32 %v1633_v23, 0.0  ;;  %2417 = vmatpush.msrb.mxu0 %v3384_v58  ;;  %v1638_v36 = vmul.f32 %v4908_v51, %v4759_v26  ;;  %v1640_v6 = vmul.f32 %v4908_v51, %v4773_v7  ;;  %v1639_v49 = vmul.f32 %v4908_v51, %v4766_v8 }
 0x30d   : > { %v4984_v43 = vmax.f32 %v1635_v18, 0.0  ;;  %v4999_v40 = vmax.f32 %v1637_v52, 0.0  ;;  %v5001_v47 = vmax.f32 %v1636_v61, 0.0  ;;  %v1641_v56 = vmul.f32 %v4908_v51, %v4780_v42 }
 0x30e   : > { %v5011_v62 = vmax.f32 %v1638_v36, 0.0  ;;  %v5023_v12 = vmax.f32 %v1640_v6, 0.0  ;;  %v5025_v26 = vmax.f32 %v1639_v49, 0.0  ;;  %v1643_v8 = vmul.f32 %v4908_v51, %v4794_v20 }
 0x30f   : > { %v5035_v7 = vmax.f32 %v1641_v56, 0.0  ;;  %v1642_v25 = vmul.f32 %v4908_v51, %v4787_v9  ;;  %v1644_v63 = vmul.f32 %v4908_v51, %v4801_v39  ;;  %v1646_v9 = vmul.f32 %v4908_v51, %v4815_v11 }
 0x310   : > { %v5047_v2 = vmax.f32 %v1643_v8, 0.0  ;;  %v1645_v59 = vmul.f32 %v4908_v51, %v4808_v48  ;;  %v1647_v27 = vmul.f32 %v4908_v51, %v4822_v1  ;;  %v1649_v48 = vmul.f32 %v4908_v51, %v4836_v35 }
 0x311   : > { %v5049_v42 = vmax.f32 %v1642_v25, 0.0  ;;  %v5059_v20 = vmax.f32 %v1644_v63, 0.0  ;;  %v5071_v50 = vmax.f32 %v1646_v9, 0.0  ;;  %v1648_v15 = vmul.f32 %v4908_v51, %v4829_v0 }
 0x312   : > { %v5073_v39 = vmax.f32 %v1645_v59, 0.0  ;;  %v5083_v11 = vmax.f32 %v1647_v27, 0.0  ;;  %v5095_v55 = vmax.f32 %v1649_v48, 0.0  ;;  %v1650_v35 = vmul.f32 %v4908_v51, %v4843_v17 }
 0x313   : > { %1822 = vrot.lane.b32.xlu1 %v4940_v41, %s3552_s18  ;;  %1726 = vrot.lane.b32.xlu0 %v1661_v21, %s3553_s19  ;;  %v5097_v1 = vmax.f32 %v1648_v15, 0.0  ;;  %v1652_v33 = vmul.f32 %v4908_v51, %v4857_v45  ;;  %v1651_v60 = vmul.f32 %v4908_v51, %v4850_v22  ;;  %v1653_v8 = vmul.f32 %v4908_v51, %v4864_v14 }
 0x314   : > { %1874 = vrot.lane.b32.xlu2 %v4943_v34, %s3552_s18  ;;  %v5107_v13 = vmax.f32 %v1650_v35, 0.0 }
 0x315   : > { %v5137_v52 = vmax.f32 %v1652_v33, 0.0  ;;  %v5139_v61 = vmax.f32 %v1651_v60, 0.0  ;;  %v5161_v15 = vmax.f32 %v1653_v8, 0.0 }
 0x31b   : > { %1730 = vrot.lane.b32.xlu1 %v4940_v41, %s3553_s19  ;;  %1824 = vrot.lane.b32.xlu0 %v4954_v28, %s3552_s18 }
 0x31c   : > { %1728 = vrot.lane.b32.xlu2 %v4922_v53, %s3553_s19 }
 0x323   : > { %1828 = vrot.lane.b32.xlu1 %v4966_v24, %s3552_s18  ;;  %1732 = vrot.lane.b32.xlu0 %v4954_v28, %s3553_s19 }
 0x324   : > { %1826 = vrot.lane.b32.xlu2 %v4968_v30, %s3552_s18 }
 0x32b   : > { %1736 = vrot.lane.b32.xlu1 %v4966_v24, %s3553_s19  ;;  %1830 = vrot.lane.b32.xlu0 %v4984_v43, %s3552_s18 }
 0x32c   : > { %1734 = vrot.lane.b32.xlu2 %v4968_v30, %s3553_s19 }
 0x333   : > { %1834 = vrot.lane.b32.xlu1 %v4999_v40, %s3552_s18  ;;  %1738 = vrot.lane.b32.xlu0 %v4984_v43, %s3553_s19 }
 0x334   : > { %1832 = vrot.lane.b32.xlu2 %v5001_v47, %s3552_s18 }
 0x33b   : > { %1742 = vrot.lane.b32.xlu1 %v4999_v40, %s3553_s19  ;;  %1836 = vrot.lane.b32.xlu0 %v5011_v62, %s3552_s18 }
 0x33c   : > { %1740 = vrot.lane.b32.xlu2 %v5001_v47, %s3553_s19 }
 0x343   : > { %1840 = vrot.lane.b32.xlu1 %v5023_v12, %s3552_s18  ;;  %1744 = vrot.lane.b32.xlu0 %v5011_v62, %s3553_s19 }
 0x344   : > { %1838 = vrot.lane.b32.xlu2 %v5025_v26, %s3552_s18 }
 0x34b   : > { %1748 = vrot.lane.b32.xlu1 %v5023_v12, %s3553_s19  ;;  %1842 = vrot.lane.b32.xlu0 %v5035_v7, %s3552_s18 }
 0x34c   : > { %1746 = vrot.lane.b32.xlu2 %v5025_v26, %s3553_s19 }
 0x353   : > { %1846 = vrot.lane.b32.xlu1 %v5047_v2, %s3552_s18  ;;  %1750 = vrot.lane.b32.xlu0 %v5035_v7, %s3553_s19 }
 0x354   : > { %1844 = vrot.lane.b32.xlu2 %v5049_v42, %s3552_s18 }
 0x35b   : > { %1754 = vrot.lane.b32.xlu1 %v5047_v2, %s3553_s19  ;;  %1848 = vrot.lane.b32.xlu0 %v5059_v20, %s3552_s18 }
 0x35c   : > { %1752 = vrot.lane.b32.xlu2 %v5049_v42, %s3553_s19 }
 0x363   : > { %1852 = vrot.lane.b32.xlu1 %v5071_v50, %s3552_s18  ;;  %1756 = vrot.lane.b32.xlu0 %v5059_v20, %s3553_s19 }
 0x364   : > { %1850 = vrot.lane.b32.xlu2 %v5073_v39, %s3552_s18 }
 0x366   : > { %v1725_v4 = vpop.permute.xlu2 %1724 }
 0x367   : > { %v1910_v0 = vsel %vm428_vm1, %v4922_v53, %v1725_v4 }
 0x36b   : > { %1760 = vrot.lane.b32.xlu1 %v5071_v50, %s3553_s19  ;;  %1854 = vrot.lane.b32.xlu0 %v5083_v11, %s3552_s18 }
 0x36c   : > { %1758 = vrot.lane.b32.xlu2 %v5073_v39, %s3553_s19 }
 0x36e   : > { %v5119_v17 = vpop.permute.xlu2 %1874 }
 0x373   : > { %1858 = vrot.lane.b32.xlu1 %v5095_v55, %s3552_s18  ;;  %1762 = vrot.lane.b32.xlu0 %v5083_v11, %s3553_s19 }
 0x374   : > { %1856 = vrot.lane.b32.xlu2 %v5097_v1, %s3552_s18 }
 0x376   : > { %v1729_v48 = vpop.permute.xlu2 %1728 }
 0x377   : > { %v1912_v35 = vsel %vm428_vm1, %v1660_v19, %v1729_v48 }
 0x37b   : > { %1766 = vrot.lane.b32.xlu1 %v5095_v55, %s3553_s19  ;;  %1860 = vrot.lane.b32.xlu0 %v5107_v13, %s3552_s18 }
 0x37c   : > { %1764 = vrot.lane.b32.xlu2 %v5097_v1, %s3553_s19 }
 0x37d   : > { %v1787_v3 = vpop.permute.xlu0 %1786  ;;  %v1821_v44 = vpop.permute.xlu1 %1820 }
 0x37e   : > { %v1941_v29 = vsel %vm428_vm1, %v4943_v34, %v1787_v3  ;;  %v5124_v23 = vsel %vm461_vm2, %v1910_v0, %v1821_v44  ;;  %v1655_v44 = vmul.f32 %v4908_v51, %v4681_v46 }
 0x37f   : > { %v5130_v58 = vsel %vm461_vm2, %v1941_v29, %v5119_v17  ;;  %v1977_v18 = vrot.slane %v5124_v23, 7  ;;  %3420 = vmatmul.msk.f32.vlgmr.msrb.gmra.mxu0 %vm616_vm3, %v5124_v23  ;;  %v2041_v37 = vperm.slane %v5124_v23, 1  ;;  %v2515_v9 = vrot.slane %v5124_v23, 1 }
 0x380   : > { %v2008_v45 = vrot.slane %v5130_v58, 7  ;;  %v1654_v29 = vmul.f32 %v4908_v51, %v4678_v5 }
 0x382   : > { %v2040_v36 = vsel %vm529_vm5, %v2008_v45, %v1977_v18 }
 0x383   : > { %1864 = vrot.lane.b32.xlu1 %v5137_v52, %s3552_s18  ;;  %1768 = vrot.lane.b32.xlu0 %v5107_v13, %s3553_s19  ;;  %v2057_v6 = vsel %vm174_vm4, %v2041_v37, %v2040_v36  ;;  %v5189_v36 = vmax.f32 %v1655_v44, 0.0  ;;  %v1658_v44 = vmul.f32 %v4908_v51, %v4690_v16 }
 0x384   : > { %1862 = vrot.lane.b32.xlu2 %v5139_v61, %s3552_s18  ;;  %3387 = vmatmul.msk.f32.vlgmr.msrb.gmra.mxu3 %vm616_vm3, %v2057_v6 }
 0x385   : > { %v1823_v49 = vpop.permute.xlu1 %1822  ;;  %v1727_v56 = vpop.permute.xlu0 %1726 }
 0x386   : > { %v1911_v25 = vsel %vm428_vm1, %v4940_v41, %v1727_v56 }
 0x387   : > { %v1943_v63 = vsel %vm461_vm2, %v1911_v25, %v1823_v49  ;;  %v5195_v49 = vmax.f32 %v1654_v29, 0.0  ;;  %v1827_v25 = vpop.permute.xlu2 %1826 }
 0x388   : > { %3421 = vmatmul.msk.f32.gmra.mxu0 %vm616_vm3, %v1943_v63  ;;  %v2516_v59 = vrot.slane %v1943_v63, 1  ;;  %v1978_v27 = vrot.slane %v1943_v63, 7  ;;  %v2579_v57 = vperm.slane %v1943_v63, 6  ;;  %v1656_v63 = vmul.f32 %v4908_v51, %v4684_v38 }
 0x38a   : > { %v2577_v4 = vsel %vm1074_vm6, %v2515_v9, %v2516_v59  ;;  %v2039_v14 = vsel %vm529_vm5, %v1977_v18, %v1978_v27 }
 0x38b   : > { %1772 = vrot.lane.b32.xlu1 %v5137_v52, %s3553_s19  ;;  %1866 = vrot.lane.b32.xlu0 %v5161_v15, %s3552_s18 }
 0x38c   : > { %1770 = vrot.lane.b32.xlu2 %v5139_v61, %s3553_s19  ;;  %3455 = vmatmul.msk.f32.vlgmr.msrb.gmra.mxu1 %vm616_vm3, %v2577_v4 }
 0x38d   : > { %3388 = vmatmul.msk.f32.gmra.mxu3 %vm616_vm3, %v2039_v14  ;;  %v1731_v0 = vpop.permute.xlu1 %1730  ;;  %v1825_v3 = vpop.permute.xlu0 %1824  ;;  %v5215_v14 = vmax.f32 %v1656_v63, 0.0 }
 0x38e   : > { %v1944_v33 = vsel %vm461_vm2, %v1912_v35, %v1825_v3  ;;  %v1913_v19 = vsel %vm428_vm1, %v1661_v21, %v1731_v0 }
 0x38f   : > { %v1979_v60 = vrot.slane %v1944_v33, 7  ;;  %v2042_v18 = vperm.slane %v1944_v33, 1  ;;  %v2517_v37 = vrot.slane %v1944_v33, 1  ;;  %v1945_v10 = vsel %vm461_vm2, %v1913_v19, %v1827_v25 }
 0x390   : > { %3422 = vmatmul.msk.f32.gmra.mxu0 %vm616_vm3, %v1944_v33  ;;  %v2518_v48 = vrot.slane %v1945_v10, 1  ;;  %v1980_v4 = vrot.slane %v1945_v10, 7  ;;  %v1735_v33 = vpop.permute.xlu2 %1734  ;;  %v2580_v19 = vperm.slane %v1945_v10, 6 }
 0x391   : > { %v2576_v46 = vsel %vm1074_vm6, %v2516_v59, %v2517_v37  ;;  %v2038_v6 = vsel %vm529_vm5, %v1978_v27, %v1979_v60 }
 0x392   : > { %v2596_v56 = vsel %vm177_vm7, %v2579_v57, %v2576_v46  ;;  %v2059_v8 = vsel %vm174_vm4, %v2042_v18, %v2038_v6  ;;  %v2575_v38 = vsel %vm1074_vm6, %v2517_v37, %v2518_v48  ;;  %v1690_v57 = vmax.f32 %v1658_v44, 0.0 }
 0x393   : > { %1870 = vrot.lane.b32.xlu1 %v5189_v36, %s3552_s18  ;;  %1774 = vrot.lane.b32.xlu0 %v5161_v15, %s3553_s19  ;;  %v1915_v46 = vsel %vm428_vm1, %v4940_v41, %v1735_v33 }
 0x394   : > { %1868 = vrot.lane.b32.xlu2 %v5195_v49, %s3552_s18  ;;  %3456 = vmatmul.msk.f32.gmra.mxu1 %vm616_vm3, %v2596_v56 }
 0x395   : > { %3389 = vmatmul.msk.f32.gmra.mxu3 %vm616_vm3, %v2059_v8  ;;  %v1733_v21 = vpop.permute.xlu0 %1732  ;;  %v1829_v59 = vpop.permute.xlu1 %1828 }
 0x396   : > { %v1914_v27 = vsel %vm428_vm1, %v4922_v53, %v1733_v21  ;;  %v2037_v53 = vsel %vm529_vm5, %v1979_v60, %v1980_v4 }
 0x397   : > { %v1946_v35 = vsel %vm461_vm2, %v1914_v27, %v1829_v59 }
 0x398   : > { %3423 = vmatmul.msk.f32.gmra.mxu0 %vm616_vm3, %v1945_v10  ;;  %v2519_v0 = vrot.slane %v1946_v35, 1  ;;  %v1981_v3 = vrot.slane %v1946_v35, 7  ;;  %v2043_v18 = vperm.slane %v1946_v35, 1  ;;  %v1833_v8 = vpop.permute.xlu2 %1832 }
 0x39a   : > { %v2574_v29 = vsel %vm1074_vm6, %v2518_v48, %v2519_v0  ;;  %v2036_v60 = vsel %vm529_vm5, %v1980_v4, %v1981_v3 }
 0x39b   : > { %1778 = vrot.lane.b32.xlu1 %v5189_v36, %s3553_s19  ;;  %1872 = vrot.lane.b32.xlu0 %v5215_v14, %s3552_s18  ;;  %v2598_v16 = vsel %vm177_vm7, %v2580_v19, %v2574_v29  ;;  %v2061_v56 = vsel %vm174_vm4, %v2043_v18, %v2036_v60 }
 0x39c   : > { %1776 = vrot.lane.b32.xlu2 %v5195_v49, %s3553_s19  ;;  %3457 = vmatmul.msk.f32.gmra.mxu1 %vm616_vm3, %v2575_v38 }
 0x39d   : > { %3390 = vmatmul.msk.f32.gmra.mxu3 %vm616_vm3, %v2037_v53  ;;  %v1831_v37 = vpop.permute.xlu0 %1830  ;;  %v1737_v6 = vpop.permute.xlu1 %1736 }
 0x39e   : > { %v1947_v51 = vsel %vm461_vm2, %v1915_v46, %v1831_v37  ;;  %v1916_v41 = vsel %vm428_vm1, %v4954_v28, %v1737_v6 }
 0x39f   : > { %v1982_v25 = vrot.slane %v1947_v51, 7  ;;  %v1948_v10 = vsel %vm461_vm2, %v1916_v41, %v1833_v8 }
 0x3a0   : > { %3424 = vmatmul.msk.f32.gmra.mxu0 %vm616_vm3, %v1946_v35  ;;  %v2521_v59 = vrot.slane %v1948_v10, 1  ;;  %v1983_v27 = vrot.slane %v1948_v10, 7  ;;  %v2044_v4 = vperm.slane %v1948_v10, 1  ;;  %v2581_v35 = vperm.slane %v1947_v51, 6  ;;  %v1741_v44 = vpop.permute.xlu2 %1740 }
 0x3a1   : > { %v2035_v28 = vsel %vm529_vm5, %v1981_v3, %v1982_v25 }
 0x3a3   : > { %1782 = vrot.lane.b32.xlu1 %v4943_v34, %s3553_s19  ;;  %1876 = vrot.lane.b32.xlu0 %v1690_v57, %s3552_s18  ;;  %v2520_v34 = vrot.slane %v1947_v51, 1 }
 0x3a4   : > { %1780 = vrot.lane.b32.xlu2 %v5215_v14, %s3553_s19  ;;  %3458 = vmatmul.msk.f32.gmra.mxu1 %vm616_vm3, %v2598_v16 }
 0x3a5   : > { %3391 = vmatmul.msk.f32.gmra.mxu3 %vm616_vm3, %v2061_v56  ;;  %v2573_v21 = vsel %vm1074_vm6, %v2519_v0, %v2520_v34  ;;  %v1739_v63 = vpop.permute.xlu0 %1738  ;;  %v2572_v48 = vsel %vm1074_vm6, %v2520_v34, %v2521_v59  ;;  %v1835_v38 = vpop.permute.xlu1 %1834 }
 0x3a6   : > { %v1917_v32 = vsel %vm428_vm1, %v4968_v30, %v1739_v63  ;;  %v2600_v53 = vsel %vm177_vm7, %v2581_v35, %v2572_v48  ;;  %v1918_v30 = vsel %vm428_vm1, %v4966_v24, %v1741_v44 }
 0x3a7   : > { %v1949_v3 = vsel %vm461_vm2, %v1917_v32, %v1835_v38 }
 0x3a8   : > { %3425 = vmatmul.msk.f32.gmra.mxu0 %vm616_vm3, %v1947_v51  ;;  %v2522_v29 = vrot.slane %v1949_v3, 1  ;;  %v1984_v18 = vrot.slane %v1949_v3, 7  ;;  %v2582_v56 = vperm.slane %v1949_v3, 6  ;;  %v1839_v34 = vpop.permute.xlu2 %1838 }
 0x3aa   : > { %v2033_v46 = vsel %vm529_vm5, %v1983_v27, %v1984_v18 }
 0x3ab   : > { %1784 = vrot.lane.b32.xlu0 %v1690_v57, %s3553_s19  ;;  %v2571_v57 = vsel %vm1074_vm6, %v2521_v59, %v2522_v29 }
 0x3ac   : > { %1878 = vrot.lane.b32.xlu2 %v1691_v31, %s3552_s18  ;;  %3459 = vmatmul.msk.f32.gmra.mxu1 %vm616_vm3, %v2573_v21  ;;  %v2034_v31 = vsel %vm529_vm5, %v1982_v25, %v1983_v27 }
 0x3ad   : > { %3392 = vmatmul.msk.f32.gmra.mxu3 %vm616_vm3, %v2035_v28  ;;  %v2063_v0 = vsel %vm174_vm4, %v2044_v4, %v2034_v31  ;;  %v1837_v33 = vpop.permute.xlu0 %1836  ;;  %v1743_v19 = vpop.permute.xlu1 %1742 }
 0x3ae   : > { %v1950_v37 = vsel %vm461_vm2, %v1918_v30, %v1837_v33  ;;  %v1919_v51 = vsel %vm428_vm1, %v4984_v43, %v1743_v19 }
 0x3af   : > { %v2523_v60 = vrot.slane %v1950_v37, 1  ;;  %v1985_v6 = vrot.slane %v1950_v37, 7  ;;  %v2045_v16 = vperm.slane %v1950_v37, 1  ;;  %v1951_v21 = vsel %vm461_vm2, %v1919_v51, %v1839_v34 }
 0x3b0   : > { %3426 = vmatmul.msk.f32.gmra.mxu0 %vm616_vm3, %v1948_v10  ;;  %v2524_v28 = vrot.slane %v1951_v21, 1  ;;  %v1986_v59 = vrot.slane %v1951_v21, 7  ;;  %v1747_v32 = vpop.permute.xlu2 %1746 }
 0x3b1   : > { %v2570_v24 = vsel %vm1074_vm6, %v2522_v29, %v2523_v60  ;;  %v2032_v41 = vsel %vm529_vm5, %v1984_v18, %v1985_v6  ;;  %v1921_v44 = vsel %vm428_vm1, %v4999_v40, %v1747_v32 }
 0x3b2   : > { %v2602_v25 = vsel %vm177_vm7, %v2582_v56, %v2570_v24  ;;  %v2065_v10 = vsel %vm174_vm4, %v2045_v16, %v2032_v41  ;;  %v2569_v48 = vsel %vm1074_vm6, %v2523_v60, %v2524_v28  ;;  %v2031_v4 = vsel %vm529_vm5, %v1985_v6, %v1986_v59 }
 0x3b4   : > { %3460 = vmatmul.msk.f32.gmra.mxu1 %vm616_vm3, %v2600_v53 }
 0x3b5   : > { %3393 = vmatmul.msk.f32.gmra.mxu3 %vm616_vm3, %v2063_v0  ;;  %v1745_v8 = vpop.permute.xlu0 %1744  ;;  %v1841_v63 = vpop.permute.xlu1 %1840  ;;  %v2583_v0 = vperm.slane %v1951_v21, 6 }
 0x3b6   : > { %v1920_v43 = vsel %vm428_vm1, %v5001_v47, %v1745_v8 }
 0x3b7   : > { %v1952_v27 = vsel %vm461_vm2, %v1920_v43, %v1841_v63 }
 0x3b8   : > { %3427 = vmatmul.msk.f32.gmra.mxu0 %vm616_vm3, %v1949_v3  ;;  %v2525_v35 = vrot.slane %v1952_v27, 1  ;;  %v1987_v38 = vrot.slane %v1952_v27, 7  ;;  %v2046_v47 = vperm.slane %v1952_v27, 1  ;;  %v1845_v19 = vpop.permute.xlu2 %1844 }
 0x3ba   : > { %v2568_v31 = vsel %vm1074_vm6, %v2524_v28, %v2525_v35  ;;  %v2030_v3 = vsel %vm529_vm5, %v1986_v59, %v1987_v38 }
 0x3bb   : > { %v2604_v29 = vsel %vm177_vm7, %v2583_v0, %v2568_v31  ;;  %v2067_v18 = vsel %vm174_vm4, %v2046_v47, %v2030_v3 }
 0x3bc   : > { %3461 = vmatmul.msk.f32.gmra.mxu1 %vm616_vm3, %v2571_v57 }
 0x3bd   : > { %3394 = vmatmul.msk.f32.gmra.mxu3 %vm616_vm3, %v2033_v46  ;;  %v1843_v53 = vpop.permute.xlu0 %1842  ;;  %v1749_v33 = vpop.permute.xlu1 %1748 }
 0x3be   : > { %v1953_v30 = vsel %vm461_vm2, %v1921_v44, %v1843_v53 }
 0x3bf   : > { %v2526_v57 = vrot.slane %v1953_v30, 1  ;;  %v1988_v60 = vrot.slane %v1953_v30, 7  ;;  %v2584_v41 = vperm.slane %v1953_v30, 6 }
 0x3c0   : > { %3428 = vmatmul.msk.f32.gmra.mxu0 %vm616_vm3, %v1950_v37  ;;  %v1922_v37 = vsel %vm428_vm1, %v5011_v62, %v1749_v33  ;;  %v1753_v43 = vpop.permute.xlu2 %1752 }
 0x3c1   : > { %v1954_v40 = vsel %vm461_vm2, %v1922_v37, %v1845_v19  ;;  %v2567_v46 = vsel %vm1074_vm6, %v2525_v35, %v2526_v57  ;;  %v2029_v16 = vsel %vm529_vm5, %v1987_v38, %v1988_v60 }
 0x3c2   : > { %v2527_v24 = vrot.slane %v1954_v40, 1  ;;  %v1989_v62 = vrot.slane %v1954_v40, 7  ;;  %v2047_v51 = vperm.slane %v1954_v40, 1 }
 0x3c4   : > { %3462 = vmatmul.msk.f32.gmra.mxu1 %vm616_vm3, %v2602_v25  ;;  %v2566_v56 = vsel %vm1074_vm6, %v2526_v57, %v2527_v24  ;;  %v2028_v25 = vsel %vm529_vm5, %v1988_v60, %v1989_v62 }
 0x3c5   : > { %3395 = vmatmul.msk.f32.gmra.mxu3 %vm616_vm3, %v2065_v10  ;;  %v1751_v6 = vpop.permute.xlu0 %1750  ;;  %v1847_v34 = vpop.permute.xlu1 %1846  ;;  %v2606_v10 = vsel %vm177_vm7, %v2584_v41, %v2566_v56 }
 0x3c6   : > { %v1923_v8 = vsel %vm428_vm1, %v5025_v26, %v1751_v6  ;;  %v1924_v26 = vsel %vm428_vm1, %v5023_v12, %v1753_v43 }
 0x3c7   : > { %v1955_v63 = vsel %vm461_vm2, %v1923_v8, %v1847_v34 }
 0x3c8   : > { %3429 = vmatmul.msk.f32.gmra.mxu0 %vm616_vm3, %v1951_v21  ;;  %v2069_v21 = vsel %vm174_vm4, %v2047_v51, %v2028_v25  ;;  %v2528_v59 = vrot.slane %v1955_v63, 1  ;;  %v2585_v0 = vperm.slane %v1955_v63, 6  ;;  %v1851_v44 = vpop.permute.xlu2 %1850 }
 0x3cc   : > { %3463 = vmatmul.msk.f32.gmra.mxu1 %vm616_vm3, %v2569_v48 }
 0x3cd   : > { %3396 = vmatmul.msk.f32.gmra.mxu3 %vm616_vm3, %v2031_v4  ;;  %v1849_v28 = vpop.permute.xlu0 %1848  ;;  %v2565_v4 = vsel %vm1074_vm6, %v2527_v24, %v2528_v59  ;;  %v1755_v35 = vpop.permute.xlu1 %1754 }
 0x3ce   : > { %v1956_v48 = vsel %vm461_vm2, %v1924_v26, %v1849_v28  ;;  %v1925_v53 = vsel %vm428_vm1, %v5035_v7, %v1755_v35 }
 0x3cf   : > { %v2529_v38 = vrot.slane %v1956_v48, 1  ;;  %v1991_v47 = vrot.slane %v1956_v48, 7  ;;  %v2048_v31 = vperm.slane %v1956_v48, 1 }
 0x3d0   : > { %3430 = vmatmul.msk.f32.gmra.mxu0 %vm616_vm3, %v1952_v27  ;;  %v1990_v27 = vrot.slane %v1955_v63, 7 }
 0x3d1   : > { %v2564_v12 = vsel %vm1074_vm6, %v2528_v59, %v2529_v38 }
 0x3d2   : > { %v2027_v32 = vsel %vm529_vm5, %v1989_v62, %v1990_v27  ;;  %v2026_v3 = vsel %vm529_vm5, %v1990_v27, %v1991_v47 }
 0x3d4   : > { %3464 = vmatmul.msk.f32.gmra.mxu1 %vm616_vm3, %v2604_v29  ;;  %v2608_v29 = vsel %vm177_vm7, %v2585_v0, %v2564_v12 }
 0x3d5   : > { %3397 = vmatmul.msk.f32.gmra.mxu3 %vm616_vm3, %v2067_v18  ;;  %v1757_v33 = vpop.permute.xlu0 %1756  ;;  %v1957_v18 = vsel %vm461_vm2, %v1925_v53, %v1851_v44  ;;  %v1853_v37 = vpop.permute.xlu1 %1852 }
 0x3d6   : > { %v1926_v7 = vsel %vm428_vm1, %v5049_v42, %v1757_v33  ;;  %v2530_v57 = vrot.slane %v1957_v18, 1  ;;  %v1992_v19 = vrot.slane %v1957_v18, 7  ;;  %v1759_v42 = vpop.permute.xlu2 %1758  ;;  %v2586_v41 = vperm.slane %v1957_v18, 6 }
 0x3d7   : > { %v1958_v60 = vsel %vm461_vm2, %v1926_v7, %v1853_v37  ;;  %v1927_v8 = vsel %vm428_vm1, %v5047_v2, %v1759_v42 }
 0x3d8   : > { %3431 = vmatmul.msk.f32.gmra.mxu0 %vm616_vm3, %v1953_v30  ;;  %v2071_v30 = vsel %vm174_vm4, %v2048_v31, %v2026_v3  ;;  %v1993_v24 = vrot.slane %v1958_v60, 7  ;;  %v2049_v62 = vperm.slane %v1958_v60, 1 }
 0x3da   : > { %v2024_v34 = vsel %vm529_vm5, %v1992_v19, %v1993_v24 }
 0x3dc   : > { %3465 = vmatmul.msk.f32.gmra.mxu1 %vm616_vm3, %v2567_v46  ;;  %v2025_v46 = vsel %vm529_vm5, %v1991_v47, %v1992_v19 }
 0x3dd   : > { %3398 = vmatmul.msk.f32.gmra.mxu3 %vm616_vm3, %v2029_v16  ;;  %v2531_v16 = vrot.slane %v1958_v60, 1  ;;  %v1855_v56 = vpop.permute.xlu0 %1854  ;;  %v1761_v25 = vpop.permute.xlu1 %1760 }
 0x3de   : > { %v1928_v43 = vsel %vm428_vm1, %v5059_v20, %v1761_v25  ;;  %v1857_v2 = vpop.permute.xlu2 %1856 }
 0x3df   : > { %v2562_v51 = vsel %vm1074_vm6, %v2530_v57, %v2531_v16  ;;  %v1960_v35 = vsel %vm461_vm2, %v1928_v43, %v1857_v2 }
 0x3e0   : > { %3432 = vmatmul.msk.f32.gmra.mxu0 %vm616_vm3, %v1954_v40  ;;  %v2563_v40 = vsel %vm1074_vm6, %v2529_v38, %v2530_v57  ;;  %v2533_v47 = vrot.slane %v1960_v35, 1  ;;  %v1995_v31 = vrot.slane %v1960_v35, 7  ;;  %v2050_v0 = vperm.slane %v1960_v35, 1 }
 0x3e4   : > { %3466 = vmatmul.msk.f32.gmra.mxu1 %vm616_vm3, %v2606_v10  ;;  %v2610_v10 = vsel %vm177_vm7, %v2586_v41, %v2562_v51 }
 0x3e5   : > { %3399 = vmatmul.msk.f32.gmra.mxu3 %vm616_vm3, %v2069_v21  ;;  %v1959_v21 = vsel %vm461_vm2, %v1927_v8, %v1855_v56  ;;  %v1859_v33 = vpop.permute.xlu1 %1858 }
 0x3e6   : > { %v2532_v59 = vrot.slane %v1959_v21, 1  ;;  %v1994_v27 = vrot.slane %v1959_v21, 7  ;;  %v2587_v44 = vperm.slane %v1959_v21, 6 }
 0x3e8   : > { %3433 = vmatmul.msk.f32.gmra.mxu0 %vm616_vm3, %v1955_v63  ;;  %v2073_v63 = vsel %vm174_vm4, %v2049_v62, %v2024_v34  ;;  %v2561_v38 = vsel %vm1074_vm6, %v2531_v16, %v2532_v59  ;;  %v2023_v20 = vsel %vm529_vm5, %v1993_v24, %v1994_v27  ;;  %v2560_v3 = vsel %vm1074_vm6, %v2532_v59, %v2533_v47 }
 0x3e9   : > { %v2022_v37 = vsel %vm529_vm5, %v1994_v27, %v1995_v31  ;;  %v2612_v7 = vsel %vm177_vm7, %v2587_v44, %v2560_v3 }
 0x3ea   : > { %v2075_v57 = vsel %vm174_vm4, %v2050_v0, %v2022_v37 }
 0x3ec   : > { %3467 = vmatmul.msk.f32.gmra.mxu1 %vm616_vm3, %v2565_v4 }
 0x3ed   : > { %3400 = vmatmul.msk.f32.gmra.mxu3 %vm616_vm3, %v2027_v32  ;;  %v1763_v32 = vpop.permute.xlu0 %1762  ;;  %v1767_v41 = vpop.permute.xlu1 %1766 }
 0x3ee   : > { %v1931_v43 = vsel %vm428_vm1, %v5083_v11, %v1767_v41 }
 0x3f0   : > { %3434 = vmatmul.msk.f32.gmra.mxu0 %vm616_vm3, %v1956_v48 }
 0x3f4   : > { %3468 = vmatmul.msk.f32.gmra.mxu1 %vm616_vm3, %v2608_v29  ;;  %v1929_v29 = vsel %vm428_vm1, %v5073_v39, %v1763_v32 }
 0x3f5   : > { %3401 = vmatmul.msk.f32.gmra.mxu3 %vm616_vm3, %v2071_v30  ;;  %v1961_v19 = vsel %vm461_vm2, %v1929_v29, %v1859_v33  ;;  %v1861_v39 = vpop.permute.xlu0 %1860 }
 0x3f6   : > { %v1996_v24 = vrot.slane %v1961_v19, 7 }
 0x3f8   : > { %3435 = vmatmul.msk.f32.gmra.mxu0 %vm616_vm3, %v1957_v18 }
 0x3fc   : > { %3469 = vmatmul.msk.f32.gmra.mxu1 %vm616_vm3, %v2563_v40  ;;  %v2419_v6 = vpop.f32.mrf.mxu0 }
 0x3fd   : > { %3402 = vmatmul.msk.f32.gmra.mxu3 %vm616_vm3, %v2025_v46  ;;  %v2534_v46 = vrot.slane %v1961_v19, 1 }
 0x3ff   : > { %v2559_v56 = vsel %vm1074_vm6, %v2533_v47, %v2534_v46 }
 0x400   : > { %3436 = vmatmul.msk.f32.gmra.mxu0 %vm616_vm3, %v1958_v60  ;;  %v1765_v60 = vpop.permute.xlu2 %1764 }
 0x404   : > { %3470 = vmatmul.msk.f32.gmra.mxu1 %vm616_vm3, %v2610_v10 }
 0x405   : > { %3403 = vmatmul.msk.f32.gmra.mxu3 %vm616_vm3, %v2073_v63  ;;  %v2422_v28 = vpop.f32.mrf.mxu0 }
 0x407   : > { %v2207_v26 = vpop.f32.mrf.mxu3 }
 0x408   : > { %v5401_v48 = vadd.f32 %v2419_v6, %v2207_v26  ;;  %3437 = vmatmul.msk.f32.gmra.mxu0 %vm616_vm3, %v1959_v21  ;;  %v1930_v6 = vsel %vm428_vm1, %v5071_v50, %v1765_v60  ;;  %v2021_v50 = vsel %vm529_vm5, %v1995_v31, %v1996_v24  ;;  %v1863_v27 = vpop.permute.xlu2 %1862 }
 0x409   : > { %v5404_v4 = vpop.f32.mrf.mxu1  ;;  %v1962_v42 = vsel %vm461_vm2, %v1930_v6, %v1861_v39  ;;  %v1963_v11 = vsel %vm461_vm2, %v1931_v43, %v1863_v27 }
 0x40a   : > { %v2535_v34 = vrot.slane %v1962_v42, 1  ;;  %v1997_v8 = vrot.slane %v1962_v42, 7  ;;  %v2051_v10 = vperm.slane %v1962_v42, 1  ;;  %v1998_v0 = vrot.slane %v1963_v11, 7 }
 0x40b   : > { %v2589_v6 = vperm.slane %v1963_v11, 6 }
 0x40c   : > { %3471 = vmatmul.msk.f32.gmra.mxu1 %vm616_vm3, %v2561_v38  ;;  %v2558_v63 = vsel %vm1074_vm6, %v2534_v46, %v2535_v34  ;;  %v2020_v2 = vsel %vm529_vm5, %v1996_v24, %v1997_v8 }
 0x40d   : > { %3404 = vmatmul.msk.f32.gmra.mxu3 %vm616_vm3, %v2023_v20  ;;  %v2425_v12 = vpop.f32.mrf.mxu0  ;;  %v2077_v32 = vsel %vm174_vm4, %v2051_v10, %v2020_v2  ;;  %v1865_v20 = vpop.permute.xlu1 %1864 }
 0x410   : > { %v2210_v53 = vpop.f32.mrf.mxu3  ;;  %3438 = vmatmul.msk.f32.gmra.mxu0 %vm616_vm3, %v1960_v35  ;;  %v1769_v35 = vpop.permute.xlu0 %1768 }
 0x411   : > { %v5418_v30 = vadd.f32 %v2422_v28, %v2210_v53  ;;  %v5420_v18 = vpop.f32.mrf.mxu1  ;;  %v2588_v28 = vperm.slane %v1961_v19, 6  ;;  %v1932_v47 = vsel %vm428_vm1, %v5097_v1, %v1769_v35  ;;  %v2019_v1 = vsel %vm529_vm5, %v1997_v8, %v1998_v0 }
 0x412   : > { %v1964_v33 = vsel %vm461_vm2, %v1932_v47, %v1865_v20 }
 0x413   : > { %v2614_v38 = vsel %vm177_vm7, %v2588_v28, %v2558_v63  ;;  %v2537_v37 = vrot.slane %v1964_v33, 1  ;;  %v2052_v39 = vperm.slane %v1964_v33, 1 }
 0x414   : > { %3472 = vmatmul.msk.f32.gmra.mxu1 %vm616_vm3, %v2612_v7  ;;  %v1999_v7 = vrot.slane %v1964_v33, 7 }
 0x415   : > { %3405 = vmatmul.msk.f32.gmra.mxu3 %vm616_vm3, %v2075_v57  ;;  %v2428_v40 = vpop.f32.mrf.mxu0  ;;  %v1771_v57 = vpop.permute.xlu2 %1770 }
 0x416   : > { %v1773_v41 = vpop.permute.xlu1 %1772 }
 0x418   : > { %v2213_v16 = vpop.f32.mrf.mxu3  ;;  %3439 = vmatmul.msk.f32.gmra.mxu0 %vm616_vm3, %v1961_v19  ;;  %v1867_v46 = vpop.permute.xlu0 %1866 }
 0x419   : > { %v5435_v62 = vadd.f32 %v2425_v12, %v2213_v16  ;;  %v5437_v51 = vpop.f32.mrf.mxu1  ;;  %v2536_v12 = vrot.slane %v1963_v11, 1 }
 0x41b   : > { %v2557_v29 = vsel %vm1074_vm6, %v2535_v34, %v2536_v12 }
 0x41c   : > { %3473 = vmatmul.msk.f32.gmra.mxu1 %vm616_vm3, %v2559_v56  ;;  %v1933_v56 = vsel %vm428_vm1, %v5095_v55, %v1771_v57 }
 0x41d   : > { %3406 = vmatmul.msk.f32.gmra.mxu3 %vm616_vm3, %v2021_v50  ;;  %v2431_v25 = vpop.f32.mrf.mxu0  ;;  %v1965_v50 = vsel %vm461_vm2, %v1933_v56, %v1867_v46  ;;  %v1869_v63 = vpop.permute.xlu2 %1868 }
 0x41e   : > { %v2000_v55 = vrot.slane %v1965_v50, 7 }
 0x420   : > { %v2216_v21 = vpop.f32.mrf.mxu3  ;;  %3440 = vmatmul.msk.f32.gmra.mxu0 %vm616_vm3, %v1962_v42  ;;  %v2018_v42 = vsel %vm529_vm5, %v1998_v0, %v1999_v7  ;;  %v1871_v0 = vpop.permute.xlu1 %1870 }
 0x421   : > { %v5450_v59 = vadd.f32 %v2428_v40, %v2216_v21  ;;  %v5452_v26 = vpop.f32.mrf.mxu1  ;;  %v2556_v40 = vsel %vm1074_vm6, %v2536_v12, %v2537_v37  ;;  %v2079_v8 = vsel %vm174_vm4, %v2052_v39, %v2018_v42  ;;  %v2538_v21 = vrot.slane %v1965_v50, 1 }
 0x422   : > { %v2616_v34 = vsel %vm177_vm7, %v2589_v6, %v2556_v40 }
 0x423   : > { %v2555_v35 = vsel %vm1074_vm6, %v2537_v37, %v2538_v21 }
 0x424   : > { %3474 = vmatmul.msk.f32.gmra.mxu1 %vm616_vm3, %v2614_v38  ;;  %v1775_v38 = vpop.permute.xlu0 %1774 }
 0x425   : > { %3407 = vmatmul.msk.f32.gmra.mxu3 %vm616_vm3, %v2077_v32  ;;  %v2434_v31 = vpop.f32.mrf.mxu0 }
 0x428   : > { %v2219_v53 = vpop.f32.mrf.mxu3  ;;  %3441 = vmatmul.msk.f32.gmra.mxu0 %vm616_vm3, %v1963_v11 }
 0x429   : > { %v5466_v3 = vadd.f32 %v2431_v25, %v2219_v53  ;;  %v5468_v44 = vpop.f32.mrf.mxu1  ;;  %v1934_v25 = vsel %vm428_vm1, %v5107_v13, %v1773_v41  ;;  %v2017_v13 = vsel %vm529_vm5, %v1999_v7, %v2000_v55  ;;  %v2590_v53 = vperm.slane %v1965_v50, 6 }
 0x42a   : > { %v1966_v27 = vsel %vm461_vm2, %v1934_v25, %v1869_v63 }
 0x42b   : > { %v2539_v32 = vrot.slane %v1966_v27, 1  ;;  %v2001_v11 = vrot.slane %v1966_v27, 7 }
 0x42c   : > { %3475 = vmatmul.msk.f32.gmra.mxu1 %vm616_vm3, %v2557_v29 }
 0x42d   : > { %3408 = vmatmul.msk.f32.gmra.mxu3 %vm616_vm3, %v2019_v1  ;;  %v2437_v19 = vpop.f32.mrf.mxu0  ;;  %v2554_v12 = vsel %vm1074_vm6, %v2538_v21, %v2539_v32  ;;  %v2016_v37 = vsel %vm529_vm5, %v2000_v55, %v2001_v11  ;;  %v1779_v21 = vpop.permute.xlu1 %1778 }
 0x42e   : > { %v2618_v7 = vsel %vm177_vm7, %v2590_v53, %v2554_v12 }
 0x430   : > { %v2222_v60 = vpop.f32.mrf.mxu3  ;;  %3442 = vmatmul.msk.f32.gmra.mxu0 %vm616_vm3, %v1964_v33  ;;  %v1935_v33 = vsel %vm428_vm1, %v5139_v61, %v1775_v38  ;;  %v5527_v61 = vpop.permute.xlu0 %1872 }
 0x431   : > { %v5480_v16 = vadd.f32 %v2434_v31, %v2222_v60  ;;  %v5482_v24 = vpop.f32.mrf.mxu1  ;;  %v2053_v31 = vperm.slane %v1966_v27, 1  ;;  %v1777_v60 = vpop.permute.xlu2 %1776 }
 0x432   : > { %v1936_v46 = vsel %vm428_vm1, %v5137_v52, %v1777_v60 }
 0x433   : > { %v2081_v57 = vsel %vm174_vm4, %v2053_v31, %v2016_v37  ;;  %v1968_v56 = vsel %vm461_vm2, %v1936_v46, %v5527_v61 }
 0x434   : > { %3476 = vmatmul.msk.f32.gmra.mxu1 %vm616_vm3, %v2616_v34  ;;  %v2541_v25 = vrot.slane %v1968_v56, 1  ;;  %v2054_v55 = vperm.slane %v1968_v56, 1 }
 0x435   : > { %3409 = vmatmul.msk.f32.gmra.mxu3 %vm616_vm3, %v2079_v8  ;;  %v2440_v10 = vpop.f32.mrf.mxu0 }
 0x438   : > { %v2225_v43 = vpop.f32.mrf.mxu3  ;;  %3443 = vmatmul.msk.f32.gmra.mxu0 %vm616_vm3, %v1965_v50  ;;  %v1877_v53 = vpop.permute.xlu0 %1876 }
 0x439   : > { %v5498_v28 = vadd.f32 %v2437_v19, %v2225_v43  ;;  %v5500_v2 = vpop.f32.mrf.mxu1  ;;  %v1967_v19 = vsel %vm461_vm2, %v1935_v33, %v1871_v0 }
 0x43a   : > { %v2540_v40 = vrot.slane %v1967_v19, 1  ;;  %v2002_v42 = vrot.slane %v1967_v19, 7  ;;  %v2591_v38 = vperm.slane %v1967_v19, 6 }
 0x43c   : > { %3477 = vmatmul.msk.f32.gmra.mxu1 %vm616_vm3, %v2555_v35  ;;  %v2553_v8 = vsel %vm1074_vm6, %v2539_v32, %v2540_v40  ;;  %v2015_v52 = vsel %vm529_vm5, %v2001_v11, %v2002_v42  ;;  %v1937_v35 = vsel %vm428_vm1, %v5161_v15, %v1779_v21  ;;  %v1781_v15 = vpop.permute.xlu2 %1780 }
 0x43d   : > { %3410 = vmatmul.msk.f32.gmra.mxu3 %vm616_vm3, %v2017_v13  ;;  %v2443_v20 = vpop.f32.mrf.mxu0  ;;  %v1969_v12 = vsel %vm461_vm2, %v1937_v35, %v5119_v17  ;;  %v1938_v37 = vsel %vm428_vm1, %v5195_v49, %v1781_v15 }
 0x43e   : > { %v2542_v33 = vrot.slane %v1969_v12, 1 }
 0x440   : > { %v2228_v47 = vpop.f32.mrf.mxu3  ;;  %3444 = vmatmul.msk.f32.gmra.mxu0 %vm616_vm3, %v1966_v27  ;;  %v2552_v27 = vsel %vm1074_vm6, %v2540_v40, %v2541_v25  ;;  %v2551_v17 = vsel %vm1074_vm6, %v2541_v25, %v2542_v33 }
 0x441   : > { %v5514_v29 = vadd.f32 %v2440_v10, %v2228_v47  ;;  %v5516_v1 = vpop.f32.mrf.mxu1  ;;  %v2003_v10 = vrot.slane %v1968_v56, 7  ;;  %v2620_v47 = vsel %vm177_vm7, %v2591_v38, %v2552_v27 }
 0x443   : > { %v2014_v11 = vsel %vm529_vm5, %v2002_v42, %v2003_v10  ;;  %v1783_v42 = vpop.permute.xlu1 %1782 }
 0x444   : > { %3478 = vmatmul.msk.f32.gmra.mxu1 %vm616_vm3, %v2618_v7  ;;  %v2083_v31 = vsel %vm174_vm4, %v2054_v55, %v2014_v11  ;;  %v1939_v25 = vsel %vm428_vm1, %v5189_v36, %v1783_v42  ;;  %v1879_v55 = vpop.permute.xlu2 %1878 }
 0x445   : > { %3411 = vmatmul.msk.f32.gmra.mxu3 %vm616_vm3, %v2081_v57  ;;  %v2446_v39 = vpop.f32.mrf.mxu0  ;;  %v2004_v57 = vrot.slane %v1969_v12, 7  ;;  %v1971_v36 = vsel %vm461_vm2, %v1939_v25, %v1879_v55 }
 0x446   : > { %v2544_v11 = vrot.slane %v1971_v36, 1 }
 0x448   : > { %v2231_v6 = vpop.f32.mrf.mxu3  ;;  %3445 = vmatmul.msk.f32.gmra.mxu0 %vm616_vm3, %v1967_v19  ;;  %v1970_v19 = vsel %vm461_vm2, %v1938_v37, %v1877_v53 }
 0x449   : > { %v2444_v41 = vadd.f32 %v2443_v20, %v2231_v6  ;;  %v2770_v34 = vpop.f32.mrf.mxu1  ;;  %v2543_v46 = vrot.slane %v1970_v19, 1  ;;  %v2013_v6 = vsel %vm529_vm5, %v2003_v10, %v2004_v57  ;;  %v2005_v49 = vrot.slane %v1970_v19, 7 }
 0x44b   : > { %v5534_v50 = vadd.f32 %v2770_v34, %v2444_v41  ;;  %v2055_v41 = vperm.slane %v1970_v19, 1  ;;  %v2012_v10 = vsel %vm529_vm5, %v2004_v57, %v2005_v49 }
 0x44c   : > { %3479 = vmatmul.msk.f32.gmra.mxu1 %vm616_vm3, %v2553_v8  ;;  %v2550_v8 = vsel %vm1074_vm6, %v2542_v33, %v2543_v46  ;;  %v2549_v33 = vsel %vm1074_vm6, %v2543_v46, %v2544_v11 }
 0x44d   : > { %3412 = vmatmul.msk.f32.gmra.mxu3 %vm616_vm3, %v2015_v52  ;;  %v2449_v63 = vpop.f32.mrf.mxu0  ;;  %v2592_v52 = vperm.slane %v1969_v12, 6  ;;  %v2085_v38 = vsel %vm174_vm4, %v2055_v41, %v2012_v10 }
 0x44f   : > { %v2622_v35 = vsel %vm177_vm7, %v2592_v52, %v2550_v8  ;;  %v2546_v52 = vrot.slane %v5130_v58, 1 }
 0x450   : > { %v2234_v43 = vpop.f32.mrf.mxu3  ;;  %3446 = vmatmul.msk.f32.gmra.mxu0 %vm616_vm3, %v1968_v56 }
 0x451   : > { %v2447_v13 = vadd.f32 %v2446_v39, %v2234_v43  ;;  %v2773_v32 = vpop.f32.mrf.mxu1  ;;  %v1785_v43 = vpop.permute.xlu0 %1784 }
 0x453   : > { %v5549_v20 = vadd.f32 %v2773_v32, %v2447_v13  ;;  %v1940_v13 = vsel %vm428_vm1, %v5215_v14, %v1785_v43  ;;  %v2594_v43 = vperm.slane %v5130_v58, 6 }
 0x454   : > { %3480 = vmatmul.msk.f32.gmra.mxu1 %vm616_vm3, %v2620_v47  ;;  %v1972_v53 = vsel %vm461_vm2, %v1940_v13, %v5527_v61 }
 0x455   : > { %3413 = vmatmul.msk.f32.gmra.mxu3 %vm616_vm3, %v2083_v31  ;;  %v2452_v0 = vpop.f32.mrf.mxu0  ;;  %v2006_v31 = vrot.slane %v1971_v36, 7  ;;  %v2545_v37 = vrot.slane %v1972_v53, 1 }
 0x457   : > { %v2011_v14 = vsel %vm529_vm5, %v2005_v49, %v2006_v31  ;;  %v2548_v61 = vsel %vm1074_vm6, %v2544_v11, %v2545_v37 }
 0x458   : > { %v2237_v7 = vpop.f32.mrf.mxu3  ;;  %3447 = vmatmul.msk.f32.gmra.mxu0 %vm616_vm3, %v1969_v12 }
 0x459   : > { %v2450_v60 = vadd.f32 %v2449_v63, %v2237_v7  ;;  %v2776_v39 = vpop.f32.mrf.mxu1  ;;  %v2007_v7 = vrot.slane %v1972_v53, 7 }
 0x45b   : > { %v5563_v40 = vadd.f32 %v2776_v39, %v2450_v60  ;;  %v2056_v60 = vperm.slane %v1972_v53, 1  ;;  %v2593_v39 = vperm.slane %v1971_v36, 6  ;;  %v2009_v10 = vsel %vm529_vm5, %v2007_v7, %v2008_v45 }
 0x45c   : > { %3481 = vmatmul.msk.f32.gmra.mxu1 %vm616_vm3, %v2551_v17 }
 0x45d   : > { %3414 = vmatmul.msk.f32.gmra.mxu3 %vm616_vm3, %v2013_v6  ;;  %v2455_v56 = vpop.f32.mrf.mxu0  ;;  %v2010_v6 = vsel %vm529_vm5, %v2006_v31, %v2007_v7  ;;  %v2624_v49 = vsel %vm177_vm7, %v2593_v39, %v2548_v61 }
 0x460   : > { %v2240_v34 = vpop.f32.mrf.mxu3  ;;  %3448 = vmatmul.msk.f32.gmra.mxu0 %vm616_vm3, %v1970_v19 }
 0x461   : > { %v2453_v21 = vadd.f32 %v2452_v0, %v2240_v34  ;;  %v2779_v63 = vpop.f32.mrf.mxu1 }
 0x463   : > { %v5578_v27 = vadd.f32 %v2779_v63, %v2453_v21  ;;  %v2547_v63 = vsel %vm1074_vm6, %v2545_v37, %v2546_v52 }
 0x464   : > { %3482 = vmatmul.msk.f32.gmra.mxu1 %vm616_vm3, %v2622_v35 }
 0x465   : > { %3415 = vmatmul.msk.f32.gmra.mxu3 %vm616_vm3, %v2085_v38  ;;  %v2458_v32 = vpop.f32.mrf.mxu0  ;;  %v2578_v38 = vsel %vm1074_vm6, %v2546_v52, %v2515_v9 }
 0x466   : > { %v2626_v11 = vsel %vm177_vm7, %v2594_v43, %v2578_v38  ;;  %v5668_v38 = vadd.f32 %v5404_v4, %v5401_v48  ;;  %v5688_v4 = vadd.f32 %v5468_v44, %v5466_v3 }
 0x468   : > { %v2243_v47 = vpop.f32.mrf.mxu3  ;;  %3449 = vmatmul.msk.f32.gmra.mxu0 %vm616_vm3, %v1971_v36 }
 0x469   : > { %v2456_v12 = vadd.f32 %v2455_v56, %v2243_v47  ;;  %v2782_v15 = vpop.f32.mrf.mxu1  ;;  %v2087_v56 = vsel %vm174_vm4, %v2056_v60, %v2010_v6 }
 0x46b   : > { %v5592_v0 = vadd.f32 %v2782_v15, %v2456_v12 }
 0x46c   : > { %3483 = vmatmul.msk.f32.gmra.mxu1 %vm616_vm3, %v2549_v33 }
 0x46d   : > { %3416 = vmatmul.msk.f32.gmra.mxu3 %vm616_vm3, %v2011_v14  ;;  %v2461_v57 = vpop.f32.mrf.mxu0 }
 0x470   : > { %v2246_v19 = vpop.f32.mrf.mxu3  ;;  %3450 = vmatmul.msk.f32.gmra.mxu0 %vm616_vm3, %v1972_v53 }
 0x471   : > { %v2459_v17 = vadd.f32 %v2458_v32, %v2246_v19  ;;  %v2785_v46 = vpop.f32.mrf.mxu1 }
 0x473   : > { %v5605_v42 = vadd.f32 %v2785_v46, %v2459_v17 }
 0x474   : > { %3484 = vmatmul.msk.f32.gmra.mxu1 %vm616_vm3, %v2624_v49 }
 0x475   : > { %3417 = vmatmul.msk.f32.gmra.mxu3 %vm616_vm3, %v2087_v56  ;;  %v2464_v41 = vpop.f32.mrf.mxu0 }
 0x478   : > { %v2249_v34 = vpop.f32.mrf.mxu3  ;;  %3451 = vmatmul.msk.f32.gmra.mxu0 %vm616_vm3, %v5130_v58 }
 0x479   : > { %v2462_v8 = vadd.f32 %v2461_v57, %v2249_v34  ;;  %v2788_v25 = vpop.f32.mrf.mxu1 }
 0x47b   : > { %v5616_v21 = vadd.f32 %v2788_v25, %v2462_v8 }
 0x47c   : > { %3485 = vmatmul.msk.f32.gmra.mxu1 %vm616_vm3, %v2547_v63 }
 0x47d   : > { %3418 = vmatmul.msk.f32.gmra.mxu3 %vm616_vm3, %v2009_v10  ;;  %v2467_v55 = vpop.f32.mrf.mxu0 }
 0x480   : > { %v2252_v35 = vpop.f32.mrf.mxu3 }
 0x481   : > { %v2465_v36 = vadd.f32 %v2464_v41, %v2252_v35  ;;  %v2791_v13 = vpop.f32.mrf.mxu1  ;;  %v5664_v35 = vadd.f32 %v5420_v18, %v5418_v30  ;;  %v2874_v30 = vsel %vm428_vm1, %v5668_v38, 0.0 }
 0x483   : > { %v5631_v32 = vadd.f32 %v2791_v13, %v2465_v36  ;;  %v5672_v36 = vadd.f32 %v5437_v51, %v5435_v62 }
 0x484   : > { %3486 = vmatmul.msk.f32.gmra.mxu1 %vm616_vm3, %v2626_v11  ;;  %v2875_v11 = vsel %vm428_vm1, %v5664_v35, 0.0 }
 0x485   : > { %v2470_v45 = vpop.f32.mrf.mxu0  ;;  %v2877_v48 = vsel %vm428_vm1, %v5672_v36, 0.0  ;;  %v2876_v62 = vadd.f32 %v2875_v11, %v2874_v30  ;;  %v2899_v30 = vsel %vm428_vm1, %v5605_v42, 0.0 }
 0x488   : > { %v2255_v47 = vpop.f32.mrf.mxu3 }
 0x489   : > { %v2468_v31 = vadd.f32 %v2467_v55, %v2255_v47  ;;  %v2794_v12 = vpop.f32.mrf.mxu1 }
 0x48b   : > { %v5636_v58 = vadd.f32 %v2794_v12, %v2468_v31  ;;  %v2881_v31 = vsel %vm428_vm1, %v5688_v4, 0.0  ;;  %v5702_v12 = vadd.f32 %v5500_v2, %v5498_v28 }
 0x48d   : > { %v2473_v15 = vpop.f32.mrf.mxu0 }
 0x490   : > { %v2258_v23 = vpop.f32.mrf.mxu3 }
 0x491   : > { %v2471_v53 = vadd.f32 %v2470_v45, %v2258_v23  ;;  %v2797_v22 = vpop.f32.mrf.mxu1  ;;  %v5680_v45 = vadd.f32 %v5452_v26, %v5450_v59  ;;  %v5696_v59 = vadd.f32 %v5482_v24, %v5480_v16  ;;  %v2878_v26 = vadd.f32 %v2877_v48, %v2876_v62 }
 0x492   : > { %v5708_v23 = vadd.f32 %v5516_v1, %v5514_v29  ;;  %v2885_v24 = vsel %vm428_vm1, %v5702_v12, 0.0 }
 0x493   : > { %v5638_v9 = vadd.f32 %v2797_v22, %v2471_v53  ;;  %v2879_v51 = vsel %vm428_vm1, %v5680_v45, 0.0 }
 0x494   : > { %v2880_v3 = vadd.f32 %v2879_v51, %v2878_v26  ;;  %v2887_v28 = vsel %vm428_vm1, %v5708_v23, 0.0  ;;  %v2901_v51 = vsel %vm428_vm1, %v5616_v21, 0.0 }
 0x495   : > { %v2476_v33 = vpop.f32.mrf.mxu0 }
 0x496   : > { %v2882_v53 = vadd.f32 %v2881_v31, %v2880_v3 }
 0x498   : > { %v2261_v14 = vpop.f32.mrf.mxu3 }
 0x499   : > { %v2474_v37 = vadd.f32 %v2473_v15, %v2261_v14  ;;  %v2800_v7 = vpop.f32.mrf.mxu1  ;;  %v2883_v15 = vsel %vm428_vm1, %v5696_v59, 0.0  ;;  %v2889_v14 = vsel %vm428_vm1, %v5534_v50, 0.0 }
 0x49b   : > { %v5640_v5 = vadd.f32 %v2800_v7, %v2474_v37  ;;  %v2891_v7 = vsel %vm428_vm1, %v5549_v20, 0.0 }
 0x49d   : > { %v2479_v57 = vpop.f32.mrf.mxu0 }
 0x4a0   : > { %v2264_v19 = vpop.f32.mrf.mxu3 }
 0x4a1   : > { %v2477_v60 = vadd.f32 %v2476_v33, %v2264_v19  ;;  %v2803_v61 = vpop.f32.mrf.mxu1  ;;  %v2884_v33 = vadd.f32 %v2883_v15, %v2882_v53  ;;  %v2893_v19 = vsel %vm428_vm1, %v5563_v40, 0.0  ;;  %v2903_v15 = vsel %vm428_vm1, %v5631_v32, 0.0 }
 0x4a3   : > { %v5642_v39 = vadd.f32 %v2803_v61, %v2477_v60  ;;  %v2886_v2 = vadd.f32 %v2885_v24, %v2884_v33  ;;  %v2905_v24 = vsel %vm428_vm1, %v5636_v58, 0.0 }
 0x4a5   : > { %v5644_v17 = vpop.f32.mrf.mxu0  ;;  %v2888_v37 = vadd.f32 %v2887_v28, %v2886_v2  ;;  %v2907_v28 = vsel %vm428_vm1, %v5638_v9, 0.0 }
 0x4a7   : > { %v2890_v29 = vadd.f32 %v2889_v14, %v2888_v37 }
 0x4a8   : > { %v2267_v46 = vpop.f32.mrf.mxu3 }
 0x4a9   : > { %v2480_v6 = vadd.f32 %v2479_v57, %v2267_v46  ;;  %v2806_v49 = vpop.f32.mrf.mxu1  ;;  %v2892_v61 = vadd.f32 %v2891_v7, %v2890_v29  ;;  %v2895_v46 = vsel %vm428_vm1, %v5578_v27, 0.0  ;;  %v2909_v7 = vsel %vm428_vm1, %v5640_v5, 0.0 }
 0x4ab   : > { %v5646_v56 = vadd.f32 %v2806_v49, %v2480_v6  ;;  %v2894_v6 = vadd.f32 %v2893_v19, %v2892_v61  ;;  %v2897_v49 = vsel %vm428_vm1, %v5592_v0, 0.0 }
 0x4ad   : > { %v5648_v41 = vpop.f32.mrf.mxu0  ;;  %v2896_v11 = vadd.f32 %v2895_v46, %v2894_v6  ;;  %v2911_v46 = vsel %vm428_vm1, %v5642_v39, 0.0 }
 0x4af   : > { %v2898_v48 = vadd.f32 %v2897_v49, %v2896_v11 }
 0x4b0   : > { %v2270_v34 = vpop.f32.mrf.mxu3 }
 0x4b1   : > { %v5650_v8 = vpop.f32.mrf.mxu1  ;;  %v2900_v31 = vadd.f32 %v2899_v30, %v2898_v48  ;;  %v2483_v2 = vadd.f32 %v5644_v17, %v2270_v34  ;;  %v2913_v34 = vsel %vm428_vm1, %v5646_v56, 0.0 }
 0x4b3   : > { %v2902_v53 = vadd.f32 %v2901_v51, %v2900_v31  ;;  %v5741_v6 = vadd.f32 %v5650_v8, %v2483_v2 }
 0x4b5   : > { %v5652_v25 = vpop.f32.mrf.mxu0  ;;  %v2904_v33 = vadd.f32 %v2903_v15, %v2902_v53  ;;  %v2915_v48 = vsel %vm428_vm1, %v5741_v6, 0.0 }
 0x4b7   : > { %v2906_v14 = vadd.f32 %v2905_v24, %v2904_v33 }
 0x4b8   : > { %v2273_v52 = vpop.f32.mrf.mxu3 }
 0x4b9   : > { %v5654_v63 = vpop.f32.mrf.mxu1  ;;  %v2486_v29 = vadd.f32 %v5648_v41, %v2273_v52  ;;  %v2908_v61 = vadd.f32 %v2907_v28, %v2906_v14 }
 0x4bb   : > { %v2910_v11 = vadd.f32 %v2909_v7, %v2908_v61  ;;  %v5748_v30 = vadd.f32 %v5654_v63, %v2486_v29 }
 0x4bd   : > { %v5656_v10 = vpop.f32.mrf.mxu0  ;;  %v2912_v52 = vadd.f32 %v2911_v46, %v2910_v11  ;;  %v2917_v31 = vsel %vm428_vm1, %v5748_v30, 0.0 }
 0x4c0   : > { %v5658_v55 = vpop.f32.mrf.mxu3 }
 0x4c1   : > { %v5660_v43 = vpop.f32.mrf.mxu1  ;;  %v2489_v49 = vadd.f32 %v5652_v25, %v5658_v55  ;;  %v2914_v25 = vadd.f32 %v2913_v34, %v2912_v52 }
 0x4c3   : > { %v5754_v8 = vadd.f32 %v5660_v43, %v2489_v49 }
 0x4c5   : > { %v5674_v13 = vpop.f32.mrf.mxu0 }
 0x4c8   : > { %v2279_v47 = vpop.f32.mrf.mxu3 }
 0x4c9   : > { %v5690_v18 = vpop.f32.mrf.mxu1  ;;  %v2492_v41 = vadd.f32 %v5656_v10, %v2279_v47  ;;  %v2916_v10 = vadd.f32 %v2915_v48, %v2914_v25  ;;  %v2919_v47 = vsel %vm428_vm1, %v5754_v8, 0.0 }
 0x4cb   : > { %v5760_v15 = vadd.f32 %v5690_v18, %v2492_v41  ;;  %v2918_v33 = vadd.f32 %v2917_v31, %v2916_v10 }
 0x4cd   : > { %v2497_v44 = vpop.f32.mrf.mxu0  ;;  %v2920_v2 = vadd.f32 %v2919_v47, %v2918_v33 }
 0x4d0   : > { %v2282_v16 = vpop.f32.mrf.mxu3 }
 0x4d1   : > { %v2821_v22 = vpop.f32.mrf.mxu1  ;;  %v2495_v51 = vadd.f32 %v5674_v13, %v2282_v16  ;;  %v2921_v13 = vsel %vm428_vm1, %v5760_v15, 0.0 }
 0x4d2   : > { %v2922_v7 = vadd.f32 %v2921_v13, %v2920_v2 }
 0x4d3   : > { %v5764_v24 = vadd.f32 %v2821_v22, %v2495_v51 }
 0x4d5   : > { %v2500_v1 = vpop.f32.mrf.mxu0  ;;  %v2923_v18 = vsel %vm428_vm1, %v5764_v24, 0.0 }
 0x4d8   : > { %v2285_v57 = vpop.f32.mrf.mxu3 }
 0x4d9   : > { %v2824_v60 = vpop.f32.mrf.mxu1  ;;  %v2498_v63 = vadd.f32 %v2497_v44, %v2285_v57 }
 0x4db   : > { %v5768_v16 = vadd.f32 %v2824_v60, %v2498_v63  ;;  %v2924_v60 = vadd.f32 %v2923_v18, %v2922_v7 }
 0x4dd   : > { %v2503_v3 = vpop.f32.mrf.mxu0  ;;  %v2925_v22 = vsel %vm428_vm1, %v5768_v16, 0.0 }
 0x4de   : > { %v2926_v46 = vadd.f32 %v2925_v22, %v2924_v60 }
 0x4e0   : > { %v2288_v62 = vpop.f32.mrf.mxu3 }
 0x4e1   : > { %v2827_v26 = vpop.f32.mrf.mxu1  ;;  %v2501_v43 = vadd.f32 %v2500_v1, %v2288_v62 }
 0x4e3   : > { %v5772_v44 = vadd.f32 %v2827_v26, %v2501_v43 }
 0x4e5   : > { %v2506_v17 = vpop.f32.mrf.mxu0 }
 0x4e8   : > { %v2291_v37 = vpop.f32.mrf.mxu3 }
 0x4e9   : > { %v2830_v19 = vpop.f32.mrf.mxu1  ;;  %v2504_v28 = vadd.f32 %v2503_v3, %v2291_v37  ;;  %v2927_v3 = vsel %vm428_vm1, %v5772_v44, 0.0 }
 0x4ea   : > { %v2928_v11 = vadd.f32 %v2927_v3, %v2926_v46 }
 0x4eb   : > { %v5776_v1 = vadd.f32 %v2830_v19, %v2504_v28 }
 0x4ed   : > { %v2509_v14 = vpop.f32.mrf.mxu0  ;;  %v2929_v26 = vsel %vm428_vm1, %v5776_v1, 0.0 }
 0x4ee   : > { %v2930_v19 = vadd.f32 %v2929_v26, %v2928_v11 }
 0x4f0   : > { %v2294_v55 = vpop.f32.mrf.mxu3 }
 0x4f1   : > { %v2833_v53 = vpop.f32.mrf.mxu1  ;;  %v2507_v57 = vadd.f32 %v2506_v17, %v2294_v55 }
 0x4f3   : > { %v5780_v37 = vadd.f32 %v2833_v53, %v2507_v57 }
 0x4f5   : > { %v2931_v17 = vsel %vm428_vm1, %v5780_v37, 0.0  ;;  %v2512_v34 = vpop.f32.mrf.mxu0 }
 0x4f6   : > { %v2932_v25 = vadd.f32 %v2931_v17, %v2930_v19 }
 0x4f8   : > { %v2297_v29 = vpop.f32.mrf.mxu3 }
 0x4f9   : > { %v2510_v62 = vadd.f32 %v2509_v14, %v2297_v29  ;;  %v2836_v61 = vpop.f32.mrf.mxu1 }
 0x4fb   : > { %v5784_v49 = vadd.f32 %v2836_v61, %v2510_v62 }
 0x4fd   : > { %v2933_v52 = vsel %vm428_vm1, %v5784_v49, 0.0 }
 0x4fe   : > { %v2934_v31 = vadd.f32 %v2933_v52, %v2932_v25 }
 0x500   : > { %v2300_v41 = vpop.f32.mrf.mxu3 }
 0x501   : > { %v2513_v48 = vadd.f32 %v2512_v34, %v2300_v41  ;;  %v2839_v51 = vpop.f32.mrf.mxu1 }
 0x503   : > { %v5790_v55 = vadd.f32 %v2839_v51, %v2513_v48 }
 0x505   : > { %v2935_v63 = vsel %vm428_vm1, %v5790_v55, 0.0 }
 0x506   : > { %v2936_v53 = vadd.f32 %v2935_v63, %v2934_v31 }
 0x508   : > { %v2937_v10 = vrot.slane %v2936_v53, 4 }
 0x50a   : > { %v2938_v47 = vadd.f32 %v2937_v10, %v2936_v53 }
 0x50c   : > { %v2939_v43 = vrot.slane %v2938_v47, 2 }
 0x50e   : > { %v2940_v33 = vadd.f32 %v2939_v43, %v2938_v47 }
 0x510   : > { %v2941_v13 = vrot.slane %v2940_v33, 1 }
 0x512   : > { %v2942_v28 = vadd.f32 %v2941_v13, %v2940_v33 }
 0x514   : > { %v5795_v2 = vmul.f32 %v2942_v28, %v4672_v54 }
 0x516   : > { %v5799_v14 = vsub.f32 %v5668_v38, %v5795_v2  ;;  %v5803_v18 = vsub.f32 %v5664_v35, %v5795_v2  ;;  %v5807_v57 = vsub.f32 %v5672_v36, %v5795_v2  ;;  %v5811_v7 = vsub.f32 %v5680_v45, %v5795_v2 }
 0x517   : > { %v5819_v38 = vsub.f32 %v5688_v4, %v5795_v2  ;;  %v5825_v36 = vsub.f32 %v5696_v59, %v5795_v2  ;;  %v5833_v3 = vsub.f32 %v5702_v12, %v5795_v2  ;;  %v5840_v59 = vsub.f32 %v5708_v23, %v5795_v2 }
 0x518   : > { %v2976_v29 = vmul.f32 %v5799_v14, %v5799_v14  ;;  %v2977_v22 = vmul.f32 %v5803_v18, %v5803_v18  ;;  %v2978_v35 = vmul.f32 %v5807_v57, %v5807_v57  ;;  %v2979_v45 = vmul.f32 %v5811_v7, %v5811_v7 }
 0x519   : > { %v2980_v4 = vmul.f32 %v5819_v38, %v5819_v38  ;;  %v2981_v11 = vmul.f32 %v5825_v36, %v5825_v36  ;;  %v5847_v12 = vsub.f32 %v5534_v50, %v5795_v2  ;;  %v2982_v34 = vmul.f32 %v5833_v3, %v5833_v3 }
 0x51a   : > { %v3008_v62 = vsel %vm428_vm1, %v2976_v29, 0.0  ;;  %v3009_v61 = vsel %vm428_vm1, %v2977_v22, 0.0  ;;  %v3011_v46 = vsel %vm428_vm1, %v2978_v35, 0.0  ;;  %v3013_v17 = vsel %vm428_vm1, %v2979_v45, 0.0 }
 0x51b   : > { %v3010_v60 = vadd.f32 %v3009_v61, %v3008_v62  ;;  %v3015_v41 = vsel %vm428_vm1, %v2980_v4, 0.0  ;;  %v5854_v23 = vsub.f32 %v5549_v20, %v5795_v2  ;;  %v2983_v48 = vmul.f32 %v5840_v59, %v5840_v59 }
 0x51c   : > { %v3017_v51 = vsel %vm428_vm1, %v2981_v11, 0.0  ;;  %v5861_v50 = vsub.f32 %v5563_v40, %v5795_v2  ;;  %v2984_v31 = vmul.f32 %v5847_v12, %v5847_v12  ;;  %v3019_v63 = vsel %vm428_vm1, %v2982_v34, 0.0 }
 0x51d   : > { %v3012_v26 = vadd.f32 %v3011_v46, %v3010_v60  ;;  %v5868_v20 = vsub.f32 %v5578_v27, %v5795_v2  ;;  %v2985_v10 = vmul.f32 %v5854_v23, %v5854_v23  ;;  %v3021_v47 = vsel %vm428_vm1, %v2983_v48, 0.0 }
 0x51e   : > { %v5875_v40 = vsub.f32 %v5592_v0, %v5795_v2  ;;  %v2986_v33 = vmul.f32 %v5861_v50, %v5861_v50  ;;  %v3023_v13 = vsel %vm428_vm1, %v2984_v31, 0.0  ;;  %v5882_v27 = vsub.f32 %v5605_v42, %v5795_v2 }
 0x51f   : > { %v3014_v19 = vadd.f32 %v3013_v17, %v3012_v26  ;;  %v2987_v29 = vmul.f32 %v5868_v20, %v5868_v20  ;;  %v3025_v22 = vsel %vm428_vm1, %v2985_v10, 0.0  ;;  %v5889_v0 = vsub.f32 %v5616_v21, %v5795_v2 }
 0x520   : > { %v2988_v45 = vmul.f32 %v5875_v40, %v5875_v40  ;;  %v3027_v62 = vsel %vm428_vm1, %v2986_v33, 0.0  ;;  %v5896_v42 = vsub.f32 %v5631_v32, %v5795_v2  ;;  %v2989_v60 = vmul.f32 %v5882_v27, %v5882_v27 }
 0x521   : > { %v3016_v52 = vadd.f32 %v3015_v41, %v3014_v19  ;;  %v3029_v4 = vsel %vm428_vm1, %v2987_v29, 0.0  ;;  %v5903_v21 = vsub.f32 %v5636_v58, %v5795_v2  ;;  %v2990_v26 = vmul.f32 %v5889_v0, %v5889_v0 }
 0x522   : > { %v3031_v11 = vsel %vm428_vm1, %v2988_v45, 0.0  ;;  %v5910_v32 = vsub.f32 %v5638_v9, %v5795_v2  ;;  %v2991_v19 = vmul.f32 %v5896_v42, %v5896_v42  ;;  %v3033_v34 = vsel %vm428_vm1, %v2989_v60, 0.0 }
 0x523   : > { %v3018_v25 = vadd.f32 %v3017_v51, %v3016_v52  ;;  %v5917_v58 = vsub.f32 %v5640_v5, %v5795_v2  ;;  %v2992_v52 = vmul.f32 %v5903_v21, %v5903_v21  ;;  %v3035_v48 = vsel %vm428_vm1, %v2990_v26, 0.0 }
 0x524   : > { %v5924_v9 = vsub.f32 %v5642_v39, %v5795_v2  ;;  %v3037_v31 = vsel %vm428_vm1, %v2991_v19, 0.0  ;;  %v5931_v5 = vsub.f32 %v5646_v56, %v5795_v2  ;;  %v5938_v39 = vsub.f32 %v5741_v6, %v5795_v2 }
 0x525   : > { %v3020_v53 = vadd.f32 %v3019_v63, %v3018_v25  ;;  %v2993_v25 = vmul.f32 %v5910_v32, %v5910_v32  ;;  %v3039_v10 = vsel %vm428_vm1, %v2992_v52, 0.0  ;;  %v5945_v56 = vsub.f32 %v5748_v30, %v5795_v2 }
 0x526   : > { %v5952_v6 = vsub.f32 %v5754_v8, %v5795_v2  ;;  %v5959_v30 = vsub.f32 %v5760_v15, %v5795_v2  ;;  %v5966_v8 = vsub.f32 %v5764_v24, %v5795_v2  ;;  %v5973_v15 = vsub.f32 %v5768_v16, %v5795_v2 }
 0x527   : > { %v3022_v43 = vadd.f32 %v3021_v47, %v3020_v53  ;;  %v2994_v53 = vmul.f32 %v5917_v58, %v5917_v58  ;;  %v3041_v33 = vsel %vm428_vm1, %v2993_v25, 0.0  ;;  %v5980_v24 = vsub.f32 %v5772_v44, %v5795_v2 }
 0x528   : > { %v5987_v16 = vsub.f32 %v5776_v1, %v5795_v2  ;;  %v5994_v44 = vsub.f32 %v5780_v37, %v5795_v2  ;;  %v6001_v1 = vsub.f32 %v5784_v49, %v5795_v2  ;;  %v6008_v37 = vsub.f32 %v5790_v55, %v5795_v2 }
 0x529   : > { %v3024_v28 = vadd.f32 %v3023_v13, %v3022_v43  ;;  %v2995_v43 = vmul.f32 %v5924_v9, %v5924_v9  ;;  %v3043_v29 = vsel %vm428_vm1, %v2994_v53, 0.0 }
 0x52a   : > { %v3006_v49 = vmul.f32 %v6001_v1, %v6001_v1 }
 0x52b   : > { %v3026_v35 = vadd.f32 %v3025_v22, %v3024_v28  ;;  %v2996_v28 = vmul.f32 %v5931_v5, %v5931_v5  ;;  %v3045_v45 = vsel %vm428_vm1, %v2995_v43, 0.0 }
 0x52c   : > { %v3067_v55 = vsel %vm428_vm1, %v3006_v49, 0.0  ;;  %v3513_v49 = vld [vmem:[%s3591_s17 + $0x8] sm:$0xff] }
 0x52d   : > { %v3028_v61 = vadd.f32 %v3027_v62, %v3026_v35  ;;  %v2997_v35 = vmul.f32 %v5938_v39, %v5938_v39  ;;  %v3047_v60 = vsel %vm428_vm1, %v2996_v28, 0.0 }
 0x52f   : > { %v3030_v46 = vadd.f32 %v3029_v4, %v3028_v61  ;;  %v2998_v61 = vmul.f32 %v5945_v56, %v5945_v56  ;;  %v3049_v26 = vsel %vm428_vm1, %v2997_v35, 0.0 }
 0x531   : > { %v3032_v17 = vadd.f32 %v3031_v11, %v3030_v46  ;;  %v2999_v46 = vmul.f32 %v5952_v6, %v5952_v6  ;;  %v3051_v19 = vsel %vm428_vm1, %v2998_v61, 0.0 }
 0x533   : > { %v3034_v41 = vadd.f32 %v3033_v34, %v3032_v17  ;;  %v3000_v17 = vmul.f32 %v5959_v30, %v5959_v30  ;;  %v3053_v52 = vsel %vm428_vm1, %v2999_v46, 0.0 }
 0x535   : > { %v3036_v51 = vadd.f32 %v3035_v48, %v3034_v41  ;;  %v3001_v41 = vmul.f32 %v5966_v8, %v5966_v8  ;;  %v3055_v25 = vsel %vm428_vm1, %v3000_v17, 0.0 }
 0x537   : > { %v3038_v63 = vadd.f32 %v3037_v31, %v3036_v51  ;;  %v3002_v51 = vmul.f32 %v5973_v15, %v5973_v15  ;;  %v3057_v53 = vsel %vm428_vm1, %v3001_v41, 0.0 }
 0x539   : > { %v3040_v47 = vadd.f32 %v3039_v10, %v3038_v63  ;;  %v3003_v63 = vmul.f32 %v5980_v24, %v5980_v24  ;;  %v3059_v43 = vsel %vm428_vm1, %v3002_v51, 0.0 }
 0x53b   : > { %v3042_v13 = vadd.f32 %v3041_v33, %v3040_v47  ;;  %v3004_v47 = vmul.f32 %v5987_v16, %v5987_v16  ;;  %v3061_v28 = vsel %vm428_vm1, %v3003_v63, 0.0 }
 0x53d   : > { %v3044_v22 = vadd.f32 %v3043_v29, %v3042_v13  ;;  %v3005_v13 = vmul.f32 %v5994_v44, %v5994_v44 }
 0x53f   : > { %v3046_v62 = vadd.f32 %v3045_v45, %v3044_v22  ;;  %v3063_v22 = vsel %vm428_vm1, %v3004_v47, 0.0  ;;  %v3007_v45 = vmul.f32 %v6008_v37, %v6008_v37 }
 0x541   : > { %v3048_v4 = vadd.f32 %v3047_v60, %v3046_v62  ;;  %v3065_v62 = vsel %vm428_vm1, %v3005_v13, 0.0  ;;  %v3069_v60 = vsel %vm428_vm1, %v3007_v45, 0.0  ;;  %v3515_v45 = vld [vmem:[%s3591_s17 + $0x18] sm:$0xff] }
 0x543   : > { %v3050_v11 = vadd.f32 %v3049_v26, %v3048_v4 }
 0x545   : > { %v3052_v34 = vadd.f32 %v3051_v19, %v3050_v11 }
 0x547   : > { %v3054_v48 = vadd.f32 %v3053_v52, %v3052_v34 }
 0x549   : > { %v3056_v31 = vadd.f32 %v3055_v25, %v3054_v48 }
 0x54b   : > { %v3058_v10 = vadd.f32 %v3057_v53, %v3056_v31 }
 0x54d   : > { %v3060_v33 = vadd.f32 %v3059_v43, %v3058_v10 }
 0x54f   : > { %v3062_v29 = vadd.f32 %v3061_v28, %v3060_v33 }
 0x551   : > { %v3064_v35 = vadd.f32 %v3063_v22, %v3062_v29  ;;  %v3512_v29 = vld [vmem:[%s3591_s17] sm:$0xff] }
 0x553   : > { %v3066_v61 = vadd.f32 %v3065_v62, %v3064_v35  ;;  %v3516_v62 = vld [vmem:[%s3591_s17 + $0x20] sm:$0xff] }
 0x555   : > { %v3068_v2 = vadd.f32 %v3067_v55, %v3066_v61  ;;  %v3517_v55 = vld [vmem:[%s3591_s17 + $0x28] sm:$0xff] }
 0x557   : > { %v3070_v4 = vadd.f32 %v3069_v60, %v3068_v2 }
 0x559   : > { %v3071_v46 = vrot.slane %v3070_v4, 4 }
 0x55b   : > { %v3072_v26 = vadd.f32 %v3071_v46, %v3070_v4 }
 0x55d   : > { %v3073_v11 = vrot.slane %v3072_v26, 2 }
 0x55f   : > { %v3074_v17 = vadd.f32 %v3073_v11, %v3072_v26 }
 0x561   : > { %v3075_v19 = vrot.slane %v3074_v17, 1 }
 0x563   : > { %v3076_v34 = vadd.f32 %v3075_v19, %v3074_v17  ;;  %v3519_v17 = vld [vmem:[%s3591_s17 + $0x38] sm:$0xff] }
 0x565   : > { %v3077_v41 = vmul.f32 %v3076_v34, %v4672_v54  ;;  %v3520_v34 = vld [vmem:[%s3591_s17 + $0x40] sm:$0xff] }
 0x567   : > { %v3078_v52 = vadd.f32 1e-05, %v3077_v41 }
 0x569   : > { %3510 = vrsqrt.f32 %v3078_v52  ;;  %vm3085_vm13 = vweird.f32 %v3078_v52 }
 0x56f   : > { %v3511_v48 = vpop.eup %3510 }
 0x570   : > { %v3080_v51 = vmul.f32 %v3511_v48, %v3078_v52  ;;  %vm3086_vm12 = vweird.f32 %v3511_v48 }
 0x571   : > { %vm3087_vm14 = vmor %vm3085_vm13, %vm3086_vm12 }
 0x572   : > { %v3081_v25 = vmul.f32 %v3511_v48, %v3080_v51  ;;  %v3521_v51 = vld [vmem:[%s3591_s17 + $0x48] sm:$0xff] }
 0x574   : > { %v3082_v31 = vmul.f32 0.5, %v3081_v25 }
 0x576   : > { %v3083_v63 = vsub.f32 1.5, %v3082_v31  ;;  %v3522_v31 = vld [vmem:[%s3591_s17 + $0x50] sm:$0xff] }
 0x578   : > { %v3084_v53 = vmul.f32 %v3511_v48, %v3083_v63 }
 0x57a   : > { %v6022_v10 = vsel %vm3087_vm14, %v3511_v48, %v3084_v53 }
 0x57b   : > { %v3089_v54 = vmul.f32 %v6022_v10, %v5799_v14  ;;  %v3090_v47 = vmul.f32 %v6022_v10, %v5803_v18  ;;  %v3091_v43 = vmul.f32 %v6022_v10, %v5807_v57  ;;  %v3092_v33 = vmul.f32 %v6022_v10, %v5811_v7  ;;  %v3514_v57 = vld [vmem:[%s3591_s17 + $0x10] sm:$0xff] }
 0x57c   : > { %v3093_v13 = vmul.f32 %v6022_v10, %v5819_v38  ;;  %v3094_v28 = vmul.f32 %v6022_v10, %v5825_v36  ;;  %v3095_v14 = vmul.f32 %v6022_v10, %v5833_v3  ;;  %v3096_v7 = vmul.f32 %v6022_v10, %v5840_v59 }
 0x57d   : > { %v3121_v18 = vadd.f32 %v3512_v29, %v3089_v54  ;;  %v3122_v22 = vadd.f32 %v3513_v49, %v3090_v47  ;;  %v3123_v35 = vadd.f32 %v3514_v57, %v3091_v43  ;;  %v3124_v38 = vadd.f32 %v3515_v45, %v3092_v33  ;;  %v3523_v54 = vld [vmem:[%s3591_s17 + $0x58] sm:$0xff]  ;;  %v3524_v33 = vld [vmem:[%s3591_s17 + $0x60] sm:$0xff]  ;;  %v3526_v49 = vld [vmem:[%s3591_s17 + $0x70] sm:$0xff] }
 0x57e   : > { %v3097_v36 = vmul.f32 %v6022_v10, %v5847_v12  ;;  %v3125_v61 = vadd.f32 %v3516_v62, %v3093_v13  ;;  %v3098_v3 = vmul.f32 %v6022_v10, %v5854_v23  ;;  %v3099_v59 = vmul.f32 %v6022_v10, %v5861_v50  ;;  %v3518_v12 = vld [vmem:[%s3591_s17 + $0x30] sm:$0xff] }
 0x57f   : > { %v3126_v2 = vadd.f32 %v3517_v55, %v3094_v28  ;;  %v3127_v60 = vadd.f32 %v3518_v12, %v3095_v14  ;;  %v3153_v4 = vmax.f32 %v3121_v18, 0.0  ;;  %v3154_v46 = vmax.f32 %v3122_v22, 0.0  ;;  %v3525_v14 = vld [vmem:[%s3591_s17 + $0x68] sm:$0xff]  ;;  %v3530_v55 = vld [vmem:[%s3591_s17 + $0x90] sm:$0xff] }
 0x580   : > { %v3155_v26 = vmax.f32 %v3123_v35, 0.0  ;;  %v3100_v11 = vmul.f32 %v6022_v10, %v5868_v20  ;;  %v3128_v19 = vadd.f32 %v3519_v17, %v3096_v7  ;;  %v3156_v23 = vmax.f32 %v3124_v38, 0.0  ;;  %v3527_v35 = vld [vmem:[%s3591_s17 + $0x78] sm:$0xff]  ;;  %v3528_v38 = vld [vmem:[%s3591_s17 + $0x80] sm:$0xff] }
 0x581   : > { %v3101_v50 = vmul.f32 %v6022_v10, %v5875_v40  ;;  %v3129_v41 = vadd.f32 %v3520_v34, %v3097_v36  ;;  %v3157_v52 = vmax.f32 %v3125_v61, 0.0  ;;  %3185 = vst.msk [vmem:[%s6052_s23] sm:$0xff] %vm428_vm1, %v3153_v4  ;;  %v3102_v48 = vmul.f32 %v6022_v10, %v5882_v27  ;;  %v3529_v61 = vld [vmem:[%s3591_s17 + $0x88] sm:$0xff]  ;;  %v3534_v34 = vld [vmem:[%s3591_s17 + $0xb0] sm:$0xff] }
 0x582   : > { %v3130_v20 = vadd.f32 %v3521_v51, %v3098_v3  ;;  %v3158_v25 = vmax.f32 %v3126_v2, 0.0  ;;  %3186 = vst.msk [vmem:[%s6052_s23 + $0x8] sm:$0xff] %vm428_vm1, %v3154_v46  ;;  %v3103_v40 = vmul.f32 %v6022_v10, %v5889_v0  ;;  %v3131_v63 = vadd.f32 %v3522_v31, %v3099_v59 }
 0x583   : > { %v3159_v53 = vmax.f32 %v3127_v60, 0.0  ;;  %3187 = vst.msk [vmem:[%s6052_s23 + $0x10] sm:$0xff] %vm428_vm1, %v3155_v26  ;;  %v3104_v27 = vmul.f32 %v6022_v10, %v5896_v42  ;;  %v3132_v47 = vadd.f32 %v3523_v54, %v3100_v11  ;;  %v3160_v43 = vmax.f32 %v3128_v19, 0.0  ;;  %v3531_v60 = vld [vmem:[%s3591_s17 + $0x98] sm:$0xff]  ;;  %v3532_v26 = vld [vmem:[%s3591_s17 + $0xa0] sm:$0xff]  ;;  %v3533_v19 = vld [vmem:[%s3591_s17 + $0xa8] sm:$0xff] }
 0x584   : > { %3188 = vst.msk [vmem:[%s6052_s23 + $0x18] sm:$0xff] %vm428_vm1, %v3156_v23  ;;  %v3105_v0 = vmul.f32 %v6022_v10, %v5903_v21  ;;  %v3133_v13 = vadd.f32 %v3524_v33, %v3101_v50  ;;  %v3161_v28 = vmax.f32 %v3129_v41, 0.0  ;;  %v3106_v42 = vmul.f32 %v6022_v10, %v5910_v32  ;;  %v3538_v54 = vld [vmem:[%s3591_s17 + $0xd0] sm:$0xff] }
 0x585   : > { %3189 = vst.msk [vmem:[%s6052_s23 + $0x20] sm:$0xff] %vm428_vm1, %v3157_v52  ;;  %v3134_v29 = vadd.f32 %v3525_v14, %v3102_v48  ;;  %v3162_v18 = vmax.f32 %v3130_v20, 0.0  ;;  %v3107_v21 = vmul.f32 %v6022_v10, %v5917_v58  ;;  %v3135_v22 = vadd.f32 %v3526_v49, %v3103_v40  ;;  %v3535_v48 = vld [vmem:[%s3591_s17 + $0xb8] sm:$0xff]  ;;  %v3541_v14 = vld [vmem:[%s3591_s17 + $0xe8] sm:$0xff] }
 0x586   : > { %3190 = vst.msk [vmem:[%s6052_s23 + $0x28] sm:$0xff] %vm428_vm1, %v3158_v25  ;;  %v3163_v57 = vmax.f32 %v3131_v63, 0.0  ;;  %v3108_v32 = vmul.f32 %v6022_v10, %v5924_v9  ;;  %v3136_v7 = vadd.f32 %v3527_v35, %v3104_v27  ;;  %v3164_v45 = vmax.f32 %v3132_v47, 0.0  ;;  %v3536_v25 = vld [vmem:[%s3591_s17 + $0xc0] sm:$0xff]  ;;  %v3537_v63 = vld [vmem:[%s3591_s17 + $0xc8] sm:$0xff]  ;;  %v3543_v49 = vld [vmem:[%s3591_s17 + $0xf8] sm:$0xff] }
 0x587   : > { %3191 = vst.msk [vmem:[%s6052_s23 + $0x30] sm:$0xff] %vm428_vm1, %v3159_v53  ;;  %v3109_v58 = vmul.f32 %v6022_v10, %v5931_v5  ;;  %v3137_v36 = vadd.f32 %v3528_v38, %v3105_v0  ;;  %v3165_v62 = vmax.f32 %v3133_v13, 0.0  ;;  %v3110_v9 = vmul.f32 %v6022_v10, %v5938_v39  ;;  %v3539_v0 = vld [vmem:[%s3591_s17 + $0xd8] sm:$0xff] }
 0x588   : > { %3192 = vst.msk [vmem:[%s6052_s23 + $0x38] sm:$0xff] %vm428_vm1, %v3160_v43  ;;  %v3138_v3 = vadd.f32 %v3529_v61, %v3106_v42  ;;  %v3166_v59 = vmax.f32 %v3134_v29, 0.0  ;;  %v3111_v5 = vmul.f32 %v6022_v10, %v5945_v56  ;;  %v3139_v2 = vadd.f32 %v3530_v55, %v3107_v21 }
 0x589   : > { %3193 = vst.msk [vmem:[%s6052_s23 + $0x40] sm:$0xff] %vm428_vm1, %v3161_v28  ;;  %v3167_v12 = vmax.f32 %v3135_v22, 0.0  ;;  %v3112_v39 = vmul.f32 %v6022_v10, %v5952_v6  ;;  %v3140_v4 = vadd.f32 %v3531_v60, %v3108_v32  ;;  %v3168_v46 = vmax.f32 %v3136_v7, 0.0  ;;  %v3540_v28 = vld [vmem:[%s3591_s17 + $0xe0] sm:$0xff] }
 0x58a   : > { %3194 = vst.msk [vmem:[%s6052_s23 + $0x48] sm:$0xff] %vm428_vm1, %v3162_v18  ;;  %v3113_v56 = vmul.f32 %v6022_v10, %v5959_v30  ;;  %v3141_v11 = vadd.f32 %v3532_v26, %v3109_v58  ;;  %v3169_v17 = vmax.f32 %v3137_v36, 0.0  ;;  %v3114_v6 = vmul.f32 %v6022_v10, %v5966_v8 }
 0x58b   : > { %3195 = vst.msk [vmem:[%s6052_s23 + $0x50] sm:$0xff] %vm428_vm1, %v3163_v57  ;;  %v3142_v23 = vadd.f32 %v3533_v19, %v3110_v9  ;;  %v3170_v50 = vmax.f32 %v3138_v3, 0.0  ;;  %v3115_v30 = vmul.f32 %v6022_v10, %v5973_v15  ;;  %v3143_v41 = vadd.f32 %v3534_v34, %v3111_v5 }
 0x58c   : > { %3196 = vst.msk [vmem:[%s6052_s23 + $0x58] sm:$0xff] %vm428_vm1, %v3164_v45  ;;  %v3171_v52 = vmax.f32 %v3139_v2, 0.0  ;;  %v3116_v8 = vmul.f32 %v6022_v10, %v5980_v24  ;;  %v3144_v51 = vadd.f32 %v3535_v48, %v3112_v39  ;;  %v3172_v20 = vmax.f32 %v3140_v4, 0.0 }
 0x58d   : > { %3197 = vst.msk [vmem:[%s6052_s23 + $0x60] sm:$0xff] %vm428_vm1, %v3165_v62  ;;  %v3117_v15 = vmul.f32 %v6022_v10, %v5987_v16  ;;  %v3145_v40 = vadd.f32 %v3536_v25, %v3113_v56  ;;  %v3173_v31 = vmax.f32 %v3141_v11, 0.0  ;;  %v3118_v24 = vmul.f32 %v6022_v10, %v5994_v44 }
 0x58e   : > { %3198 = vst.msk [vmem:[%s6052_s23 + $0x68] sm:$0xff] %vm428_vm1, %v3166_v59  ;;  %v3146_v53 = vadd.f32 %v3537_v63, %v3114_v6  ;;  %v3174_v27 = vmax.f32 %v3142_v23, 0.0  ;;  %v3119_v16 = vmul.f32 %v6022_v10, %v6001_v1  ;;  %v3147_v47 = vadd.f32 %v3538_v54, %v3115_v30 }
 0x58f   : > { %3199 = vst.msk [vmem:[%s6052_s23 + $0x70] sm:$0xff] %vm428_vm1, %v3167_v12  ;;  %v3175_v43 = vmax.f32 %v3143_v41, 0.0  ;;  %v3120_v44 = vmul.f32 %v6022_v10, %v6008_v37  ;;  %v3148_v33 = vadd.f32 %v3539_v0, %v3116_v8  ;;  %v3176_v13 = vmax.f32 %v3144_v51, 0.0  ;;  %v3542_v37 = vld [vmem:[%s3591_s17 + $0xf0] sm:$0xff] }
 0x590   : > { %3200 = vst.msk [vmem:[%s6052_s23 + $0x78] sm:$0xff] %vm428_vm1, %v3168_v46  ;;  %v3149_v1 = vadd.f32 %v3540_v28, %v3117_v15  ;;  %v3177_v42 = vmax.f32 %v3145_v40, 0.0  ;;  %v3150_v29 = vadd.f32 %v3541_v14, %v3118_v24  ;;  %v3178_v18 = vmax.f32 %v3146_v53, 0.0 }
 0x591   : > { %3201 = vst.msk [vmem:[%s6052_s23 + $0x80] sm:$0xff] %vm428_vm1, %v3169_v17  ;;  %v3151_v10 = vadd.f32 %v3542_v37, %v3119_v16  ;;  %v3179_v21 = vmax.f32 %v3147_v47, 0.0  ;;  %v3152_v22 = vadd.f32 %v3543_v49, %v3120_v44  ;;  %v3180_v57 = vmax.f32 %v3148_v33, 0.0 }
 0x592   : > { %3202 = vst.msk [vmem:[%s6052_s23 + $0x88] sm:$0xff] %vm428_vm1, %v3170_v50  ;;  %v3181_v32 = vmax.f32 %v3149_v1, 0.0  ;;  %v3182_v35 = vmax.f32 %v3150_v29, 0.0 }
 0x593   : > { %3203 = vst.msk [vmem:[%s6052_s23 + $0x90] sm:$0xff] %vm428_vm1, %v3171_v52  ;;  %v3183_v7 = vmax.f32 %v3151_v10, 0.0  ;;  %v3184_v45 = vmax.f32 %v3152_v22, 0.0 }
 0x594   : > { %3204 = vst.msk [vmem:[%s6052_s23 + $0x98] sm:$0xff] %vm428_vm1, %v3172_v20 }
 0x595   : > { %3205 = vst.msk [vmem:[%s6052_s23 + $0xa0] sm:$0xff] %vm428_vm1, %v3173_v31 }
 0x596   : > { %3206 = vst.msk [vmem:[%s6052_s23 + $0xa8] sm:$0xff] %vm428_vm1, %v3174_v27 }
 0x597   : > { %3207 = vst.msk [vmem:[%s6052_s23 + $0xb0] sm:$0xff] %vm428_vm1, %v3175_v43 }
 0x598   : > { %3208 = vst.msk [vmem:[%s6052_s23 + $0xb8] sm:$0xff] %vm428_vm1, %v3176_v13 }
 0x599   : > { %3209 = vst.msk [vmem:[%s6052_s23 + $0xc0] sm:$0xff] %vm428_vm1, %v3177_v42 }
 0x59a   : > { %3210 = vst.msk [vmem:[%s6052_s23 + $0xc8] sm:$0xff] %vm428_vm1, %v3178_v18 }
 0x59b   : > { %3211 = vst.msk [vmem:[%s6052_s23 + $0xd0] sm:$0xff] %vm428_vm1, %v3179_v21 }
 0x59c   : > { %3212 = vst.msk [vmem:[%s6052_s23 + $0xd8] sm:$0xff] %vm428_vm1, %v3180_v57 }
 0x59d   : > { %3213 = vst.msk [vmem:[%s6052_s23 + $0xe0] sm:$0xff] %vm428_vm1, %v3181_v32 }
 0x59e   : > { %3214 = vst.msk [vmem:[%s6052_s23 + $0xe8] sm:$0xff] %vm428_vm1, %v3182_v35 }
 0x59f   : > { %3215 = vst.msk [vmem:[%s6052_s23 + $0xf0] sm:$0xff] %vm428_vm1, %v3183_v7 }
 0x5a0   : > { %3216 = vst.msk [vmem:[%s6052_s23 + $0xf8] sm:$0xff] %vm428_vm1, %v3184_v45 }
 0x5a1 PF: > { %s13_s12 = sadd.s32 1, %s3550_s12  }
 0x5a2   : > { %p10_p4 = scmp.ge.s32.totalorder %s13_s12, 4  }
 0x5a4   :  { %12 = sbr.rel (!%p10_p4) target bundleno = 1 (0x1), region = 66 }

// kernel: tpu_custom_call.1
= control target key start
LH: loop header
LB: loop body
LE: loop exit
PB: predicated region body
PF: predicated region fallthrough
CT: control target
= control target key end

     0   :  { %s3707_s12 = smov 0   ;;  %s6196_s0 = inlined_call_operand.vmem [shape: f32[2,16,16,4], index: 0, kind: input, shape index: {}]   ;;  %s6197_s1 = inlined_call_operand.vmem [shape: f32[3,12,4], index: 1, kind: input, shape index: {}]   ;;  %s6198_s2 = inlined_call_operand.vmem [shape: f32[3,12,4], index: 2, kind: input, shape index: {}]   ;;  %s6199_s3 = inlined_call_operand.vmem [shape: f32[2,16,16,4], index: 3, kind: output, shape index: {}]  }
   0x1 LB: > { %s3404_s13 = sadd.s32 4294967295, %s3682_s12   ;;  %p3408_p0 = scmp.ge.s32.totalorder %s3682_s12, 1  ;;  %s3682_s12 = sphi %s3707_s12, %s13_s12  }
   0x2   : > { %p137_p1 = scmp.lt.s32.totalorder %s3682_s12, 3 }
   0x4   : > { %p138_p2 = pnand %p3408_p0, %p137_p1 }
   0x6   : > { %141 = sbr.rel (%p138_p2) target bundleno = 1441 (0x5a1), region = 32 }
   0xb   : > { %p161_p3 = scmp.lt.s32.totalorder %s3404_s13, 1  ;;  %s3684_s18 = smov 8   ;;  %v3414_v21 = vld [vmem:[%s6197_s1 + $0x18] sm:$0xf]  ;;  %vm778_vm0 = vcmask 1043456   ;;  %v3413_v22 = vld [vmem:[%s6197_s1 + $0x10] sm:$0xff]  ;;  %v171_v38 = vlaneseq }
   0xc   : > { %s3685_s19 = smov 4   ;;  %3625 = vmatpush.msk.msra.mxu3 %vm778_vm0, %v3414_v21  ;;  %3448 = vmatpush.msk.msra.mxu1 %vm778_vm0, %v3414_v21  ;;  %v680_v24 = vld [vmem:[%s6197_s1 + $0x8] sm:$0xf]  ;;  %v679_v25 = vld [vmem:[%s6197_s1] sm:$0xff]  ;;  %vm428_vm1 = vcmask 31744   ;;  %vm461_vm2 = vcmask 64512  }
   0xd   : > { %s6223_s13 = smov (!%p161_p3, %s3404_s13), 1  ;;  %3623 = vmatpush.msk.msra.mxu2 %vm778_vm0, %v680_v24  ;;  %3415 = vmatpush.msk.msra.mxu0 %vm778_vm0, %v680_v24  ;;  %v3482_v27 = vld [vmem:[%s6197_s1 + $0x28] sm:$0xf]  ;;  %vm681_vm3 = vcmask 97280   ;;  %v3923_v45 = vshrl.u32 %v171_v38, 7  ;;  %vm531_vm5 = vcmask 1040384  }
   0xe   : > { %s3621_s14 = sshll.u32 %s6223_s13, 8  ;;  %3626 = vmatpush.msra.mxu3 %v3413_v22  ;;  %977 = vmatpush.msra.mxu1 %v3413_v22  ;;  %vm1075_vm6 = vcmask 1046528  }
   0xf   : > { %s3723_s17 = scalar_lea.vmem %s6196_s0, %s3621_s14  ;;  %3624 = vmatpush.msra.mxu2 %v679_v25  ;;  %797 = vmatpush.msra.mxu0 %v679_v25  ;;  %6204 = vst [vmem:[#allocation2_spill] sm:$0xff] %v3923_v45  ;;  %vm174_vm4 = vcmp.eq.s32.totalorder %v3923_v45, 0  ;;  %v3958_v61 = vadd.s32 8, %v3923_v45  ;;  %s6054_s23 = scalar_lea.vmem %s6199_s3, %s3621_s14 }
  0x10   : > { %v3726_v0 = vld [vmem:[%s3723_s17 + $0x88] sm:$0xff]  ;;  %v3729_v1 = vld [vmem:[%s3723_s17 + $0x78] sm:$0xff]  ;;  %v3738_v2 = vld [vmem:[%s3723_s17 + $0x90] sm:$0xff] }
  0x11   : > { %368 = vrot.lane.b32.xlu1 %v3726_v0, %s3684_s18  ;;  %272 = vrot.lane.b32.xlu0 %v3729_v1, %s3685_s19  ;;  %v3741_v3 = vld [vmem:[%s3723_s17 + $0x80] sm:$0xff]  ;;  %v3744_v4 = vld [vmem:[%s3723_s17 + $0x98] sm:$0xff]  ;;  %6205 = vst [vmem:[#allocation3_spill] sm:$0xff] %v3958_v61  ;;  %vm177_vm7 = vcmp.eq.s32.totalorder %v3958_v61, 15 }
  0x12   : > { %276 = vrot.lane.b32.xlu2 %v3726_v0, %s3685_s19  ;;  %v3753_v5 = vld [vmem:[%s3723_s17 + $0xa0] sm:$0xff]  ;;  %v3762_v6 = vld [vmem:[%s3723_s17 + $0xa8] sm:$0xff]  ;;  %v3765_v7 = vld [vmem:[%s3723_s17 + $0xb0] sm:$0xff]  ;;  %3483 = vmatpush.msk.msrb.mxu2 %vm778_vm0, %v3482_v27 }
  0x13   : > { %v3774_v8 = vld [vmem:[%s3723_s17 + $0xb8] sm:$0xff]  ;;  %v3783_v9 = vld [vmem:[%s3723_s17 + $0xc0] sm:$0xff]  ;;  %v3786_v10 = vld [vmem:[%s3723_s17 + $0xc8] sm:$0xff] }
  0x14   : > { %v3795_v11 = vld [vmem:[%s3723_s17 + $0xd0] sm:$0xff]  ;;  %v3804_v12 = vld [vmem:[%s3723_s17 + $0xd8] sm:$0xff]  ;;  %v3807_v13 = vld [vmem:[%s3723_s17 + $0xe0] sm:$0xff] }
  0x15   : > { %v3816_v14 = vld [vmem:[%s3723_s17 + $0xe8] sm:$0xff]  ;;  %v208_v15 = vld [vmem:[%s3723_s17 + $0xf0] sm:$0xff]  ;;  %v209_v16 = vld [vmem:[%s3723_s17 + $0xf8] sm:$0xff] }
  0x16   : > { %v3831_v17 = vld [vmem:[%s3723_s17] sm:$0xff]  ;;  %v3838_v18 = vld [vmem:[%s3723_s17 + $0x10] sm:$0xff]  ;;  %v3841_v19 = vld [vmem:[%s3723_s17 + $0x8] sm:$0xff] }
  0x17   : > { %v3844_v20 = vld [vmem:[%s3723_s17 + $0x18] sm:$0xff]  ;;  %v3861_v23 = vld [vmem:[%s3723_s17 + $0x20] sm:$0xff]  ;;  %v3882_v28 = vld [vmem:[%s3723_s17 + $0x28] sm:$0xff] }
  0x18   : > { %v3889_v30 = vld [vmem:[%s3723_s17 + $0x38] sm:$0xff]  ;;  %v3892_v31 = vld [vmem:[%s3723_s17 + $0x30] sm:$0xff]  ;;  %v3901_v35 = vld [vmem:[%s3723_s17 + $0x68] sm:$0xff] }
  0x19   : > { %370 = vrot.lane.b32.xlu1 %v3738_v2, %s3684_s18  ;;  %274 = vrot.lane.b32.xlu0 %v3741_v3, %s3685_s19  ;;  %v3906_v37 = vld [vmem:[%s3723_s17 + $0x40] sm:$0xff]  ;;  %v3915_v40 = vld [vmem:[%s3723_s17 + $0x70] sm:$0xff] }
  0x1a   : > { %372 = vrot.lane.b32.xlu2 %v3744_v4, %s3684_s18  ;;  %v3938_v54 = vld [vmem:[%s3723_s17 + $0x50] sm:$0xff]  ;;  %v3966_v22 = vld [vmem:[%s3723_s17 + $0x48] sm:$0xff] }
  0x21   : > { %374 = vrot.lane.b32.xlu1 %v3753_v5, %s3684_s18  ;;  %278 = vrot.lane.b32.xlu0 %v3738_v2, %s3685_s19 }
  0x22   : > { %280 = vrot.lane.b32.xlu2 %v3744_v4, %s3685_s19 }
  0x29   : > { %282 = vrot.lane.b32.xlu1 %v3753_v5, %s3685_s19  ;;  %376 = vrot.lane.b32.xlu0 %v3762_v6, %s3684_s18 }
  0x2a   : > { %378 = vrot.lane.b32.xlu2 %v3765_v7, %s3684_s18 }
  0x31   : > { %380 = vrot.lane.b32.xlu1 %v3774_v8, %s3684_s18  ;;  %284 = vrot.lane.b32.xlu0 %v3762_v6, %s3685_s19 }
  0x32   : > { %286 = vrot.lane.b32.xlu2 %v3765_v7, %s3685_s19 }
  0x39   : > { %288 = vrot.lane.b32.xlu1 %v3774_v8, %s3685_s19  ;;  %382 = vrot.lane.b32.xlu0 %v3783_v9, %s3684_s18 }
  0x3a   : > { %384 = vrot.lane.b32.xlu2 %v3786_v10, %s3684_s18 }
  0x41   : > { %386 = vrot.lane.b32.xlu1 %v3795_v11, %s3684_s18  ;;  %290 = vrot.lane.b32.xlu0 %v3783_v9, %s3685_s19 }
  0x42   : > { %292 = vrot.lane.b32.xlu2 %v3786_v10, %s3685_s19 }
  0x49   : > { %294 = vrot.lane.b32.xlu1 %v3795_v11, %s3685_s19  ;;  %388 = vrot.lane.b32.xlu0 %v3804_v12, %s3684_s18 }
  0x4a   : > { %390 = vrot.lane.b32.xlu2 %v3807_v13, %s3684_s18 }
  0x51   : > { %392 = vrot.lane.b32.xlu1 %v3816_v14, %s3684_s18  ;;  %296 = vrot.lane.b32.xlu0 %v3804_v12, %s3685_s19 }
  0x52   : > { %298 = vrot.lane.b32.xlu2 %v3807_v13, %s3685_s19 }
  0x59   : > { %300 = vrot.lane.b32.xlu1 %v3816_v14, %s3685_s19  ;;  %394 = vrot.lane.b32.xlu0 %v208_v15, %s3684_s18 }
  0x5a   : > { %396 = vrot.lane.b32.xlu2 %v209_v16, %s3684_s18 }
  0x61   : > { %304 = vrot.lane.b32.xlu1 %v209_v16, %s3685_s19  ;;  %302 = vrot.lane.b32.xlu0 %v208_v15, %s3685_s19  ;;  %v3963_v15 = vld [vmem:[%s3723_s17 + $0x58] sm:$0xff] }
  0x62   : > { %242 = vrot.lane.b32.xlu2 %v3831_v17, %s3685_s19 }
  0x69   : > { %338 = vrot.lane.b32.xlu1 %v3838_v18, %s3684_s18  ;;  %244 = vrot.lane.b32.xlu0 %v3841_v19, %s3685_s19 }
  0x6a   : > { %340 = vrot.lane.b32.xlu2 %v3844_v20, %s3684_s18 }
  0x6c   : > { %v277_v26 = vpop.permute.xlu2 %276 }
  0x6d   : > { %v446_v36 = vsel %vm428_vm1, %v3729_v1, %v277_v26 }
  0x71   : > { %246 = vrot.lane.b32.xlu0 %v3838_v18, %s3685_s19  ;;  %342 = vrot.lane.b32.xlu1 %v3861_v23, %s3684_s18 }
  0x72   : > { %248 = vrot.lane.b32.xlu2 %v3844_v20, %s3685_s19 }
  0x74   : > { %v373_v29 = vpop.permute.xlu2 %372 }
  0x75   : > { %v479_v41 = vsel %vm461_vm2, %v446_v36, %v373_v29 }
  0x76   : > { %v1109_v47 = vrot.slane %v479_v41, 1  ;;  %v565_v62 = vrot.slane %v479_v41, 7  ;;  %v1185_v24 = vperm.slane %v479_v41, 6 }
  0x79   : > { %344 = vrot.lane.b32.xlu0 %v3882_v28, %s3684_s18  ;;  %250 = vrot.lane.b32.xlu1 %v3861_v23, %s3685_s19 }
  0x7a   : > { %346 = vrot.lane.b32.xlu2 %v3892_v31, %s3684_s18 }
  0x7c   : > { %v281_v32 = vpop.permute.xlu2 %280 }
  0x7d   : > { %v448_v26 = vsel %vm428_vm1, %v3726_v0, %v281_v32 }
  0x81   : > { %252 = vrot.lane.b32.xlu0 %v3882_v28, %s3685_s19  ;;  %348 = vrot.lane.b32.xlu1 %v3889_v30, %s3684_s18 }
  0x82   : > { %254 = vrot.lane.b32.xlu2 %v3892_v31, %s3685_s19 }
  0x83   : > { %v369_v33 = vpop.permute.xlu1 %368  ;;  %v273_v34 = vpop.permute.xlu0 %272 }
  0x84   : > { %v444_v39 = vsel %vm428_vm1, %v3901_v35, %v273_v34  ;;  %v379_v48 = vpop.permute.xlu2 %378 }
  0x85   : > { %v3921_v42 = vsel %vm461_vm2, %v444_v39, %v369_v33 }
  0x86   : > { %v561_v50 = vrot.slane %v3921_v42, 7 }
  0x89   : > { %350 = vrot.lane.b32.xlu0 %v3906_v37, %s3684_s18  ;;  %256 = vrot.lane.b32.xlu1 %v3889_v30, %s3685_s19 }
  0x8a   : > { %352 = vrot.lane.b32.xlu2 %v3966_v22, %s3684_s18 }
  0x8b   : > { %v371_v43 = vpop.permute.xlu1 %370  ;;  %v275_v44 = vpop.permute.xlu0 %274 }
  0x8c   : > { %v445_v46 = vsel %vm428_vm1, %v3915_v40, %v275_v44  ;;  %v287_v21 = vpop.permute.xlu2 %286 }
  0x8d   : > { %v3928_v49 = vsel %vm461_vm2, %v445_v46, %v371_v43 }
  0x8e   : > { %v563_v51 = vrot.slane %v3928_v49, 7  ;;  %3465 = vmatmul.msk.f32.vlgmr.msra.gmra.mxu3 %vm681_vm3, %v3928_v49  ;;  %v1107_v52 = vrot.slane %v3928_v49, 1  ;;  %v639_v53 = vperm.slane %v3928_v49, 1 }
  0x90   : > { %v564_v55 = vsel %vm531_vm5, %v561_v50, %v563_v51  ;;  %v3946_v56 = vsel %vm1075_vm6, %v1107_v52, %v1109_v47  ;;  %v566_v27 = vsel %vm531_vm5, %v563_v51, %v565_v62 }
  0x91   : > { %258 = vrot.lane.b32.xlu0 %v3906_v37, %s3685_s19  ;;  %v663_v57 = vsel %vm174_vm4, %v639_v53, %v564_v55  ;;  %354 = vrot.lane.b32.xlu1 %v3938_v54, %s3684_s18 }
  0x92   : > { %3432 = vmatmul.msk.f32.vlgmr.msra.gmra.mxu2 %vm681_vm3, %v663_v57  ;;  %260 = vrot.lane.b32.xlu2 %v3966_v22, %s3685_s19 }
  0x93   : > { %v375_v58 = vpop.permute.xlu1 %374  ;;  %v279_v59 = vpop.permute.xlu0 %278 }
  0x94   : > { %v447_v60 = vsel %vm428_vm1, %v3741_v3, %v279_v59 }
  0x95   : > { %v480_v63 = vsel %vm461_vm2, %v447_v60, %v375_v58 }
  0x96   : > { %3466 = vmatmul.msk.f32.gmra.mxu3 %vm681_vm3, %v479_v41  ;;  %v1111_v16 = vrot.slane %v480_v63, 1  ;;  %v567_v33 = vrot.slane %v480_v63, 7  ;;  %v640_v43 = vperm.slane %v480_v63, 1 }
  0x98   : > { %v1112_v25 = vsel %vm1075_vm6, %v1109_v47, %v1111_v16  ;;  %v568_v46 = vsel %vm531_vm5, %v565_v62, %v567_v33 }
  0x99   : > { %356 = vrot.lane.b32.xlu0 %v3963_v15, %s3684_s18  ;;  %262 = vrot.lane.b32.xlu1 %v3938_v54, %s3685_s19  ;;  %v3981_v29 = vsel %vm177_vm7, %v1185_v24, %v1112_v25 }
  0x9a   : > { %3433 = vmatmul.msk.f32.gmra.mxu2 %vm681_vm3, %v566_v27 }
  0x9b   : > { %v283_v34 = vpop.permute.xlu1 %282  ;;  %v377_v36 = vpop.permute.xlu0 %376 }
  0x9c   : > { %v449_v38 = vsel %vm428_vm1, %v3738_v2, %v283_v34  ;;  %v481_v39 = vsel %vm461_vm2, %v448_v26, %v377_v36  ;;  %v385_v2 = vpop.permute.xlu2 %384 }
  0x9d   : > { %v1113_v0 = vrot.slane %v481_v39, 1  ;;  %v1186_v32 = vperm.slane %v481_v39, 6  ;;  %v3988_v41 = vsel %vm461_vm2, %v449_v38, %v379_v48  ;;  %v665_v48 = vsel %vm174_vm4, %v640_v43, %v568_v46 }
  0x9e   : > { %3467 = vmatmul.msk.f32.gmra.mxu3 %vm681_vm3, %v480_v63  ;;  %v1115_v44 = vrot.slane %v3988_v41, 1  ;;  %v569_v59 = vrot.slane %v481_v39, 7 }
  0x9f   : > { %v3996_v47 = vsel %vm1075_vm6, %v1111_v16, %v1113_v0  ;;  %v451_v16 = vsel %vm428_vm1, %v3753_v5, %v287_v21  ;;  %v641_v21 = vperm.slane %v3988_v41, 1 }
  0xa0   : > { %v1116_v51 = vsel %vm1075_vm6, %v1113_v0, %v1115_v44  ;;  %v570_v24 = vsel %vm531_vm5, %v567_v33, %v569_v59  ;;  %v4041_v0 = vld [vmem:[%s3723_s17 + $0x60] sm:$0xff] }
  0xa1   : > { %264 = vrot.lane.b32.xlu0 %v3963_v15, %s3685_s19  ;;  %360 = vrot.lane.b32.xlu1 %v3901_v35, %s3684_s18  ;;  %v4007_v53 = vsel %vm177_vm7, %v1186_v32, %v1116_v51 }
  0xa2   : > { %3434 = vmatmul.msk.f32.gmra.mxu2 %vm681_vm3, %v665_v48  ;;  %358 = vrot.lane.b32.xlu2 %v4041_v0, %s3684_s18 }
  0xa3   : > { %v381_v55 = vpop.permute.xlu1 %380  ;;  %v285_v57 = vpop.permute.xlu0 %284 }
  0xa4   : > { %v450_v58 = vsel %vm428_vm1, %v3744_v4, %v285_v57  ;;  %v571_v4 = vrot.slane %v3988_v41, 7  ;;  %v293_v25 = vpop.permute.xlu2 %292 }
  0xa5   : > { %v483_v60 = vsel %vm461_vm2, %v450_v58, %v381_v55 }
  0xa6   : > { %3468 = vmatmul.msk.f32.gmra.mxu3 %vm681_vm3, %v481_v39  ;;  %v1117_v62 = vrot.slane %v483_v60, 1  ;;  %v1187_v5 = vperm.slane %v483_v60, 6  ;;  %v572_v39 = vsel %vm531_vm5, %v569_v59, %v571_v4  ;;  %v573_v57 = vrot.slane %v483_v60, 7 }
  0xa8   : > { %v4015_v63 = vsel %vm1075_vm6, %v1115_v44, %v1117_v62  ;;  %v667_v44 = vsel %vm174_vm4, %v641_v21, %v572_v39  ;;  %v574_v59 = vsel %vm531_vm5, %v571_v4, %v573_v57 }
  0xa9   : > { %362 = vrot.lane.b32.xlu0 %v3915_v40, %s3684_s18  ;;  %268 = vrot.lane.b32.xlu1 %v3901_v35, %s3685_s19 }
  0xaa   : > { %3435 = vmatmul.msk.f32.gmra.mxu2 %vm681_vm3, %v570_v24  ;;  %266 = vrot.lane.b32.xlu2 %v4041_v0, %s3685_s19 }
  0xab   : > { %v289_v26 = vpop.permute.xlu1 %288  ;;  %v383_v27 = vpop.permute.xlu0 %382 }
  0xac   : > { %v452_v34 = vsel %vm428_vm1, %v3762_v6, %v289_v26  ;;  %v4029_v36 = vsel %vm461_vm2, %v451_v16, %v383_v27  ;;  %v3481_v6 = vld [vmem:[%s6197_s1 + $0x20] sm:$0xff]  ;;  %v4065_v48 = vpop.permute.xlu2 %390 }
  0xad   : > { %v1119_v33 = vrot.slane %v4029_v36, 1  ;;  %v4034_v35 = vsel %vm461_vm2, %v452_v34, %v385_v2  ;;  %1342 = vmatpush.msrb.mxu2 %v3481_v6  ;;  %v575_v16 = vrot.slane %v4029_v36, 7 }
  0xae   : > { %3469 = vmatmul.msk.f32.gmra.mxu3 %vm681_vm3, %v3988_v41  ;;  %v1121_v38 = vrot.slane %v4034_v35, 1  ;;  %v1188_v55 = vperm.slane %v4034_v35, 6 }
  0xaf   : > { %v1120_v32 = vsel %vm1075_vm6, %v1117_v62, %v1119_v33 }
  0xb0   : > { %v4051_v43 = vsel %vm177_vm7, %v1187_v5, %v1120_v32  ;;  %v4054_v41 = vsel %vm1075_vm6, %v1119_v33, %v1121_v38 }
  0xb1   : > { %270 = vrot.lane.b32.xlu0 %v3915_v40, %s3685_s19  ;;  %366 = vrot.lane.b32.xlu1 %v3741_v3, %s3684_s18 }
  0xb2   : > { %3436 = vmatmul.msk.f32.gmra.mxu2 %vm681_vm3, %v667_v44  ;;  %364 = vrot.lane.b32.xlu2 %v3729_v1, %s3684_s18  ;;  %v577_v1 = vrot.slane %v4034_v35, 7 }
  0xb3   : > { %v387_v46 = vpop.permute.xlu1 %386  ;;  %v291_v2 = vpop.permute.xlu0 %290 }
  0xb4   : > { %v453_v51 = vsel %vm428_vm1, %v3765_v7, %v291_v2  ;;  %v454_v7 = vsel %vm428_vm1, %v3774_v8, %v293_v25  ;;  %v642_v8 = vperm.slane %v4029_v36, 1  ;;  %v299_v21 = vpop.permute.xlu2 %298 }
  0xb5   : > { %v4069_v40 = vsel %vm461_vm2, %v453_v51, %v387_v46 }
  0xb6   : > { %3470 = vmatmul.msk.f32.gmra.mxu3 %vm681_vm3, %v483_v60  ;;  %v1123_v58 = vrot.slane %v4069_v40, 1 }
  0xb8   : > { %v1124_v3 = vsel %vm1075_vm6, %v1121_v38, %v1123_v58 }
  0xb9   : > { %v4081_v62 = vsel %vm177_vm7, %v1188_v55, %v1124_v3 }
  0xba   : > { %3437 = vmatmul.msk.f32.gmra.mxu2 %vm681_vm3, %v574_v59 }
  0xbb   : > { %v295_v60 = vpop.permute.xlu1 %294  ;;  %v389_v24 = vpop.permute.xlu0 %388 }
  0xbc   : > { %v455_v26 = vsel %vm428_vm1, %v3783_v9, %v295_v60  ;;  %v4088_v27 = vsel %vm461_vm2, %v454_v7, %v389_v24  ;;  %v576_v9 = vsel %vm531_vm5, %v573_v57, %v575_v16  ;;  %v397_v51 = vpop.permute.xlu2 %396  ;;  %v457_v57 = vsel %vm428_vm1, %v3795_v11, %v299_v21 }
  0xbd   : > { %v1125_v4 = vrot.slane %v4088_v27, 1  ;;  %v1189_v25 = vperm.slane %v4088_v27, 6  ;;  %v4095_v34 = vsel %vm461_vm2, %v455_v26, %v4065_v48  ;;  %v669_v39 = vsel %vm174_vm4, %v642_v8, %v576_v9 }
  0xbe   : > { %3471 = vmatmul.msk.f32.gmra.mxu3 %vm681_vm3, %v4029_v36  ;;  %v1127_v5 = vrot.slane %v4095_v34, 1 }
  0xbf   : > { %v4104_v33 = vsel %vm1075_vm6, %v1123_v58, %v1125_v4  ;;  %v578_v58 = vsel %vm531_vm5, %v575_v16, %v577_v1  ;;  %v643_v16 = vperm.slane %v4069_v40, 1 }
  0xc0   : > { %v1128_v38 = vsel %vm1075_vm6, %v1125_v4, %v1127_v5 }
  0xc1   : > { %v4111_v6 = vsel %vm177_vm7, %v1189_v25, %v1128_v38 }
  0xc2   : > { %3438 = vmatmul.msk.f32.gmra.mxu2 %vm681_vm3, %v669_v39 }
  0xc3   : > { %v393_v36 = vpop.permute.xlu1 %392  ;;  %v297_v32 = vpop.permute.xlu0 %296 }
  0xc4   : > { %v456_v44 = vsel %vm428_vm1, %v3786_v10, %v297_v32  ;;  %v579_v10 = vrot.slane %v4069_v40, 7  ;;  %v243_v9 = vpop.permute.xlu2 %242  ;;  %v581_v32 = vrot.slane %v4088_v27, 7 }
  0xc5   : > { %v4118_v46 = vsel %vm461_vm2, %v456_v44, %v393_v36 }
  0xc6   : > { %3472 = vmatmul.msk.f32.gmra.mxu3 %vm681_vm3, %v4034_v35  ;;  %v1129_v2 = vrot.slane %v4118_v46, 1  ;;  %v1190_v60 = vperm.slane %v4118_v46, 6  ;;  %v580_v8 = vsel %vm531_vm5, %v577_v1, %v579_v10 }
  0xc8   : > { %v4124_v55 = vsel %vm1075_vm6, %v1127_v5, %v1129_v2  ;;  %v671_v5 = vsel %vm174_vm4, %v643_v16, %v580_v8 }
  0xca   : > { %3439 = vmatmul.msk.f32.gmra.mxu2 %vm681_vm3, %v578_v58  ;;  %v429_v58 = vsel %vm428_vm1, %v3838_v18, %v243_v9 }
  0xcb   : > { %v301_v3 = vpop.permute.xlu1 %300  ;;  %v395_v7 = vpop.permute.xlu0 %394 }
  0xcc   : > { %v458_v35 = vsel %vm428_vm1, %v3804_v12, %v301_v3  ;;  %v4134_v59 = vsel %vm461_vm2, %v457_v57, %v395_v7  ;;  %v582_v57 = vsel %vm531_vm5, %v579_v10, %v581_v32 }
  0xcd   : > { %v1131_v24 = vrot.slane %v4134_v59, 1  ;;  %v4139_v11 = vsel %vm461_vm2, %v458_v35, %v397_v51 }
  0xce   : > { %3473 = vmatmul.msk.f32.gmra.mxu3 %vm681_vm3, %v4069_v40  ;;  %v1133_v26 = vrot.slane %v4139_v11, 1  ;;  %v1191_v44 = vperm.slane %v4139_v11, 6 }
  0xcf   : > { %v1132_v12 = vsel %vm1075_vm6, %v1129_v2, %v1131_v24 }
  0xd0   : > { %v4149_v4 = vsel %vm177_vm7, %v1190_v60, %v1132_v12  ;;  %v4152_v25 = vsel %vm1075_vm6, %v1131_v24, %v1133_v26  ;;  %v341_v24 = vpop.permute.xlu2 %340 }
  0xd2   : > { %3440 = vmatmul.msk.f32.gmra.mxu2 %vm681_vm3, %v671_v5 }
  0xd3   : > { %v305_v40 = vpop.permute.xlu1 %304  ;;  %v303_v21 = vpop.permute.xlu0 %302 }
  0xd4   : > { %v460_v38 = vsel %vm428_vm1, %v3816_v14, %v305_v40  ;;  %v459_v39 = vsel %vm428_vm1, %v3807_v13, %v303_v21 }
  0xd5   : > { %v4164_v1 = vsel %vm461_vm2, %v460_v38, %v393_v36  ;;  %v4168_v2 = vsel %vm461_vm2, %v459_v39, %v4065_v48 }
  0xd6   : > { %3474 = vmatmul.msk.f32.gmra.mxu3 %vm681_vm3, %v4088_v27  ;;  %v1135_v51 = vrot.slane %v4168_v2, 1  ;;  %v1137_v14 = vrot.slane %v4164_v1, 1  ;;  %v583_v27 = vrot.slane %v4095_v34, 7  ;;  %v498_v3 = vrot.slane %v4164_v1, 7 }
  0xd7   : > { %v1192_v16 = vperm.slane %v4164_v1, 6 }
  0xd8   : > { %v1136_v13 = vsel %vm1075_vm6, %v1133_v26, %v1135_v51  ;;  %v4183_v48 = vsel %vm1075_vm6, %v1135_v51, %v1137_v14  ;;  %v644_v26 = vperm.slane %v4095_v34, 1  ;;  %v584_v9 = vsel %vm531_vm5, %v581_v32, %v583_v27 }
  0xd9   : > { %v4180_v36 = vsel %vm177_vm7, %v1191_v44, %v1136_v13 }
  0xda   : > { %3441 = vmatmul.msk.f32.gmra.mxu2 %vm681_vm3, %v582_v57 }
  0xdb   : > { %v339_v7 = vpop.permute.xlu1 %338  ;;  %v245_v35 = vpop.permute.xlu0 %244 }
  0xdc   : > { %v4189_v10 = vsel %vm461_vm2, %v429_v58, %v339_v7  ;;  %v430_v60 = vsel %vm428_vm1, %v3844_v20, %v245_v35  ;;  %v585_v58 = vrot.slane %v4118_v46, 7 }
  0xdd   : > { %v532_v8 = vrot.slane %v4189_v10, 7  ;;  %v631_v12 = vperm.slane %v4189_v10, 1  ;;  %v1076_v5 = vrot.slane %v4189_v10, 1  ;;  %3449 = vmatmul.msk.f32.vlgmr.msra.gmra.mxu1 %vm681_vm3, %v4189_v10  ;;  %v4207_v21 = vsel %vm461_vm2, %v430_v60, %v341_v24  ;;  %v249_v60 = vpop.permute.xlu2 %248 }
  0xde   : > { %3475 = vmatmul.msk.f32.gmra.mxu3 %vm681_vm3, %v4095_v34  ;;  %v673_v34 = vsel %vm174_vm4, %v644_v26, %v584_v9  ;;  %v533_v32 = vrot.slane %v4207_v21, 7  ;;  %v587_v24 = vrot.slane %v4134_v59, 7 }
  0xdf   : > { %v626_v40 = vsel %vm531_vm5, %v498_v3, %v532_v8  ;;  %v1172_v38 = vsel %vm1075_vm6, %v1137_v14, %v1076_v5 }
  0xe0   : > { %v647_v39 = vsel %vm174_vm4, %v631_v12, %v626_v40  ;;  %v4216_v44 = vsel %vm177_vm7, %v1192_v16, %v1172_v38  ;;  %v534_v7 = vsel %vm531_vm5, %v532_v8, %v533_v32  ;;  %v645_v8 = vperm.slane %v4134_v59, 1 }
  0xe1   : > { %3416 = vmatmul.msk.f32.vlgmr.msra.gmra.mxu0 %vm681_vm3, %v647_v39  ;;  %v588_v9 = vsel %vm531_vm5, %v585_v58, %v587_v24 }
  0xe2   : > { %3442 = vmatmul.msk.f32.gmra.mxu2 %vm681_vm3, %v673_v34  ;;  %v675_v39 = vsel %vm174_vm4, %v645_v8, %v588_v9 }
  0xe3   : > { %v247_v51 = vpop.permute.xlu0 %246  ;;  %v343_v13 = vpop.permute.xlu1 %342 }
  0xe4   : > { %v431_v14 = vsel %vm428_vm1, %v3831_v17, %v247_v51  ;;  %v586_v17 = vsel %vm531_vm5, %v583_v27, %v585_v58  ;;  %v589_v51 = vrot.slane %v4139_v11, 7 }
  0xe5   : > { %v4226_v57 = vsel %vm461_vm2, %v431_v14, %v343_v13  ;;  %3450 = vmatmul.msk.f32.gmra.mxu1 %vm681_vm3, %v4207_v21  ;;  %v347_v34 = vpop.permute.xlu2 %346 }
  0xe6   : > { %3476 = vmatmul.msk.f32.gmra.mxu3 %vm681_vm3, %v4118_v46  ;;  %v535_v35 = vrot.slane %v4226_v57, 7  ;;  %v632_v16 = vperm.slane %v4226_v57, 1  ;;  %v432_v46 = vsel %vm428_vm1, %v3841_v19, %v249_v60  ;;  %v590_v58 = vsel %vm531_vm5, %v587_v24, %v589_v51 }
  0xe7   : > { %v591_v60 = vrot.slane %v4168_v2, 7 }
  0xe8   : > { %v536_v26 = vsel %vm531_vm5, %v533_v32, %v535_v35 }
  0xe9   : > { %3417 = vmatmul.msk.f32.gmra.mxu0 %vm681_vm3, %v534_v7  ;;  %v649_v27 = vsel %vm174_vm4, %v632_v16, %v536_v26  ;;  %v592_v26 = vsel %vm531_vm5, %v589_v51, %v591_v60 }
  0xea   : > { %3443 = vmatmul.msk.f32.gmra.mxu2 %vm681_vm3, %v586_v17 }
  0xeb   : > { %v345_v12 = vpop.permute.xlu0 %344  ;;  %v251_v38 = vpop.permute.xlu1 %250 }
  0xec   : > { %v4252_v40 = vsel %vm461_vm2, %v432_v46, %v345_v12  ;;  %v433_v19 = vsel %vm428_vm1, %v3838_v18, %v251_v38 }
  0xed   : > { %3451 = vmatmul.msk.f32.gmra.mxu1 %vm681_vm3, %v4226_v57  ;;  %v4262_v32 = vsel %vm461_vm2, %v433_v19, %v347_v34  ;;  %v255_v46 = vpop.permute.xlu2 %254 }
  0xee   : > { %3477 = vmatmul.msk.f32.gmra.mxu3 %vm681_vm3, %v4134_v59  ;;  %v537_v59 = vrot.slane %v4252_v40, 7  ;;  %v539_v14 = vrot.slane %v4262_v32, 7  ;;  %v633_v7 = vperm.slane %v4262_v32, 1  ;;  %v435_v12 = vsel %vm428_vm1, %v3861_v23, %v255_v46 }
  0xef   : > { %v593_v23 = vsel %vm531_vm5, %v591_v60, %v498_v3 }
  0xf0   : > { %v538_v18 = vsel %vm531_vm5, %v535_v35, %v537_v59  ;;  %v540_v17 = vsel %vm531_vm5, %v537_v59, %v539_v14 }
  0xf1   : > { %3418 = vmatmul.msk.f32.gmra.mxu0 %vm681_vm3, %v649_v27  ;;  %v651_v24 = vsel %vm174_vm4, %v633_v7, %v540_v17  ;;  %v1079_v7 = vrot.slane %v4226_v57, 1 }
  0xf2   : > { %3444 = vmatmul.msk.f32.gmra.mxu2 %vm681_vm3, %v675_v39 }
  0xf3   : > { %v253_v13 = vpop.permute.xlu0 %252  ;;  %v349_v16 = vpop.permute.xlu1 %348 }
  0xf4   : > { %v434_v35 = vsel %vm428_vm1, %v3844_v20, %v253_v13 }
  0xf5   : > { %3452 = vmatmul.msk.f32.gmra.mxu1 %vm681_vm3, %v4252_v40  ;;  %v4288_v8 = vsel %vm461_vm2, %v434_v35, %v349_v16  ;;  %v353_v51 = vpop.permute.xlu2 %352 }
  0xf6   : > { %3478 = vmatmul.msk.f32.gmra.mxu3 %vm681_vm3, %v4139_v11  ;;  %v646_v11 = vperm.slane %v4168_v2, 1  ;;  %v541_v27 = vrot.slane %v4288_v8, 7 }
  0xf8   : > { %v677_v20 = vsel %vm174_vm4, %v646_v11, %v592_v26  ;;  %v542_v38 = vsel %vm531_vm5, %v539_v14, %v541_v27  ;;  %v1077_v14 = vrot.slane %v4207_v21, 1  ;;  %v1177_v11 = vperm.slane %v4207_v21, 6 }
  0xf9   : > { %3419 = vmatmul.msk.f32.gmra.mxu0 %vm681_vm3, %v538_v18 }
  0xfa   : > { %3445 = vmatmul.msk.f32.gmra.mxu2 %vm681_vm3, %v590_v58  ;;  %v1080_v10 = vsel %vm1075_vm6, %v1077_v14, %v1079_v7 }
  0xfb   : > { %v257_v39 = vpop.permute.xlu1 %256 }
  0xfc   : > { %v436_v18 = vsel %vm428_vm1, %v3882_v28, %v257_v39  ;;  %v1078_v28 = vsel %vm1075_vm6, %v1076_v5, %v1077_v14 }
  0xfd   : > { %3453 = vmatmul.msk.f32.gmra.mxu1 %vm681_vm3, %v4262_v32  ;;  %v4321_v3 = vsel %vm461_vm2, %v436_v18, %v353_v51  ;;  %v261_v57 = vpop.permute.xlu2 %260 }
  0xfe   : > { %3479 = vmatmul.msk.f32.gmra.mxu3 %vm681_vm3, %v4168_v2  ;;  %v351_v2 = vpop.permute.xlu0 %350  ;;  %v545_v60 = vrot.slane %v4321_v3, 7  ;;  %v438_v46 = vsel %vm428_vm1, %v3889_v30, %v261_v57 }
  0xff   : > { %v4298_v9 = vsel %vm461_vm2, %v435_v12, %v351_v2  ;;  %v1081_v12 = vrot.slane %v4252_v40, 1 }
 0x100   : > { %v543_v19 = vrot.slane %v4298_v9, 7  ;;  %v634_v34 = vperm.slane %v4298_v9, 1 }
 0x101   : > { %3420 = vmatmul.msk.f32.gmra.mxu0 %vm681_vm3, %v651_v24  ;;  %v1194_v24 = vsel %vm177_vm7, %v1177_v11, %v1080_v10  ;;  %v1082_v30 = vsel %vm1075_vm6, %v1079_v7, %v1081_v12 }
 0x102   : > { %3446 = vmatmul.msk.f32.gmra.mxu2 %vm681_vm3, %v677_v20  ;;  %v544_v59 = vsel %vm531_vm5, %v541_v27, %v543_v19 }
 0x103   : > { %v355_v17 = vpop.permute.xlu1 %354 }
 0x105   : > { %3454 = vmatmul.msk.f32.gmra.mxu1 %vm681_vm3, %v4288_v8 }
 0x106   : > { %3480 = vmatmul.msk.f32.gmra.mxu3 %vm681_vm3, %v4164_v1  ;;  %v653_v1 = vsel %vm174_vm4, %v634_v34, %v544_v59  ;;  %v259_v13 = vpop.permute.xlu0 %258  ;;  %v1083_v34 = vrot.slane %v4262_v32, 1 }
 0x107   : > { %v437_v58 = vsel %vm428_vm1, %v3892_v31, %v259_v13  ;;  %v546_v31 = vsel %vm531_vm5, %v543_v19, %v545_v60 }
 0x108   : > { %v4333_v35 = vsel %vm461_vm2, %v437_v58, %v355_v17 }
 0x109   : > { %3421 = vmatmul.msk.f32.gmra.mxu0 %vm681_vm3, %v542_v38  ;;  %v547_v5 = vrot.slane %v4333_v35, 7  ;;  %v635_v26 = vperm.slane %v4333_v35, 1 }
 0x10a   : > { %3447 = vmatmul.msk.f32.gmra.mxu2 %vm681_vm3, %v593_v23  ;;  %v359_v23 = vpop.permute.xlu2 %358 }
 0x10b   : > { %v548_v21 = vsel %vm531_vm5, %v545_v60, %v547_v5  ;;  %v263_v19 = vpop.permute.xlu1 %262  ;;  %v1085_v60 = vrot.slane %v4288_v8, 1 }
 0x10c   : > { %v655_v2 = vsel %vm174_vm4, %v635_v26, %v548_v21  ;;  %v439_v39 = vsel %vm428_vm1, %v3906_v37, %v263_v19  ;;  %v1178_v37 = vperm.slane %v4252_v40, 6 }
 0x10d   : > { %3455 = vmatmul.msk.f32.gmra.mxu1 %vm681_vm3, %v4298_v9  ;;  %v4369_v18 = vsel %vm461_vm2, %v439_v39, %v359_v23  ;;  %v1086_v57 = vsel %vm1075_vm6, %v1083_v34, %v1085_v60 }
 0x10e   : > { %v357_v27 = vpop.permute.xlu0 %356  ;;  %v551_v32 = vrot.slane %v4369_v18, 7 }
 0x10f   : > { %v4359_v38 = vsel %vm461_vm2, %v438_v46, %v357_v27 }
 0x110   : > { %v549_v59 = vrot.slane %v4359_v38, 7 }
 0x111   : > { %3422 = vmatmul.msk.f32.gmra.mxu0 %vm681_vm3, %v653_v1  ;;  %v1084_v1 = vsel %vm1075_vm6, %v1081_v12, %v1083_v34  ;;  %v1179_v12 = vperm.slane %v4288_v8, 6 }
 0x112   : > { %3484 = vmatmul.msk.f32.vlgmr.msrb.gmra.mxu2 %vm681_vm3, %v1078_v28  ;;  %v550_v14 = vsel %vm531_vm5, %v547_v5, %v549_v59  ;;  %v1196_v58 = vsel %vm177_vm7, %v1178_v37, %v1084_v1  ;;  %v636_v28 = vperm.slane %v4369_v18, 1  ;;  %v552_v7 = vsel %vm531_vm5, %v549_v59, %v551_v32  ;;  %v267_v10 = vpop.permute.xlu2 %266 }
 0x113   : > { %v361_v11 = vpop.permute.xlu1 %360  ;;  %v1089_v59 = vrot.slane %v4321_v3, 1 }
 0x115   : > { %v4336_v16 = vpop.f32.mrf.mxu2  ;;  %3456 = vmatmul.msk.f32.gmra.mxu1 %vm681_vm3, %v4321_v3 }
 0x116   : > { %v265_v13 = vpop.permute.xlu0 %264 }
 0x117   : > { %v440_v40 = vsel %vm428_vm1, %v3966_v22, %v265_v13  ;;  %v441_v22 = vsel %vm428_vm1, %v3938_v54, %v267_v10 }
 0x118   : > { %v4395_v5 = vsel %vm461_vm2, %v440_v40, %v361_v11  ;;  %v1180_v40 = vperm.slane %v4321_v3, 6 }
 0x119   : > { %3423 = vmatmul.msk.f32.gmra.mxu0 %vm681_vm3, %v546_v31  ;;  %v657_v31 = vsel %vm174_vm4, %v636_v28, %v552_v7  ;;  %v553_v26 = vrot.slane %v4395_v5, 7 }
 0x11a   : > { %3485 = vmatmul.msk.f32.gmra.mxu2 %vm681_vm3, %v1194_v24  ;;  %v1087_v24 = vrot.slane %v4298_v9, 1  ;;  %v365_v34 = vpop.permute.xlu2 %364 }
 0x11b   : > { %v269_v19 = vpop.permute.xlu1 %268 }
 0x11c   : > { %v1088_v54 = vsel %vm1075_vm6, %v1085_v60, %v1087_v24  ;;  %v442_v23 = vsel %vm428_vm1, %v3963_v15, %v269_v19  ;;  %v1090_v13 = vsel %vm1075_vm6, %v1087_v24, %v1089_v59  ;;  %v1091_v15 = vrot.slane %v4333_v35, 1 }
 0x11d   : > { %v4351_v20 = vpop.f32.mrf.mxu2  ;;  %3457 = vmatmul.msk.f32.gmra.mxu1 %vm681_vm3, %v4333_v35  ;;  %v1198_v39 = vsel %vm177_vm7, %v1179_v12, %v1088_v54  ;;  %v475_v1 = vsel %vm461_vm2, %v442_v23, %v365_v34  ;;  %v1095_v12 = vrot.slane %v4369_v18, 1  ;;  %v1182_v23 = vperm.slane %v4395_v5, 6 }
 0x11e   : > { %v363_v21 = vpop.permute.xlu0 %362  ;;  %v1092_v10 = vsel %vm1075_vm6, %v1089_v59, %v1091_v15 }
 0x11f   : > { %v4405_v46 = vsel %vm461_vm2, %v441_v22, %v363_v21  ;;  %v1093_v22 = vrot.slane %v4359_v38, 1 }
 0x120   : > { %v555_v9 = vrot.slane %v4405_v46, 7  ;;  %v637_v8 = vperm.slane %v4405_v46, 1 }
 0x121   : > { %3424 = vmatmul.msk.f32.gmra.mxu0 %vm681_vm3, %v655_v2  ;;  %v554_v2 = vsel %vm531_vm5, %v551_v32, %v553_v26  ;;  %v1094_v21 = vsel %vm1075_vm6, %v1091_v15, %v1093_v22  ;;  %v1183_v15 = vperm.slane %v475_v1, 6 }
 0x122   : > { %3486 = vmatmul.msk.f32.gmra.mxu2 %vm681_vm3, %v1082_v30  ;;  %v556_v30 = vsel %vm531_vm5, %v553_v26, %v555_v9 }
 0x123   : > { %v367_v7 = vpop.permute.xlu1 %366 }
 0x125   : > { %v4371_v51 = vpop.f32.mrf.mxu2  ;;  %3458 = vmatmul.msk.f32.gmra.mxu1 %vm681_vm3, %v4359_v38 }
 0x126   : > { %v271_v32 = vpop.permute.xlu0 %270 }
 0x127   : > { %v443_v28 = vsel %vm428_vm1, %v4041_v0, %v271_v32 }
 0x128   : > { %v476_v11 = vsel %vm461_vm2, %v443_v28, %v367_v7 }
 0x129   : > { %3425 = vmatmul.msk.f32.gmra.mxu0 %vm681_vm3, %v550_v14  ;;  %v659_v14 = vsel %vm174_vm4, %v637_v8, %v556_v30  ;;  %v559_v35 = vrot.slane %v476_v11, 7  ;;  %v638_v0 = vperm.slane %v476_v11, 1  ;;  %v1099_v30 = vrot.slane %v4405_v46, 1 }
 0x12a   : > { %3487 = vmatmul.msk.f32.gmra.mxu2 %vm681_vm3, %v1196_v58  ;;  %v557_v58 = vrot.slane %v475_v1, 7 }
 0x12b   : > { %v562_v19 = vsel %vm531_vm5, %v559_v35, %v561_v50 }
 0x12c   : > { %v560_v3 = vsel %vm531_vm5, %v557_v58, %v559_v35 }
 0x12d   : > { %v4388_v17 = vpop.f32.mrf.mxu2  ;;  %3459 = vmatmul.msk.f32.gmra.mxu1 %vm681_vm3, %v4369_v18  ;;  %v661_v26 = vsel %vm174_vm4, %v638_v0, %v560_v3 }
 0x131   : > { %3426 = vmatmul.msk.f32.gmra.mxu0 %vm681_vm3, %v657_v31  ;;  %v558_v31 = vsel %vm531_vm5, %v555_v9, %v557_v58  ;;  %v1096_v9 = vsel %vm1075_vm6, %v1093_v22, %v1095_v12 }
 0x132   : > { %3488 = vmatmul.msk.f32.gmra.mxu2 %vm681_vm3, %v1086_v57  ;;  %v1200_v57 = vsel %vm177_vm7, %v1180_v40, %v1092_v10  ;;  %v1105_v40 = vrot.slane %v3921_v42, 1 }
 0x135   : > { %v4408_v27 = vpop.f32.mrf.mxu2  ;;  %3460 = vmatmul.msk.f32.gmra.mxu1 %vm681_vm3, %v4395_v5 }
 0x139   : > { %3427 = vmatmul.msk.f32.gmra.mxu0 %vm681_vm3, %v554_v2  ;;  %v1181_v2 = vperm.slane %v4359_v38, 6  ;;  %v1097_v38 = vrot.slane %v4395_v5, 1 }
 0x13a   : > { %3489 = vmatmul.msk.f32.gmra.mxu2 %vm681_vm3, %v1198_v39 }
 0x13b   : > { %v1202_v18 = vsel %vm177_vm7, %v1181_v2, %v1096_v9  ;;  %v1098_v8 = vsel %vm1075_vm6, %v1095_v12, %v1097_v38  ;;  %v1100_v34 = vsel %vm1075_vm6, %v1097_v38, %v1099_v30 }
 0x13c   : > { %v1204_v59 = vsel %vm177_vm7, %v1182_v23, %v1100_v34 }
 0x13d   : > { %v4424_v37 = vpop.f32.mrf.mxu2  ;;  %3461 = vmatmul.msk.f32.gmra.mxu1 %vm681_vm3, %v4405_v46  ;;  %v1103_v46 = vrot.slane %v476_v11, 1 }
 0x141   : > { %3428 = vmatmul.msk.f32.gmra.mxu0 %vm681_vm3, %v659_v14  ;;  %v1101_v14 = vrot.slane %v475_v1, 1 }
 0x142   : > { %3490 = vmatmul.msk.f32.gmra.mxu2 %vm681_vm3, %v1090_v13 }
 0x143   : > { %v1102_v13 = vsel %vm1075_vm6, %v1099_v30, %v1101_v14  ;;  %v1104_v5 = vsel %vm1075_vm6, %v1101_v14, %v1103_v46  ;;  %v1027_v30 = vpop.f32.mrf.mxu3 }
 0x144   : > { %v1206_v28 = vsel %vm177_vm7, %v1183_v15, %v1104_v5 }
 0x145   : > { %v4438_v60 = vpop.f32.mrf.mxu2  ;;  %3462 = vmatmul.msk.f32.gmra.mxu1 %vm681_vm3, %v475_v1  ;;  %v1108_v1 = vsel %vm1075_vm6, %v1105_v40, %v1107_v52 }
 0x149   : > { %3429 = vmatmul.msk.f32.gmra.mxu0 %vm681_vm3, %v558_v31  ;;  %v1106_v31 = vsel %vm1075_vm6, %v1103_v46, %v1105_v40 }
 0x14a   : > { %3491 = vmatmul.msk.f32.gmra.mxu2 %vm681_vm3, %v1200_v57 }
 0x14b   : > { %v1030_v14 = vpop.f32.mrf.mxu3 }
 0x14d   : > { %v4450_v24 = vpop.f32.mrf.mxu2  ;;  %3463 = vmatmul.msk.f32.gmra.mxu1 %vm681_vm3, %v476_v11  ;;  %v1184_v11 = vperm.slane %v3921_v42, 6 }
 0x14f   : > { %v1208_v35 = vsel %vm177_vm7, %v1184_v11, %v1108_v1 }
 0x151   : > { %3430 = vmatmul.msk.f32.gmra.mxu0 %vm681_vm3, %v661_v26 }
 0x152   : > { %3492 = vmatmul.msk.f32.gmra.mxu2 %vm681_vm3, %v1094_v21 }
 0x155   : > { %v4460_v54 = vpop.f32.mrf.mxu2  ;;  %3464 = vmatmul.msk.f32.gmra.mxu1 %vm681_vm3, %v3921_v42 }
 0x159   : > { %3431 = vmatmul.msk.f32.gmra.mxu0 %vm681_vm3, %v562_v19 }
 0x15a   : > { %3493 = vmatmul.msk.f32.gmra.mxu2 %vm681_vm3, %v1202_v18 }
 0x15d   : > { %v4473_v39 = vpop.f32.mrf.mxu2 }
 0x15e   : > { %6206 = vst [vmem:[#allocation4_spill] sm:$0xff] %v4473_v39  ;;  %v4531_v3 = vpop.f32.mrf.mxu0 }
 0x162   : > { %3494 = vmatmul.msk.f32.gmra.mxu2 %vm681_vm3, %v1098_v8 }
 0x165   : > { %v4479_v50 = vpop.f32.mrf.mxu2 }
 0x166   : > { %6207 = vst [vmem:[#allocation5_spill] sm:$0xff] %v4479_v50  ;;  %v4539_v22 = vpop.f32.mrf.mxu0 }
 0x16a   : > { %3495 = vmatmul.msk.f32.gmra.mxu2 %vm681_vm3, %v1204_v59 }
 0x16d   : > { %v4485_v32 = vpop.f32.mrf.mxu2 }
 0x16e   : > { %6208 = vst [vmem:[#allocation6_spill] sm:$0xff] %v4485_v32 }
 0x172   : > { %3496 = vmatmul.msk.f32.gmra.mxu2 %vm681_vm3, %v1102_v13 }
 0x175   : > { %v4489_v58 = vpop.f32.mrf.mxu2 }
 0x176   : > { %6209 = vst [vmem:[#allocation7_spill] sm:$0xff] %v4489_v58 }
 0x17a   : > { %3497 = vmatmul.msk.f32.gmra.mxu2 %vm681_vm3, %v1206_v28 }
 0x17d   : > { %v4495_v7 = vpop.f32.mrf.mxu2 }
 0x17e   : > { %6210 = vst [vmem:[#allocation8_spill] sm:$0xff] %v4495_v7 }
 0x182   : > { %3498 = vmatmul.msk.f32.gmra.mxu2 %vm681_vm3, %v1106_v31  ;;  %v1028_v31 = vadd.f32 %v1027_v30, %v4336_v16 }
 0x185   : > { %v4500_v10 = vpop.f32.mrf.mxu2 }
 0x186   : > { %6211 = vst [vmem:[#allocation9_spill] sm:$0xff] %v4500_v10 }
 0x18a   : > { %3499 = vmatmul.msk.f32.gmra.mxu2 %vm681_vm3, %v1208_v35 }
 0x18d   : > { %v4509_v57 = vpop.f32.mrf.mxu2 }
 0x18e   : > { %6212 = vst [vmem:[#allocation10_spill] sm:$0xff] %v4509_v57 }
 0x192   : > { %3500 = vmatmul.msk.f32.gmra.mxu2 %vm681_vm3, %v3946_v56 }
 0x195   : > { %v4513_v0 = vpop.f32.mrf.mxu2 }
 0x19a   : > { %3501 = vmatmul.msk.f32.gmra.mxu2 %vm681_vm3, %v3981_v29  ;;  %v4533_v29 = vpop.f32.mrf.mxu1 }
 0x19d   : > { %v4517_v49 = vpop.f32.mrf.mxu2 }
 0x1a2   : > { %3502 = vmatmul.msk.f32.gmra.mxu2 %vm681_vm3, %v3996_v47 }
 0x1a5   : > { %v4521_v42 = vpop.f32.mrf.mxu2 }
 0x1aa   : > { %3503 = vmatmul.msk.f32.gmra.mxu2 %vm681_vm3, %v4007_v53  ;;  %v982_v53 = vpop.f32.mrf.mxu1 }
 0x1ad   : > { %v4525_v52 = vpop.f32.mrf.mxu2 }
 0x1b2   : > { %3504 = vmatmul.msk.f32.gmra.mxu2 %vm681_vm3, %v4015_v63  ;;  %v805_v63 = vpop.f32.mrf.mxu0  ;;  %v985_v21 = vpop.f32.mrf.mxu1 }
 0x1b5   : > { %v4529_v56 = vpop.f32.mrf.mxu2 }
 0x1ba   : > { %3505 = vmatmul.msk.f32.gmra.mxu2 %vm681_vm3, %v4051_v43  ;;  %v808_v43 = vpop.f32.mrf.mxu0  ;;  %v988_v9 = vpop.f32.mrf.mxu1 }
 0x1bd   : > { %v4537_v47 = vpop.f32.mrf.mxu2 }
 0x1c2   : > { %3506 = vmatmul.msk.f32.gmra.mxu2 %vm681_vm3, %v4054_v41  ;;  %v811_v19 = vpop.f32.mrf.mxu0  ;;  %v991_v18 = vpop.f32.mrf.mxu1 }
 0x1c5   : > { %v4543_v26 = vpop.f32.mrf.mxu2 }
 0x1ca   : > { %3507 = vmatmul.msk.f32.gmra.mxu2 %vm681_vm3, %v4081_v62  ;;  %v814_v38 = vpop.f32.mrf.mxu0 }
 0x1cd   : > { %v4547_v12 = vpop.f32.mrf.mxu2 }
 0x1d2   : > { %3508 = vmatmul.msk.f32.gmra.mxu2 %vm681_vm3, %v4104_v33  ;;  %v994_v33 = vpop.f32.mrf.mxu1 }
 0x1d5   : > { %v4551_v2 = vpop.f32.mrf.mxu2 }
 0x1da   : > { %3509 = vmatmul.msk.f32.gmra.mxu2 %vm681_vm3, %v4111_v6  ;;  %v817_v6 = vpop.f32.mrf.mxu0  ;;  %v997_v23 = vpop.f32.mrf.mxu1 }
 0x1dd   : > { %v4555_v41 = vpop.f32.mrf.mxu2 }
 0x1e2   : > { %3510 = vmatmul.msk.f32.gmra.mxu2 %vm681_vm3, %v4124_v55  ;;  %v820_v55 = vpop.f32.mrf.mxu0  ;;  %v1000_v13 = vpop.f32.mrf.mxu1 }
 0x1e5   : > { %v4559_v62 = vpop.f32.mrf.mxu2 }
 0x1ea   : > { %3511 = vmatmul.msk.f32.gmra.mxu2 %vm681_vm3, %v4149_v4  ;;  %v823_v46 = vpop.f32.mrf.mxu0  ;;  %v1003_v15 = vpop.f32.mrf.mxu1 }
 0x1ed   : > { %v4563_v8 = vpop.f32.mrf.mxu2 }
 0x1f2   : > { %3512 = vmatmul.msk.f32.gmra.mxu2 %vm681_vm3, %v4152_v25  ;;  %v1033_v25 = vpop.f32.mrf.mxu3  ;;  %v826_v28 = vpop.f32.mrf.mxu0 }
 0x1f3   : > { %v1006_v40 = vpop.f32.mrf.mxu1 }
 0x1f5   : > { %v4567_v34 = vpop.f32.mrf.mxu2 }
 0x1fa   : > { %3513 = vmatmul.msk.f32.gmra.mxu2 %vm681_vm3, %v4180_v36  ;;  %v1036_v36 = vpop.f32.mrf.mxu3  ;;  %v829_v35 = vpop.f32.mrf.mxu0 }
 0x1fb   : > { %v1009_v45 = vpop.f32.mrf.mxu1  ;;  %v1037_v30 = vadd.f32 %v1036_v36, %v4388_v17  ;;  %v989_v36 = vadd.f32 %v988_v9, %v808_v43  ;;  %v998_v9 = vadd.f32 %v997_v23, %v817_v6 }
 0x1fd   : > { %v4571_v59 = vpop.f32.mrf.mxu2 }
 0x202   : > { %3514 = vmatmul.msk.f32.gmra.mxu2 %vm681_vm3, %v4183_v48  ;;  %v1031_v48 = vadd.f32 %v1030_v14, %v4351_v20  ;;  %v1039_v61 = vpop.f32.mrf.mxu3  ;;  %v832_v7 = vpop.f32.mrf.mxu0 }
 0x203   : > { %v1012_v16 = vpop.f32.mrf.mxu1 }
 0x205   : > { %v4575_v4 = vpop.f32.mrf.mxu2 }
 0x20a   : > { %3515 = vmatmul.msk.f32.gmra.mxu2 %vm681_vm3, %v4216_v44  ;;  %v1034_v44 = vadd.f32 %v1033_v25, %v4371_v51  ;;  %v4588_v32 = vpop.f32.mrf.mxu3  ;;  %v835_v20 = vpop.f32.mrf.mxu0  ;;  %v983_v51 = vadd.f32 %v982_v53, %v4539_v22  ;;  %v992_v22 = vadd.f32 %v991_v18, %v811_v19  ;;  %v995_v53 = vadd.f32 %v994_v33, %v814_v38 }
 0x20b   : > { %v1015_v39 = vpop.f32.mrf.mxu1  ;;  %v1001_v38 = vadd.f32 %v1000_v13, %v820_v55 }
 0x20d   : > { %v4579_v5 = vpop.f32.mrf.mxu2  ;;  %v4641_v6 = vadd.f32 %v4547_v12, %v1001_v38 }
 0x212   : > { %v4595_v14 = vpop.f32.mrf.mxu3 }
 0x215   : > { %v1392_v1 = vpop.f32.mrf.mxu2 }
 0x216   : > { %v4582_v11 = vadd.f32 %v1392_v1, %v1028_v31 }
 0x21d   : > { %v1395_v57 = vpop.f32.mrf.mxu2 }
 0x21e   : > { %v4585_v10 = vadd.f32 %v1395_v57, %v1031_v48  ;;  %v1040_v57 = vadd.f32 %v1039_v61, %v4408_v27  ;;  %v980_v48 = vadd.f32 %v4533_v29, %v4531_v3  ;;  %v838_v61 = vpop.f32.mrf.mxu0  ;;  %v4612_v27 = vpop.f32.mrf.mxu3  ;;  %v4617_v29 = vadd.f32 %v4525_v52, %v989_v36 }
 0x21f   : > { %v4631_v52 = vadd.f32 %v4537_v47, %v995_v53  ;;  %v1013_v53 = vadd.f32 %v1012_v16, %v832_v7 }
 0x220   : > { %v1477_v19 = vsel %vm428_vm1, %v4617_v29, 0.0 }
 0x225   : > { %v1398_v58 = vpop.f32.mrf.mxu2 }
 0x226   : > { %v4590_v50 = vadd.f32 %v1398_v58, %v1034_v44  ;;  %v986_v58 = vadd.f32 %v985_v21, %v805_v63  ;;  %v4602_v44 = vadd.f32 %v4517_v49, %v983_v51  ;;  %v1018_v49 = vpop.f32.mrf.mxu1  ;;  %v1004_v51 = vadd.f32 %v1003_v15, %v823_v46  ;;  %v1051_v47 = vpop.f32.mrf.mxu3 }
 0x227   : > { %v1010_v46 = vadd.f32 %v1009_v45, %v829_v35  ;;  %v1485_v15 = vsel %vm428_vm1, %v4641_v6, 0.0  ;;  %v4661_v45 = vadd.f32 %v4563_v8, %v1013_v53 }
 0x228   : > { %v1473_v3 = vsel %vm428_vm1, %v4602_v44, 0.0  ;;  %v4646_v13 = vadd.f32 %v4551_v2, %v1004_v51 }
 0x22d   : > { %v1401_v31 = vpop.f32.mrf.mxu2 }
 0x22e   : > { %v4593_v1 = vadd.f32 %v1401_v31, %v1037_v30  ;;  %v4607_v30 = vadd.f32 %v4513_v0, %v980_v48  ;;  %v4610_v31 = vadd.f32 %v4521_v42, %v986_v58  ;;  %v4624_v42 = vadd.f32 %v4529_v56, %v992_v22  ;;  %v841_v48 = vpop.f32.mrf.mxu0  ;;  %v1021_v36 = vpop.f32.mrf.mxu1 }
 0x22f   : > { %v1007_v58 = vadd.f32 %v1006_v40, %v826_v28  ;;  %v1487_v28 = vsel %vm428_vm1, %v4646_v13, 0.0  ;;  %v4656_v40 = vadd.f32 %v4559_v62, %v1010_v46  ;;  %v1054_v8 = vpop.f32.mrf.mxu3  ;;  %v1505_v46 = vsel %vm428_vm1, %v4585_v10, 0.0 }
 0x230   : > { %v1472_v63 = vsel %vm428_vm1, %v4607_v30, 0.0  ;;  %v1475_v0 = vsel %vm428_vm1, %v4610_v31, 0.0  ;;  %v1479_v33 = vsel %vm428_vm1, %v4624_v42, 0.0 }
 0x231   : > { %v1474_v21 = vadd.f32 %v1473_v3, %v1472_v63  ;;  %v4651_v12 = vadd.f32 %v4555_v41, %v1007_v58  ;;  %v1016_v63 = vadd.f32 %v1015_v39, %v835_v20  ;;  %v1491_v41 = vsel %vm428_vm1, %v4656_v40, 0.0 }
 0x232   : > { %v1493_v39 = vsel %vm428_vm1, %v4661_v45, 0.0 }
 0x233   : > { %v1476_v18 = vadd.f32 %v1475_v0, %v1474_v21  ;;  %v1489_v0 = vsel %vm428_vm1, %v4651_v12, 0.0  ;;  %v1019_v21 = vadd.f32 %v1018_v49, %v838_v61  ;;  %v4666_v7 = vadd.f32 %v4567_v34, %v1016_v63 }
 0x234   : > { %v1509_v63 = vsel %vm428_vm1, %v4593_v1, 0.0 }
 0x235   : > { %v1404_v25 = vpop.f32.mrf.mxu2  ;;  %v1478_v56 = vadd.f32 %v1477_v19, %v1476_v18  ;;  %v1022_v19 = vadd.f32 %v1021_v36, %v841_v48  ;;  %v4671_v20 = vadd.f32 %v4571_v59, %v1019_v21  ;;  %v1495_v49 = vsel %vm428_vm1, %v4666_v7, 0.0 }
 0x236   : > { %v4604_v17 = vadd.f32 %v1404_v25, %v1040_v57  ;;  %v4636_v57 = vadd.f32 %v4543_v26, %v998_v9  ;;  %v1481_v25 = vsel %vm428_vm1, %v4631_v52, 0.0  ;;  %v844_v16 = vpop.f32.mrf.mxu0  ;;  %v1024_v18 = vpop.f32.mrf.mxu1  ;;  %v1049_v21 = vadd.f32 %v4612_v27, %v4450_v24 }
 0x237   : > { %v1480_v23 = vadd.f32 %v1479_v33, %v1478_v56  ;;  %v1025_v61 = vadd.f32 %v1024_v18, %v844_v16  ;;  %v4676_v34 = vadd.f32 %v4575_v4, %v1022_v19  ;;  %v1497_v56 = vsel %vm428_vm1, %v4671_v20, 0.0  ;;  %v6213_v19 = vld [vmem:[#allocation4_spill] sm:$0xff] }
 0x238   : > { %v1483_v55 = vsel %vm428_vm1, %v4636_v57, 0.0  ;;  %v1503_v4 = vsel %vm428_vm1, %v4582_v11, 0.0  ;;  %v1052_v16 = vadd.f32 %v1051_v47, %v4460_v54 }
 0x239   : > { %v1482_v26 = vadd.f32 %v1481_v25, %v1480_v23  ;;  %v4681_v51 = vadd.f32 %v4579_v5, %v1025_v61  ;;  %v1499_v59 = vsel %vm428_vm1, %v4676_v34, 0.0 }
 0x23b   : > { %v1484_v3 = vadd.f32 %v1483_v55, %v1482_v26  ;;  %v1501_v58 = vsel %vm428_vm1, %v4681_v51, 0.0  ;;  %v1057_v26 = vpop.f32.mrf.mxu3 }
 0x23d   : > { %v4626_v43 = vpop.f32.mrf.mxu2  ;;  %v1486_v2 = vadd.f32 %v1485_v15, %v1484_v3  ;;  %v1043_v15 = vadd.f32 %v4588_v32, %v4424_v37  ;;  %v1507_v3 = vsel %vm428_vm1, %v4590_v50, 0.0  ;;  %v1511_v37 = vsel %vm428_vm1, %v4604_v17, 0.0 }
 0x23f   : > { %v1488_v35 = vadd.f32 %v1487_v28, %v1486_v2  ;;  %v1046_v2 = vadd.f32 %v4595_v14, %v4438_v60 }
 0x241   : > { %v1490_v9 = vadd.f32 %v1489_v0, %v1488_v35  ;;  %v4700_v0 = vadd.f32 %v4626_v43, %v1043_v15  ;;  %v6216_v15 = vld [vmem:[#allocation7_spill] sm:$0xff] }
 0x243   : > { %v1492_v38 = vadd.f32 %v1491_v41, %v1490_v9  ;;  %v1513_v60 = vsel %vm428_vm1, %v4700_v0, 0.0  ;;  %v1060_v9 = vpop.f32.mrf.mxu3 }
 0x245   : > { %v1410_v22 = vpop.f32.mrf.mxu2  ;;  %v1494_v33 = vadd.f32 %v1493_v39, %v1492_v38  ;;  %v1055_v39 = vadd.f32 %v1054_v8, %v6213_v19  ;;  %v6214_v38 = vld [vmem:[#allocation5_spill] sm:$0xff] }
 0x246   : > { %v4706_v32 = vadd.f32 %v1410_v22, %v1046_v2  ;;  %v1058_v61 = vadd.f32 %v1057_v26, %v6214_v38  ;;  %v6218_v19 = vld [vmem:[#allocation9_spill] sm:$0xff] }
 0x247   : > { %v1496_v25 = vadd.f32 %v1495_v49, %v1494_v33 }
 0x248   : > { %v1515_v24 = vsel %vm428_vm1, %v4706_v32, 0.0 }
 0x249   : > { %v1498_v23 = vadd.f32 %v1497_v56, %v1496_v25 }
 0x24b   : > { %v1500_v55 = vadd.f32 %v1499_v59, %v1498_v23  ;;  %v6215_v59 = vld [vmem:[#allocation6_spill] sm:$0xff] }
 0x24c   : > { %v1061_v23 = vadd.f32 %v1060_v9, %v6215_v59 }
 0x24d   : > { %v1413_v62 = vpop.f32.mrf.mxu2  ;;  %v1502_v36 = vadd.f32 %v1501_v58, %v1500_v55  ;;  %v1063_v58 = vpop.f32.mrf.mxu3 }
 0x24e   : > { %v4711_v14 = vadd.f32 %v1413_v62, %v1049_v21  ;;  %v6217_v21 = vld [vmem:[#allocation8_spill] sm:$0xff] }
 0x24f   : > { %v1504_v5 = vadd.f32 %v1503_v4, %v1502_v36 }
 0x250   : > { %v1517_v54 = vsel %vm428_vm1, %v4711_v14, 0.0 }
 0x251   : > { %v1506_v53 = vadd.f32 %v1505_v46, %v1504_v5 }
 0x253   : > { %v1508_v35 = vadd.f32 %v1507_v3, %v1506_v53  ;;  %v1064_v3 = vadd.f32 %v1063_v58, %v6216_v15 }
 0x255   : > { %v1416_v48 = vpop.f32.mrf.mxu2  ;;  %v1510_v41 = vadd.f32 %v1509_v63, %v1508_v35  ;;  %v1066_v2 = vpop.f32.mrf.mxu3 }
 0x256   : > { %v4716_v27 = vadd.f32 %v1416_v48, %v1052_v16 }
 0x257   : > { %v1512_v43 = vadd.f32 %v1511_v37, %v1510_v41  ;;  %v1067_v37 = vadd.f32 %v1066_v2, %v6217_v21 }
 0x258   : > { %v1519_v49 = vsel %vm428_vm1, %v4716_v27, 0.0 }
 0x259   : > { %v1514_v18 = vadd.f32 %v1513_v60, %v1512_v43 }
 0x25b   : > { %v1516_v62 = vadd.f32 %v1515_v24, %v1514_v18 }
 0x25d   : > { %v1419_v28 = vpop.f32.mrf.mxu2  ;;  %v1518_v8 = vadd.f32 %v1517_v54, %v1516_v62  ;;  %v1069_v9 = vpop.f32.mrf.mxu3  ;;  %v6219_v62 = vld [vmem:[#allocation10_spill] sm:$0xff] }
 0x25e   : > { %v4721_v47 = vadd.f32 %v1419_v28, %v1055_v39  ;;  %v1070_v39 = vadd.f32 %v1069_v9, %v6218_v19 }
 0x25f   : > { %v1520_v25 = vadd.f32 %v1519_v49, %v1518_v8 }
 0x260   : > { %v1521_v56 = vsel %vm428_vm1, %v4721_v47, 0.0 }
 0x261   : > { %v1522_v55 = vadd.f32 %v1521_v56, %v1520_v25 }
 0x265   : > { %v1422_v22 = vpop.f32.mrf.mxu2  ;;  %v1072_v54 = vpop.f32.mrf.mxu3 }
 0x266   : > { %v1466_v33 = vadd.f32 %v1422_v22, %v1058_v61  ;;  %v3686_v22 = vmov 256.0   ;;  %v1073_v49 = vadd.f32 %v1072_v54, %v6219_v62 }
 0x267   : > { %3638 = vrcp.f32 %v3686_v22 }
 0x268   : > { %v1523_v48 = vsel %vm428_vm1, %v1466_v33, 0.0 }
 0x269   : > { %v1524_v36 = vadd.f32 %v1523_v48, %v1522_v55 }
 0x26d   : > { %v1425_v4 = vpop.f32.mrf.mxu2  ;;  %v3639_v8 = vpop.eup %3638 }
 0x26e   : > { %v1467_v26 = vadd.f32 %v1425_v4, %v1061_v23  ;;  %v1542_v23 = vmul.f32 256.0, %v3639_v8  ;;  %vm1546_vm8 = vweird.f32 %v3639_v8 }
 0x270   : > { %v1525_v46 = vsel %vm428_vm1, %v1467_v26, 0.0  ;;  %v1543_v55 = vsub.f32 1.0, %v1542_v23 }
 0x271   : > { %v1526_v5 = vadd.f32 %v1525_v46, %v1524_v36 }
 0x272   : > { %v1544_v46 = vmul.f32 %v3639_v8, %v1543_v55 }
 0x275   : > { %v1428_v53 = vpop.f32.mrf.mxu2 }
 0x276   : > { %v1468_v28 = vadd.f32 %v1428_v53, %v1064_v3  ;;  %v1545_v3 = vadd.f32 %v3639_v8, %v1544_v46 }
 0x278   : > { %v1527_v63 = vsel %vm428_vm1, %v1468_v28, 0.0  ;;  %v4738_v2 = vsel %vm1546_vm8, %v3639_v8, %v1545_v3 }
 0x279   : > { %v1528_v35 = vadd.f32 %v1527_v63, %v1526_v5 }
 0x27d   : > { %v1431_v41 = vpop.f32.mrf.mxu2 }
 0x27e   : > { %v1469_v16 = vadd.f32 %v1431_v41, %v1067_v37 }
 0x280   : > { %v1529_v60 = vsel %vm428_vm1, %v1469_v16, 0.0 }
 0x281   : > { %v1530_v43 = vadd.f32 %v1529_v60, %v1528_v35 }
 0x285   : > { %v1434_v24 = vpop.f32.mrf.mxu2 }
 0x286   : > { %v1470_v18 = vadd.f32 %v1434_v24, %v1070_v39 }
 0x288   : > { %v1531_v38 = vsel %vm428_vm1, %v1470_v18, 0.0 }
 0x289   : > { %v1532_v61 = vadd.f32 %v1531_v38, %v1530_v43 }
 0x28d   : > { %v1437_v56 = vpop.f32.mrf.mxu2 }
 0x28e   : > { %v1471_v25 = vadd.f32 %v1437_v56, %v1073_v49 }
 0x290   : > { %v1533_v59 = vsel %vm428_vm1, %v1471_v25, 0.0 }
 0x291   : > { %v1534_v48 = vadd.f32 %v1533_v59, %v1532_v61 }
 0x293   : > { %v1535_v58 = vrot.slane %v1534_v48, 4 }
 0x295   : > { %v1536_v4 = vadd.f32 %v1535_v58, %v1534_v48 }
 0x297   : > { %v1537_v36 = vrot.slane %v1536_v4, 2 }
 0x299   : > { %v1538_v5 = vadd.f32 %v1537_v36, %v1536_v4 }
 0x29b   : > { %v1539_v15 = vrot.slane %v1538_v5, 1 }
 0x29d   : > { %v1540_v53 = vadd.f32 %v1539_v15, %v1538_v5 }
 0x29f   : > { %v4741_v63 = vmul.f32 %v4738_v2, %v1540_v53 }
 0x2a1   : > { %v4744_v35 = vsub.f32 %v1466_v33, %v4741_v63  ;;  %v4747_v21 = vsub.f32 %v1467_v26, %v4741_v63  ;;  %v4750_v37 = vsub.f32 %v1468_v28, %v4741_v63  ;;  %v4753_v41 = vsub.f32 %v1469_v16, %v4741_v63 }
 0x2a2   : > { %v4756_v60 = vsub.f32 %v1470_v18, %v4741_v63  ;;  %v4759_v9 = vsub.f32 %v1471_v25, %v4741_v63  ;;  %v4763_v43 = vsub.f32 %v4607_v30, %v4741_v63  ;;  %v4767_v33 = vsub.f32 %v4602_v44, %v4741_v63 }
 0x2a3   : > { %v4771_v26 = vsub.f32 %v4610_v31, %v4741_v63  ;;  %v4775_v28 = vsub.f32 %v4617_v29, %v4741_v63  ;;  %v4783_v30 = vsub.f32 %v4624_v42, %v4741_v63  ;;  %v4789_v31 = vsub.f32 %v4631_v52, %v4741_v63 }
 0x2a4   : > { %v1581_v16 = vmul.f32 %v4763_v43, %v4763_v43  ;;  %v1582_v19 = vmul.f32 %v4767_v33, %v4767_v33  ;;  %v4797_v22 = vsub.f32 %v4636_v57, %v4741_v63  ;;  %v4804_v52 = vsub.f32 %v4641_v6, %v4741_v63 }
 0x2a5   : > { %v1583_v44 = vmul.f32 %v4771_v26, %v4771_v26  ;;  %v1584_v29 = vmul.f32 %v4775_v28, %v4775_v28  ;;  %v1585_v42 = vmul.f32 %v4783_v30, %v4783_v30  ;;  %v1586_v54 = vmul.f32 %v4789_v31, %v4789_v31 }
 0x2a6   : > { %v1613_v39 = vsel %vm428_vm1, %v1581_v16, 0.0  ;;  %v1614_v24 = vsel %vm428_vm1, %v1582_v19, 0.0  ;;  %v4811_v57 = vsub.f32 %v4646_v13, %v4741_v63  ;;  %v1587_v8 = vmul.f32 %v4797_v22, %v4797_v22 }
 0x2a7   : > { %v1615_v18 = vadd.f32 %v1614_v24, %v1613_v39  ;;  %v1616_v38 = vsel %vm428_vm1, %v1583_v44, 0.0  ;;  %v1618_v62 = vsel %vm428_vm1, %v1584_v29, 0.0  ;;  %v1620_v56 = vsel %vm428_vm1, %v1585_v42, 0.0 }
 0x2a8   : > { %v4818_v6 = vsub.f32 %v4651_v12, %v4741_v63  ;;  %v1588_v59 = vmul.f32 %v4804_v52, %v4804_v52  ;;  %v1622_v23 = vsel %vm428_vm1, %v1586_v54, 0.0  ;;  %v4825_v13 = vsub.f32 %v4656_v40, %v4741_v63 }
 0x2a9   : > { %v1617_v61 = vadd.f32 %v1616_v38, %v1615_v18  ;;  %v1589_v58 = vmul.f32 %v4811_v57, %v4811_v57  ;;  %v1624_v55 = vsel %vm428_vm1, %v1587_v8, 0.0  ;;  %v4832_v12 = vsub.f32 %v4661_v45, %v4741_v63 }
 0x2aa   : > { %v1590_v36 = vmul.f32 %v4818_v6, %v4818_v6  ;;  %v1626_v46 = vsel %vm428_vm1, %v1588_v59, 0.0  ;;  %v4839_v40 = vsub.f32 %v4666_v7, %v4741_v63  ;;  %v1591_v15 = vmul.f32 %v4825_v13, %v4825_v13 }
 0x2ab   : > { %v1619_v49 = vadd.f32 %v1618_v62, %v1617_v61  ;;  %v1628_v3 = vsel %vm428_vm1, %v1589_v58, 0.0  ;;  %v4846_v45 = vsub.f32 %v4671_v20, %v4741_v63  ;;  %v1592_v16 = vmul.f32 %v4832_v12, %v4832_v12 }
 0x2ac   : > { %v1630_v19 = vsel %vm428_vm1, %v1590_v36, 0.0  ;;  %v4853_v7 = vsub.f32 %v4676_v34, %v4741_v63  ;;  %v1593_v29 = vmul.f32 %v4839_v40, %v4839_v40  ;;  %v1632_v39 = vsel %vm428_vm1, %v1591_v15, 0.0 }
 0x2ad   : > { %v1621_v25 = vadd.f32 %v1620_v56, %v1619_v49  ;;  %v4860_v20 = vsub.f32 %v4681_v51, %v4741_v63  ;;  %v1594_v18 = vmul.f32 %v4846_v45, %v4846_v45  ;;  %v1634_v42 = vsel %vm428_vm1, %v1592_v16, 0.0 }
 0x2ae   : > { %v4867_v34 = vsub.f32 %v4582_v11, %v4741_v63  ;;  %v1595_v61 = vmul.f32 %v4853_v7, %v4853_v7  ;;  %v1636_v54 = vsel %vm428_vm1, %v1593_v29, 0.0  ;;  %v4874_v51 = vsub.f32 %v4585_v10, %v4741_v63 }
 0x2af   : > { %v1623_v48 = vadd.f32 %v1622_v23, %v1621_v25  ;;  %v1596_v49 = vmul.f32 %v4860_v20, %v4860_v20  ;;  %v1638_v8 = vsel %vm428_vm1, %v1594_v18, 0.0  ;;  %v4881_v11 = vsub.f32 %v4590_v50, %v4741_v63 }
 0x2b0   : > { %v1597_v25 = vmul.f32 %v4867_v34, %v4867_v34  ;;  %v1640_v59 = vsel %vm428_vm1, %v1595_v61, 0.0  ;;  %v4888_v10 = vsub.f32 %v4593_v1, %v4741_v63  ;;  %v4895_v50 = vsub.f32 %v4604_v17, %v4741_v63 }
 0x2b1   : > { %v1625_v4 = vadd.f32 %v1624_v55, %v1623_v48  ;;  %v1598_v48 = vmul.f32 %v4874_v51, %v4874_v51  ;;  %v1642_v58 = vsel %vm428_vm1, %v1596_v49, 0.0  ;;  %v4902_v1 = vsub.f32 %v4700_v0, %v4741_v63 }
 0x2b2   : > { %v1644_v36 = vsel %vm428_vm1, %v1597_v25, 0.0  ;;  %v4909_v17 = vsub.f32 %v4706_v32, %v4741_v63  ;;  %v4916_v0 = vsub.f32 %v4711_v14, %v4741_v63  ;;  %v4923_v32 = vsub.f32 %v4716_v27, %v4741_v63 }
 0x2b3   : > { %v1627_v5 = vadd.f32 %v1626_v46, %v1625_v4  ;;  %v1599_v4 = vmul.f32 %v4881_v11, %v4881_v11  ;;  %v1646_v15 = vsel %vm428_vm1, %v1598_v48, 0.0  ;;  %v4930_v14 = vsub.f32 %v4721_v47, %v4741_v63 }
 0x2b4   : > { %v1605_v27 = vmul.f32 %v4923_v32, %v4923_v32  ;;  %v1607_v47 = vmul.f32 %v4744_v35, %v4744_v35 }
 0x2b5   : > { %v1629_v53 = vadd.f32 %v1628_v3, %v1627_v5  ;;  %v1600_v5 = vmul.f32 %v4888_v10, %v4888_v10  ;;  %v1648_v16 = vsel %vm428_vm1, %v1599_v4, 0.0 }
 0x2b6   : > { %v1660_v63 = vsel %vm428_vm1, %v1605_v27, 0.0  ;;  %v1664_v4 = vsel %vm428_vm1, %v1607_v47, 0.0  ;;  %v2221_v27 = vld [vmem:[%s6198_s2 + $0x8] sm:$0xf] }
 0x2b7   : > { %v1631_v44 = vadd.f32 %v1630_v19, %v1629_v53  ;;  %v1601_v53 = vmul.f32 %v4895_v50, %v4895_v50  ;;  %v1650_v29 = vsel %vm428_vm1, %v1600_v5, 0.0  ;;  %3518 = vmatpush.msk.msrb.mxu3 %vm778_vm0, %v2221_v27 }
 0x2b9   : > { %v1633_v24 = vadd.f32 %v1632_v39, %v1631_v44  ;;  %v1602_v44 = vmul.f32 %v4902_v1, %v4902_v1  ;;  %v1652_v18 = vsel %vm428_vm1, %v1601_v53, 0.0 }
 0x2bb   : > { %v1635_v38 = vadd.f32 %v1634_v42, %v1633_v24  ;;  %v1603_v24 = vmul.f32 %v4909_v17, %v4909_v17  ;;  %v1654_v61 = vsel %vm428_vm1, %v1602_v44, 0.0 }
 0x2bd   : > { %v1637_v62 = vadd.f32 %v1636_v54, %v1635_v38  ;;  %v1604_v38 = vmul.f32 %v4916_v0, %v4916_v0 }
 0x2bf   : > { %v1639_v56 = vadd.f32 %v1638_v8, %v1637_v62  ;;  %v1656_v62 = vsel %vm428_vm1, %v1603_v24, 0.0  ;;  %v1606_v8 = vmul.f32 %v4930_v14, %v4930_v14 }
 0x2c1   : > { %v1641_v23 = vadd.f32 %v1640_v59, %v1639_v56  ;;  %v1658_v56 = vsel %vm428_vm1, %v1604_v38, 0.0  ;;  %v1662_v48 = vsel %vm428_vm1, %v1606_v8, 0.0  ;;  %v3585_v8 = vld [vmem:[%s6198_s2 + $0x28] sm:$0xf] }
 0x2c2   : > { %3586 = vmatpush.msk.msrb.mxu1 %vm778_vm0, %v3585_v8 }
 0x2c3   : > { %v1643_v55 = vadd.f32 %v1642_v58, %v1641_v23  ;;  %v1608_v23 = vmul.f32 %v4747_v21, %v4747_v21 }
 0x2c5   : > { %v1645_v46 = vadd.f32 %v1644_v36, %v1643_v55  ;;  %v1609_v55 = vmul.f32 %v4750_v37, %v4750_v37  ;;  %v1666_v5 = vsel %vm428_vm1, %v1608_v23, 0.0 }
 0x2c7   : > { %v1647_v3 = vadd.f32 %v1646_v15, %v1645_v46  ;;  %v1610_v46 = vmul.f32 %v4753_v41, %v4753_v41  ;;  %v1668_v53 = vsel %vm428_vm1, %v1609_v55, 0.0 }
 0x2c9   : > { %v1649_v19 = vadd.f32 %v1648_v16, %v1647_v3  ;;  %v1611_v3 = vmul.f32 %v4756_v60, %v4756_v60  ;;  %v1670_v44 = vsel %vm428_vm1, %v1610_v46, 0.0 }
 0x2cb   : > { %v1651_v39 = vadd.f32 %v1650_v29, %v1649_v19  ;;  %v1612_v19 = vmul.f32 %v4759_v9, %v4759_v9 }
 0x2cd   : > { %v1653_v42 = vadd.f32 %v1652_v18, %v1651_v39  ;;  %v1672_v39 = vsel %vm428_vm1, %v1611_v3, 0.0  ;;  %v1674_v18 = vsel %vm428_vm1, %v1612_v19, 0.0 }
 0x2cf   : > { %v1655_v54 = vadd.f32 %v1654_v61, %v1653_v42 }
 0x2d1   : > { %v1657_v49 = vadd.f32 %v1656_v62, %v1655_v54  ;;  %v3517_v62 = vld [vmem:[%s6198_s2 + $0x18] sm:$0xf] }
 0x2d2   : > { %3551 = vmatpush.msk.msrb.mxu0 %vm778_vm0, %v3517_v62 }
 0x2d3   : > { %v1659_v25 = vadd.f32 %v1658_v56, %v1657_v49 }
 0x2d5   : > { %v1661_v59 = vadd.f32 %v1660_v63, %v1659_v25 }
 0x2d7   : > { %v1663_v58 = vadd.f32 %v1662_v48, %v1661_v59 }
 0x2d9   : > { %v1665_v36 = vadd.f32 %v1664_v4, %v1663_v58 }
 0x2db   : > { %v1667_v15 = vadd.f32 %v1666_v5, %v1665_v36 }
 0x2dd   : > { %v1669_v16 = vadd.f32 %v1668_v53, %v1667_v15 }
 0x2df   : > { %v1671_v29 = vadd.f32 %v1670_v44, %v1669_v16 }
 0x2e1   : > { %v1673_v24 = vadd.f32 %v1672_v39, %v1671_v29 }
 0x2e3   : > { %v1675_v42 = vadd.f32 %v1674_v18, %v1673_v24 }
 0x2e5   : > { %v1676_v38 = vrot.slane %v1675_v42, 4 }
 0x2e7   : > { %v1677_v61 = vadd.f32 %v1676_v38, %v1675_v42  ;;  %v3584_v38 = vld [vmem:[%s6198_s2 + $0x20] sm:$0xff] }
 0x2e8   : > { %2876 = vmatpush.msrb.mxu1 %v3584_v38 }
 0x2e9   : > { %v1678_v54 = vrot.slane %v1677_v61, 2 }
 0x2eb   : > { %v1679_v49 = vadd.f32 %v1678_v54, %v1677_v61 }
 0x2ed   : > { %v1680_v56 = vrot.slane %v1679_v49, 1 }
 0x2ef   : > { %v1681_v25 = vadd.f32 %v1680_v56, %v1679_v49 }
 0x2f1   : > { %v1682_v47 = vmul.f32 %v1681_v25, %v4738_v2 }
 0x2f3   : > { %v1683_v63 = vadd.f32 1e-05, %v1682_v47 }
 0x2f5   : > { %3640 = vrsqrt.f32 %v1683_v63  ;;  %vm1690_vm10 = vweird.f32 %v1683_v63 }
 0x2fb   : > { %v3641_v59 = vpop.eup %3640 }
 0x2fc   : > { %v1685_v23 = vmul.f32 %v3641_v59, %v1683_v63  ;;  %vm1691_vm9 = vweird.f32 %v3641_v59 }
 0x2fd   : > { %vm1692_vm11 = vmor %vm1690_vm10, %vm1691_vm9 }
 0x2fe   : > { %v1686_v48 = vmul.f32 %v3641_v59, %v1685_v23 }
 0x300   : > { %v1687_v58 = vmul.f32 0.5, %v1686_v48 }
 0x302   : > { %v1688_v55 = vsub.f32 1.5, %v1687_v58 }
 0x304   : > { %v1689_v4 = vmul.f32 %v3641_v59, %v1688_v55 }
 0x306   : > { %v4974_v36 = vsel %vm1692_vm11, %v3641_v59, %v1689_v4 }
 0x307   : > { %v1696_v46 = vmul.f32 %v4974_v36, %v4771_v26  ;;  %v4980_v5 = vmul.f32 %v4974_v36, %v4759_v9  ;;  %v4984_v15 = vmul.f32 %v4974_v36, %v4763_v43  ;;  %v1723_v3 = vmul.f32 %v4974_v36, %v4753_v41 }
 0x308   : > { %v1697_v41 = vmul.f32 %v4974_v36, %v4775_v28  ;;  %v5004_v9 = vmul.f32 %v4974_v36, %v4767_v33  ;;  %v1698_v33 = vmul.f32 %v4974_v36, %v4783_v30  ;;  %v1700_v29 = vmul.f32 %v4974_v36, %v4797_v22  ;;  %v2220_v22 = vld [vmem:[%s6198_s2] sm:$0xff] }
 0x309   : > { %v4988_v53 = vmax.f32 %v1696_v46, 0.0  ;;  %v1757_v16 = vmax.f32 %v4980_v5, 0.0  ;;  %v1726_v19 = vmax.f32 %v4984_v15, 0.0  ;;  %v5009_v44 = vmax.f32 %v1723_v3, 0.0  ;;  %2336 = vmatpush.msrb.mxu3 %v2220_v22 }
 0x30a   : > { %v5006_v43 = vmax.f32 %v1697_v41, 0.0  ;;  %v1727_v26 = vmax.f32 %v5004_v9, 0.0  ;;  %v5020_v28 = vmax.f32 %v1698_v33, 0.0  ;;  %v1699_v39 = vmul.f32 %v4974_v36, %v4789_v31  ;;  %v3516_v31 = vld [vmem:[%s6198_s2 + $0x10] sm:$0xff] }
 0x30b   : > { %1852 = vrot.lane.b32.xlu0 %v1757_v16, %s3685_s19  ;;  %1886 = vrot.lane.b32.xlu1 %v4988_v53, %s3684_s18  ;;  %v5032_v24 = vmax.f32 %v1700_v29, 0.0  ;;  %v1701_v18 = vmul.f32 %v4974_v36, %v4804_v52  ;;  %v1703_v52 = vmul.f32 %v4974_v36, %v4818_v6  ;;  %v1702_v61 = vmul.f32 %v4974_v36, %v4811_v57 }
 0x30c   : > { %1790 = vrot.lane.b32.xlu2 %v1726_v19, %s3685_s19  ;;  %v5034_v30 = vmax.f32 %v1699_v39, 0.0  ;;  %2516 = vmatpush.msrb.mxu0 %v3516_v31  ;;  %v1704_v6 = vmul.f32 %v4974_v36, %v4825_v13  ;;  %v1706_v57 = vmul.f32 %v4974_v36, %v4839_v40  ;;  %v1705_v49 = vmul.f32 %v4974_v36, %v4832_v12 }
 0x30d   : > { %v5050_v42 = vmax.f32 %v1701_v18, 0.0  ;;  %v5065_v54 = vmax.f32 %v1703_v52, 0.0  ;;  %v5067_v27 = vmax.f32 %v1702_v61, 0.0  ;;  %v1707_v56 = vmul.f32 %v4974_v36, %v4846_v45 }
 0x30e   : > { %v5077_v62 = vmax.f32 %v1704_v6, 0.0  ;;  %v5089_v8 = vmax.f32 %v1706_v57, 0.0  ;;  %v5091_v13 = vmax.f32 %v1705_v49, 0.0  ;;  %v1709_v12 = vmul.f32 %v4974_v36, %v4860_v20 }
 0x30f   : > { %v5101_v40 = vmax.f32 %v1707_v56, 0.0  ;;  %v1708_v25 = vmul.f32 %v4974_v36, %v4853_v7  ;;  %v1710_v63 = vmul.f32 %v4974_v36, %v4867_v34  ;;  %v1712_v7 = vmul.f32 %v4974_v36, %v4881_v11 }
 0x310   : > { %v5113_v47 = vmax.f32 %v1709_v12, 0.0  ;;  %v1711_v59 = vmul.f32 %v4974_v36, %v4874_v51  ;;  %v1713_v48 = vmul.f32 %v4974_v36, %v4888_v10  ;;  %v1715_v51 = vmul.f32 %v4974_v36, %v4902_v1 }
 0x311   : > { %v5115_v45 = vmax.f32 %v1708_v25, 0.0  ;;  %v5125_v20 = vmax.f32 %v1710_v63, 0.0  ;;  %v5137_v23 = vmax.f32 %v1712_v7, 0.0  ;;  %v1714_v58 = vmul.f32 %v4974_v36, %v4895_v50 }
 0x312   : > { %v5139_v34 = vmax.f32 %v1711_v59, 0.0  ;;  %v5149_v11 = vmax.f32 %v1713_v48, 0.0  ;;  %v5161_v55 = vmax.f32 %v1715_v51, 0.0  ;;  %v1716_v1 = vmul.f32 %v4974_v36, %v4909_v17 }
 0x313   : > { %1888 = vrot.lane.b32.xlu1 %v5006_v43, %s3684_s18  ;;  %1792 = vrot.lane.b32.xlu0 %v1727_v26, %s3685_s19  ;;  %v5163_v10 = vmax.f32 %v1714_v58, 0.0  ;;  %v1718_v33 = vmul.f32 %v4974_v36, %v4923_v32  ;;  %v1717_v22 = vmul.f32 %v4974_v36, %v4916_v0  ;;  %v1719_v12 = vmul.f32 %v4974_v36, %v4930_v14 }
 0x314   : > { %1940 = vrot.lane.b32.xlu2 %v5009_v44, %s3684_s18  ;;  %v5173_v46 = vmax.f32 %v1716_v1, 0.0 }
 0x315   : > { %v5203_v52 = vmax.f32 %v1718_v33, 0.0  ;;  %v5205_v61 = vmax.f32 %v1717_v22, 0.0  ;;  %v5226_v58 = vmax.f32 %v1719_v12, 0.0 }
 0x31b   : > { %1796 = vrot.lane.b32.xlu1 %v5006_v43, %s3685_s19  ;;  %1890 = vrot.lane.b32.xlu0 %v5020_v28, %s3684_s18 }
 0x31c   : > { %1794 = vrot.lane.b32.xlu2 %v4988_v53, %s3685_s19 }
 0x323   : > { %1894 = vrot.lane.b32.xlu1 %v5032_v24, %s3684_s18  ;;  %1798 = vrot.lane.b32.xlu0 %v5020_v28, %s3685_s19 }
 0x324   : > { %1892 = vrot.lane.b32.xlu2 %v5034_v30, %s3684_s18 }
 0x32b   : > { %1802 = vrot.lane.b32.xlu1 %v5032_v24, %s3685_s19  ;;  %1896 = vrot.lane.b32.xlu0 %v5050_v42, %s3684_s18 }
 0x32c   : > { %1800 = vrot.lane.b32.xlu2 %v5034_v30, %s3685_s19 }
 0x333   : > { %1900 = vrot.lane.b32.xlu1 %v5065_v54, %s3684_s18  ;;  %1804 = vrot.lane.b32.xlu0 %v5050_v42, %s3685_s19 }
 0x334   : > { %1898 = vrot.lane.b32.xlu2 %v5067_v27, %s3684_s18 }
 0x33b   : > { %1808 = vrot.lane.b32.xlu1 %v5065_v54, %s3685_s19  ;;  %1902 = vrot.lane.b32.xlu0 %v5077_v62, %s3684_s18 }
 0x33c   : > { %1806 = vrot.lane.b32.xlu2 %v5067_v27, %s3685_s19 }
 0x343   : > { %1906 = vrot.lane.b32.xlu1 %v5089_v8, %s3684_s18  ;;  %1810 = vrot.lane.b32.xlu0 %v5077_v62, %s3685_s19 }
 0x344   : > { %1904 = vrot.lane.b32.xlu2 %v5091_v13, %s3684_s18 }
 0x34b   : > { %1814 = vrot.lane.b32.xlu1 %v5089_v8, %s3685_s19  ;;  %1908 = vrot.lane.b32.xlu0 %v5101_v40, %s3684_s18 }
 0x34c   : > { %1812 = vrot.lane.b32.xlu2 %v5091_v13, %s3685_s19 }
 0x353   : > { %1912 = vrot.lane.b32.xlu1 %v5113_v47, %s3684_s18  ;;  %1816 = vrot.lane.b32.xlu0 %v5101_v40, %s3685_s19 }
 0x354   : > { %1910 = vrot.lane.b32.xlu2 %v5115_v45, %s3684_s18 }
 0x35b   : > { %1820 = vrot.lane.b32.xlu1 %v5113_v47, %s3685_s19  ;;  %1914 = vrot.lane.b32.xlu0 %v5125_v20, %s3684_s18 }
 0x35c   : > { %1818 = vrot.lane.b32.xlu2 %v5115_v45, %s3685_s19 }
 0x363   : > { %1918 = vrot.lane.b32.xlu1 %v5137_v23, %s3684_s18  ;;  %1822 = vrot.lane.b32.xlu0 %v5125_v20, %s3685_s19 }
 0x364   : > { %1916 = vrot.lane.b32.xlu2 %v5139_v34, %s3684_s18 }
 0x366   : > { %v1791_v4 = vpop.permute.xlu2 %1790 }
 0x367   : > { %v1976_v50 = vsel %vm428_vm1, %v4988_v53, %v1791_v4 }
 0x36b   : > { %1826 = vrot.lane.b32.xlu1 %v5137_v23, %s3685_s19  ;;  %1920 = vrot.lane.b32.xlu0 %v5149_v11, %s3684_s18 }
 0x36c   : > { %1824 = vrot.lane.b32.xlu2 %v5139_v34, %s3685_s19 }
 0x36e   : > { %v5185_v17 = vpop.permute.xlu2 %1940 }
 0x373   : > { %1924 = vrot.lane.b32.xlu1 %v5161_v55, %s3684_s18  ;;  %1828 = vrot.lane.b32.xlu0 %v5149_v11, %s3685_s19 }
 0x374   : > { %1922 = vrot.lane.b32.xlu2 %v5163_v10, %s3684_s18 }
 0x376   : > { %v1795_v51 = vpop.permute.xlu2 %1794 }
 0x377   : > { %v1978_v1 = vsel %vm428_vm1, %v1726_v19, %v1795_v51 }
 0x37b   : > { %1832 = vrot.lane.b32.xlu1 %v5161_v55, %s3685_s19  ;;  %1926 = vrot.lane.b32.xlu0 %v5173_v46, %s3684_s18 }
 0x37c   : > { %1830 = vrot.lane.b32.xlu2 %v5163_v10, %s3685_s19 }
 0x37d   : > { %v1853_v3 = vpop.permute.xlu0 %1852  ;;  %v1887_v41 = vpop.permute.xlu1 %1886 }
 0x37e   : > { %v2007_v29 = vsel %vm428_vm1, %v5009_v44, %v1853_v3  ;;  %v5190_v39 = vsel %vm461_vm2, %v1976_v50, %v1887_v41  ;;  %v1721_v41 = vmul.f32 %v4974_v36, %v4747_v21 }
 0x37f   : > { %v5196_v31 = vsel %vm461_vm2, %v2007_v29, %v5185_v17  ;;  %v2077_v18 = vrot.slane %v5190_v39, 7  ;;  %3552 = vmatmul.msk.f32.vlgmr.msrb.gmra.mxu0 %vm681_vm3, %v5190_v39  ;;  %v2172_v38 = vperm.slane %v5190_v39, 1  ;;  %v2614_v7 = vrot.slane %v5190_v39, 1 }
 0x380   : > { %v2044_v32 = vrot.slane %v5196_v31, 7  ;;  %v1720_v29 = vmul.f32 %v4974_v36, %v4744_v35 }
 0x382   : > { %v2171_v0 = vsel %vm531_vm5, %v2044_v32, %v2077_v18 }
 0x383   : > { %1930 = vrot.lane.b32.xlu1 %v5203_v52, %s3684_s18  ;;  %1834 = vrot.lane.b32.xlu0 %v5173_v46, %s3685_s19  ;;  %v2188_v57 = vsel %vm174_vm4, %v2172_v38, %v2171_v0  ;;  %v5252_v0 = vmax.f32 %v1721_v41, 0.0  ;;  %v1724_v41 = vmul.f32 %v4974_v36, %v4756_v60 }
 0x384   : > { %1928 = vrot.lane.b32.xlu2 %v5205_v61, %s3684_s18  ;;  %3519 = vmatmul.msk.f32.vlgmr.msrb.gmra.mxu3 %vm681_vm3, %v2188_v57 }
 0x385   : > { %v1889_v49 = vpop.permute.xlu1 %1888  ;;  %v1793_v56 = vpop.permute.xlu0 %1792 }
 0x386   : > { %v1977_v25 = vsel %vm428_vm1, %v5006_v43, %v1793_v56 }
 0x387   : > { %v2009_v63 = vsel %vm461_vm2, %v1977_v25, %v1889_v49  ;;  %v5256_v49 = vmax.f32 %v1720_v29, 0.0  ;;  %v1893_v25 = vpop.permute.xlu2 %1892 }
 0x388   : > { %3553 = vmatmul.msk.f32.gmra.mxu0 %vm681_vm3, %v2009_v63  ;;  %v2615_v59 = vrot.slane %v2009_v63, 1  ;;  %v2078_v48 = vrot.slane %v2009_v63, 7  ;;  %v2711_v15 = vperm.slane %v2009_v63, 6  ;;  %v1722_v63 = vmul.f32 %v4974_v36, %v4750_v37 }
 0x38a   : > { %v2616_v4 = vsel %vm1075_vm6, %v2614_v7, %v2615_v59  ;;  %v2079_v14 = vsel %vm531_vm5, %v2077_v18, %v2078_v48 }
 0x38b   : > { %1838 = vrot.lane.b32.xlu1 %v5203_v52, %s3685_s19  ;;  %1932 = vrot.lane.b32.xlu0 %v5226_v58, %s3684_s18 }
 0x38c   : > { %1836 = vrot.lane.b32.xlu2 %v5205_v61, %s3685_s19  ;;  %3587 = vmatmul.msk.f32.vlgmr.msrb.gmra.mxu1 %vm681_vm3, %v2616_v4 }
 0x38d   : > { %3520 = vmatmul.msk.f32.gmra.mxu3 %vm681_vm3, %v2079_v14  ;;  %v1797_v50 = vpop.permute.xlu1 %1796  ;;  %v1891_v3 = vpop.permute.xlu0 %1890  ;;  %v5276_v14 = vmax.f32 %v1722_v63, 0.0 }
 0x38e   : > { %v2010_v33 = vsel %vm461_vm2, %v1978_v1, %v1891_v3  ;;  %v1979_v19 = vsel %vm428_vm1, %v1727_v26, %v1797_v50 }
 0x38f   : > { %v2080_v22 = vrot.slane %v2010_v33, 7  ;;  %v2173_v18 = vperm.slane %v2010_v33, 1  ;;  %v2617_v38 = vrot.slane %v2010_v33, 1  ;;  %v2011_v9 = vsel %vm461_vm2, %v1979_v19, %v1893_v25 }
 0x390   : > { %3554 = vmatmul.msk.f32.gmra.mxu0 %vm681_vm3, %v2010_v33  ;;  %v2619_v51 = vrot.slane %v2011_v9, 1  ;;  %v2082_v4 = vrot.slane %v2011_v9, 7  ;;  %v1801_v33 = vpop.permute.xlu2 %1800  ;;  %v2712_v19 = vperm.slane %v2011_v9, 6 }
 0x391   : > { %v2618_v57 = vsel %vm1075_vm6, %v2615_v59, %v2617_v38  ;;  %v2081_v21 = vsel %vm531_vm5, %v2078_v48, %v2080_v22 }
 0x392   : > { %v2728_v35 = vsel %vm177_vm7, %v2711_v15, %v2618_v57  ;;  %v2190_v12 = vsel %vm174_vm4, %v2173_v18, %v2081_v21  ;;  %v2620_v37 = vsel %vm1075_vm6, %v2617_v38, %v2619_v51  ;;  %v1756_v15 = vmax.f32 %v1724_v41, 0.0 }
 0x393   : > { %1936 = vrot.lane.b32.xlu1 %v5252_v0, %s3684_s18  ;;  %1840 = vrot.lane.b32.xlu0 %v5226_v58, %s3685_s19 }
 0x394   : > { %1934 = vrot.lane.b32.xlu2 %v5256_v49, %s3684_s18  ;;  %3588 = vmatmul.msk.f32.gmra.mxu1 %vm681_vm3, %v2728_v35 }
 0x395   : > { %3521 = vmatmul.msk.f32.gmra.mxu3 %vm681_vm3, %v2190_v12  ;;  %v1799_v26 = vpop.permute.xlu0 %1798  ;;  %v1895_v59 = vpop.permute.xlu1 %1894 }
 0x396   : > { %v1980_v48 = vsel %vm428_vm1, %v4988_v53, %v1799_v26  ;;  %v2083_v53 = vsel %vm531_vm5, %v2080_v22, %v2082_v4  ;;  %v1981_v22 = vsel %vm428_vm1, %v5006_v43, %v1801_v33 }
 0x397   : > { %v2012_v1 = vsel %vm461_vm2, %v1980_v48, %v1895_v59 }
 0x398   : > { %3555 = vmatmul.msk.f32.gmra.mxu0 %vm681_vm3, %v2011_v9  ;;  %v2621_v50 = vrot.slane %v2012_v1, 1  ;;  %v2084_v3 = vrot.slane %v2012_v1, 7  ;;  %v2174_v18 = vperm.slane %v2012_v1, 1  ;;  %v1899_v12 = vpop.permute.xlu2 %1898 }
 0x39a   : > { %v2622_v29 = vsel %vm1075_vm6, %v2619_v51, %v2621_v50  ;;  %v2085_v57 = vsel %vm531_vm5, %v2082_v4, %v2084_v3 }
 0x39b   : > { %1844 = vrot.lane.b32.xlu1 %v5252_v0, %s3685_s19  ;;  %1938 = vrot.lane.b32.xlu0 %v5276_v14, %s3684_s18  ;;  %v2730_v60 = vsel %vm177_vm7, %v2712_v19, %v2622_v29  ;;  %v2192_v35 = vsel %vm174_vm4, %v2174_v18, %v2085_v57 }
 0x39c   : > { %1842 = vrot.lane.b32.xlu2 %v5256_v49, %s3685_s19  ;;  %3589 = vmatmul.msk.f32.gmra.mxu1 %vm681_vm3, %v2620_v37 }
 0x39d   : > { %3522 = vmatmul.msk.f32.gmra.mxu3 %vm681_vm3, %v2083_v53  ;;  %v1897_v38 = vpop.permute.xlu0 %1896  ;;  %v1803_v21 = vpop.permute.xlu1 %1802 }
 0x39e   : > { %v2013_v36 = vsel %vm461_vm2, %v1981_v22, %v1897_v38  ;;  %v1982_v43 = vsel %vm428_vm1, %v5020_v28, %v1803_v21 }
 0x39f   : > { %v2086_v25 = vrot.slane %v2013_v36, 7  ;;  %v2014_v9 = vsel %vm461_vm2, %v1982_v43, %v1899_v12 }
 0x3a0   : > { %3556 = vmatmul.msk.f32.gmra.mxu0 %vm681_vm3, %v2012_v1  ;;  %v2625_v59 = vrot.slane %v2014_v9, 1  ;;  %v2088_v48 = vrot.slane %v2014_v9, 7  ;;  %v2175_v4 = vperm.slane %v2014_v9, 1  ;;  %v2713_v1 = vperm.slane %v2013_v36, 6  ;;  %v1807_v41 = vpop.permute.xlu2 %1806 }
 0x3a1   : > { %v2087_v28 = vsel %vm531_vm5, %v2084_v3, %v2086_v25 }
 0x3a2   : > { %v2089_v5 = vsel %vm531_vm5, %v2086_v25, %v2088_v48 }
 0x3a3   : > { %1848 = vrot.lane.b32.xlu1 %v5009_v44, %s3685_s19  ;;  %1942 = vrot.lane.b32.xlu0 %v1756_v15, %s3684_s18  ;;  %v2623_v44 = vrot.slane %v2013_v36, 1 }
 0x3a4   : > { %1846 = vrot.lane.b32.xlu2 %v5276_v14, %s3685_s19  ;;  %3590 = vmatmul.msk.f32.gmra.mxu1 %vm681_vm3, %v2730_v60 }
 0x3a5   : > { %3523 = vmatmul.msk.f32.gmra.mxu3 %vm681_vm3, %v2192_v35  ;;  %v2624_v26 = vsel %vm1075_vm6, %v2621_v50, %v2623_v44  ;;  %v1805_v63 = vpop.permute.xlu0 %1804  ;;  %v2626_v51 = vsel %vm1075_vm6, %v2623_v44, %v2625_v59  ;;  %v1901_v37 = vpop.permute.xlu1 %1900  ;;  %v2194_v50 = vsel %vm174_vm4, %v2175_v4, %v2089_v5 }
 0x3a6   : > { %v1983_v53 = vsel %vm428_vm1, %v5034_v30, %v1805_v63  ;;  %v1984_v30 = vsel %vm428_vm1, %v5032_v24, %v1807_v41 }
 0x3a7   : > { %v2015_v3 = vsel %vm461_vm2, %v1983_v53, %v1901_v37 }
 0x3a8   : > { %3557 = vmatmul.msk.f32.gmra.mxu0 %vm681_vm3, %v2013_v36  ;;  %v2627_v29 = vrot.slane %v2015_v3, 1  ;;  %v2090_v18 = vrot.slane %v2015_v3, 7  ;;  %v2714_v35 = vperm.slane %v2015_v3, 6  ;;  %v1905_v44 = vpop.permute.xlu2 %1904 }
 0x3aa   : > { %v2091_v22 = vsel %vm531_vm5, %v2088_v48, %v2090_v18 }
 0x3ab   : > { %1850 = vrot.lane.b32.xlu0 %v1756_v15, %s3685_s19  ;;  %v2628_v15 = vsel %vm1075_vm6, %v2625_v59, %v2627_v29 }
 0x3ac   : > { %1944 = vrot.lane.b32.xlu2 %v1757_v16, %s3684_s18  ;;  %3591 = vmatmul.msk.f32.gmra.mxu1 %vm681_vm3, %v2624_v26  ;;  %v2732_v16 = vsel %vm177_vm7, %v2713_v1, %v2626_v51 }
 0x3ad   : > { %3524 = vmatmul.msk.f32.gmra.mxu3 %vm681_vm3, %v2087_v28  ;;  %v1903_v33 = vpop.permute.xlu0 %1902  ;;  %v1809_v19 = vpop.permute.xlu1 %1808 }
 0x3ae   : > { %v2016_v38 = vsel %vm461_vm2, %v1984_v30, %v1903_v33  ;;  %v1985_v36 = vsel %vm428_vm1, %v5050_v42, %v1809_v19 }
 0x3af   : > { %v2629_v57 = vrot.slane %v2016_v38, 1  ;;  %v2092_v21 = vrot.slane %v2016_v38, 7  ;;  %v2176_v60 = vperm.slane %v2016_v38, 1  ;;  %v2017_v26 = vsel %vm461_vm2, %v1985_v36, %v1905_v44 }
 0x3b0   : > { %3558 = vmatmul.msk.f32.gmra.mxu0 %vm681_vm3, %v2014_v9  ;;  %v2631_v28 = vrot.slane %v2017_v26, 1  ;;  %v2094_v59 = vrot.slane %v2017_v26, 7  ;;  %v1813_v53 = vpop.permute.xlu2 %1812 }
 0x3b1   : > { %v2630_v24 = vsel %vm1075_vm6, %v2627_v29, %v2629_v57  ;;  %v2093_v43 = vsel %vm531_vm5, %v2090_v18, %v2092_v21  ;;  %v1987_v41 = vsel %vm428_vm1, %v5065_v54, %v1813_v53 }
 0x3b2   : > { %v2734_v25 = vsel %vm177_vm7, %v2714_v35, %v2630_v24  ;;  %v2196_v9 = vsel %vm174_vm4, %v2176_v60, %v2093_v43  ;;  %v2632_v51 = vsel %vm1075_vm6, %v2629_v57, %v2631_v28  ;;  %v2095_v4 = vsel %vm531_vm5, %v2092_v21, %v2094_v59 }
 0x3b4   : > { %3592 = vmatmul.msk.f32.gmra.mxu1 %vm681_vm3, %v2732_v16 }
 0x3b5   : > { %3525 = vmatmul.msk.f32.gmra.mxu3 %vm681_vm3, %v2194_v50  ;;  %v1811_v12 = vpop.permute.xlu0 %1810  ;;  %v1907_v63 = vpop.permute.xlu1 %1906  ;;  %v2715_v50 = vperm.slane %v2017_v26, 6 }
 0x3b6   : > { %v1986_v42 = vsel %vm428_vm1, %v5067_v27, %v1811_v12 }
 0x3b7   : > { %v2018_v48 = vsel %vm461_vm2, %v1986_v42, %v1907_v63 }
 0x3b8   : > { %3559 = vmatmul.msk.f32.gmra.mxu0 %vm681_vm3, %v2015_v3  ;;  %v2633_v1 = vrot.slane %v2018_v48, 1  ;;  %v2096_v37 = vrot.slane %v2018_v48, 7  ;;  %v2177_v5 = vperm.slane %v2018_v48, 1  ;;  %v1911_v19 = vpop.permute.xlu2 %1910 }
 0x3ba   : > { %v2634_v27 = vsel %vm1075_vm6, %v2631_v28, %v2633_v1  ;;  %v2097_v3 = vsel %vm531_vm5, %v2094_v59, %v2096_v37 }
 0x3bb   : > { %v2736_v29 = vsel %vm177_vm7, %v2715_v50, %v2634_v27  ;;  %v2198_v18 = vsel %vm174_vm4, %v2177_v5, %v2097_v3 }
 0x3bc   : > { %3593 = vmatmul.msk.f32.gmra.mxu1 %vm681_vm3, %v2628_v15 }
 0x3bd   : > { %3526 = vmatmul.msk.f32.gmra.mxu3 %vm681_vm3, %v2091_v22  ;;  %v1909_v16 = vpop.permute.xlu0 %1908  ;;  %v1815_v33 = vpop.permute.xlu1 %1814 }
 0x3be   : > { %v2019_v30 = vsel %vm461_vm2, %v1987_v41, %v1909_v16 }
 0x3bf   : > { %v2635_v15 = vrot.slane %v2019_v30, 1  ;;  %v2098_v57 = vrot.slane %v2019_v30, 7  ;;  %v2716_v43 = vperm.slane %v2019_v30, 6 }
 0x3c0   : > { %3560 = vmatmul.msk.f32.gmra.mxu0 %vm681_vm3, %v2016_v38  ;;  %v1988_v38 = vsel %vm428_vm1, %v5077_v62, %v1815_v33  ;;  %v1819_v42 = vpop.permute.xlu2 %1818 }
 0x3c1   : > { %v2020_v54 = vsel %vm461_vm2, %v1988_v38, %v1911_v19  ;;  %v2636_v22 = vsel %vm1075_vm6, %v2633_v1, %v2635_v15  ;;  %v2099_v60 = vsel %vm531_vm5, %v2096_v37, %v2098_v57 }
 0x3c2   : > { %v2637_v24 = vrot.slane %v2020_v54, 1  ;;  %v2100_v36 = vrot.slane %v2020_v54, 7  ;;  %v2178_v35 = vperm.slane %v2020_v54, 1 }
 0x3c4   : > { %3594 = vmatmul.msk.f32.gmra.mxu1 %vm681_vm3, %v2734_v25  ;;  %v2638_v62 = vsel %vm1075_vm6, %v2635_v15, %v2637_v24  ;;  %v2101_v25 = vsel %vm531_vm5, %v2098_v57, %v2100_v36 }
 0x3c5   : > { %3527 = vmatmul.msk.f32.gmra.mxu3 %vm681_vm3, %v2196_v9  ;;  %v1817_v21 = vpop.permute.xlu0 %1816  ;;  %v1913_v44 = vpop.permute.xlu1 %1912  ;;  %v2738_v9 = vsel %vm177_vm7, %v2716_v43, %v2638_v62 }
 0x3c6   : > { %v1989_v12 = vsel %vm428_vm1, %v5091_v13, %v1817_v21  ;;  %v1990_v13 = vsel %vm428_vm1, %v5089_v8, %v1819_v42 }
 0x3c7   : > { %v2021_v63 = vsel %vm461_vm2, %v1989_v12, %v1913_v44 }
 0x3c8   : > { %3561 = vmatmul.msk.f32.gmra.mxu0 %vm681_vm3, %v2017_v26  ;;  %v2200_v26 = vsel %vm174_vm4, %v2178_v35, %v2101_v25  ;;  %v2639_v59 = vrot.slane %v2021_v63, 1  ;;  %v2717_v50 = vperm.slane %v2021_v63, 6  ;;  %v1917_v41 = vpop.permute.xlu2 %1916 }
 0x3cc   : > { %3595 = vmatmul.msk.f32.gmra.mxu1 %vm681_vm3, %v2632_v51 }
 0x3cd   : > { %3528 = vmatmul.msk.f32.gmra.mxu3 %vm681_vm3, %v2095_v4  ;;  %v1915_v28 = vpop.permute.xlu0 %1914  ;;  %v2640_v4 = vsel %vm1075_vm6, %v2637_v24, %v2639_v59  ;;  %v1821_v1 = vpop.permute.xlu1 %1820 }
 0x3ce   : > { %v2022_v51 = vsel %vm461_vm2, %v1990_v13, %v1915_v28  ;;  %v1991_v16 = vsel %vm428_vm1, %v5101_v40, %v1821_v1 }
 0x3cf   : > { %v2641_v37 = vrot.slane %v2022_v51, 1  ;;  %v2104_v5 = vrot.slane %v2022_v51, 7  ;;  %v2179_v27 = vperm.slane %v2022_v51, 1 }
 0x3d0   : > { %3562 = vmatmul.msk.f32.gmra.mxu0 %vm681_vm3, %v2018_v48  ;;  %v2102_v48 = vrot.slane %v2021_v63, 7 }
 0x3d1   : > { %v2642_v8 = vsel %vm1075_vm6, %v2639_v59, %v2641_v37 }
 0x3d2   : > { %v2103_v53 = vsel %vm531_vm5, %v2100_v36, %v2102_v48  ;;  %v2105_v3 = vsel %vm531_vm5, %v2102_v48, %v2104_v5  ;;  %v1825_v36 = vpop.permute.xlu2 %1824 }
 0x3d3   : > { %v1993_v12 = vsel %vm428_vm1, %v5113_v47, %v1825_v36 }
 0x3d4   : > { %3596 = vmatmul.msk.f32.gmra.mxu1 %vm681_vm3, %v2736_v29  ;;  %v2740_v29 = vsel %vm177_vm7, %v2717_v50, %v2642_v8 }
 0x3d5   : > { %3529 = vmatmul.msk.f32.gmra.mxu3 %vm681_vm3, %v2198_v18  ;;  %v1823_v33 = vpop.permute.xlu0 %1822  ;;  %v2023_v18 = vsel %vm461_vm2, %v1991_v16, %v1917_v41  ;;  %v1919_v38 = vpop.permute.xlu1 %1918 }
 0x3d6   : > { %v1992_v40 = vsel %vm428_vm1, %v5115_v45, %v1823_v33  ;;  %v2643_v15 = vrot.slane %v2023_v18, 1  ;;  %v2106_v19 = vrot.slane %v2023_v18, 7  ;;  %v2718_v43 = vperm.slane %v2023_v18, 6 }
 0x3d7   : > { %v2024_v57 = vsel %vm461_vm2, %v1992_v40, %v1919_v38 }
 0x3d8   : > { %3563 = vmatmul.msk.f32.gmra.mxu0 %vm681_vm3, %v2019_v30  ;;  %v2202_v30 = vsel %vm174_vm4, %v2179_v27, %v2105_v3  ;;  %v2108_v24 = vrot.slane %v2024_v57, 7  ;;  %v2180_v35 = vperm.slane %v2024_v57, 1 }
 0x3da   : > { %v2109_v44 = vsel %vm531_vm5, %v2106_v19, %v2108_v24  ;;  %v1923_v47 = vpop.permute.xlu2 %1922 }
 0x3dc   : > { %3597 = vmatmul.msk.f32.gmra.mxu1 %vm681_vm3, %v2636_v22  ;;  %v2107_v22 = vsel %vm531_vm5, %v2104_v5, %v2106_v19 }
 0x3dd   : > { %3530 = vmatmul.msk.f32.gmra.mxu3 %vm681_vm3, %v2099_v60  ;;  %v2645_v60 = vrot.slane %v2024_v57, 1  ;;  %v1921_v62 = vpop.permute.xlu0 %1920  ;;  %v1827_v25 = vpop.permute.xlu1 %1826 }
 0x3de   : > { %v1994_v42 = vsel %vm428_vm1, %v5125_v20, %v1827_v25 }
 0x3df   : > { %v2646_v45 = vsel %vm1075_vm6, %v2643_v15, %v2645_v60  ;;  %v2026_v1 = vsel %vm461_vm2, %v1994_v42, %v1923_v47 }
 0x3e0   : > { %3564 = vmatmul.msk.f32.gmra.mxu0 %vm681_vm3, %v2020_v54  ;;  %v2644_v54 = vsel %vm1075_vm6, %v2641_v37, %v2643_v15  ;;  %v2649_v5 = vrot.slane %v2026_v1, 1  ;;  %v2112_v27 = vrot.slane %v2026_v1, 7  ;;  %v2181_v50 = vperm.slane %v2026_v1, 1 }
 0x3e4   : > { %3598 = vmatmul.msk.f32.gmra.mxu1 %vm681_vm3, %v2738_v9  ;;  %v2742_v9 = vsel %vm177_vm7, %v2718_v43, %v2646_v45 }
 0x3e5   : > { %3531 = vmatmul.msk.f32.gmra.mxu3 %vm681_vm3, %v2200_v26  ;;  %v2025_v26 = vsel %vm461_vm2, %v1993_v12, %v1921_v62  ;;  %v1925_v33 = vpop.permute.xlu1 %1924 }
 0x3e6   : > { %v2647_v59 = vrot.slane %v2025_v26, 1  ;;  %v2110_v48 = vrot.slane %v2025_v26, 7  ;;  %v2719_v41 = vperm.slane %v2025_v26, 6 }
 0x3e8   : > { %3565 = vmatmul.msk.f32.gmra.mxu0 %vm681_vm3, %v2021_v63  ;;  %v2204_v63 = vsel %vm174_vm4, %v2180_v35, %v2109_v44  ;;  %v2648_v37 = vsel %vm1075_vm6, %v2645_v60, %v2647_v59  ;;  %v2111_v20 = vsel %vm531_vm5, %v2108_v24, %v2110_v48  ;;  %v2650_v3 = vsel %vm1075_vm6, %v2647_v59, %v2649_v5 }
 0x3e9   : > { %v2113_v38 = vsel %vm531_vm5, %v2110_v48, %v2112_v27  ;;  %v2744_v40 = vsel %vm177_vm7, %v2719_v41, %v2650_v3 }
 0x3ea   : > { %v2206_v15 = vsel %vm174_vm4, %v2181_v50, %v2113_v38 }
 0x3ec   : > { %3599 = vmatmul.msk.f32.gmra.mxu1 %vm681_vm3, %v2640_v4 }
 0x3ed   : > { %3532 = vmatmul.msk.f32.gmra.mxu3 %vm681_vm3, %v2103_v53  ;;  %v1829_v53 = vpop.permute.xlu0 %1828  ;;  %v1833_v43 = vpop.permute.xlu1 %1832 }
 0x3ee   : > { %v1997_v42 = vsel %vm428_vm1, %v5149_v11, %v1833_v43 }
 0x3f0   : > { %3566 = vmatmul.msk.f32.gmra.mxu0 %vm681_vm3, %v2022_v51 }
 0x3f4   : > { %3600 = vmatmul.msk.f32.gmra.mxu1 %vm681_vm3, %v2740_v29  ;;  %v1995_v29 = vsel %vm428_vm1, %v5139_v34, %v1829_v53 }
 0x3f5   : > { %3533 = vmatmul.msk.f32.gmra.mxu3 %vm681_vm3, %v2202_v30  ;;  %v2027_v19 = vsel %vm461_vm2, %v1995_v29, %v1925_v33  ;;  %v1927_v34 = vpop.permute.xlu0 %1926  ;;  %v1931_v11 = vpop.permute.xlu1 %1930 }
 0x3f6   : > { %v2114_v24 = vrot.slane %v2027_v19, 7 }
 0x3f8   : > { %3567 = vmatmul.msk.f32.gmra.mxu0 %vm681_vm3, %v2023_v18  ;;  %v2115_v12 = vsel %vm531_vm5, %v2112_v27, %v2114_v24 }
 0x3fc   : > { %3601 = vmatmul.msk.f32.gmra.mxu1 %vm681_vm3, %v2644_v54  ;;  %v2518_v21 = vpop.f32.mrf.mxu0 }
 0x3fd   : > { %3534 = vmatmul.msk.f32.gmra.mxu3 %vm681_vm3, %v2107_v22  ;;  %v2651_v22 = vrot.slane %v2027_v19, 1  ;;  %v1839_v43 = vpop.permute.xlu1 %1838 }
 0x3ff   : > { %v2652_v62 = vsel %vm1075_vm6, %v2649_v5, %v2651_v22 }
 0x400   : > { %3568 = vmatmul.msk.f32.gmra.mxu0 %vm681_vm3, %v2024_v57  ;;  %v1831_v57 = vpop.permute.xlu2 %1830 }
 0x404   : > { %3602 = vmatmul.msk.f32.gmra.mxu1 %vm681_vm3, %v2742_v9 }
 0x405   : > { %3535 = vmatmul.msk.f32.gmra.mxu3 %vm681_vm3, %v2204_v63  ;;  %v2521_v28 = vpop.f32.mrf.mxu0 }
 0x407   : > { %v2338_v13 = vpop.f32.mrf.mxu3 }
 0x408   : > { %v5434_v51 = vadd.f32 %v2518_v21, %v2338_v13  ;;  %3569 = vmatmul.msk.f32.gmra.mxu0 %vm681_vm3, %v2025_v26  ;;  %v1996_v21 = vsel %vm428_vm1, %v5137_v23, %v1831_v57  ;;  %v1929_v48 = vpop.permute.xlu2 %1928 }
 0x409   : > { %v5437_v4 = vpop.f32.mrf.mxu1  ;;  %v2028_v36 = vsel %vm461_vm2, %v1996_v21, %v1927_v34 }
 0x40a   : > { %v2653_v44 = vrot.slane %v2028_v36, 1  ;;  %v2116_v25 = vrot.slane %v2028_v36, 7  ;;  %v2182_v9 = vperm.slane %v2028_v36, 1 }
 0x40c   : > { %3603 = vmatmul.msk.f32.gmra.mxu1 %vm681_vm3, %v2648_v37  ;;  %v2654_v63 = vsel %vm1075_vm6, %v2651_v22, %v2653_v44  ;;  %v2117_v47 = vsel %vm531_vm5, %v2114_v24, %v2116_v25 }
 0x40d   : > { %3536 = vmatmul.msk.f32.gmra.mxu3 %vm681_vm3, %v2111_v20  ;;  %v2524_v8 = vpop.f32.mrf.mxu0  ;;  %v2208_v53 = vsel %vm174_vm4, %v2182_v9, %v2117_v47  ;;  %v2029_v20 = vsel %vm461_vm2, %v1997_v42, %v1929_v48 }
 0x40e   : > { %v2118_v50 = vrot.slane %v2029_v20, 7  ;;  %v2721_v21 = vperm.slane %v2029_v20, 6 }
 0x410   : > { %v2341_v16 = vpop.f32.mrf.mxu3  ;;  %3570 = vmatmul.msk.f32.gmra.mxu0 %vm681_vm3, %v2026_v1  ;;  %v1835_v1 = vpop.permute.xlu0 %1834  ;;  %v2119_v38 = vsel %vm531_vm5, %v2116_v25, %v2118_v50 }
 0x411   : > { %v5448_v30 = vadd.f32 %v2521_v28, %v2341_v16  ;;  %v5450_v18 = vpop.f32.mrf.mxu1  ;;  %v2720_v28 = vperm.slane %v2027_v19, 6  ;;  %v1998_v5 = vsel %vm428_vm1, %v5163_v10, %v1835_v1 }
 0x412   : > { %v2030_v33 = vsel %vm461_vm2, %v1998_v5, %v1931_v11 }
 0x413   : > { %v2746_v37 = vsel %vm177_vm7, %v2720_v28, %v2654_v63  ;;  %v2120_v10 = vrot.slane %v2030_v33, 7  ;;  %v2183_v34 = vperm.slane %v2030_v33, 1 }
 0x414   : > { %3604 = vmatmul.msk.f32.gmra.mxu1 %vm681_vm3, %v2744_v40  ;;  %v2657_v40 = vrot.slane %v2030_v33, 1 }
 0x415   : > { %3537 = vmatmul.msk.f32.gmra.mxu3 %vm681_vm3, %v2206_v15  ;;  %v2527_v54 = vpop.f32.mrf.mxu0  ;;  %v1837_v15 = vpop.permute.xlu2 %1836 }
 0x418   : > { %v2344_v60 = vpop.f32.mrf.mxu3  ;;  %3571 = vmatmul.msk.f32.gmra.mxu0 %vm681_vm3, %v2027_v19  ;;  %v1933_v22 = vpop.permute.xlu0 %1932 }
 0x419   : > { %v5464_v35 = vadd.f32 %v2524_v8, %v2344_v60  ;;  %v5466_v45 = vpop.f32.mrf.mxu1  ;;  %v2655_v8 = vrot.slane %v2029_v20, 1 }
 0x41b   : > { %v2656_v29 = vsel %vm1075_vm6, %v2653_v44, %v2655_v8 }
 0x41c   : > { %3605 = vmatmul.msk.f32.gmra.mxu1 %vm681_vm3, %v2652_v62  ;;  %v1999_v62 = vsel %vm428_vm1, %v5161_v55, %v1837_v15 }
 0x41d   : > { %3538 = vmatmul.msk.f32.gmra.mxu3 %vm681_vm3, %v2115_v12  ;;  %v2530_v23 = vpop.f32.mrf.mxu0  ;;  %v2031_v12 = vsel %vm461_vm2, %v1999_v62, %v1933_v22  ;;  %v1935_v63 = vpop.permute.xlu2 %1934 }
 0x41e   : > { %v2122_v55 = vrot.slane %v2031_v12, 7 }
 0x420   : > { %v2347_v26 = vpop.f32.mrf.mxu3  ;;  %3572 = vmatmul.msk.f32.gmra.mxu0 %vm681_vm3, %v2028_v36  ;;  %v2121_v36 = vsel %vm531_vm5, %v2118_v50, %v2120_v10  ;;  %v1937_v50 = vpop.permute.xlu1 %1936 }
 0x421   : > { %v5476_v59 = vadd.f32 %v2527_v54, %v2347_v26  ;;  %v5478_v13 = vpop.f32.mrf.mxu1  ;;  %v2658_v54 = vsel %vm1075_vm6, %v2655_v8, %v2657_v40  ;;  %v2210_v25 = vsel %vm174_vm4, %v2183_v34, %v2121_v36  ;;  %v2659_v26 = vrot.slane %v2031_v12, 1 }
 0x422   : > { %v2748_v44 = vsel %vm177_vm7, %v2721_v21, %v2658_v54 }
 0x423   : > { %v2660_v1 = vsel %vm1075_vm6, %v2657_v40, %v2659_v26 }
 0x424   : > { %3606 = vmatmul.msk.f32.gmra.mxu1 %vm681_vm3, %v2746_v37  ;;  %v1841_v37 = vpop.permute.xlu0 %1840 }
 0x425   : > { %3539 = vmatmul.msk.f32.gmra.mxu3 %vm681_vm3, %v2208_v53  ;;  %v2533_v27 = vpop.f32.mrf.mxu0 }
 0x428   : > { %v2350_v16 = vpop.f32.mrf.mxu3  ;;  %3573 = vmatmul.msk.f32.gmra.mxu0 %vm681_vm3, %v2029_v20 }
 0x429   : > { %v5491_v3 = vadd.f32 %v2530_v23, %v2350_v16  ;;  %v5493_v41 = vpop.f32.mrf.mxu1  ;;  %v2000_v23 = vsel %vm428_vm1, %v5173_v46, %v1839_v43  ;;  %v2123_v46 = vsel %vm531_vm5, %v2120_v10, %v2122_v55  ;;  %v2722_v16 = vperm.slane %v2031_v12, 6 }
 0x42a   : > { %v2032_v48 = vsel %vm461_vm2, %v2000_v23, %v1935_v63 }
 0x42b   : > { %v2661_v53 = vrot.slane %v2032_v48, 1  ;;  %v2124_v20 = vrot.slane %v2032_v48, 7 }
 0x42c   : > { %3607 = vmatmul.msk.f32.gmra.mxu1 %vm681_vm3, %v2656_v29 }
 0x42d   : > { %3540 = vmatmul.msk.f32.gmra.mxu3 %vm681_vm3, %v2119_v38  ;;  %v2536_v19 = vpop.f32.mrf.mxu0  ;;  %v2662_v8 = vsel %vm1075_vm6, %v2659_v26, %v2661_v53  ;;  %v2125_v40 = vsel %vm531_vm5, %v2122_v55, %v2124_v20 }
 0x42e   : > { %v2750_v10 = vsel %vm177_vm7, %v2722_v16, %v2662_v8 }
 0x430   : > { %v2353_v57 = vpop.f32.mrf.mxu3  ;;  %3574 = vmatmul.msk.f32.gmra.mxu0 %vm681_vm3, %v2030_v33  ;;  %v2001_v33 = vsel %vm428_vm1, %v5205_v61, %v1841_v37  ;;  %v5544_v61 = vpop.permute.xlu0 %1938 }
 0x431   : > { %v5502_v60 = vadd.f32 %v2533_v27, %v2353_v57  ;;  %v5504_v24 = vpop.f32.mrf.mxu1  ;;  %v2184_v27 = vperm.slane %v2032_v48, 1  ;;  %v1843_v57 = vpop.permute.xlu2 %1842 }
 0x432   : > { %v2002_v22 = vsel %vm428_vm1, %v5203_v52, %v1843_v57  ;;  %v1845_v52 = vpop.permute.xlu1 %1844 }
 0x433   : > { %v2212_v15 = vsel %vm174_vm4, %v2184_v27, %v2125_v40  ;;  %v2034_v62 = vsel %vm461_vm2, %v2002_v22, %v5544_v61 }
 0x434   : > { %3608 = vmatmul.msk.f32.gmra.mxu1 %vm681_vm3, %v2748_v44  ;;  %v2665_v23 = vrot.slane %v2034_v62, 1  ;;  %v2128_v26 = vrot.slane %v2034_v62, 7  ;;  %v2185_v55 = vperm.slane %v2034_v62, 1 }
 0x435   : > { %3541 = vmatmul.msk.f32.gmra.mxu3 %vm681_vm3, %v2210_v25  ;;  %v2539_v9 = vpop.f32.mrf.mxu0 }
 0x438   : > { %v2356_v42 = vpop.f32.mrf.mxu3  ;;  %3575 = vmatmul.msk.f32.gmra.mxu0 %vm681_vm3, %v2031_v12 }
 0x439   : > { %v5519_v28 = vadd.f32 %v2536_v19, %v2356_v42  ;;  %v5521_v47 = vpop.f32.mrf.mxu1  ;;  %v2033_v19 = vsel %vm461_vm2, %v2001_v33, %v1937_v50  ;;  %v1847_v16 = vpop.permute.xlu2 %1846 }
 0x43a   : > { %v2663_v54 = vrot.slane %v2033_v19, 1  ;;  %v2126_v36 = vrot.slane %v2033_v19, 7  ;;  %v2723_v37 = vperm.slane %v2033_v19, 6  ;;  %v2004_v40 = vsel %vm428_vm1, %v5256_v49, %v1847_v16  ;;  %v1849_v49 = vpop.permute.xlu1 %1848 }
 0x43c   : > { %3609 = vmatmul.msk.f32.gmra.mxu1 %vm681_vm3, %v2660_v1  ;;  %v2664_v25 = vsel %vm1075_vm6, %v2661_v53, %v2663_v54  ;;  %v2003_v1 = vsel %vm428_vm1, %v5226_v58, %v1845_v52  ;;  %v1943_v58 = vpop.permute.xlu0 %1942 }
 0x43d   : > { %3542 = vmatmul.msk.f32.gmra.mxu3 %vm681_vm3, %v2123_v46  ;;  %v2542_v11 = vpop.f32.mrf.mxu0  ;;  %v2035_v8 = vsel %vm461_vm2, %v2003_v1, %v5185_v17 }
 0x43e   : > { %v2667_v33 = vrot.slane %v2035_v8, 1 }
 0x440   : > { %v2359_v5 = vpop.f32.mrf.mxu3  ;;  %3576 = vmatmul.msk.f32.gmra.mxu0 %vm681_vm3, %v2032_v48  ;;  %v2666_v48 = vsel %vm1075_vm6, %v2663_v54, %v2665_v23  ;;  %v2668_v17 = vsel %vm1075_vm6, %v2665_v23, %v2667_v33  ;;  %v2724_v23 = vperm.slane %v2035_v8, 6 }
 0x441   : > { %v5532_v29 = vadd.f32 %v2539_v9, %v2359_v5  ;;  %v5534_v38 = vpop.f32.mrf.mxu1  ;;  %v2127_v9 = vsel %vm531_vm5, %v2124_v20, %v2126_v36  ;;  %v2752_v5 = vsel %vm177_vm7, %v2723_v37, %v2666_v48 }
 0x444   : > { %3610 = vmatmul.msk.f32.gmra.mxu1 %vm681_vm3, %v2750_v10 }
 0x445   : > { %3543 = vmatmul.msk.f32.gmra.mxu3 %vm681_vm3, %v2212_v15  ;;  %v2545_v34 = vpop.f32.mrf.mxu0  ;;  %v2130_v15 = vrot.slane %v2035_v8, 7 }
 0x448   : > { %v2362_v21 = vpop.f32.mrf.mxu3  ;;  %3577 = vmatmul.msk.f32.gmra.mxu0 %vm681_vm3, %v2033_v19  ;;  %v2036_v19 = vsel %vm461_vm2, %v2004_v40, %v1943_v58 }
 0x449   : > { %v2543_v43 = vadd.f32 %v2542_v11, %v2362_v21  ;;  %v2902_v44 = vpop.f32.mrf.mxu1  ;;  %v2129_v11 = vsel %vm531_vm5, %v2126_v36, %v2128_v26  ;;  %v2669_v22 = vrot.slane %v2036_v19, 1  ;;  %v2131_v21 = vsel %vm531_vm5, %v2128_v26, %v2130_v15  ;;  %v1945_v26 = vpop.permute.xlu2 %1944 }
 0x44a   : > { %v2214_v27 = vsel %vm174_vm4, %v2185_v55, %v2129_v11  ;;  %v2132_v36 = vrot.slane %v2036_v19, 7 }
 0x44b   : > { %v5551_v12 = vadd.f32 %v2902_v44, %v2543_v43  ;;  %v2186_v43 = vperm.slane %v2036_v19, 1 }
 0x44c   : > { %3611 = vmatmul.msk.f32.gmra.mxu1 %vm681_vm3, %v2664_v25  ;;  %v2670_v25 = vsel %vm1075_vm6, %v2667_v33, %v2669_v22  ;;  %v2133_v55 = vsel %vm531_vm5, %v2130_v15, %v2132_v36 }
 0x44d   : > { %3544 = vmatmul.msk.f32.gmra.mxu3 %vm681_vm3, %v2127_v9  ;;  %v2548_v63 = vpop.f32.mrf.mxu0  ;;  %v2005_v9 = vsel %vm428_vm1, %v5252_v0, %v1849_v49  ;;  %v2754_v1 = vsel %vm177_vm7, %v2724_v23, %v2670_v25  ;;  %v2216_v37 = vsel %vm174_vm4, %v2186_v43, %v2133_v55  ;;  %v2675_v23 = vrot.slane %v5196_v31, 1 }
 0x450   : > { %v2365_v42 = vpop.f32.mrf.mxu3  ;;  %3578 = vmatmul.msk.f32.gmra.mxu0 %vm681_vm3, %v2034_v62 }
 0x451   : > { %v2546_v46 = vadd.f32 %v2545_v34, %v2365_v42  ;;  %v2905_v53 = vpop.f32.mrf.mxu1  ;;  %v1851_v42 = vpop.permute.xlu0 %1850 }
 0x452   : > { %v2006_v0 = vsel %vm428_vm1, %v5276_v14, %v1851_v42 }
 0x453   : > { %v5562_v20 = vadd.f32 %v2905_v53, %v2546_v46  ;;  %v2037_v46 = vsel %vm461_vm2, %v2005_v9, %v1945_v26  ;;  %v2038_v58 = vsel %vm461_vm2, %v2006_v0, %v5544_v61  ;;  %v2726_v26 = vperm.slane %v5196_v31, 6 }
 0x454   : > { %3612 = vmatmul.msk.f32.gmra.mxu1 %vm681_vm3, %v2752_v5  ;;  %v2671_v11 = vrot.slane %v2037_v46, 1  ;;  %v2673_v14 = vrot.slane %v2038_v58, 1  ;;  %v2725_v61 = vperm.slane %v2037_v46, 6 }
 0x455   : > { %3545 = vmatmul.msk.f32.gmra.mxu3 %vm681_vm3, %v2214_v27  ;;  %v2551_v50 = vpop.f32.mrf.mxu0  ;;  %v2134_v27 = vrot.slane %v2037_v46, 7 }
 0x456   : > { %v2672_v33 = vsel %vm1075_vm6, %v2669_v22, %v2671_v11 }
 0x457   : > { %v2135_v40 = vsel %vm531_vm5, %v2132_v36, %v2134_v27 }
 0x458   : > { %v2368_v10 = vpop.f32.mrf.mxu3  ;;  %3579 = vmatmul.msk.f32.gmra.mxu0 %vm681_vm3, %v2035_v8 }
 0x459   : > { %v2549_v57 = vadd.f32 %v2548_v63, %v2368_v10  ;;  %v2908_v34 = vpop.f32.mrf.mxu1  ;;  %v2136_v10 = vrot.slane %v2038_v58, 7 }
 0x45b   : > { %v5576_v54 = vadd.f32 %v2908_v34, %v2549_v57  ;;  %v2187_v57 = vperm.slane %v2038_v58, 1  ;;  %v2674_v34 = vsel %vm1075_vm6, %v2671_v11, %v2673_v14  ;;  %v2137_v22 = vsel %vm531_vm5, %v2134_v27, %v2136_v10 }
 0x45c   : > { %3613 = vmatmul.msk.f32.gmra.mxu1 %vm681_vm3, %v2668_v17  ;;  %v2756_v36 = vsel %vm177_vm7, %v2725_v61, %v2674_v34  ;;  %v2138_v6 = vsel %vm531_vm5, %v2136_v10, %v2044_v32 }
 0x45d   : > { %3546 = vmatmul.msk.f32.gmra.mxu3 %vm681_vm3, %v2131_v21  ;;  %v2554_v62 = vpop.f32.mrf.mxu0 }
 0x460   : > { %v2371_v44 = vpop.f32.mrf.mxu3  ;;  %3580 = vmatmul.msk.f32.gmra.mxu0 %vm681_vm3, %v2036_v19 }
 0x461   : > { %v2552_v52 = vadd.f32 %v2551_v50, %v2371_v44  ;;  %v2911_v63 = vpop.f32.mrf.mxu1 }
 0x463   : > { %v5587_v48 = vadd.f32 %v2911_v63, %v2552_v52  ;;  %v2676_v63 = vsel %vm1075_vm6, %v2673_v14, %v2675_v23 }
 0x464   : > { %3614 = vmatmul.msk.f32.gmra.mxu1 %vm681_vm3, %v2754_v1  ;;  %v2710_v1 = vsel %vm1075_vm6, %v2675_v23, %v2614_v7 }
 0x465   : > { %3547 = vmatmul.msk.f32.gmra.mxu3 %vm681_vm3, %v2216_v37  ;;  %v2557_v53 = vpop.f32.mrf.mxu0 }
 0x468   : > { %v2374_v5 = vpop.f32.mrf.mxu3  ;;  %3581 = vmatmul.msk.f32.gmra.mxu0 %vm681_vm3, %v2037_v46 }
 0x469   : > { %v2555_v8 = vadd.f32 %v2554_v62, %v2374_v5  ;;  %v2914_v16 = vpop.f32.mrf.mxu1  ;;  %v2218_v62 = vsel %vm174_vm4, %v2187_v57, %v2137_v22 }
 0x46b   : > { %v5601_v50 = vadd.f32 %v2914_v16, %v2555_v8 }
 0x46c   : > { %3615 = vmatmul.msk.f32.gmra.mxu1 %vm681_vm3, %v2672_v33 }
 0x46d   : > { %3548 = vmatmul.msk.f32.gmra.mxu3 %vm681_vm3, %v2135_v40  ;;  %v2560_v15 = vpop.f32.mrf.mxu0 }
 0x470   : > { %v2377_v19 = vpop.f32.mrf.mxu3  ;;  %3582 = vmatmul.msk.f32.gmra.mxu0 %vm681_vm3, %v2038_v58 }
 0x471   : > { %v2558_v17 = vadd.f32 %v2557_v53, %v2377_v19  ;;  %v2917_v21 = vpop.f32.mrf.mxu1  ;;  %v2758_v53 = vsel %vm177_vm7, %v2726_v26, %v2710_v1  ;;  %v5670_v1 = vadd.f32 %v5437_v4, %v5434_v51  ;;  %v5690_v4 = vadd.f32 %v5493_v41, %v5491_v3 }
 0x473   : > { %v5610_v49 = vadd.f32 %v2917_v21, %v2558_v17 }
 0x474   : > { %3616 = vmatmul.msk.f32.gmra.mxu1 %vm681_vm3, %v2756_v36 }
 0x475   : > { %3549 = vmatmul.msk.f32.gmra.mxu3 %vm681_vm3, %v2218_v62  ;;  %v2563_v43 = vpop.f32.mrf.mxu0 }
 0x478   : > { %v2380_v44 = vpop.f32.mrf.mxu3  ;;  %3583 = vmatmul.msk.f32.gmra.mxu0 %vm681_vm3, %v5196_v31 }
 0x479   : > { %v2561_v25 = vadd.f32 %v2560_v15, %v2380_v44  ;;  %v2920_v9 = vpop.f32.mrf.mxu1 }
 0x47b   : > { %v5621_v52 = vadd.f32 %v2920_v9, %v2561_v25 }
 0x47c   : > { %3617 = vmatmul.msk.f32.gmra.mxu1 %vm681_vm3, %v2676_v63 }
 0x47d   : > { %3550 = vmatmul.msk.f32.gmra.mxu3 %vm681_vm3, %v2138_v6  ;;  %v2566_v55 = vpop.f32.mrf.mxu0 }
 0x480   : > { %v2383_v42 = vpop.f32.mrf.mxu3 }
 0x481   : > { %v2564_v37 = vadd.f32 %v2563_v43, %v2383_v42  ;;  %v2923_v46 = vpop.f32.mrf.mxu1  ;;  %v5666_v42 = vadd.f32 %v5450_v18, %v5448_v30  ;;  %v3006_v30 = vsel %vm428_vm1, %v5670_v1, 0.0 }
 0x483   : > { %v5633_v0 = vadd.f32 %v2923_v46, %v2564_v37  ;;  %v5674_v37 = vadd.f32 %v5466_v45, %v5464_v35 }
 0x484   : > { %3618 = vmatmul.msk.f32.gmra.mxu1 %vm681_vm3, %v2758_v53  ;;  %v3007_v53 = vsel %vm428_vm1, %v5666_v42, 0.0 }
 0x485   : > { %v2569_v32 = vpop.f32.mrf.mxu0  ;;  %v3009_v51 = vsel %vm428_vm1, %v5674_v37, 0.0  ;;  %v3008_v35 = vadd.f32 %v3007_v53, %v3006_v30  ;;  %v3031_v30 = vsel %vm428_vm1, %v5610_v49, 0.0 }
 0x488   : > { %v2386_v11 = vpop.f32.mrf.mxu3 }
 0x489   : > { %v2567_v5 = vadd.f32 %v2566_v55, %v2386_v11  ;;  %v2926_v27 = vpop.f32.mrf.mxu1 }
 0x48b   : > { %v5638_v8 = vadd.f32 %v2926_v27, %v2567_v5  ;;  %v3013_v5 = vsel %vm428_vm1, %v5690_v4, 0.0  ;;  %v5704_v27 = vadd.f32 %v5521_v47, %v5519_v28 }
 0x48d   : > { %v2572_v31 = vpop.f32.mrf.mxu0 }
 0x490   : > { %v2389_v16 = vpop.f32.mrf.mxu3 }
 0x491   : > { %v2570_v39 = vadd.f32 %v2569_v32, %v2389_v16  ;;  %v2929_v58 = vpop.f32.mrf.mxu1  ;;  %v5682_v32 = vadd.f32 %v5478_v13, %v5476_v59  ;;  %v5698_v59 = vadd.f32 %v5504_v24, %v5502_v60  ;;  %v3010_v13 = vadd.f32 %v3009_v51, %v3008_v35 }
 0x492   : > { %v5710_v16 = vadd.f32 %v5534_v38, %v5532_v29  ;;  %v3017_v24 = vsel %vm428_vm1, %v5704_v27, 0.0 }
 0x493   : > { %v5640_v7 = vadd.f32 %v2929_v58, %v2570_v39  ;;  %v3011_v45 = vsel %vm428_vm1, %v5682_v32, 0.0 }
 0x494   : > { %v3012_v3 = vadd.f32 %v3011_v45, %v3010_v13  ;;  %v3019_v28 = vsel %vm428_vm1, %v5710_v16, 0.0  ;;  %v3033_v45 = vsel %vm428_vm1, %v5621_v52, 0.0 }
 0x495   : > { %v2575_v33 = vpop.f32.mrf.mxu0 }
 0x496   : > { %v3014_v39 = vadd.f32 %v3013_v5, %v3012_v3 }
 0x498   : > { %v2392_v40 = vpop.f32.mrf.mxu3 }
 0x499   : > { %v2573_v14 = vadd.f32 %v2572_v31, %v2392_v40  ;;  %v2932_v10 = vpop.f32.mrf.mxu1  ;;  %v3015_v31 = vsel %vm428_vm1, %v5698_v59, 0.0  ;;  %v3021_v40 = vsel %vm428_vm1, %v5551_v12, 0.0 }
 0x49b   : > { %v5642_v56 = vadd.f32 %v2932_v10, %v2573_v14  ;;  %v3023_v10 = vsel %vm428_vm1, %v5562_v20, 0.0 }
 0x49d   : > { %v2578_v15 = vpop.f32.mrf.mxu0 }
 0x4a0   : > { %v2395_v19 = vpop.f32.mrf.mxu3 }
 0x4a1   : > { %v2576_v57 = vadd.f32 %v2575_v33, %v2395_v19  ;;  %v2935_v34 = vpop.f32.mrf.mxu1  ;;  %v3016_v33 = vadd.f32 %v3015_v31, %v3014_v39  ;;  %v3025_v19 = vsel %vm428_vm1, %v5576_v54, 0.0  ;;  %v3035_v31 = vsel %vm428_vm1, %v5633_v0, 0.0 }
 0x4a3   : > { %v5644_v61 = vadd.f32 %v2935_v34, %v2576_v57  ;;  %v3018_v47 = vadd.f32 %v3017_v24, %v3016_v33  ;;  %v3037_v24 = vsel %vm428_vm1, %v5638_v8, 0.0 }
 0x4a5   : > { %v5646_v17 = vpop.f32.mrf.mxu0  ;;  %v3020_v14 = vadd.f32 %v3019_v28, %v3018_v47  ;;  %v3039_v28 = vsel %vm428_vm1, %v5640_v7, 0.0 }
 0x4a7   : > { %v3022_v29 = vadd.f32 %v3021_v40, %v3020_v14 }
 0x4a8   : > { %v2398_v21 = vpop.f32.mrf.mxu3 }
 0x4a9   : > { %v2579_v22 = vadd.f32 %v2578_v15, %v2398_v21  ;;  %v2938_v36 = vpop.f32.mrf.mxu1  ;;  %v3024_v34 = vadd.f32 %v3023_v10, %v3022_v29  ;;  %v3027_v21 = vsel %vm428_vm1, %v5587_v48, 0.0  ;;  %v3041_v10 = vsel %vm428_vm1, %v5642_v56, 0.0 }
 0x4ab   : > { %v5648_v62 = vadd.f32 %v2938_v36, %v2579_v22  ;;  %v3026_v22 = vadd.f32 %v3025_v19, %v3024_v34  ;;  %v3029_v36 = vsel %vm428_vm1, %v5601_v50, 0.0 }
 0x4ad   : > { %v5650_v43 = vpop.f32.mrf.mxu0  ;;  %v3028_v53 = vadd.f32 %v3027_v21, %v3026_v22  ;;  %v3043_v21 = vsel %vm428_vm1, %v5644_v61, 0.0 }
 0x4af   : > { %v3030_v51 = vadd.f32 %v3029_v36, %v3028_v53 }
 0x4b0   : > { %v2401_v44 = vpop.f32.mrf.mxu3 }
 0x4b1   : > { %v5652_v25 = vpop.f32.mrf.mxu1  ;;  %v3032_v5 = vadd.f32 %v3031_v30, %v3030_v51  ;;  %v2582_v47 = vadd.f32 %v5646_v17, %v2401_v44  ;;  %v3045_v44 = vsel %vm428_vm1, %v5648_v62, 0.0 }
 0x4b3   : > { %v3034_v39 = vadd.f32 %v3033_v45, %v3032_v5  ;;  %v5743_v22 = vadd.f32 %v5652_v25, %v2582_v47 }
 0x4b5   : > { %v5654_v9 = vpop.f32.mrf.mxu0  ;;  %v3036_v33 = vadd.f32 %v3035_v31, %v3034_v39  ;;  %v3047_v51 = vsel %vm428_vm1, %v5743_v22, 0.0 }
 0x4b7   : > { %v3038_v40 = vadd.f32 %v3037_v24, %v3036_v33 }
 0x4b8   : > { %v2404_v23 = vpop.f32.mrf.mxu3 }
 0x4b9   : > { %v5656_v63 = vpop.f32.mrf.mxu1  ;;  %v2585_v29 = vadd.f32 %v5650_v43, %v2404_v23  ;;  %v3040_v34 = vadd.f32 %v3039_v28, %v3038_v40 }
 0x4bb   : > { %v3042_v53 = vadd.f32 %v3041_v10, %v3040_v34  ;;  %v5750_v30 = vadd.f32 %v5656_v63, %v2585_v29 }
 0x4bd   : > { %v5658_v6 = vpop.f32.mrf.mxu0  ;;  %v3044_v23 = vadd.f32 %v3043_v21, %v3042_v53  ;;  %v3049_v5 = vsel %vm428_vm1, %v5750_v30, 0.0 }
 0x4c0   : > { %v5660_v55 = vpop.f32.mrf.mxu3 }
 0x4c1   : > { %v5662_v26 = vpop.f32.mrf.mxu1  ;;  %v2588_v36 = vadd.f32 %v5654_v9, %v5660_v55  ;;  %v3046_v9 = vadd.f32 %v3045_v44, %v3044_v23 }
 0x4c3   : > { %v5756_v25 = vadd.f32 %v5662_v26, %v2588_v36 }
 0x4c5   : > { %v5676_v46 = vpop.f32.mrf.mxu0 }
 0x4c8   : > { %v2410_v11 = vpop.f32.mrf.mxu3 }
 0x4c9   : > { %v5692_v18 = vpop.f32.mrf.mxu1  ;;  %v2591_v43 = vadd.f32 %v5658_v6, %v2410_v11  ;;  %v3048_v6 = vadd.f32 %v3047_v51, %v3046_v9  ;;  %v3051_v11 = vsel %vm428_vm1, %v5756_v25, 0.0 }
 0x4cb   : > { %v5762_v31 = vadd.f32 %v5692_v18, %v2591_v43  ;;  %v3050_v33 = vadd.f32 %v3049_v5, %v3048_v6 }
 0x4cd   : > { %v2596_v41 = vpop.f32.mrf.mxu0  ;;  %v3052_v47 = vadd.f32 %v3051_v11, %v3050_v33 }
 0x4d0   : > { %v2413_v60 = vpop.f32.mrf.mxu3 }
 0x4d1   : > { %v2953_v58 = vpop.f32.mrf.mxu1  ;;  %v2594_v45 = vadd.f32 %v5676_v46, %v2413_v60  ;;  %v3053_v46 = vsel %vm428_vm1, %v5762_v31, 0.0 }
 0x4d2   : > { %v3054_v10 = vadd.f32 %v3053_v46, %v3052_v47 }
 0x4d3   : > { %v5766_v24 = vadd.f32 %v2953_v58, %v2594_v45 }
 0x4d5   : > { %v2599_v38 = vpop.f32.mrf.mxu0  ;;  %v3055_v18 = vsel %vm428_vm1, %v5766_v24, 0.0 }
 0x4d8   : > { %v2416_v15 = vpop.f32.mrf.mxu3 }
 0x4d9   : > { %v2956_v57 = vpop.f32.mrf.mxu1  ;;  %v2597_v63 = vadd.f32 %v2596_v41, %v2416_v15 }
 0x4db   : > { %v5770_v60 = vadd.f32 %v2956_v57, %v2597_v63  ;;  %v3056_v57 = vadd.f32 %v3055_v18, %v3054_v10 }
 0x4dd   : > { %v2602_v3 = vpop.f32.mrf.mxu0  ;;  %v3057_v58 = vsel %vm428_vm1, %v5770_v60, 0.0 }
 0x4de   : > { %v3058_v21 = vadd.f32 %v3057_v58, %v3056_v57 }
 0x4e0   : > { %v2419_v35 = vpop.f32.mrf.mxu3 }
 0x4e1   : > { %v2959_v13 = vpop.f32.mrf.mxu1  ;;  %v2600_v26 = vadd.f32 %v2599_v38, %v2419_v35 }
 0x4e3   : > { %v5774_v41 = vadd.f32 %v2959_v13, %v2600_v26 }
 0x4e5   : > { %v2605_v17 = vpop.f32.mrf.mxu0 }
 0x4e8   : > { %v2422_v14 = vpop.f32.mrf.mxu3 }
 0x4e9   : > { %v2962_v19 = vpop.f32.mrf.mxu1  ;;  %v2603_v28 = vadd.f32 %v2602_v3, %v2422_v14  ;;  %v3059_v3 = vsel %vm428_vm1, %v5774_v41, 0.0 }
 0x4ea   : > { %v3060_v53 = vadd.f32 %v3059_v3, %v3058_v21 }
 0x4eb   : > { %v5778_v38 = vadd.f32 %v2962_v19, %v2603_v28 }
 0x4ed   : > { %v2608_v40 = vpop.f32.mrf.mxu0  ;;  %v3061_v13 = vsel %vm428_vm1, %v5778_v38, 0.0 }
 0x4ee   : > { %v3062_v19 = vadd.f32 %v3061_v13, %v3060_v53 }
 0x4f0   : > { %v2425_v55 = vpop.f32.mrf.mxu3 }
 0x4f1   : > { %v2965_v39 = vpop.f32.mrf.mxu1  ;;  %v2606_v15 = vadd.f32 %v2605_v17, %v2425_v55 }
 0x4f3   : > { %v5782_v14 = vadd.f32 %v2965_v39, %v2606_v15 }
 0x4f5   : > { %v3063_v17 = vsel %vm428_vm1, %v5782_v14, 0.0  ;;  %v2611_v44 = vpop.f32.mrf.mxu0 }
 0x4f6   : > { %v3064_v9 = vadd.f32 %v3063_v17, %v3062_v19 }
 0x4f8   : > { %v2428_v29 = vpop.f32.mrf.mxu3 }
 0x4f9   : > { %v2609_v35 = vadd.f32 %v2608_v40, %v2428_v29  ;;  %v2968_v34 = vpop.f32.mrf.mxu1 }
 0x4fb   : > { %v5786_v36 = vadd.f32 %v2968_v34, %v2609_v35 }
 0x4fd   : > { %v3065_v23 = vsel %vm428_vm1, %v5786_v36, 0.0 }
 0x4fe   : > { %v3066_v5 = vadd.f32 %v3065_v23, %v3064_v9 }
 0x500   : > { %v2431_v43 = vpop.f32.mrf.mxu3 }
 0x501   : > { %v2612_v51 = vadd.f32 %v2611_v44, %v2431_v43  ;;  %v2971_v45 = vpop.f32.mrf.mxu1 }
 0x503   : > { %v5792_v55 = vadd.f32 %v2971_v45, %v2612_v51 }
 0x505   : > { %v3067_v63 = vsel %vm428_vm1, %v5792_v55, 0.0 }
 0x506   : > { %v3068_v39 = vadd.f32 %v3067_v63, %v3066_v5 }
 0x508   : > { %v3069_v6 = vrot.slane %v3068_v39, 4 }
 0x50a   : > { %v3070_v11 = vadd.f32 %v3069_v6, %v3068_v39 }
 0x50c   : > { %v3071_v26 = vrot.slane %v3070_v11, 2 }
 0x50e   : > { %v3072_v33 = vadd.f32 %v3071_v26, %v3070_v11 }
 0x510   : > { %v3073_v46 = vrot.slane %v3072_v33, 1 }
 0x512   : > { %v3074_v28 = vadd.f32 %v3073_v46, %v3072_v33 }
 0x514   : > { %v5797_v47 = vmul.f32 %v3074_v28, %v4738_v2 }
 0x516   : > { %v5801_v40 = vsub.f32 %v5670_v1, %v5797_v47  ;;  %v5805_v18 = vsub.f32 %v5666_v42, %v5797_v47  ;;  %v5809_v15 = vsub.f32 %v5674_v37, %v5797_v47  ;;  %v5813_v10 = vsub.f32 %v5682_v32, %v5797_v47 }
 0x517   : > { %v5821_v1 = vsub.f32 %v5690_v4, %v5797_v47  ;;  %v5827_v37 = vsub.f32 %v5698_v59, %v5797_v47  ;;  %v5835_v3 = vsub.f32 %v5704_v27, %v5797_v47  ;;  %v5842_v59 = vsub.f32 %v5710_v16, %v5797_v47 }
 0x518   : > { %v3108_v29 = vmul.f32 %v5801_v40, %v5801_v40  ;;  %v3109_v58 = vmul.f32 %v5805_v18, %v5805_v18  ;;  %v3110_v42 = vmul.f32 %v5809_v15, %v5809_v15  ;;  %v3111_v32 = vmul.f32 %v5813_v10, %v5813_v10 }
 0x519   : > { %v3112_v4 = vmul.f32 %v5821_v1, %v5821_v1  ;;  %v3113_v53 = vmul.f32 %v5827_v37, %v5827_v37  ;;  %v5849_v27 = vsub.f32 %v5551_v12, %v5797_v47  ;;  %v3114_v44 = vmul.f32 %v5835_v3, %v5835_v3 }
 0x51a   : > { %v3140_v35 = vsel %vm428_vm1, %v3108_v29, 0.0  ;;  %v3141_v34 = vsel %vm428_vm1, %v3109_v58, 0.0  ;;  %v3143_v21 = vsel %vm428_vm1, %v3110_v42, 0.0  ;;  %v3145_v17 = vsel %vm428_vm1, %v3111_v32, 0.0 }
 0x51b   : > { %v3142_v57 = vadd.f32 %v3141_v34, %v3140_v35  ;;  %v3147_v43 = vsel %vm428_vm1, %v3112_v4, 0.0  ;;  %v5856_v16 = vsub.f32 %v5562_v20, %v5797_v47  ;;  %v3115_v51 = vmul.f32 %v5842_v59, %v5842_v59 }
 0x51c   : > { %v3149_v45 = vsel %vm428_vm1, %v3113_v53, 0.0  ;;  %v5863_v12 = vsub.f32 %v5576_v54, %v5797_v47  ;;  %v3116_v5 = vmul.f32 %v5849_v27, %v5849_v27  ;;  %v3151_v63 = vsel %vm428_vm1, %v3114_v44, 0.0 }
 0x51d   : > { %v3144_v13 = vadd.f32 %v3143_v21, %v3142_v57  ;;  %v5870_v20 = vsub.f32 %v5587_v48, %v5797_v47  ;;  %v3117_v6 = vmul.f32 %v5856_v16, %v5856_v16  ;;  %v3153_v11 = vsel %vm428_vm1, %v3115_v51, 0.0 }
 0x51e   : > { %v5877_v54 = vsub.f32 %v5601_v50, %v5797_v47  ;;  %v3118_v33 = vmul.f32 %v5863_v12, %v5863_v12  ;;  %v3155_v46 = vsel %vm428_vm1, %v3116_v5, 0.0  ;;  %v5884_v48 = vsub.f32 %v5610_v49, %v5797_v47 }
 0x51f   : > { %v3146_v19 = vadd.f32 %v3145_v17, %v3144_v13  ;;  %v3119_v29 = vmul.f32 %v5870_v20, %v5870_v20  ;;  %v3157_v58 = vsel %vm428_vm1, %v3117_v6, 0.0  ;;  %v5891_v50 = vsub.f32 %v5621_v52, %v5797_v47 }
 0x520   : > { %v3120_v32 = vmul.f32 %v5877_v54, %v5877_v54  ;;  %v3159_v35 = vsel %vm428_vm1, %v3118_v33, 0.0  ;;  %v5898_v49 = vsub.f32 %v5633_v0, %v5797_v47  ;;  %v3121_v57 = vmul.f32 %v5884_v48, %v5884_v48 }
 0x521   : > { %v3148_v23 = vadd.f32 %v3147_v43, %v3146_v19  ;;  %v3161_v4 = vsel %vm428_vm1, %v3119_v29, 0.0  ;;  %v5905_v52 = vsub.f32 %v5638_v8, %v5797_v47  ;;  %v3122_v13 = vmul.f32 %v5891_v50, %v5891_v50 }
 0x522   : > { %v3163_v53 = vsel %vm428_vm1, %v3120_v32, 0.0  ;;  %v5912_v0 = vsub.f32 %v5640_v7, %v5797_v47  ;;  %v3123_v19 = vmul.f32 %v5898_v49, %v5898_v49  ;;  %v3165_v44 = vsel %vm428_vm1, %v3121_v57, 0.0 }
 0x523   : > { %v3150_v9 = vadd.f32 %v3149_v45, %v3148_v23  ;;  %v5919_v8 = vsub.f32 %v5642_v56, %v5797_v47  ;;  %v3124_v23 = vmul.f32 %v5905_v52, %v5905_v52  ;;  %v3167_v51 = vsel %vm428_vm1, %v3122_v13, 0.0 }
 0x524   : > { %v5926_v7 = vsub.f32 %v5644_v61, %v5797_v47  ;;  %v3169_v5 = vsel %vm428_vm1, %v3123_v19, 0.0  ;;  %v5933_v56 = vsub.f32 %v5648_v62, %v5797_v47  ;;  %v5940_v61 = vsub.f32 %v5743_v22, %v5797_v47 }
 0x525   : > { %v3152_v39 = vadd.f32 %v3151_v63, %v3150_v9  ;;  %v3125_v9 = vmul.f32 %v5912_v0, %v5912_v0  ;;  %v3171_v6 = vsel %vm428_vm1, %v3124_v23, 0.0  ;;  %v5947_v62 = vsub.f32 %v5750_v30, %v5797_v47 }
 0x526   : > { %v5954_v22 = vsub.f32 %v5756_v25, %v5797_v47  ;;  %v5961_v30 = vsub.f32 %v5762_v31, %v5797_v47  ;;  %v5968_v25 = vsub.f32 %v5766_v24, %v5797_v47  ;;  %v5975_v31 = vsub.f32 %v5770_v60, %v5797_v47 }
 0x527   : > { %v3154_v26 = vadd.f32 %v3153_v11, %v3152_v39  ;;  %v3126_v39 = vmul.f32 %v5919_v8, %v5919_v8  ;;  %v3173_v33 = vsel %vm428_vm1, %v3125_v9, 0.0  ;;  %v5982_v24 = vsub.f32 %v5774_v41, %v5797_v47 }
 0x528   : > { %v5989_v60 = vsub.f32 %v5778_v38, %v5797_v47  ;;  %v5996_v41 = vsub.f32 %v5782_v14, %v5797_v47  ;;  %v6003_v38 = vsub.f32 %v5786_v36, %v5797_v47  ;;  %v6010_v14 = vsub.f32 %v5792_v55, %v5797_v47 }
 0x529   : > { %v3156_v28 = vadd.f32 %v3155_v46, %v3154_v26  ;;  %v3127_v26 = vmul.f32 %v5926_v7, %v5926_v7  ;;  %v3175_v29 = vsel %vm428_vm1, %v3126_v39, 0.0 }
 0x52a   : > { %v3138_v36 = vmul.f32 %v6003_v38, %v6003_v38 }
 0x52b   : > { %v3158_v42 = vadd.f32 %v3157_v58, %v3156_v28  ;;  %v3128_v28 = vmul.f32 %v5933_v56, %v5933_v56  ;;  %v3177_v32 = vsel %vm428_vm1, %v3127_v26, 0.0 }
 0x52c   : > { %v3199_v55 = vsel %vm428_vm1, %v3138_v36, 0.0  ;;  %v3645_v36 = vld [vmem:[%s3723_s17 + $0x8] sm:$0xff] }
 0x52d   : > { %v3160_v34 = vadd.f32 %v3159_v35, %v3158_v42  ;;  %v3129_v42 = vmul.f32 %v5940_v61, %v5940_v61  ;;  %v3179_v57 = vsel %vm428_vm1, %v3128_v28, 0.0 }
 0x52f   : > { %v3162_v21 = vadd.f32 %v3161_v4, %v3160_v34  ;;  %v3130_v34 = vmul.f32 %v5947_v62, %v5947_v62  ;;  %v3181_v13 = vsel %vm428_vm1, %v3129_v42, 0.0 }
 0x531   : > { %v3164_v17 = vadd.f32 %v3163_v53, %v3162_v21  ;;  %v3131_v21 = vmul.f32 %v5954_v22, %v5954_v22  ;;  %v3183_v19 = vsel %vm428_vm1, %v3130_v34, 0.0 }
 0x533   : > { %v3166_v43 = vadd.f32 %v3165_v44, %v3164_v17  ;;  %v3132_v17 = vmul.f32 %v5961_v30, %v5961_v30  ;;  %v3185_v23 = vsel %vm428_vm1, %v3131_v21, 0.0 }
 0x535   : > { %v3168_v45 = vadd.f32 %v3167_v51, %v3166_v43  ;;  %v3133_v43 = vmul.f32 %v5968_v25, %v5968_v25  ;;  %v3187_v9 = vsel %vm428_vm1, %v3132_v17, 0.0 }
 0x537   : > { %v3170_v63 = vadd.f32 %v3169_v5, %v3168_v45  ;;  %v3134_v45 = vmul.f32 %v5975_v31, %v5975_v31  ;;  %v3189_v39 = vsel %vm428_vm1, %v3133_v43, 0.0 }
 0x539   : > { %v3172_v11 = vadd.f32 %v3171_v6, %v3170_v63  ;;  %v3135_v63 = vmul.f32 %v5982_v24, %v5982_v24  ;;  %v3191_v26 = vsel %vm428_vm1, %v3134_v45, 0.0 }
 0x53b   : > { %v3174_v46 = vadd.f32 %v3173_v33, %v3172_v11  ;;  %v3136_v11 = vmul.f32 %v5989_v60, %v5989_v60  ;;  %v3193_v28 = vsel %vm428_vm1, %v3135_v63, 0.0 }
 0x53d   : > { %v3176_v58 = vadd.f32 %v3175_v29, %v3174_v46  ;;  %v3137_v46 = vmul.f32 %v5996_v41, %v5996_v41 }
 0x53f   : > { %v3178_v35 = vadd.f32 %v3177_v32, %v3176_v58  ;;  %v3195_v58 = vsel %vm428_vm1, %v3136_v11, 0.0  ;;  %v3139_v32 = vmul.f32 %v6010_v14, %v6010_v14 }
 0x541   : > { %v3180_v4 = vadd.f32 %v3179_v57, %v3178_v35  ;;  %v3197_v35 = vsel %vm428_vm1, %v3137_v46, 0.0  ;;  %v3201_v57 = vsel %vm428_vm1, %v3139_v32, 0.0  ;;  %v3647_v32 = vld [vmem:[%s3723_s17 + $0x18] sm:$0xff] }
 0x543   : > { %v3182_v53 = vadd.f32 %v3181_v13, %v3180_v4 }
 0x545   : > { %v3184_v44 = vadd.f32 %v3183_v19, %v3182_v53 }
 0x547   : > { %v3186_v51 = vadd.f32 %v3185_v23, %v3184_v44 }
 0x549   : > { %v3188_v5 = vadd.f32 %v3187_v9, %v3186_v51 }
 0x54b   : > { %v3190_v6 = vadd.f32 %v3189_v39, %v3188_v5 }
 0x54d   : > { %v3192_v33 = vadd.f32 %v3191_v26, %v3190_v6 }
 0x54f   : > { %v3194_v29 = vadd.f32 %v3193_v28, %v3192_v33 }
 0x551   : > { %v3196_v42 = vadd.f32 %v3195_v58, %v3194_v29  ;;  %v3644_v29 = vld [vmem:[%s3723_s17] sm:$0xff] }
 0x553   : > { %v3198_v34 = vadd.f32 %v3197_v35, %v3196_v42  ;;  %v3648_v35 = vld [vmem:[%s3723_s17 + $0x20] sm:$0xff] }
 0x555   : > { %v3200_v47 = vadd.f32 %v3199_v55, %v3198_v34  ;;  %v3649_v55 = vld [vmem:[%s3723_s17 + $0x28] sm:$0xff] }
 0x557   : > { %v3202_v4 = vadd.f32 %v3201_v57, %v3200_v47 }
 0x559   : > { %v3203_v21 = vrot.slane %v3202_v4, 4 }
 0x55b   : > { %v3204_v13 = vadd.f32 %v3203_v21, %v3202_v4 }
 0x55d   : > { %v3205_v53 = vrot.slane %v3204_v13, 2 }
 0x55f   : > { %v3206_v17 = vadd.f32 %v3205_v53, %v3204_v13 }
 0x561   : > { %v3207_v19 = vrot.slane %v3206_v17, 1 }
 0x563   : > { %v3208_v44 = vadd.f32 %v3207_v19, %v3206_v17  ;;  %v3651_v17 = vld [vmem:[%s3723_s17 + $0x38] sm:$0xff] }
 0x565   : > { %v3209_v43 = vmul.f32 %v3208_v44, %v4738_v2  ;;  %v3652_v44 = vld [vmem:[%s3723_s17 + $0x40] sm:$0xff] }
 0x567   : > { %v3210_v23 = vadd.f32 1e-05, %v3209_v43 }
 0x569   : > { %3642 = vrsqrt.f32 %v3210_v23  ;;  %vm3217_vm13 = vweird.f32 %v3210_v23 }
 0x56f   : > { %v3643_v51 = vpop.eup %3642 }
 0x570   : > { %v3212_v45 = vmul.f32 %v3643_v51, %v3210_v23  ;;  %vm3218_vm12 = vweird.f32 %v3643_v51 }
 0x571   : > { %vm3219_vm14 = vmor %vm3217_vm13, %vm3218_vm12 }
 0x572   : > { %v3213_v9 = vmul.f32 %v3643_v51, %v3212_v45  ;;  %v3653_v45 = vld [vmem:[%s3723_s17 + $0x48] sm:$0xff] }
 0x574   : > { %v3214_v5 = vmul.f32 0.5, %v3213_v9 }
 0x576   : > { %v3215_v63 = vsub.f32 1.5, %v3214_v5  ;;  %v3654_v5 = vld [vmem:[%s3723_s17 + $0x50] sm:$0xff] }
 0x578   : > { %v3216_v39 = vmul.f32 %v3643_v51, %v3215_v63 }
 0x57a   : > { %v6024_v6 = vsel %vm3219_vm14, %v3643_v51, %v3216_v39 }
 0x57b   : > { %v3221_v2 = vmul.f32 %v6024_v6, %v5801_v40  ;;  %v3222_v11 = vmul.f32 %v6024_v6, %v5805_v18  ;;  %v3223_v26 = vmul.f32 %v6024_v6, %v5809_v15  ;;  %v3224_v33 = vmul.f32 %v6024_v6, %v5813_v10  ;;  %v3646_v15 = vld [vmem:[%s3723_s17 + $0x10] sm:$0xff] }
 0x57c   : > { %v3225_v46 = vmul.f32 %v6024_v6, %v5821_v1  ;;  %v3226_v28 = vmul.f32 %v6024_v6, %v5827_v37  ;;  %v3227_v40 = vmul.f32 %v6024_v6, %v5835_v3  ;;  %v3228_v10 = vmul.f32 %v6024_v6, %v5842_v59 }
 0x57d   : > { %v3253_v18 = vadd.f32 %v3644_v29, %v3221_v2  ;;  %v3254_v58 = vadd.f32 %v3645_v36, %v3222_v11  ;;  %v3255_v42 = vadd.f32 %v3646_v15, %v3223_v26  ;;  %v3256_v1 = vadd.f32 %v3647_v32, %v3224_v33  ;;  %v3655_v2 = vld [vmem:[%s3723_s17 + $0x58] sm:$0xff]  ;;  %v3656_v33 = vld [vmem:[%s3723_s17 + $0x60] sm:$0xff]  ;;  %v3658_v36 = vld [vmem:[%s3723_s17 + $0x70] sm:$0xff] }
 0x57e   : > { %v3229_v37 = vmul.f32 %v6024_v6, %v5849_v27  ;;  %v3257_v34 = vadd.f32 %v3648_v35, %v3225_v46  ;;  %v3230_v3 = vmul.f32 %v6024_v6, %v5856_v16  ;;  %v3231_v59 = vmul.f32 %v6024_v6, %v5863_v12  ;;  %v3650_v27 = vld [vmem:[%s3723_s17 + $0x30] sm:$0xff] }
 0x57f   : > { %v3258_v47 = vadd.f32 %v3649_v55, %v3226_v28  ;;  %v3259_v57 = vadd.f32 %v3650_v27, %v3227_v40  ;;  %v3285_v4 = vmax.f32 %v3253_v18, 0.0  ;;  %v3286_v21 = vmax.f32 %v3254_v58, 0.0  ;;  %v3657_v40 = vld [vmem:[%s3723_s17 + $0x68] sm:$0xff]  ;;  %v3662_v55 = vld [vmem:[%s3723_s17 + $0x90] sm:$0xff] }
 0x580   : > { %v3287_v13 = vmax.f32 %v3255_v42, 0.0  ;;  %v3232_v53 = vmul.f32 %v6024_v6, %v5870_v20  ;;  %v3260_v19 = vadd.f32 %v3651_v17, %v3228_v10  ;;  %v3288_v16 = vmax.f32 %v3256_v1, 0.0  ;;  %v3659_v42 = vld [vmem:[%s3723_s17 + $0x78] sm:$0xff]  ;;  %v3660_v1 = vld [vmem:[%s3723_s17 + $0x80] sm:$0xff] }
 0x581   : > { %v3233_v12 = vmul.f32 %v6024_v6, %v5877_v54  ;;  %v3261_v43 = vadd.f32 %v3652_v44, %v3229_v37  ;;  %v3289_v23 = vmax.f32 %v3257_v34, 0.0  ;;  %3317 = vst.msk [vmem:[%s6054_s23] sm:$0xff] %vm428_vm1, %v3285_v4  ;;  %v3234_v51 = vmul.f32 %v6024_v6, %v5884_v48  ;;  %v3661_v34 = vld [vmem:[%s3723_s17 + $0x88] sm:$0xff]  ;;  %v3666_v44 = vld [vmem:[%s3723_s17 + $0xb0] sm:$0xff] }
 0x582   : > { %v3262_v20 = vadd.f32 %v3653_v45, %v3230_v3  ;;  %v3290_v9 = vmax.f32 %v3258_v47, 0.0  ;;  %3318 = vst.msk [vmem:[%s6054_s23 + $0x8] sm:$0xff] %vm428_vm1, %v3286_v21  ;;  %v3235_v54 = vmul.f32 %v6024_v6, %v5891_v50  ;;  %v3263_v63 = vadd.f32 %v3654_v5, %v3231_v59 }
 0x583   : > { %v3291_v39 = vmax.f32 %v3259_v57, 0.0  ;;  %3319 = vst.msk [vmem:[%s6054_s23 + $0x10] sm:$0xff] %vm428_vm1, %v3287_v13  ;;  %v3236_v48 = vmul.f32 %v6024_v6, %v5898_v49  ;;  %v3264_v11 = vadd.f32 %v3655_v2, %v3232_v53  ;;  %v3292_v26 = vmax.f32 %v3260_v19, 0.0  ;;  %v3663_v57 = vld [vmem:[%s3723_s17 + $0x98] sm:$0xff]  ;;  %v3664_v13 = vld [vmem:[%s3723_s17 + $0xa0] sm:$0xff]  ;;  %v3665_v19 = vld [vmem:[%s3723_s17 + $0xa8] sm:$0xff] }
 0x584   : > { %3320 = vst.msk [vmem:[%s6054_s23 + $0x18] sm:$0xff] %vm428_vm1, %v3288_v16  ;;  %v3237_v50 = vmul.f32 %v6024_v6, %v5905_v52  ;;  %v3265_v46 = vadd.f32 %v3656_v33, %v3233_v12  ;;  %v3293_v28 = vmax.f32 %v3261_v43, 0.0  ;;  %v3238_v49 = vmul.f32 %v6024_v6, %v5912_v0  ;;  %v3670_v2 = vld [vmem:[%s3723_s17 + $0xd0] sm:$0xff] }
 0x585   : > { %3321 = vst.msk [vmem:[%s6054_s23 + $0x20] sm:$0xff] %vm428_vm1, %v3289_v23  ;;  %v3266_v29 = vadd.f32 %v3657_v40, %v3234_v51  ;;  %v3294_v18 = vmax.f32 %v3262_v20, 0.0  ;;  %v3239_v52 = vmul.f32 %v6024_v6, %v5919_v8  ;;  %v3267_v58 = vadd.f32 %v3658_v36, %v3235_v54  ;;  %v3667_v51 = vld [vmem:[%s3723_s17 + $0xb8] sm:$0xff]  ;;  %v3673_v40 = vld [vmem:[%s3723_s17 + $0xe8] sm:$0xff] }
 0x586   : > { %3322 = vst.msk [vmem:[%s6054_s23 + $0x28] sm:$0xff] %vm428_vm1, %v3290_v9  ;;  %v3295_v15 = vmax.f32 %v3263_v63, 0.0  ;;  %v3240_v0 = vmul.f32 %v6024_v6, %v5926_v7  ;;  %v3268_v10 = vadd.f32 %v3659_v42, %v3236_v48  ;;  %v3296_v32 = vmax.f32 %v3264_v11, 0.0  ;;  %v3668_v9 = vld [vmem:[%s3723_s17 + $0xc0] sm:$0xff]  ;;  %v3669_v63 = vld [vmem:[%s3723_s17 + $0xc8] sm:$0xff]  ;;  %v3675_v36 = vld [vmem:[%s3723_s17 + $0xf8] sm:$0xff] }
 0x587   : > { %3323 = vst.msk [vmem:[%s6054_s23 + $0x30] sm:$0xff] %vm428_vm1, %v3291_v39  ;;  %v3241_v8 = vmul.f32 %v6024_v6, %v5933_v56  ;;  %v3269_v37 = vadd.f32 %v3660_v1, %v3237_v50  ;;  %v3297_v35 = vmax.f32 %v3265_v46, 0.0  ;;  %v3242_v7 = vmul.f32 %v6024_v6, %v5940_v61  ;;  %v3671_v50 = vld [vmem:[%s3723_s17 + $0xd8] sm:$0xff] }
 0x588   : > { %3324 = vst.msk [vmem:[%s6054_s23 + $0x38] sm:$0xff] %vm428_vm1, %v3292_v26  ;;  %v3270_v3 = vadd.f32 %v3661_v34, %v3238_v49  ;;  %v3298_v59 = vmax.f32 %v3266_v29, 0.0  ;;  %v3243_v56 = vmul.f32 %v6024_v6, %v5947_v62  ;;  %v3271_v47 = vadd.f32 %v3662_v55, %v3239_v52 }
 0x589   : > { %3325 = vst.msk [vmem:[%s6054_s23 + $0x40] sm:$0xff] %vm428_vm1, %v3293_v28  ;;  %v3299_v27 = vmax.f32 %v3267_v58, 0.0  ;;  %v3244_v61 = vmul.f32 %v6024_v6, %v5954_v22  ;;  %v3272_v4 = vadd.f32 %v3663_v57, %v3240_v0  ;;  %v3300_v21 = vmax.f32 %v3268_v10, 0.0  ;;  %v3672_v28 = vld [vmem:[%s3723_s17 + $0xe0] sm:$0xff] }
 0x58a   : > { %3326 = vst.msk [vmem:[%s6054_s23 + $0x48] sm:$0xff] %vm428_vm1, %v3294_v18  ;;  %v3245_v62 = vmul.f32 %v6024_v6, %v5961_v30  ;;  %v3273_v53 = vadd.f32 %v3664_v13, %v3241_v8  ;;  %v3301_v17 = vmax.f32 %v3269_v37, 0.0  ;;  %v3246_v22 = vmul.f32 %v6024_v6, %v5968_v25 }
 0x58b   : > { %3327 = vst.msk [vmem:[%s6054_s23 + $0x50] sm:$0xff] %vm428_vm1, %v3295_v15  ;;  %v3274_v16 = vadd.f32 %v3665_v19, %v3242_v7  ;;  %v3302_v12 = vmax.f32 %v3270_v3, 0.0  ;;  %v3247_v30 = vmul.f32 %v6024_v6, %v5975_v31  ;;  %v3275_v43 = vadd.f32 %v3666_v44, %v3243_v56 }
 0x58c   : > { %3328 = vst.msk [vmem:[%s6054_s23 + $0x58] sm:$0xff] %vm428_vm1, %v3296_v32  ;;  %v3303_v23 = vmax.f32 %v3271_v47, 0.0  ;;  %v3248_v25 = vmul.f32 %v6024_v6, %v5982_v24  ;;  %v3276_v45 = vadd.f32 %v3667_v51, %v3244_v61  ;;  %v3304_v20 = vmax.f32 %v3272_v4, 0.0 }
 0x58d   : > { %3329 = vst.msk [vmem:[%s6054_s23 + $0x60] sm:$0xff] %vm428_vm1, %v3297_v35  ;;  %v3249_v31 = vmul.f32 %v6024_v6, %v5989_v60  ;;  %v3277_v54 = vadd.f32 %v3668_v9, %v3245_v62  ;;  %v3305_v5 = vmax.f32 %v3273_v53, 0.0  ;;  %v3250_v24 = vmul.f32 %v6024_v6, %v5996_v41 }
 0x58e   : > { %3330 = vst.msk [vmem:[%s6054_s23 + $0x68] sm:$0xff] %vm428_vm1, %v3298_v59  ;;  %v3278_v39 = vadd.f32 %v3669_v63, %v3246_v22  ;;  %v3306_v48 = vmax.f32 %v3274_v16, 0.0  ;;  %v3251_v60 = vmul.f32 %v6024_v6, %v6003_v38  ;;  %v3279_v11 = vadd.f32 %v3670_v2, %v3247_v30 }
 0x58f   : > { %3331 = vst.msk [vmem:[%s6054_s23 + $0x70] sm:$0xff] %vm428_vm1, %v3299_v27  ;;  %v3307_v26 = vmax.f32 %v3275_v43, 0.0  ;;  %v3252_v41 = vmul.f32 %v6024_v6, %v6010_v14  ;;  %v3280_v33 = vadd.f32 %v3671_v50, %v3248_v25  ;;  %v3308_v46 = vmax.f32 %v3276_v45, 0.0  ;;  %v3674_v14 = vld [vmem:[%s3723_s17 + $0xf0] sm:$0xff] }
 0x590   : > { %3332 = vst.msk [vmem:[%s6054_s23 + $0x78] sm:$0xff] %vm428_vm1, %v3300_v21  ;;  %v3281_v38 = vadd.f32 %v3672_v28, %v3249_v31  ;;  %v3309_v49 = vmax.f32 %v3277_v54, 0.0  ;;  %v3282_v29 = vadd.f32 %v3673_v40, %v3250_v24  ;;  %v3310_v18 = vmax.f32 %v3278_v39, 0.0 }
 0x591   : > { %3333 = vst.msk [vmem:[%s6054_s23 + $0x80] sm:$0xff] %vm428_vm1, %v3301_v17  ;;  %v3283_v6 = vadd.f32 %v3674_v14, %v3251_v60  ;;  %v3311_v52 = vmax.f32 %v3279_v11, 0.0  ;;  %v3284_v58 = vadd.f32 %v3675_v36, %v3252_v41  ;;  %v3312_v15 = vmax.f32 %v3280_v33, 0.0 }
 0x592   : > { %3334 = vst.msk [vmem:[%s6054_s23 + $0x88] sm:$0xff] %vm428_vm1, %v3302_v12  ;;  %v3313_v0 = vmax.f32 %v3281_v38, 0.0  ;;  %v3314_v42 = vmax.f32 %v3282_v29, 0.0 }
 0x593   : > { %3335 = vst.msk [vmem:[%s6054_s23 + $0x90] sm:$0xff] %vm428_vm1, %v3303_v23  ;;  %v3315_v10 = vmax.f32 %v3283_v6, 0.0  ;;  %v3316_v32 = vmax.f32 %v3284_v58, 0.0 }
 0x594   : > { %3336 = vst.msk [vmem:[%s6054_s23 + $0x98] sm:$0xff] %vm428_vm1, %v3304_v20 }
 0x595   : > { %3337 = vst.msk [vmem:[%s6054_s23 + $0xa0] sm:$0xff] %vm428_vm1, %v3305_v5 }
 0x596   : > { %3338 = vst.msk [vmem:[%s6054_s23 + $0xa8] sm:$0xff] %vm428_vm1, %v3306_v48 }
 0x597   : > { %3339 = vst.msk [vmem:[%s6054_s23 + $0xb0] sm:$0xff] %vm428_vm1, %v3307_v26 }
 0x598   : > { %3340 = vst.msk [vmem:[%s6054_s23 + $0xb8] sm:$0xff] %vm428_vm1, %v3308_v46 }
 0x599   : > { %3341 = vst.msk [vmem:[%s6054_s23 + $0xc0] sm:$0xff] %vm428_vm1, %v3309_v49 }
 0x59a   : > { %3342 = vst.msk [vmem:[%s6054_s23 + $0xc8] sm:$0xff] %vm428_vm1, %v3310_v18 }
 0x59b   : > { %3343 = vst.msk [vmem:[%s6054_s23 + $0xd0] sm:$0xff] %vm428_vm1, %v3311_v52 }
 0x59c   : > { %3344 = vst.msk [vmem:[%s6054_s23 + $0xd8] sm:$0xff] %vm428_vm1, %v3312_v15 }
 0x59d   : > { %3345 = vst.msk [vmem:[%s6054_s23 + $0xe0] sm:$0xff] %vm428_vm1, %v3313_v0 }
 0x59e   : > { %3346 = vst.msk [vmem:[%s6054_s23 + $0xe8] sm:$0xff] %vm428_vm1, %v3314_v42 }
 0x59f   : > { %3347 = vst.msk [vmem:[%s6054_s23 + $0xf0] sm:$0xff] %vm428_vm1, %v3315_v10 }
 0x5a0   : > { %3348 = vst.msk [vmem:[%s6054_s23 + $0xf8] sm:$0xff] %vm428_vm1, %v3316_v32 }
 0x5a1 PF: > { %s13_s12 = sadd.s32 1, %s3682_s12  }
 0x5a2   : > { %p10_p4 = scmp.ge.s32.totalorder %s13_s12, 4  }
 0x5a4   :  { %12 = sbr.rel (!%p10_p4) target bundleno = 1 (0x1), region = 66 }

</bundles_post_ra>
